<compile_context>
chip_gen: v5e
topology: v5e:2x2
jax: 0.10.0
libtpu: 0.0.40
codegen_flags: <defaults>
</compile_context>

<pallas_src>
import jax
import jax.numpy as jnp
from jax.experimental import pallas as pl
from jax.experimental.pallas import tpu as pltpu

EPS = 1e-5


def lenet_fused_kernel(x9_ref, w1_ref, b1_ref, ga1_ref, be1_ref,
                       w2_ref, b2_ref, ga2_ref, be2_ref,
                       wf1_ref, bf1_ref, wf2_ref, bf2_ref, wf3_ref, bf3_ref,
                       o_ref,
                       y1s_ref, p1s_ref, y2s_ref, p2s_ref):
    f32, bf16 = jnp.float32, jnp.bfloat16
    B = o_ref.shape[0]
    N1 = B * 169          # pooled-1 rows (b, ph, pw); also the conv2 row grid
    R1 = 4 * N1           # conv1 rows, ordered (dh, dw, b, ph, pw)

    # ---- conv1 (1->6, 3x3): ONE f32 MXU matmul over host-built im2col rows
    acc1 = jnp.dot(x9_ref[...], w1_ref[...], preferred_element_type=f32)   # [R1,128]
    y1 = acc1 + b1_ref[...]

    # ---- BN1 (training-mode batch stats, biased var) + ReLU.
    # Every row of y1 is a valid conv1 output position -> no mask needed.
    n1 = float(B * 26 * 26)
    mean1 = jnp.sum(y1, axis=0, keepdims=True) * (1.0 / n1)
    var1 = jnp.sum(y1 * y1, axis=0, keepdims=True) * (1.0 / n1) - mean1 * mean1
    inv1 = jax.lax.rsqrt(var1 + EPS)
    y1s_ref[...] = jnp.maximum(
        (y1 - mean1) * inv1 * ga1_ref[...] + be1_ref[...], 0.0).astype(bf16)

    # ---- maxpool1 (2x2/2): row order makes the 4 pool taps 4 contiguous blocks
    p1s_ref[...] = jnp.zeros(p1s_ref.shape, p1s_ref.dtype)   # zero tap-overread pad rows
    p00 = y1s_ref[pl.ds(0 * N1, N1), :].astype(f32)
    p01 = y1s_ref[pl.ds(1 * N1, N1), :].astype(f32)
    p10 = y1s_ref[pl.ds(2 * N1, N1), :].astype(f32)
    p11 = y1s_ref[pl.ds(3 * N1, N1), :].astype(f32)
    p1s_ref[pl.ds(0, N1), :] = jnp.maximum(jnp.maximum(p00, p01),
                                           jnp.maximum(p10, p11))

    # ---- conv2 (6->16, 3x3): pack 9 taps x 6 cin into disjoint 8-lane groups
    # (pltpu.roll == jnp.roll: positive shift moves data to higher lanes), then
    # a single bf16 MXU dot. Weight rows are laid out as 8*t + cin on the host.
    im2 = p1s_ref[pl.ds(0, N1), :]
    for t in range(1, 9):
        off = (t // 3) * 13 + (t % 3)
        im2 = im2 + pltpu.roll(p1s_ref[pl.ds(off, N1), :], 8 * t, 1)
    acc2 = jnp.dot(im2.astype(bf16), w2_ref[...], preferred_element_type=f32)  # [N1,128]
    y2 = acc2 + b2_ref[...]

    # ---- BN2 + ReLU. Valid conv2 rows inside each 13x13 block are ph<11, pw<11.
    # Mask built in-kernel from an iota (f32 floor-div; +0.5 guards rounding).
    r = jax.lax.broadcasted_iota(jnp.int32, (N1, 1), 0).astype(f32)
    q = jnp.floor((r + 0.5) * (1.0 / 13.0))              # = b*13 + ph
    pw = r - 13.0 * q
    ph = q - 13.0 * jnp.floor((q + 0.5) * (1.0 / 13.0))
    valid = jnp.logical_and(pw < 10.5, ph < 10.5)
    n2 = float(B * 11 * 11)
    y2m = jnp.where(valid, y2, 0.0)
    mean2 = jnp.sum(y2m, axis=0, keepdims=True) * (1.0 / n2)
    var2 = jnp.sum(y2m * y2m, axis=0, keepdims=True) * (1.0 / n2) - mean2 * mean2
    inv2 = jax.lax.rsqrt(var2 + EPS)
    y2s_ref[...] = jnp.maximum(
        (y2 - mean2) * inv2 * ga2_ref[...] + be2_ref[...], 0.0)

    # ---- maxpool2 (2x2/2) fused with its gather: O(B) strided row slices.
    # Only valid (ph,pw <= 9) rows are ever read here.
    for b in range(B):
        for qh in range(5):
            base = b * 169 + qh * 26
            v = jnp.maximum(
                jnp.maximum(y2s_ref[pl.ds(base, 5, stride=2), :],
                            y2s_ref[pl.ds(base + 1, 5, stride=2), :]),
                jnp.maximum(y2s_ref[pl.ds(base + 13, 5, stride=2), :],
                            y2s_ref[pl.ds(base + 14, 5, stride=2), :]))
            p2s_ref[pl.ds(b * 25 + qh * 5, 5), :] = v

    # ---- fc1 + ReLU: 8 spatial taps x 16 channels per 128-lane group -> 4 dots
    h1 = jnp.zeros((B, 128), f32)
    for g in range(4):
        lhs = p2s_ref[pl.ds(g * 8, B, stride=25), :]
        for k in range(1, 8):
            s = g * 8 + k
            if s >= 25:
                break
            lhs = lhs + pltpu.roll(p2s_ref[pl.ds(s, B, stride=25), :], 16 * k, 1)
        h1 = h1 + jnp.dot(lhs.astype(bf16), wf1_ref[g], preferred_element_type=f32)
    h1 = jnp.maximum(h1 + bf1_ref[...], 0.0).astype(bf16)

    # ---- fc2 + ReLU, fc3 (lanes 10..127 of the output are zero padding)
    h2 = jnp.maximum(
        jnp.dot(h1, wf2_ref[...], preferred_element_type=f32) + bf2_ref[...], 0.0
    ).astype(bf16)
    o_ref[...] = jnp.dot(h2, wf3_ref[...], preferred_element_type=f32) + bf3_ref[...]


def _vec128(v):
    return jnp.pad(v.astype(jnp.float32), (0, 128 - v.shape[0])).reshape(1, 128)


def _vmem_estimate_bytes(B):
    R1, N1 = B * 676, B * 169
    inputs = (R1 * 128 * 4 + 128 * 128 * 4 + 4 * 128 * 128 * 2
              + 3 * 128 * 128 * 2 + 9 * 128 * 4)
    scratch = (R1 * 128 * 2 + (N1 + 32) * 128 * 4 + N1 * 128 * 4
               + B * 25 * 128 * 4)
    temps = 3 * R1 * 128 * 4 + 4 * N1 * 128 * 4     # conv/BN value temporaries
    return inputs + scratch + temps


def lenet_forward(x_nchw, params):
    f32, bf16 = jnp.float32, jnp.bfloat16
    B = x_nchw.shape[0]
    N1 = B * 169
    R1 = 4 * N1

    # VMEM budget (generation-aware): keep well under v7x's 64 MiB physical VMEM.
    vmem_est = _vmem_estimate_bytes(B)
    assert vmem_est <= 48 * 1024 * 1024, (
        f"LeNet fused kernel needs ~{vmem_est} B of VMEM at B={B}; "
        "reduce the batch or add a batch grid axis.")

    # ---- conv1 im2col on host: rows ordered (dh, dw, b, ph, pw), 9 taps in lanes
    img = x_nchw.astype(f32)[:, 0]                               # [B,28,28]
    taps = [img[:, ki:ki + 26, kj:kj + 26] for ki in range(3) for kj in range(3)]
    pat = jnp.stack(taps, axis=-1)                               # [B,26,26,9] (b,h,w,t)
    pat = pat.reshape(B, 13, 2, 13, 2, 9)                        # (b,ph,dh,pw,dw,t)
    pat = jnp.transpose(pat, (2, 4, 0, 1, 3, 5))                 # (dh,dw,b,ph,pw,t)
    x9 = jnp.pad(pat.reshape(R1, 9), ((0, 0), (0, 128 - 9)))     # [R1,128] f32

    # ---- conv1 weights: [tap, cout] padded to [128,128] f32
    w1p = jnp.pad(params['conv1_w'].reshape(6, 9).T,
                  ((0, 128 - 9), (0, 128 - 6))).astype(f32)

    # ---- conv2 weights packed to match the 8-lane tap groups: row = 8*t + cin
    w2 = jnp.transpose(params['conv2_w'], (2, 3, 1, 0)).reshape(9, 6, 16)
    w2 = jnp.pad(w2, ((0, 0), (0, 2), (0, 0))).reshape(72, 16)
    w2p = jnp.pad(w2, ((0, 128 - 72), (0, 128 - 16))).astype(bf16)

    # ---- fc1 weights: group g holds spatial taps s=8g+k, lane row = 16*k + c
    wf1 = params['fc1_w'].reshape(120, 16, 25)                   # [j, c, s]
    wf1 = jnp.transpose(wf1, (2, 1, 0))                          # [s, c, j]
    wf1 = jnp.pad(wf1, ((0, 32 - 25), (0, 0), (0, 128 - 120)))   # [32,16,128]
    wf1p = wf1.reshape(4, 128, 128).astype(bf16)                 # [g, 16k+c, j]

    wf2p = jnp.pad(params['fc2_w'].T, ((0, 8), (0, 44))).astype(bf16)    # [128,128]
    wf3p = jnp.pad(params['fc3_w'].T, ((0, 44), (0, 118))).astype(bf16)  # [128,128]

    b1, ga1, be1 = _vec128(params['conv1_b']), _vec128(params['bn1_g']), _vec128(params['bn1_b'])
    b2, ga2, be2 = _vec128(params['conv2_b']), _vec128(params['bn2_g']), _vec128(params['bn2_b'])
    bf1, bf2, bf3 = _vec128(params['fc1_b']), _vec128(params['fc2_b']), _vec128(params['fc3_b'])

    vmem = pl.BlockSpec(memory_space=pltpu.MemorySpace.VMEM)
    out = pl.pallas_call(
        lenet_fused_kernel,
        out_shape=jax.ShapeDtypeStruct((B, 128), f32),
        in_specs=[vmem] * 15,
        out_specs=vmem,
        scratch_shapes=[
            pltpu.VMEM((R1, 128), bf16),       # conv1 + bn1 + relu rows (big -> bf16)
            pltpu.VMEM((N1 + 32, 128), f32),   # pooled1 rows (+ tap-overread pad)
            pltpu.VMEM((N1, 128), f32),        # conv2 + bn2 + relu rows
            pltpu.VMEM((B * 25, 128), f32),    # pooled2 rows
        ],
        compiler_params=pltpu.CompilerParams(
            vmem_limit_bytes=min(max(2 * vmem_est, 16 * 1024 * 1024),
                                 48 * 1024 * 1024)),
    )(x9, w1p, b1, ga1, be1,
      w2p, b2, ga2, be2,
      wf1p, bf1, wf2p, bf2, wf3p, bf3)

    # dequant stub: identity; drop the zero-padded logit lanes
    return out[:, :10]


if __name__ == "__main__":
    key = jax.random.PRNGKey(0)
    ks = jax.random.split(key, 13)
    params = {
        'conv1_w': 0.30 * jax.random.normal(ks[0], (6, 1, 3, 3), jnp.float32),
        'conv1_b': 0.10 * jax.random.normal(ks[1], (6,), jnp.float32),
        'bn1_g':   1.0 + 0.1 * jax.random.normal(ks[2], (6,), jnp.float32),
        'bn1_b':   0.10 * jax.random.normal(ks[3], (6,), jnp.float32),
        'conv2_w': 0.10 * jax.random.normal(ks[4], (16, 6, 3, 3), jnp.float32),
        'conv2_b': 0.10 * jax.random.normal(ks[5], (16,), jnp.float32),
        'bn2_g':   1.0 + 0.1 * jax.random.normal(ks[6], (16,), jnp.float32),
        'bn2_b':   0.10 * jax.random.normal(ks[7], (16,), jnp.float32),
        'fc1_w':   0.05 * jax.random.normal(ks[8], (120, 400), jnp.float32),
        'fc1_b':   jnp.zeros((120,), jnp.float32),
        'fc2_w':   0.09 * jax.random.normal(ks[9], (84, 120), jnp.float32),
        'fc2_b':   jnp.zeros((84,), jnp.float32),
        'fc3_w':   0.10 * jax.random.normal(ks[10], (10, 84), jnp.float32),
        'fc3_b':   jnp.zeros((10,), jnp.float32),
    }
    x = jax.random.normal(ks[11], (2, 1, 28, 28), jnp.float32)

    out = jax.jit(lenet_forward)(x, params)
    jax.block_until_ready(out)
    assert out.shape == (2, 10) and out.dtype == jnp.float32
    assert bool(jnp.all(jnp.isfinite(out)))
    print("KERNEL_OK")
</pallas_src>

<mosaic_0001>
module attributes {stable_mosaic.version = 11 : i64} {
  func.func @lenet_fused_kernel(%arg0: memref<1352x128xf32, #tpu.memory_space<vmem>>, %arg1: memref<128x128xf32, #tpu.memory_space<vmem>>, %arg2: memref<1x128xf32, #tpu.memory_space<vmem>>, %arg3: memref<1x128xf32, #tpu.memory_space<vmem>>, %arg4: memref<1x128xf32, #tpu.memory_space<vmem>>, %arg5: memref<128x128xbf16, #tpu.memory_space<vmem>>, %arg6: memref<1x128xf32, #tpu.memory_space<vmem>>, %arg7: memref<1x128xf32, #tpu.memory_space<vmem>>, %arg8: memref<1x128xf32, #tpu.memory_space<vmem>>, %arg9: memref<4x128x128xbf16, #tpu.memory_space<vmem>>, %arg10: memref<1x128xf32, #tpu.memory_space<vmem>>, %arg11: memref<128x128xbf16, #tpu.memory_space<vmem>>, %arg12: memref<1x128xf32, #tpu.memory_space<vmem>>, %arg13: memref<128x128xbf16, #tpu.memory_space<vmem>>, %arg14: memref<1x128xf32, #tpu.memory_space<vmem>>, %arg15: memref<2x128xf32, #tpu.memory_space<vmem>>, %arg16: memref<1352x128xbf16, #tpu.memory_space<vmem>>, %arg17: memref<370x128xf32, #tpu.memory_space<vmem>>, %arg18: memref<338x128xf32, #tpu.memory_space<vmem>>, %arg19: memref<50x128xf32, #tpu.memory_space<vmem>>) attributes {dimension_semantics = [], scalar_prefetch = 0 : i64, scratch_operands = 4 : i64, tpu.core_type = #tpu.core_type<tc>} {
    %c0 = arith.constant 0 : index
    %c0_0 = arith.constant 0 : index
    %0 = vector.load %arg0[%c0, %c0_0] : memref<1352x128xf32, #tpu.memory_space<vmem>>, vector<1352x128xf32>
    %c0_1 = arith.constant 0 : index
    %c0_2 = arith.constant 0 : index
    %1 = vector.load %arg1[%c0_1, %c0_2] : memref<128x128xf32, #tpu.memory_space<vmem>>, vector<128x128xf32>
    %cst = arith.constant dense<0.000000e+00> : vector<1352x128xf32>
    %2 = tpu.matmul %0, %1, %cst {dimension_numbers = #tpu.dot_dimension_numbers<[1], [0], [0], [1], [0, 0, 1, 1], [], []>} : vector<1352x128xf32>, vector<128x128xf32>, vector<1352x128xf32> -> vector<1352x128xf32>
    %c0_3 = arith.constant 0 : index
    %c0_4 = arith.constant 0 : index
    %3 = vector.load %arg2[%c0_3, %c0_4] : memref<1x128xf32, #tpu.memory_space<vmem>>, vector<1x128xf32>
    %4 = vector.broadcast %3 : vector<1x128xf32> to vector<1352x128xf32>
    %5 = arith.addf %2, %4 : vector<1352x128xf32>
    %cst_5 = arith.constant dense<0.000000e+00> : vector<128xf32>
    %6 = vector.multi_reduction <add>, %5, %cst_5 [0] : vector<1352x128xf32> to vector<128xf32>
    %7 = vector.shape_cast %6 : vector<128xf32> to vector<1x128xf32>
    %cst_6 = arith.constant 7.396450e-04 : f32
    %8 = vector.broadcast %cst_6 : f32 to vector<1x128xf32>
    %9 = arith.mulf %7, %8 : vector<1x128xf32>
    %10 = arith.mulf %5, %5 : vector<1352x128xf32>
    %cst_7 = arith.constant dense<0.000000e+00> : vector<128xf32>
    %11 = vector.multi_reduction <add>, %10, %cst_7 [0] : vector<1352x128xf32> to vector<128xf32>
    %12 = vector.shape_cast %11 : vector<128xf32> to vector<1x128xf32>
    %cst_8 = arith.constant 7.396450e-04 : f32
    %13 = vector.broadcast %cst_8 : f32 to vector<1x128xf32>
    %14 = arith.mulf %12, %13 : vector<1x128xf32>
    %15 = arith.mulf %9, %9 : vector<1x128xf32>
    %16 = arith.subf %14, %15 : vector<1x128xf32>
    %cst_9 = arith.constant 9.99999974E-6 : f32
    %17 = vector.broadcast %cst_9 : f32 to vector<1x128xf32>
    %18 = arith.addf %16, %17 : vector<1x128xf32>
    %19 = math.rsqrt %18 : vector<1x128xf32>
    %20 = vector.broadcast %9 : vector<1x128xf32> to vector<1352x128xf32>
    %21 = arith.subf %5, %20 : vector<1352x128xf32>
    %22 = vector.broadcast %19 : vector<1x128xf32> to vector<1352x128xf32>
    %23 = arith.mulf %21, %22 : vector<1352x128xf32>
    %c0_10 = arith.constant 0 : index
    %c0_11 = arith.constant 0 : index
    %24 = vector.load %arg3[%c0_10, %c0_11] : memref<1x128xf32, #tpu.memory_space<vmem>>, vector<1x128xf32>
    %25 = vector.broadcast %24 : vector<1x128xf32> to vector<1352x128xf32>
    %26 = arith.mulf %23, %25 : vector<1352x128xf32>
    %c0_12 = arith.constant 0 : index
    %c0_13 = arith.constant 0 : index
    %27 = vector.load %arg4[%c0_12, %c0_13] : memref<1x128xf32, #tpu.memory_space<vmem>>, vector<1x128xf32>
    %28 = vector.broadcast %27 : vector<1x128xf32> to vector<1352x128xf32>
    %29 = arith.addf %26, %28 : vector<1352x128xf32>
    %cst_14 = arith.constant 0.000000e+00 : f32
    %30 = vector.broadcast %cst_14 : f32 to vector<1352x128xf32>
    %31 = arith.maximumf %29, %30 : vector<1352x128xf32>
    %32 = arith.truncf %31 : vector<1352x128xf32> to vector<1352x128xbf16>
    %c0_15 = arith.constant 0 : index
    %c0_16 = arith.constant 0 : index
    %33 = vector.load %arg16[%c0_15, %c0_16] : memref<1352x128xbf16, #tpu.memory_space<vmem>>, vector<1352x128xbf16>
    tpu.vector_store %arg16[%c0_15, %c0_16], %32 {strides = array<i32>} : memref<1352x128xbf16, #tpu.memory_space<vmem>>, vector<1352x128xbf16>,
    %cst_17 = arith.constant 0.000000e+00 : f32
    %34 = vector.broadcast %cst_17 : f32 to vector<370x128xf32>
    %c0_18 = arith.constant 0 : index
    %c0_19 = arith.constant 0 : index
    %35 = vector.load %arg17[%c0_18, %c0_19] : memref<370x128xf32, #tpu.memory_space<vmem>>, vector<370x128xf32>
    tpu.vector_store %arg17[%c0_18, %c0_19], %34 {strides = array<i32>} : memref<370x128xf32, #tpu.memory_space<vmem>>, vector<370x128xf32>,
    %c0_20 = arith.constant 0 : index
    %c0_21 = arith.constant 0 : index
    %36 = vector.load %arg16[%c0_20, %c0_21] : memref<1352x128xbf16, #tpu.memory_space<vmem>>, vector<338x128xbf16>
    %37 = arith.extf %36 : vector<338x128xbf16> to vector<338x128xf32>
    %c338 = arith.constant 338 : index
    %c0_22 = arith.constant 0 : index
    %38 = vector.load %arg16[%c338, %c0_22] : memref<1352x128xbf16, #tpu.memory_space<vmem>>, vector<338x128xbf16>
    %39 = arith.extf %38 : vector<338x128xbf16> to vector<338x128xf32>
    %c676 = arith.constant 676 : index
    %c0_23 = arith.constant 0 : index
    %40 = vector.load %arg16[%c676, %c0_23] : memref<1352x128xbf16, #tpu.memory_space<vmem>>, vector<338x128xbf16>
    %41 = arith.extf %40 : vector<338x128xbf16> to vector<338x128xf32>
    %c1014 = arith.constant 1014 : index
    %c0_24 = arith.constant 0 : index
    %42 = vector.load %arg16[%c1014, %c0_24] : memref<1352x128xbf16, #tpu.memory_space<vmem>>, vector<338x128xbf16>
    %43 = arith.extf %42 : vector<338x128xbf16> to vector<338x128xf32>
    %44 = arith.maximumf %37, %39 : vector<338x128xf32>
    %45 = arith.maximumf %41, %43 : vector<338x128xf32>
    %46 = arith.maximumf %44, %45 : vector<338x128xf32>
    %c0_25 = arith.constant 0 : index
    %c0_26 = arith.constant 0 : index
    %47 = vector.load %arg17[%c0_25, %c0_26] : memref<370x128xf32, #tpu.memory_space<vmem>>, vector<338x128xf32>
    tpu.vector_store %arg17[%c0_25, %c0_26], %46 {strides = array<i32>} : memref<370x128xf32, #tpu.memory_space<vmem>>, vector<338x128xf32>,
    %c0_27 = arith.constant 0 : index
    %c0_28 = arith.constant 0 : index
    %48 = vector.load %arg17[%c0_27, %c0_28] : memref<370x128xf32, #tpu.memory_space<vmem>>, vector<338x128xf32>
    %c1 = arith.constant 1 : index
    %c0_29 = arith.constant 0 : index
    %49 = vector.load %arg17[%c1, %c0_29] : memref<370x128xf32, #tpu.memory_space<vmem>>, vector<338x128xf32>
    %c8_i32 = arith.constant 8 : i32
    %50 = tpu.dynamic_rotate %49 by %c8_i32 dim 1 : vector<338x128xf32>, i32 -> vector<338x128xf32>
    %51 = arith.addf %48, %50 : vector<338x128xf32>
    %c2 = arith.constant 2 : index
    %c0_30 = arith.constant 0 : index
    %52 = vector.load %arg17[%c2, %c0_30] : memref<370x128xf32, #tpu.memory_space<vmem>>, vector<338x128xf32>
    %c16_i32 = arith.constant 16 : i32
    %53 = tpu.dynamic_rotate %52 by %c16_i32 dim 1 : vector<338x128xf32>, i32 -> vector<338x128xf32>
    %54 = arith.addf %51, %53 : vector<338x128xf32>
    %c13 = arith.constant 13 : index
    %c0_31 = arith.constant 0 : index
    %55 = vector.load %arg17[%c13, %c0_31] : memref<370x128xf32, #tpu.memory_space<vmem>>, vector<338x128xf32>
    %c24_i32 = arith.constant 24 : i32
    %56 = tpu.dynamic_rotate %55 by %c24_i32 dim 1 : vector<338x128xf32>, i32 -> vector<338x128xf32>
    %57 = arith.addf %54, %56 : vector<338x128xf32>
    %c14 = arith.constant 14 : index
    %c0_32 = arith.constant 0 : index
    %58 = vector.load %arg17[%c14, %c0_32] : memref<370x128xf32, #tpu.memory_space<vmem>>, vector<338x128xf32>
    %c32_i32 = arith.constant 32 : i32
    %59 = tpu.dynamic_rotate %58 by %c32_i32 dim 1 : vector<338x128xf32>, i32 -> vector<338x128xf32>
    %60 = arith.addf %57, %59 : vector<338x128xf32>
    %c15 = arith.constant 15 : index
    %c0_33 = arith.constant 0 : index
    %61 = vector.load %arg17[%c15, %c0_33] : memref<370x128xf32, #tpu.memory_space<vmem>>, vector<338x128xf32>
    %c40_i32 = arith.constant 40 : i32
    %62 = tpu.dynamic_rotate %61 by %c40_i32 dim 1 : vector<338x128xf32>, i32 -> vector<338x128xf32>
    %63 = arith.addf %60, %62 : vector<338x128xf32>
    %c26 = arith.constant 26 : index
    %c0_34 = arith.constant 0 : index
    %64 = vector.load %arg17[%c26, %c0_34] : memref<370x128xf32, #tpu.memory_space<vmem>>, vector<338x128xf32>
    %c48_i32 = arith.constant 48 : i32
    %65 = tpu.dynamic_rotate %64 by %c48_i32 dim 1 : vector<338x128xf32>, i32 -> vector<338x128xf32>
    %66 = arith.addf %63, %65 : vector<338x128xf32>
    %c27 = arith.constant 27 : index
    %c0_35 = arith.constant 0 : index
    %67 = vector.load %arg17[%c27, %c0_35] : memref<370x128xf32, #tpu.memory_space<vmem>>, vector<338x128xf32>
    %c56_i32 = arith.constant 56 : i32
    %68 = tpu.dynamic_rotate %67 by %c56_i32 dim 1 : vector<338x128xf32>, i32 -> vector<338x128xf32>
    %69 = arith.addf %66, %68 : vector<338x128xf32>
    %c28 = arith.constant 28 : index
    %c0_36 = arith.constant 0 : index
    %70 = vector.load %arg17[%c28, %c0_36] : memref<370x128xf32, #tpu.memory_space<vmem>>, vector<338x128xf32>
    %c64_i32 = arith.constant 64 : i32
    %71 = tpu.dynamic_rotate %70 by %c64_i32 dim 1 : vector<338x128xf32>, i32 -> vector<338x128xf32>
    %72 = arith.addf %69, %71 : vector<338x128xf32>
    %73 = arith.truncf %72 : vector<338x128xf32> to vector<338x128xbf16>
    %c0_37 = arith.constant 0 : index
    %c0_38 = arith.constant 0 : index
    %74 = vector.load %arg5[%c0_37, %c0_38] : memref<128x128xbf16, #tpu.memory_space<vmem>>, vector<128x128xbf16>
    %cst_39 = arith.constant dense<0.000000e+00> : vector<338x128xf32>
    %75 = tpu.matmul %73, %74, %cst_39 {dimension_numbers = #tpu.dot_dimension_numbers<[1], [0], [0], [1], [0, 0, 1, 1], [], []>} : vector<338x128xbf16>, vector<128x128xbf16>, vector<338x128xf32> -> vector<338x128xf32>
    %c0_40 = arith.constant 0 : index
    %c0_41 = arith.constant 0 : index
    %76 = vector.load %arg6[%c0_40, %c0_41] : memref<1x128xf32, #tpu.memory_space<vmem>>, vector<1x128xf32>
    %77 = vector.broadcast %76 : vector<1x128xf32> to vector<338x128xf32>
    %78 = arith.addf %75, %77 : vector<338x128xf32>
    %79 = tpu.iota {dimensions = array<i32: 0>} : vector<338x1xi32>
    %80 = arith.sitofp %79 : vector<338x1xi32> to vector<338x1xf32>
    %cst_42 = arith.constant 5.000000e-01 : f32
    %81 = vector.broadcast %cst_42 : f32 to vector<338x1xf32>
    %82 = arith.addf %80, %81 : vector<338x1xf32>
    %cst_43 = arith.constant 0.0769230798 : f32
    %83 = vector.broadcast %cst_43 : f32 to vector<338x1xf32>
    %84 = arith.mulf %82, %83 : vector<338x1xf32>
    %85 = math.floor %84 : vector<338x1xf32>
    %cst_44 = arith.constant 1.300000e+01 : f32
    %86 = vector.broadcast %cst_44 : f32 to vector<338x1xf32>
    %87 = arith.mulf %86, %85 : vector<338x1xf32>
    %88 = arith.subf %80, %87 : vector<338x1xf32>
    %cst_45 = arith.constant 5.000000e-01 : f32
    %89 = vector.broadcast %cst_45 : f32 to vector<338x1xf32>
    %90 = arith.addf %85, %89 : vector<338x1xf32>
    %cst_46 = arith.constant 0.0769230798 : f32
    %91 = vector.broadcast %cst_46 : f32 to vector<338x1xf32>
    %92 = arith.mulf %90, %91 : vector<338x1xf32>
    %93 = math.floor %92 : vector<338x1xf32>
    %cst_47 = arith.constant 1.300000e+01 : f32
    %94 = vector.broadcast %cst_47 : f32 to vector<338x1xf32>
    %95 = arith.mulf %94, %93 : vector<338x1xf32>
    %96 = arith.subf %85, %95 : vector<338x1xf32>
    %cst_48 = arith.constant 1.050000e+01 : f32
    %97 = vector.broadcast %cst_48 : f32 to vector<338x1xf32>
    %98 = arith.cmpf olt, %88, %97 : vector<338x1xf32>
    %cst_49 = arith.constant 1.050000e+01 : f32
    %99 = vector.broadcast %cst_49 : f32 to vector<338x1xf32>
    %100 = arith.cmpf olt, %96, %99 : vector<338x1xf32>
    %101 = arith.andi %98, %100 : vector<338x1xi1>
    %cst_50 = arith.constant 0.000000e+00 : f32
    %102 = vector.shape_cast %101 : vector<338x1xi1> to vector<338x1xi1>
    %103 = vector.broadcast %102 : vector<338x1xi1> to vector<338x128xi1>
    %104 = vector.broadcast %cst_50 : f32 to vector<338x128xf32>
    %105 = arith.select %103, %78, %104 : vector<338x128xi1>, vector<338x128xf32>
    %cst_51 = arith.constant dense<0.000000e+00> : vector<128xf32>
    %106 = vector.multi_reduction <add>, %105, %cst_51 [0] : vector<338x128xf32> to vector<128xf32>
    %107 = vector.shape_cast %106 : vector<128xf32> to vector<1x128xf32>
    %cst_52 = arith.constant 0.00413223123 : f32
    %108 = vector.broadcast %cst_52 : f32 to vector<1x128xf32>
    %109 = arith.mulf %107, %108 : vector<1x128xf32>
    %110 = arith.mulf %105, %105 : vector<338x128xf32>
    %cst_53 = arith.constant dense<0.000000e+00> : vector<128xf32>
    %111 = vector.multi_reduction <add>, %110, %cst_53 [0] : vector<338x128xf32> to vector<128xf32>
    %112 = vector.shape_cast %111 : vector<128xf32> to vector<1x128xf32>
    %cst_54 = arith.constant 0.00413223123 : f32
    %113 = vector.broadcast %cst_54 : f32 to vector<1x128xf32>
    %114 = arith.mulf %112, %113 : vector<1x128xf32>
    %115 = arith.mulf %109, %109 : vector<1x128xf32>
    %116 = arith.subf %114, %115 : vector<1x128xf32>
    %cst_55 = arith.constant 9.99999974E-6 : f32
    %117 = vector.broadcast %cst_55 : f32 to vector<1x128xf32>
    %118 = arith.addf %116, %117 : vector<1x128xf32>
    %119 = math.rsqrt %118 : vector<1x128xf32>
    %120 = vector.broadcast %109 : vector<1x128xf32> to vector<338x128xf32>
    %121 = arith.subf %78, %120 : vector<338x128xf32>
    %122 = vector.broadcast %119 : vector<1x128xf32> to vector<338x128xf32>
    %123 = arith.mulf %121, %122 : vector<338x128xf32>
    %c0_56 = arith.constant 0 : index
    %c0_57 = arith.constant 0 : index
    %124 = vector.load %arg7[%c0_56, %c0_57] : memref<1x128xf32, #tpu.memory_space<vmem>>, vector<1x128xf32>
    %125 = vector.broadcast %124 : vector<1x128xf32> to vector<338x128xf32>
    %126 = arith.mulf %123, %125 : vector<338x128xf32>
    %c0_58 = arith.constant 0 : index
    %c0_59 = arith.constant 0 : index
    %127 = vector.load %arg8[%c0_58, %c0_59] : memref<1x128xf32, #tpu.memory_space<vmem>>, vector<1x128xf32>
    %128 = vector.broadcast %127 : vector<1x128xf32> to vector<338x128xf32>
    %129 = arith.addf %126, %128 : vector<338x128xf32>
    %cst_60 = arith.constant 0.000000e+00 : f32
    %130 = vector.broadcast %cst_60 : f32 to vector<338x128xf32>
    %131 = arith.maximumf %129, %130 : vector<338x128xf32>
    %c0_61 = arith.constant 0 : index
    %c0_62 = arith.constant 0 : index
    %132 = vector.load %arg18[%c0_61, %c0_62] : memref<338x128xf32, #tpu.memory_space<vmem>>, vector<338x128xf32>
    tpu.vector_store %arg18[%c0_61, %c0_62], %131 {strides = array<i32>} : memref<338x128xf32, #tpu.memory_space<vmem>>, vector<338x128xf32>,
    %c0_63 = arith.constant 0 : index
    %c0_64 = arith.constant 0 : index
    %133 = tpu.strided_load %arg18[%c0_63, %c0_64] {strides = array<i32: 2, 1>} : memref<338x128xf32, #tpu.memory_space<vmem>>, vector<5x128xf32>
    %c1_65 = arith.constant 1 : index
    %c0_66 = arith.constant 0 : index
    %134 = tpu.strided_load %arg18[%c1_65, %c0_66] {strides = array<i32: 2, 1>} : memref<338x128xf32, #tpu.memory_space<vmem>>, vector<5x128xf32>
    %135 = arith.maximumf %133, %134 : vector<5x128xf32>
    %c13_67 = arith.constant 13 : index
    %c0_68 = arith.constant 0 : index
    %136 = tpu.strided_load %arg18[%c13_67, %c0_68] {strides = array<i32: 2, 1>} : memref<338x128xf32, #tpu.memory_space<vmem>>, vector<5x128xf32>
    %c14_69 = arith.constant 14 : index
    %c0_70 = arith.constant 0 : index
    %137 = tpu.strided_load %arg18[%c14_69, %c0_70] {strides = array<i32: 2, 1>} : memref<338x128xf32, #tpu.memory_space<vmem>>, vector<5x128xf32>
    %138 = arith.maximumf %136, %137 : vector<5x128xf32>
    %139 = arith.maximumf %135, %138 : vector<5x128xf32>
    %c0_71 = arith.constant 0 : index
    %c0_72 = arith.constant 0 : index
    %140 = vector.load %arg19[%c0_71, %c0_72] : memref<50x128xf32, #tpu.memory_space<vmem>>, vector<5x128xf32>
    tpu.vector_store %arg19[%c0_71, %c0_72], %139 {strides = array<i32>} : memref<50x128xf32, #tpu.memory_space<vmem>>, vector<5x128xf32>,
    %c26_73 = arith.constant 26 : index
    %c0_74 = arith.constant 0 : index
    %141 = tpu.strided_load %arg18[%c26_73, %c0_74] {strides = array<i32: 2, 1>} : memref<338x128xf32, #tpu.memory_space<vmem>>, vector<5x128xf32>
    %c27_75 = arith.constant 27 : index
    %c0_76 = arith.constant 0 : index
    %142 = tpu.strided_load %arg18[%c27_75, %c0_76] {strides = array<i32: 2, 1>} : memref<338x128xf32, #tpu.memory_space<vmem>>, vector<5x128xf32>
    %143 = arith.maximumf %141, %142 : vector<5x128xf32>
    %c39 = arith.constant 39 : index
    %c0_77 = arith.constant 0 : index
    %144 = tpu.strided_load %arg18[%c39, %c0_77] {strides = array<i32: 2, 1>} : memref<338x128xf32, #tpu.memory_space<vmem>>, vector<5x128xf32>
    %c40 = arith.constant 40 : index
    %c0_78 = arith.constant 0 : index
    %145 = tpu.strided_load %arg18[%c40, %c0_78] {strides = array<i32: 2, 1>} : memref<338x128xf32, #tpu.memory_space<vmem>>, vector<5x128xf32>
    %146 = arith.maximumf %144, %145 : vector<5x128xf32>
    %147 = arith.maximumf %143, %146 : vector<5x128xf32>
    %c5 = arith.constant 5 : index
    %c0_79 = arith.constant 0 : index
    %148 = vector.load %arg19[%c5, %c0_79] : memref<50x128xf32, #tpu.memory_space<vmem>>, vector<5x128xf32>
    tpu.vector_store %arg19[%c5, %c0_79], %147 {strides = array<i32>} : memref<50x128xf32, #tpu.memory_space<vmem>>, vector<5x128xf32>,
    %c52 = arith.constant 52 : index
    %c0_80 = arith.constant 0 : index
    %149 = tpu.strided_load %arg18[%c52, %c0_80] {strides = array<i32: 2, 1>} : memref<338x128xf32, #tpu.memory_space<vmem>>, vector<5x128xf32>
    %c53 = arith.constant 53 : index
    %c0_81 = arith.constant 0 : index
    %150 = tpu.strided_load %arg18[%c53, %c0_81] {strides = array<i32: 2, 1>} : memref<338x128xf32, #tpu.memory_space<vmem>>, vector<5x128xf32>
    %151 = arith.maximumf %149, %150 : vector<5x128xf32>
    %c65 = arith.constant 65 : index
    %c0_82 = arith.constant 0 : index
    %152 = tpu.strided_load %arg18[%c65, %c0_82] {strides = array<i32: 2, 1>} : memref<338x128xf32, #tpu.memory_space<vmem>>, vector<5x128xf32>
    %c66 = arith.constant 66 : index
    %c0_83 = arith.constant 0 : index
    %153 = tpu.strided_load %arg18[%c66, %c0_83] {strides = array<i32: 2, 1>} : memref<338x128xf32, #tpu.memory_space<vmem>>, vector<5x128xf32>
    %154 = arith.maximumf %152, %153 : vector<5x128xf32>
    %155 = arith.maximumf %151, %154 : vector<5x128xf32>
    %c10 = arith.constant 10 : index
    %c0_84 = arith.constant 0 : index
    %156 = vector.load %arg19[%c10, %c0_84] : memref<50x128xf32, #tpu.memory_space<vmem>>, vector<5x128xf32>
    tpu.vector_store %arg19[%c10, %c0_84], %155 {strides = array<i32>} : memref<50x128xf32, #tpu.memory_space<vmem>>, vector<5x128xf32>,
    %c78 = arith.constant 78 : index
    %c0_85 = arith.constant 0 : index
    %157 = tpu.strided_load %arg18[%c78, %c0_85] {strides = array<i32: 2, 1>} : memref<338x128xf32, #tpu.memory_space<vmem>>, vector<5x128xf32>
    %c79 = arith.constant 79 : index
    %c0_86 = arith.constant 0 : index
    %158 = tpu.strided_load %arg18[%c79, %c0_86] {strides = array<i32: 2, 1>} : memref<338x128xf32, #tpu.memory_space<vmem>>, vector<5x128xf32>
    %159 = arith.maximumf %157, %158 : vector<5x128xf32>
    %c91 = arith.constant 91 : index
    %c0_87 = arith.constant 0 : index
    %160 = tpu.strided_load %arg18[%c91, %c0_87] {strides = array<i32: 2, 1>} : memref<338x128xf32, #tpu.memory_space<vmem>>, vector<5x128xf32>
    %c92 = arith.constant 92 : index
    %c0_88 = arith.constant 0 : index
    %161 = tpu.strided_load %arg18[%c92, %c0_88] {strides = array<i32: 2, 1>} : memref<338x128xf32, #tpu.memory_space<vmem>>, vector<5x128xf32>
    %162 = arith.maximumf %160, %161 : vector<5x128xf32>
    %163 = arith.maximumf %159, %162 : vector<5x128xf32>
    %c15_89 = arith.constant 15 : index
    %c0_90 = arith.constant 0 : index
    %164 = vector.load %arg19[%c15_89, %c0_90] : memref<50x128xf32, #tpu.memory_space<vmem>>, vector<5x128xf32>
    tpu.vector_store %arg19[%c15_89, %c0_90], %163 {strides = array<i32>} : memref<50x128xf32, #tpu.memory_space<vmem>>, vector<5x128xf32>,
    %c104 = arith.constant 104 : index
    %c0_91 = arith.constant 0 : index
    %165 = tpu.strided_load %arg18[%c104, %c0_91] {strides = array<i32: 2, 1>} : memref<338x128xf32, #tpu.memory_space<vmem>>, vector<5x128xf32>
    %c105 = arith.constant 105 : index
    %c0_92 = arith.constant 0 : index
    %166 = tpu.strided_load %arg18[%c105, %c0_92] {strides = array<i32: 2, 1>} : memref<338x128xf32, #tpu.memory_space<vmem>>, vector<5x128xf32>
    %167 = arith.maximumf %165, %166 : vector<5x128xf32>
    %c117 = arith.constant 117 : index
    %c0_93 = arith.constant 0 : index
    %168 = tpu.strided_load %arg18[%c117, %c0_93] {strides = array<i32: 2, 1>} : memref<338x128xf32, #tpu.memory_space<vmem>>, vector<5x128xf32>
    %c118 = arith.constant 118 : index
    %c0_94 = arith.constant 0 : index
    %169 = tpu.strided_load %arg18[%c118, %c0_94] {strides = array<i32: 2, 1>} : memref<338x128xf32, #tpu.memory_space<vmem>>, vector<5x128xf32>
    %170 = arith.maximumf %168, %169 : vector<5x128xf32>
    %171 = arith.maximumf %167, %170 : vector<5x128xf32>
    %c20 = arith.constant 20 : index
    %c0_95 = arith.constant 0 : index
    %172 = vector.load %arg19[%c20, %c0_95] : memref<50x128xf32, #tpu.memory_space<vmem>>, vector<5x128xf32>
    tpu.vector_store %arg19[%c20, %c0_95], %171 {strides = array<i32>} : memref<50x128xf32, #tpu.memory_space<vmem>>, vector<5x128xf32>,
    %c169 = arith.constant 169 : index
    %c0_96 = arith.constant 0 : index
    %173 = tpu.strided_load %arg18[%c169, %c0_96] {strides = array<i32: 2, 1>} : memref<338x128xf32, #tpu.memory_space<vmem>>, vector<5x128xf32>
    %c170 = arith.constant 170 : index
    %c0_97 = arith.constant 0 : index
    %174 = tpu.strided_load %arg18[%c170, %c0_97] {strides = array<i32: 2, 1>} : memref<338x128xf32, #tpu.memory_space<vmem>>, vector<5x128xf32>
    %175 = arith.maximumf %173, %174 : vector<5x128xf32>
    %c182 = arith.constant 182 : index
    %c0_98 = arith.constant 0 : index
    %176 = tpu.strided_load %arg18[%c182, %c0_98] {strides = array<i32: 2, 1>} : memref<338x128xf32, #tpu.memory_space<vmem>>, vector<5x128xf32>
    %c183 = arith.constant 183 : index
    %c0_99 = arith.constant 0 : index
    %177 = tpu.strided_load %arg18[%c183, %c0_99] {strides = array<i32: 2, 1>} : memref<338x128xf32, #tpu.memory_space<vmem>>, vector<5x128xf32>
    %178 = arith.maximumf %176, %177 : vector<5x128xf32>
    %179 = arith.maximumf %175, %178 : vector<5x128xf32>
    %c25 = arith.constant 25 : index
    %c0_100 = arith.constant 0 : index
    %180 = vector.load %arg19[%c25, %c0_100] : memref<50x128xf32, #tpu.memory_space<vmem>>, vector<5x128xf32>
    tpu.vector_store %arg19[%c25, %c0_100], %179 {strides = array<i32>} : memref<50x128xf32, #tpu.memory_space<vmem>>, vector<5x128xf32>,
    %c195 = arith.constant 195 : index
    %c0_101 = arith.constant 0 : index
    %181 = tpu.strided_load %arg18[%c195, %c0_101] {strides = array<i32: 2, 1>} : memref<338x128xf32, #tpu.memory_space<vmem>>, vector<5x128xf32>
    %c196 = arith.constant 196 : index
    %c0_102 = arith.constant 0 : index
    %182 = tpu.strided_load %arg18[%c196, %c0_102] {strides = array<i32: 2, 1>} : memref<338x128xf32, #tpu.memory_space<vmem>>, vector<5x128xf32>
    %183 = arith.maximumf %181, %182 : vector<5x128xf32>
    %c208 = arith.constant 208 : index
    %c0_103 = arith.constant 0 : index
    %184 = tpu.strided_load %arg18[%c208, %c0_103] {strides = array<i32: 2, 1>} : memref<338x128xf32, #tpu.memory_space<vmem>>, vector<5x128xf32>
    %c209 = arith.constant 209 : index
    %c0_104 = arith.constant 0 : index
    %185 = tpu.strided_load %arg18[%c209, %c0_104] {strides = array<i32: 2, 1>} : memref<338x128xf32, #tpu.memory_space<vmem>>, vector<5x128xf32>
    %186 = arith.maximumf %184, %185 : vector<5x128xf32>
    %187 = arith.maximumf %183, %186 : vector<5x128xf32>
    %c30 = arith.constant 30 : index
    %c0_105 = arith.constant 0 : index
    %188 = vector.load %arg19[%c30, %c0_105] : memref<50x128xf32, #tpu.memory_space<vmem>>, vector<5x128xf32>
    tpu.vector_store %arg19[%c30, %c0_105], %187 {strides = array<i32>} : memref<50x128xf32, #tpu.memory_space<vmem>>, vector<5x128xf32>,
    %c221 = arith.constant 221 : index
    %c0_106 = arith.constant 0 : index
    %189 = tpu.strided_load %arg18[%c221, %c0_106] {strides = array<i32: 2, 1>} : memref<338x128xf32, #tpu.memory_space<vmem>>, vector<5x128xf32>
    %c222 = arith.constant 222 : index
    %c0_107 = arith.constant 0 : index
    %190 = tpu.strided_load %arg18[%c222, %c0_107] {strides = array<i32: 2, 1>} : memref<338x128xf32, #tpu.memory_space<vmem>>, vector<5x128xf32>
    %191 = arith.maximumf %189, %190 : vector<5x128xf32>
    %c234 = arith.constant 234 : index
    %c0_108 = arith.constant 0 : index
    %192 = tpu.strided_load %arg18[%c234, %c0_108] {strides = array<i32: 2, 1>} : memref<338x128xf32, #tpu.memory_space<vmem>>, vector<5x128xf32>
    %c235 = arith.constant 235 : index
    %c0_109 = arith.constant 0 : index
    %193 = tpu.strided_load %arg18[%c235, %c0_109] {strides = array<i32: 2, 1>} : memref<338x128xf32, #tpu.memory_space<vmem>>, vector<5x128xf32>
    %194 = arith.maximumf %192, %193 : vector<5x128xf32>
    %195 = arith.maximumf %191, %194 : vector<5x128xf32>
    %c35 = arith.constant 35 : index
    %c0_110 = arith.constant 0 : index
    %196 = vector.load %arg19[%c35, %c0_110] : memref<50x128xf32, #tpu.memory_space<vmem>>, vector<5x128xf32>
    tpu.vector_store %arg19[%c35, %c0_110], %195 {strides = array<i32>} : memref<50x128xf32, #tpu.memory_space<vmem>>, vector<5x128xf32>,
    %c247 = arith.constant 247 : index
    %c0_111 = arith.constant 0 : index
    %197 = tpu.strided_load %arg18[%c247, %c0_111] {strides = array<i32: 2, 1>} : memref<338x128xf32, #tpu.memory_space<vmem>>, vector<5x128xf32>
    %c248 = arith.constant 248 : index
    %c0_112 = arith.constant 0 : index
    %198 = tpu.strided_load %arg18[%c248, %c0_112] {strides = array<i32: 2, 1>} : memref<338x128xf32, #tpu.memory_space<vmem>>, vector<5x128xf32>
    %199 = arith.maximumf %197, %198 : vector<5x128xf32>
    %c260 = arith.constant 260 : index
    %c0_113 = arith.constant 0 : index
    %200 = tpu.strided_load %arg18[%c260, %c0_113] {strides = array<i32: 2, 1>} : memref<338x128xf32, #tpu.memory_space<vmem>>, vector<5x128xf32>
    %c261 = arith.constant 261 : index
    %c0_114 = arith.constant 0 : index
    %201 = tpu.strided_load %arg18[%c261, %c0_114] {strides = array<i32: 2, 1>} : memref<338x128xf32, #tpu.memory_space<vmem>>, vector<5x128xf32>
    %202 = arith.maximumf %200, %201 : vector<5x128xf32>
    %203 = arith.maximumf %199, %202 : vector<5x128xf32>
    %c40_115 = arith.constant 40 : index
    %c0_116 = arith.constant 0 : index
    %204 = vector.load %arg19[%c40_115, %c0_116] : memref<50x128xf32, #tpu.memory_space<vmem>>, vector<5x128xf32>
    tpu.vector_store %arg19[%c40_115, %c0_116], %203 {strides = array<i32>} : memref<50x128xf32, #tpu.memory_space<vmem>>, vector<5x128xf32>,
    %c273 = arith.constant 273 : index
    %c0_117 = arith.constant 0 : index
    %205 = tpu.strided_load %arg18[%c273, %c0_117] {strides = array<i32: 2, 1>} : memref<338x128xf32, #tpu.memory_space<vmem>>, vector<5x128xf32>
    %c274 = arith.constant 274 : index
    %c0_118 = arith.constant 0 : index
    %206 = tpu.strided_load %arg18[%c274, %c0_118] {strides = array<i32: 2, 1>} : memref<338x128xf32, #tpu.memory_space<vmem>>, vector<5x128xf32>
    %207 = arith.maximumf %205, %206 : vector<5x128xf32>
    %c286 = arith.constant 286 : index
    %c0_119 = arith.constant 0 : index
    %208 = tpu.strided_load %arg18[%c286, %c0_119] {strides = array<i32: 2, 1>} : memref<338x128xf32, #tpu.memory_space<vmem>>, vector<5x128xf32>
    %c287 = arith.constant 287 : index
    %c0_120 = arith.constant 0 : index
    %209 = tpu.strided_load %arg18[%c287, %c0_120] {strides = array<i32: 2, 1>} : memref<338x128xf32, #tpu.memory_space<vmem>>, vector<5x128xf32>
    %210 = arith.maximumf %208, %209 : vector<5x128xf32>
    %211 = arith.maximumf %207, %210 : vector<5x128xf32>
    %c45 = arith.constant 45 : index
    %c0_121 = arith.constant 0 : index
    %212 = vector.load %arg19[%c45, %c0_121] : memref<50x128xf32, #tpu.memory_space<vmem>>, vector<5x128xf32>
    tpu.vector_store %arg19[%c45, %c0_121], %211 {strides = array<i32>} : memref<50x128xf32, #tpu.memory_space<vmem>>, vector<5x128xf32>,
    %cst_122 = arith.constant 0.000000e+00 : f32
    %213 = vector.broadcast %cst_122 : f32 to vector<2x128xf32>
    %c0_123 = arith.constant 0 : index
    %c0_124 = arith.constant 0 : index
    %214 = tpu.strided_load %arg19[%c0_123, %c0_124] {strides = array<i32: 25, 1>} : memref<50x128xf32, #tpu.memory_space<vmem>>, vector<2x128xf32>
    %c1_125 = arith.constant 1 : index
    %c0_126 = arith.constant 0 : index
    %215 = tpu.strided_load %arg19[%c1_125, %c0_126] {strides = array<i32: 25, 1>} : memref<50x128xf32, #tpu.memory_space<vmem>>, vector<2x128xf32>
    %c16_i32_127 = arith.constant 16 : i32
    %216 = tpu.dynamic_rotate %215 by %c16_i32_127 dim 1 : vector<2x128xf32>, i32 -> vector<2x128xf32>
    %217 = arith.addf %214, %216 : vector<2x128xf32>
    %c2_128 = arith.constant 2 : index
    %c0_129 = arith.constant 0 : index
    %218 = tpu.strided_load %arg19[%c2_128, %c0_129] {strides = array<i32: 25, 1>} : memref<50x128xf32, #tpu.memory_space<vmem>>, vector<2x128xf32>
    %c32_i32_130 = arith.constant 32 : i32
    %219 = tpu.dynamic_rotate %218 by %c32_i32_130 dim 1 : vector<2x128xf32>, i32 -> vector<2x128xf32>
    %220 = arith.addf %217, %219 : vector<2x128xf32>
    %c3 = arith.constant 3 : index
    %c0_131 = arith.constant 0 : index
    %221 = tpu.strided_load %arg19[%c3, %c0_131] {strides = array<i32: 25, 1>} : memref<50x128xf32, #tpu.memory_space<vmem>>, vector<2x128xf32>
    %c48_i32_132 = arith.constant 48 : i32
    %222 = tpu.dynamic_rotate %221 by %c48_i32_132 dim 1 : vector<2x128xf32>, i32 -> vector<2x128xf32>
    %223 = arith.addf %220, %222 : vector<2x128xf32>
    %c4 = arith.constant 4 : index
    %c0_133 = arith.constant 0 : index
    %224 = tpu.strided_load %arg19[%c4, %c0_133] {strides = array<i32: 25, 1>} : memref<50x128xf32, #tpu.memory_space<vmem>>, vector<2x128xf32>
    %c64_i32_134 = arith.constant 64 : i32
    %225 = tpu.dynamic_rotate %224 by %c64_i32_134 dim 1 : vector<2x128xf32>, i32 -> vector<2x128xf32>
    %226 = arith.addf %223, %225 : vector<2x128xf32>
    %c5_135 = arith.constant 5 : index
    %c0_136 = arith.constant 0 : index
    %227 = tpu.strided_load %arg19[%c5_135, %c0_136] {strides = array<i32: 25, 1>} : memref<50x128xf32, #tpu.memory_space<vmem>>, vector<2x128xf32>
    %c80_i32 = arith.constant 80 : i32
    %228 = tpu.dynamic_rotate %227 by %c80_i32 dim 1 : vector<2x128xf32>, i32 -> vector<2x128xf32>
    %229 = arith.addf %226, %228 : vector<2x128xf32>
    %c6 = arith.constant 6 : index
    %c0_137 = arith.constant 0 : index
    %230 = tpu.strided_load %arg19[%c6, %c0_137] {strides = array<i32: 25, 1>} : memref<50x128xf32, #tpu.memory_space<vmem>>, vector<2x128xf32>
    %c96_i32 = arith.constant 96 : i32
    %231 = tpu.dynamic_rotate %230 by %c96_i32 dim 1 : vector<2x128xf32>, i32 -> vector<2x128xf32>
    %232 = arith.addf %229, %231 : vector<2x128xf32>
    %c7 = arith.constant 7 : index
    %c0_138 = arith.constant 0 : index
    %233 = tpu.strided_load %arg19[%c7, %c0_138] {strides = array<i32: 25, 1>} : memref<50x128xf32, #tpu.memory_space<vmem>>, vector<2x128xf32>
    %c112_i32 = arith.constant 112 : i32
    %234 = tpu.dynamic_rotate %233 by %c112_i32 dim 1 : vector<2x128xf32>, i32 -> vector<2x128xf32>
    %235 = arith.addf %232, %234 : vector<2x128xf32>
    %236 = arith.truncf %235 : vector<2x128xf32> to vector<2x128xbf16>
    %c0_139 = arith.constant 0 : index
    %c0_140 = arith.constant 0 : index
    %c0_141 = arith.constant 0 : index
    %237 = vector.load %arg9[%c0_139, %c0_140, %c0_141] : memref<4x128x128xbf16, #tpu.memory_space<vmem>>, vector<1x128x128xbf16>
    %238 = vector.shape_cast %237 : vector<1x128x128xbf16> to vector<128x128xbf16>
    %cst_142 = arith.constant dense<0.000000e+00> : vector<2x128xf32>
    %239 = tpu.matmul %236, %238, %cst_142 {dimension_numbers = #tpu.dot_dimension_numbers<[1], [0], [0], [1], [0, 0, 1, 1], [], []>} : vector<2x128xbf16>, vector<128x128xbf16>, vector<2x128xf32> -> vector<2x128xf32>
    %240 = arith.addf %213, %239 : vector<2x128xf32>
    %c8 = arith.constant 8 : index
    %c0_143 = arith.constant 0 : index
    %241 = tpu.strided_load %arg19[%c8, %c0_143] {strides = array<i32: 25, 1>} : memref<50x128xf32, #tpu.memory_space<vmem>>, vector<2x128xf32>
    %c9 = arith.constant 9 : index
    %c0_144 = arith.constant 0 : index
    %242 = tpu.strided_load %arg19[%c9, %c0_144] {strides = array<i32: 25, 1>} : memref<50x128xf32, #tpu.memory_space<vmem>>, vector<2x128xf32>
    %c16_i32_145 = arith.constant 16 : i32
    %243 = tpu.dynamic_rotate %242 by %c16_i32_145 dim 1 : vector<2x128xf32>, i32 -> vector<2x128xf32>
    %244 = arith.addf %241, %243 : vector<2x128xf32>
    %c10_146 = arith.constant 10 : index
    %c0_147 = arith.constant 0 : index
    %245 = tpu.strided_load %arg19[%c10_146, %c0_147] {strides = array<i32: 25, 1>} : memref<50x128xf32, #tpu.memory_space<vmem>>, vector<2x128xf32>
    %c32_i32_148 = arith.constant 32 : i32
    %246 = tpu.dynamic_rotate %245 by %c32_i32_148 dim 1 : vector<2x128xf32>, i32 -> vector<2x128xf32>
    %247 = arith.addf %244, %246 : vector<2x128xf32>
    %c11 = arith.constant 11 : index
    %c0_149 = arith.constant 0 : index
    %248 = tpu.strided_load %arg19[%c11, %c0_149] {strides = array<i32: 25, 1>} : memref<50x128xf32, #tpu.memory_space<vmem>>, vector<2x128xf32>
    %c48_i32_150 = arith.constant 48 : i32
    %249 = tpu.dynamic_rotate %248 by %c48_i32_150 dim 1 : vector<2x128xf32>, i32 -> vector<2x128xf32>
    %250 = arith.addf %247, %249 : vector<2x128xf32>
    %c12 = arith.constant 12 : index
    %c0_151 = arith.constant 0 : index
    %251 = tpu.strided_load %arg19[%c12, %c0_151] {strides = array<i32: 25, 1>} : memref<50x128xf32, #tpu.memory_space<vmem>>, vector<2x128xf32>
    %c64_i32_152 = arith.constant 64 : i32
    %252 = tpu.dynamic_rotate %251 by %c64_i32_152 dim 1 : vector<2x128xf32>, i32 -> vector<2x128xf32>
    %253 = arith.addf %250, %252 : vector<2x128xf32>
    %c13_153 = arith.constant 13 : index
    %c0_154 = arith.constant 0 : index
    %254 = tpu.strided_load %arg19[%c13_153, %c0_154] {strides = array<i32: 25, 1>} : memref<50x128xf32, #tpu.memory_space<vmem>>, vector<2x128xf32>
    %c80_i32_155 = arith.constant 80 : i32
    %255 = tpu.dynamic_rotate %254 by %c80_i32_155 dim 1 : vector<2x128xf32>, i32 -> vector<2x128xf32>
    %256 = arith.addf %253, %255 : vector<2x128xf32>
    %c14_156 = arith.constant 14 : index
    %c0_157 = arith.constant 0 : index
    %257 = tpu.strided_load %arg19[%c14_156, %c0_157] {strides = array<i32: 25, 1>} : memref<50x128xf32, #tpu.memory_space<vmem>>, vector<2x128xf32>
    %c96_i32_158 = arith.constant 96 : i32
    %258 = tpu.dynamic_rotate %257 by %c96_i32_158 dim 1 : vector<2x128xf32>, i32 -> vector<2x128xf32>
    %259 = arith.addf %256, %258 : vector<2x128xf32>
    %c15_159 = arith.constant 15 : index
    %c0_160 = arith.constant 0 : index
    %260 = tpu.strided_load %arg19[%c15_159, %c0_160] {strides = array<i32: 25, 1>} : memref<50x128xf32, #tpu.memory_space<vmem>>, vector<2x128xf32>
    %c112_i32_161 = arith.constant 112 : i32
    %261 = tpu.dynamic_rotate %260 by %c112_i32_161 dim 1 : vector<2x128xf32>, i32 -> vector<2x128xf32>
    %262 = arith.addf %259, %261 : vector<2x128xf32>
    %263 = arith.truncf %262 : vector<2x128xf32> to vector<2x128xbf16>
    %c1_162 = arith.constant 1 : index
    %c0_163 = arith.constant 0 : index
    %c0_164 = arith.constant 0 : index
    %264 = vector.load %arg9[%c1_162, %c0_163, %c0_164] : memref<4x128x128xbf16, #tpu.memory_space<vmem>>, vector<1x128x128xbf16>
    %265 = vector.shape_cast %264 : vector<1x128x128xbf16> to vector<128x128xbf16>
    %cst_165 = arith.constant dense<0.000000e+00> : vector<2x128xf32>
    %266 = tpu.matmul %263, %265, %cst_165 {dimension_numbers = #tpu.dot_dimension_numbers<[1], [0], [0], [1], [0, 0, 1, 1], [], []>} : vector<2x128xbf16>, vector<128x128xbf16>, vector<2x128xf32> -> vector<2x128xf32>
    %267 = arith.addf %240, %266 : vector<2x128xf32>
    %c16 = arith.constant 16 : index
    %c0_166 = arith.constant 0 : index
    %268 = tpu.strided_load %arg19[%c16, %c0_166] {strides = array<i32: 25, 1>} : memref<50x128xf32, #tpu.memory_space<vmem>>, vector<2x128xf32>
    %c17 = arith.constant 17 : index
    %c0_167 = arith.constant 0 : index
    %269 = tpu.strided_load %arg19[%c17, %c0_167] {strides = array<i32: 25, 1>} : memref<50x128xf32, #tpu.memory_space<vmem>>, vector<2x128xf32>
    %c16_i32_168 = arith.constant 16 : i32
    %270 = tpu.dynamic_rotate %269 by %c16_i32_168 dim 1 : vector<2x128xf32>, i32 -> vector<2x128xf32>
    %271 = arith.addf %268, %270 : vector<2x128xf32>
    %c18 = arith.constant 18 : index
    %c0_169 = arith.constant 0 : index
    %272 = tpu.strided_load %arg19[%c18, %c0_169] {strides = array<i32: 25, 1>} : memref<50x128xf32, #tpu.memory_space<vmem>>, vector<2x128xf32>
    %c32_i32_170 = arith.constant 32 : i32
    %273 = tpu.dynamic_rotate %272 by %c32_i32_170 dim 1 : vector<2x128xf32>, i32 -> vector<2x128xf32>
    %274 = arith.addf %271, %273 : vector<2x128xf32>
    %c19 = arith.constant 19 : index
    %c0_171 = arith.constant 0 : index
    %275 = tpu.strided_load %arg19[%c19, %c0_171] {strides = array<i32: 25, 1>} : memref<50x128xf32, #tpu.memory_space<vmem>>, vector<2x128xf32>
    %c48_i32_172 = arith.constant 48 : i32
    %276 = tpu.dynamic_rotate %275 by %c48_i32_172 dim 1 : vector<2x128xf32>, i32 -> vector<2x128xf32>
    %277 = arith.addf %274, %276 : vector<2x128xf32>
    %c20_173 = arith.constant 20 : index
    %c0_174 = arith.constant 0 : index
    %278 = tpu.strided_load %arg19[%c20_173, %c0_174] {strides = array<i32: 25, 1>} : memref<50x128xf32, #tpu.memory_space<vmem>>, vector<2x128xf32>
    %c64_i32_175 = arith.constant 64 : i32
    %279 = tpu.dynamic_rotate %278 by %c64_i32_175 dim 1 : vector<2x128xf32>, i32 -> vector<2x128xf32>
    %280 = arith.addf %277, %279 : vector<2x128xf32>
    %c21 = arith.constant 21 : index
    %c0_176 = arith.constant 0 : index
    %281 = tpu.strided_load %arg19[%c21, %c0_176] {strides = array<i32: 25, 1>} : memref<50x128xf32, #tpu.memory_space<vmem>>, vector<2x128xf32>
    %c80_i32_177 = arith.constant 80 : i32
    %282 = tpu.dynamic_rotate %281 by %c80_i32_177 dim 1 : vector<2x128xf32>, i32 -> vector<2x128xf32>
    %283 = arith.addf %280, %282 : vector<2x128xf32>
    %c22 = arith.constant 22 : index
    %c0_178 = arith.constant 0 : index
    %284 = tpu.strided_load %arg19[%c22, %c0_178] {strides = array<i32: 25, 1>} : memref<50x128xf32, #tpu.memory_space<vmem>>, vector<2x128xf32>
    %c96_i32_179 = arith.constant 96 : i32
    %285 = tpu.dynamic_rotate %284 by %c96_i32_179 dim 1 : vector<2x128xf32>, i32 -> vector<2x128xf32>
    %286 = arith.addf %283, %285 : vector<2x128xf32>
    %c23 = arith.constant 23 : index
    %c0_180 = arith.constant 0 : index
    %287 = tpu.strided_load %arg19[%c23, %c0_180] {strides = array<i32: 25, 1>} : memref<50x128xf32, #tpu.memory_space<vmem>>, vector<2x128xf32>
    %c112_i32_181 = arith.constant 112 : i32
    %288 = tpu.dynamic_rotate %287 by %c112_i32_181 dim 1 : vector<2x128xf32>, i32 -> vector<2x128xf32>
    %289 = arith.addf %286, %288 : vector<2x128xf32>
    %290 = arith.truncf %289 : vector<2x128xf32> to vector<2x128xbf16>
    %c2_182 = arith.constant 2 : index
    %c0_183 = arith.constant 0 : index
    %c0_184 = arith.constant 0 : index
    %291 = vector.load %arg9[%c2_182, %c0_183, %c0_184] : memref<4x128x128xbf16, #tpu.memory_space<vmem>>, vector<1x128x128xbf16>
    %292 = vector.shape_cast %291 : vector<1x128x128xbf16> to vector<128x128xbf16>
    %cst_185 = arith.constant dense<0.000000e+00> : vector<2x128xf32>
    %293 = tpu.matmul %290, %292, %cst_185 {dimension_numbers = #tpu.dot_dimension_numbers<[1], [0], [0], [1], [0, 0, 1, 1], [], []>} : vector<2x128xbf16>, vector<128x128xbf16>, vector<2x128xf32> -> vector<2x128xf32>
    %294 = arith.addf %267, %293 : vector<2x128xf32>
    %c24 = arith.constant 24 : index
    %c0_186 = arith.constant 0 : index
    %295 = tpu.strided_load %arg19[%c24, %c0_186] {strides = array<i32: 25, 1>} : memref<50x128xf32, #tpu.memory_space<vmem>>, vector<2x128xf32>
    %296 = arith.truncf %295 : vector<2x128xf32> to vector<2x128xbf16>
    %c3_187 = arith.constant 3 : index
    %c0_188 = arith.constant 0 : index
    %c0_189 = arith.constant 0 : index
    %297 = vector.load %arg9[%c3_187, %c0_188, %c0_189] : memref<4x128x128xbf16, #tpu.memory_space<vmem>>, vector<1x128x128xbf16>
    %298 = vector.shape_cast %297 : vector<1x128x128xbf16> to vector<128x128xbf16>
    %cst_190 = arith.constant dense<0.000000e+00> : vector<2x128xf32>
    %299 = tpu.matmul %296, %298, %cst_190 {dimension_numbers = #tpu.dot_dimension_numbers<[1], [0], [0], [1], [0, 0, 1, 1], [], []>} : vector<2x128xbf16>, vector<128x128xbf16>, vector<2x128xf32> -> vector<2x128xf32>
    %300 = arith.addf %294, %299 : vector<2x128xf32>
    %c0_191 = arith.constant 0 : index
    %c0_192 = arith.constant 0 : index
    %301 = vector.load %arg10[%c0_191, %c0_192] : memref<1x128xf32, #tpu.memory_space<vmem>>, vector<1x128xf32>
    %302 = vector.broadcast %301 : vector<1x128xf32> to vector<2x128xf32>
    %303 = arith.addf %300, %302 : vector<2x128xf32>
    %cst_193 = arith.constant 0.000000e+00 : f32
    %304 = vector.broadcast %cst_193 : f32 to vector<2x128xf32>
    %305 = arith.maximumf %303, %304 : vector<2x128xf32>
    %306 = arith.truncf %305 : vector<2x128xf32> to vector<2x128xbf16>
    %c0_194 = arith.constant 0 : index
    %c0_195 = arith.constant 0 : index
    %307 = vector.load %arg11[%c0_194, %c0_195] : memref<128x128xbf16, #tpu.memory_space<vmem>>, vector<128x128xbf16>
    %cst_196 = arith.constant dense<0.000000e+00> : vector<2x128xf32>
    %308 = tpu.matmul %306, %307, %cst_196 {dimension_numbers = #tpu.dot_dimension_numbers<[1], [0], [0], [1], [0, 0, 1, 1], [], []>} : vector<2x128xbf16>, vector<128x128xbf16>, vector<2x128xf32> -> vector<2x128xf32>
    %c0_197 = arith.constant 0 : index
    %c0_198 = arith.constant 0 : index
    %309 = vector.load %arg12[%c0_197, %c0_198] : memref<1x128xf32, #tpu.memory_space<vmem>>, vector<1x128xf32>
    %310 = vector.broadcast %309 : vector<1x128xf32> to vector<2x128xf32>
    %311 = arith.addf %308, %310 : vector<2x128xf32>
    %cst_199 = arith.constant 0.000000e+00 : f32
    %312 = vector.broadcast %cst_199 : f32 to vector<2x128xf32>
    %313 = arith.maximumf %311, %312 : vector<2x128xf32>
    %314 = arith.truncf %313 : vector<2x128xf32> to vector<2x128xbf16>
    %c0_200 = arith.constant 0 : index
    %c0_201 = arith.constant 0 : index
    %315 = vector.load %arg13[%c0_200, %c0_201] : memref<128x128xbf16, #tpu.memory_space<vmem>>, vector<128x128xbf16>
    %cst_202 = arith.constant dense<0.000000e+00> : vector<2x128xf32>
    %316 = tpu.matmul %314, %315, %cst_202 {dimension_numbers = #tpu.dot_dimension_numbers<[1], [0], [0], [1], [0, 0, 1, 1], [], []>} : vector<2x128xbf16>, vector<128x128xbf16>, vector<2x128xf32> -> vector<2x128xf32>
    %c0_203 = arith.constant 0 : index
    %c0_204 = arith.constant 0 : index
    %317 = vector.load %arg14[%c0_203, %c0_204] : memref<1x128xf32, #tpu.memory_space<vmem>>, vector<1x128xf32>
    %318 = vector.broadcast %317 : vector<1x128xf32> to vector<2x128xf32>
    %319 = arith.addf %316, %318 : vector<2x128xf32>
    %c0_205 = arith.constant 0 : index
    %c0_206 = arith.constant 0 : index
    %320 = vector.load %arg15[%c0_205, %c0_206] : memref<2x128xf32, #tpu.memory_space<vmem>>, vector<2x128xf32>
    tpu.vector_store %arg15[%c0_205, %c0_206], %319 {strides = array<i32>} : memref<2x128xf32, #tpu.memory_space<vmem>>, vector<2x128xf32>,
    return
  }
}

</mosaic_0001>

<bundles_post_ra>
// kernel: lenet_forward.1
= control target key start
LH: loop header
LB: loop body
LE: loop exit
PB: predicated region body
PF: predicated region fallthrough
CT: control target
= control target key end

     0   :  { %s16787_s0 = inlined_call_operand.vmem [shape: f32[1352,128], index: 0, kind: input, shape index: {}]   ;;  %s16788_s1 = inlined_call_operand.vmem [shape: f32[128,128], index: 1, kind: input, shape index: {}]   ;;  %s16789_s2 = inlined_call_operand.vmem [shape: f32[1,128], index: 2, kind: input, shape index: {}]   ;;  %s16790_s3 = inlined_call_operand.vmem [shape: f32[1,128], index: 3, kind: input, shape index: {}]   ;;  %s16791_s4 = inlined_call_operand.vmem [shape: f32[1,128], index: 4, kind: input, shape index: {}]   ;;  %s16792_s5 = inlined_call_operand.vmem [shape: bf16[128,128], index: 5, kind: input, shape index: {}]   ;;  %s16793_s6 = inlined_call_operand.vmem [shape: f32[1,128], index: 6, kind: input, shape index: {}]   ;;  %s16794_s7 = inlined_call_operand.vmem [shape: f32[1,128], index: 7, kind: input, shape index: {}]   ;;  %s16795_s8 = inlined_call_operand.vmem [shape: f32[1,128], index: 8, kind: input, shape index: {}]   ;;  %s16796_s9 = inlined_call_operand.vmem [shape: bf16[4,128,128], index: 9, kind: input, shape index: {}]   ;;  %s16797_s10 = inlined_call_operand.vmem [shape: f32[1,128], index: 10, kind: input, shape index: {}]   ;;  %s16798_s11 = inlined_call_operand.vmem [shape: bf16[128,128], index: 11, kind: input, shape index: {}]   ;;  %s16799_s12 = inlined_call_operand.vmem [shape: f32[1,128], index: 12, kind: input, shape index: {}]   ;;  %s16800_s13 = inlined_call_operand.vmem [shape: bf16[128,128], index: 13, kind: input, shape index: {}]   ;;  %s16801_s14 = inlined_call_operand.vmem [shape: f32[1,128], index: 14, kind: input, shape index: {}]   ;;  %s16802_s15 = inlined_call_operand.hbm [shape: f32[2,128], index: 15, kind: output, shape index: {}]  }
   0x1   :  { %v235_v0 = vld [vmem:[%s16788_s1 + $0x78] sm:$0xff]  ;;  %v234_v1 = vld [vmem:[%s16788_s1 + $0x70] sm:$0xff]  ;;  %v233_v2 = vld [vmem:[%s16788_s1 + $0x68] sm:$0xff] }
   0x2   :  { %240 = vmatpush.msra.mxu0 %v235_v0  ;;  %8323 = vmatpush.msra.mxu2 %v235_v0  ;;  %v232_v3 = vld [vmem:[%s16788_s1 + $0x60] sm:$0xff]  ;;  %v231_v4 = vld [vmem:[%s16788_s1 + $0x58] sm:$0xff]  ;;  %v230_v5 = vld [vmem:[%s16788_s1 + $0x50] sm:$0xff] }
   0x3   :  { %8324 = vmatpush.msra.mxu3 %v235_v0  ;;  %8322 = vmatpush.msra.mxu1 %v235_v0 }
   0x4   :  { %241 = vmatpush.msra.mxu0 %v234_v1  ;;  %8326 = vmatpush.msra.mxu2 %v234_v1 }
   0x5   :  { %8327 = vmatpush.msra.mxu3 %v234_v1  ;;  %8325 = vmatpush.msra.mxu1 %v234_v1 }
   0x6   :  { %242 = vmatpush.msra.mxu0 %v233_v2  ;;  %8329 = vmatpush.msra.mxu2 %v233_v2 }
   0x7   :  { %8330 = vmatpush.msra.mxu3 %v233_v2  ;;  %8328 = vmatpush.msra.mxu1 %v233_v2 }
   0x8   :  { %243 = vmatpush.msra.mxu0 %v232_v3  ;;  %8332 = vmatpush.msra.mxu2 %v232_v3 }
   0x9   :  { %8333 = vmatpush.msra.mxu3 %v232_v3  ;;  %8331 = vmatpush.msra.mxu1 %v232_v3 }
   0xa   :  { %244 = vmatpush.msra.mxu0 %v231_v4  ;;  %8335 = vmatpush.msra.mxu2 %v231_v4 }
   0xb   :  { %20 = vsyncpa [#allocation7], 0  ;;  %v229_v6 = vld [vmem:[%s16788_s1 + $0x48] sm:$0xff]  ;;  %8336 = vmatpush.msra.mxu3 %v231_v4  ;;  %8334 = vmatpush.msra.mxu1 %v231_v4  ;;  %v228_v7 = vld [vmem:[%s16788_s1 + $0x40] sm:$0xff]  ;;  %s9285_s27 = smov 56   ;;  %s9286_s28 = smov 48  }
   0xc   :  { %245 = vmatpush.msra.mxu0 %v230_v5  ;;  %8338 = vmatpush.msra.mxu2 %v230_v5  ;;  %v227_v8 = vld [vmem:[%s16788_s1 + $0x38] sm:$0xff]  ;;  %v226_v9 = vld [vmem:[%s16788_s1 + $0x30] sm:$0xff]  ;;  %v225_v10 = vld [vmem:[%s16788_s1 + $0x28] sm:$0xff]  ;;  %vm2921_vm3 = vcmask 1045504   ;;  %vm3350_vm4 = vcmask 1043456   ;;  %s9289_s18 = smov 32  }
   0xd   :  { %8339 = vmatpush.msra.mxu3 %v230_v5  ;;  %8337 = vmatpush.msra.mxu1 %v230_v5  ;;  %v224_v11 = vld [vmem:[%s16788_s1 + $0x20] sm:$0xff]  ;;  %v223_v12 = vld [vmem:[%s16788_s1 + $0x18] sm:$0xff]  ;;  %v222_v13 = vld [vmem:[%s16788_s1 + $0x10] sm:$0xff]  ;;  %s9290_s19 = smov 16   ;;  %s9291_s20 = smov 40  }
   0xe   :  { %246 = vmatpush.msra.mxu0 %v229_v6  ;;  %8341 = vmatpush.msra.mxu2 %v229_v6  ;;  %v221_v14 = vld [vmem:[%s16788_s1 + $0x8] sm:$0xff]  ;;  %v220_v15 = vld [vmem:[%s16788_s1] sm:$0xff]  ;;  %v53_v18 = vld [vmem:[%s16787_s0 + $0x10] sm:$0xff]  ;;  %s9292_s21 = smov 64   ;;  %s9293_s23 = smov 80  }
   0xf   :  { %8342 = vmatpush.msra.mxu3 %v229_v6  ;;  %8340 = vmatpush.msra.mxu1 %v229_v6  ;;  %v51_v16 = vld [vmem:[%s16787_s0] sm:$0xff]  ;;  %v52_v17 = vld [vmem:[%s16787_s0 + $0x8] sm:$0xff]  ;;  %v54_v19 = vld [vmem:[%s16787_s0 + $0x18] sm:$0xff] }
  0x10   :  { %247 = vmatpush.msra.mxu0 %v228_v7  ;;  %8344 = vmatpush.msra.mxu2 %v228_v7  ;;  %v55_v20 = vld [vmem:[%s16787_s0 + $0x20] sm:$0xff]  ;;  %v56_v21 = vld [vmem:[%s16787_s0 + $0x28] sm:$0xff]  ;;  %v57_v22 = vld [vmem:[%s16787_s0 + $0x30] sm:$0xff] }
  0x11   :  { %8345 = vmatpush.msra.mxu3 %v228_v7  ;;  %8343 = vmatpush.msra.mxu1 %v228_v7  ;;  %v58_v23 = vld [vmem:[%s16787_s0 + $0x38] sm:$0xff]  ;;  %v59_v24 = vld [vmem:[%s16787_s0 + $0x40] sm:$0xff]  ;;  %v60_v25 = vld [vmem:[%s16787_s0 + $0x48] sm:$0xff] }
  0x12   :  { %248 = vmatpush.msra.mxu0 %v227_v8  ;;  %8347 = vmatpush.msra.mxu2 %v227_v8  ;;  %v61_v26 = vld [vmem:[%s16787_s0 + $0x50] sm:$0xff]  ;;  %v62_v27 = vld [vmem:[%s16787_s0 + $0x58] sm:$0xff]  ;;  %v63_v28 = vld [vmem:[%s16787_s0 + $0x60] sm:$0xff] }
  0x13   :  { %8348 = vmatpush.msra.mxu3 %v227_v8  ;;  %8346 = vmatpush.msra.mxu1 %v227_v8  ;;  %v64_v29 = vld [vmem:[%s16787_s0 + $0x68] sm:$0xff]  ;;  %v65_v30 = vld [vmem:[%s16787_s0 + $0x70] sm:$0xff]  ;;  %v66_v31 = vld [vmem:[%s16787_s0 + $0x78] sm:$0xff] }
  0x14   :  { %249 = vmatpush.msra.mxu0 %v226_v9  ;;  %8350 = vmatpush.msra.mxu2 %v226_v9  ;;  %v67_v33 = vld [vmem:[%s16787_s0 + $0x80] sm:$0xff]  ;;  %v68_v35 = vld [vmem:[%s16787_s0 + $0x88] sm:$0xff]  ;;  %v69_v37 = vld [vmem:[%s16787_s0 + $0x90] sm:$0xff] }
  0x15   :  { %8351 = vmatpush.msra.mxu3 %v226_v9  ;;  %8349 = vmatpush.msra.mxu1 %v226_v9  ;;  %v70_v39 = vld [vmem:[%s16787_s0 + $0x98] sm:$0xff]  ;;  %v71_v41 = vld [vmem:[%s16787_s0 + $0xa0] sm:$0xff]  ;;  %v72_v44 = vld [vmem:[%s16787_s0 + $0xa8] sm:$0xff] }
  0x16   :  { %250 = vmatpush.msra.mxu0 %v225_v10  ;;  %8353 = vmatpush.msra.mxu2 %v225_v10  ;;  %v122_v42 = vld [vmem:[%s16787_s0 + $0x238] sm:$0xff]  ;;  %v123_v45 = vld [vmem:[%s16787_s0 + $0x240] sm:$0xff]  ;;  %v73_v47 = vld [vmem:[%s16787_s0 + $0xb0] sm:$0xff] }
  0x17   :  { %8354 = vmatpush.msra.mxu3 %v225_v10  ;;  %8352 = vmatpush.msra.mxu1 %v225_v10  ;;  %v124_v48 = vld [vmem:[%s16787_s0 + $0x248] sm:$0xff]  ;;  %v74_v50 = vld [vmem:[%s16787_s0 + $0xb8] sm:$0xff]  ;;  %v125_v51 = vld [vmem:[%s16787_s0 + $0x250] sm:$0xff] }
  0x18   :  { %251 = vmatpush.msra.mxu0 %v224_v11  ;;  %8356 = vmatpush.msra.mxu2 %v224_v11  ;;  %v75_v53 = vld [vmem:[%s16787_s0 + $0xc0] sm:$0xff]  ;;  %v126_v54 = vld [vmem:[%s16787_s0 + $0x258] sm:$0xff]  ;;  %v76_v56 = vld [vmem:[%s16787_s0 + $0xc8] sm:$0xff] }
  0x19   :  { %8357 = vmatpush.msra.mxu3 %v224_v11  ;;  %8355 = vmatpush.msra.mxu1 %v224_v11  ;;  %v127_v57 = vld [vmem:[%s16787_s0 + $0x260] sm:$0xff]  ;;  %v77_v59 = vld [vmem:[%s16787_s0 + $0xd0] sm:$0xff]  ;;  %v128_v60 = vld [vmem:[%s16787_s0 + $0x268] sm:$0xff] }
  0x1a   :  { %252 = vmatpush.msra.mxu0 %v223_v12  ;;  %8359 = vmatpush.msra.mxu2 %v223_v12  ;;  %v78_v62 = vld [vmem:[%s16787_s0 + $0xd8] sm:$0xff]  ;;  %v129_v63 = vld [vmem:[%s16787_s0 + $0x270] sm:$0xff]  ;;  %v79_v1 = vld [vmem:[%s16787_s0 + $0xe0] sm:$0xff] }
  0x1b   :  { %8360 = vmatpush.msra.mxu3 %v223_v12  ;;  %8358 = vmatpush.msra.mxu1 %v223_v12  ;;  %v130_v2 = vld [vmem:[%s16787_s0 + $0x278] sm:$0xff]  ;;  %v80_v4 = vld [vmem:[%s16787_s0 + $0xe8] sm:$0xff]  ;;  %v131_v5 = vld [vmem:[%s16787_s0 + $0x280] sm:$0xff] }
  0x1c   :  { %253 = vmatpush.msra.mxu0 %v222_v13  ;;  %8362 = vmatpush.msra.mxu2 %v222_v13  ;;  %v81_v7 = vld [vmem:[%s16787_s0 + $0xf0] sm:$0xff]  ;;  %v132_v8 = vld [vmem:[%s16787_s0 + $0x288] sm:$0xff]  ;;  %v82_v10 = vld [vmem:[%s16787_s0 + $0xf8] sm:$0xff] }
  0x1d   :  { %8363 = vmatpush.msra.mxu3 %v222_v13  ;;  %8361 = vmatpush.msra.mxu1 %v222_v13  ;;  %v133_v11 = vld [vmem:[%s16787_s0 + $0x290] sm:$0xff]  ;;  %v83_v13 = vld [vmem:[%s16787_s0 + $0x100] sm:$0xff] }
  0x1e   :  { %254 = vmatpush.msra.mxu0 %v221_v14  ;;  %8365 = vmatpush.msra.mxu2 %v221_v14 }
  0x1f   :  { %8366 = vmatpush.msra.mxu3 %v221_v14  ;;  %8364 = vmatpush.msra.mxu1 %v221_v14  ;;  %v134_v14 = vld [vmem:[%s16787_s0 + $0x298] sm:$0xff] }
  0x20   :  { %255 = vmatpush.msra.mxu0 %v220_v15  ;;  %8368 = vmatpush.msra.mxu2 %v220_v15 }
  0x21   :  { %256 = vmatmul.f32.vlgmr.msra.gmra.mxu0 %v51_v16  ;;  %8369 = vmatpush.msra.mxu3 %v220_v15  ;;  %v84_v16 = vld [vmem:[%s16787_s0 + $0x108] sm:$0xff] }
  0x22   :  { %8367 = vmatpush.msra.mxu1 %v220_v15  ;;  %469 = vmatmul.f32.vlgmr.msra.gmra.mxu2 %v122_v42  ;;  %v89_v42 = vld [vmem:[%s16787_s0 + $0x130] sm:$0xff] }
  0x29   :  { %259 = vmatmul.f32.gmra.mxu0 %v52_v17  ;;  %v171_v17 = vld [vmem:[%s16787_s0 + $0x3c0] sm:$0xff] }
  0x2a   :  { %472 = vmatmul.f32.gmra.mxu2 %v123_v45  ;;  %616 = vmatmul.f32.vlgmr.msra.gmra.mxu3 %v171_v17  ;;  %v181_v17 = vld [vmem:[%s16787_s0 + $0x410] sm:$0xff] }
  0x31   :  { %262 = vmatmul.f32.gmra.mxu0 %v53_v18  ;;  %v135_v18 = vld [vmem:[%s16787_s0 + $0x2a0] sm:$0xff] }
  0x32   :  { %475 = vmatmul.f32.gmra.mxu2 %v124_v48 }
  0x39   :  { %265 = vmatmul.f32.gmra.mxu0 %v54_v19 }
  0x3a   :  { %478 = vmatmul.f32.gmra.mxu2 %v125_v51  ;;  %v177_v51 = vld [vmem:[%s16787_s0 + $0x3f0] sm:$0xff] }
  0x41   :  { %268 = vmatmul.f32.gmra.mxu0 %v55_v20  ;;  %v85_v20 = vld [vmem:[%s16787_s0 + $0x110] sm:$0xff] }
  0x42   :  { %481 = vmatmul.f32.gmra.mxu2 %v126_v54  ;;  %v141_v54 = vld [vmem:[%s16787_s0 + $0x2d0] sm:$0xff] }
  0x49   :  { %271 = vmatmul.f32.gmra.mxu0 %v56_v21  ;;  %v172_v21 = vld [vmem:[%s16787_s0 + $0x3c8] sm:$0xff] }
  0x4a   :  { %484 = vmatmul.f32.gmra.mxu2 %v127_v57  ;;  %619 = vmatmul.f32.gmra.mxu3 %v172_v21  ;;  %v91_v57 = vld [vmem:[%s16787_s0 + $0x140] sm:$0xff] }
  0x51   :  { %274 = vmatmul.f32.gmra.mxu0 %v57_v22  ;;  %v136_v22 = vld [vmem:[%s16787_s0 + $0x2a8] sm:$0xff] }
  0x52   :  { %487 = vmatmul.f32.gmra.mxu2 %v128_v60 }
  0x59   :  { %277 = vmatmul.f32.gmra.mxu0 %v58_v23 }
  0x5a   :  { %490 = vmatmul.f32.gmra.mxu2 %v129_v63 }
  0x61   :  { %280 = vmatmul.f32.gmra.mxu0 %v59_v24  ;;  %v86_v24 = vld [vmem:[%s16787_s0 + $0x118] sm:$0xff] }
  0x62   :  { %493 = vmatmul.f32.gmra.mxu2 %v130_v2  ;;  %v179_v2 = vld [vmem:[%s16787_s0 + $0x400] sm:$0xff] }
  0x69   :  { %283 = vmatmul.f32.gmra.mxu0 %v60_v25  ;;  %v173_v25 = vld [vmem:[%s16787_s0 + $0x3d0] sm:$0xff] }
  0x6a   :  { %496 = vmatmul.f32.gmra.mxu2 %v131_v5  ;;  %622 = vmatmul.f32.gmra.mxu3 %v173_v25  ;;  %v143_v5 = vld [vmem:[%s16787_s0 + $0x2e0] sm:$0xff] }
  0x71   :  { %286 = vmatmul.f32.gmra.mxu0 %v61_v26  ;;  %v137_v26 = vld [vmem:[%s16787_s0 + $0x2b0] sm:$0xff] }
  0x72   :  { %499 = vmatmul.f32.gmra.mxu2 %v132_v8  ;;  %v93_v8 = vld [vmem:[%s16787_s0 + $0x150] sm:$0xff] }
  0x79   :  { %289 = vmatmul.f32.gmra.mxu0 %v62_v27 }
  0x7a   :  { %502 = vmatmul.f32.gmra.mxu2 %v133_v11 }
  0x81   :  { %292 = vmatmul.f32.gmra.mxu0 %v63_v28  ;;  %v87_v28 = vld [vmem:[%s16787_s0 + $0x120] sm:$0xff] }
  0x82   :  { %505 = vmatmul.f32.gmra.mxu2 %v134_v14 }
  0x89   :  { %295 = vmatmul.f32.gmra.mxu0 %v64_v29  ;;  %v174_v29 = vld [vmem:[%s16787_s0 + $0x3d8] sm:$0xff] }
  0x8a   :  { %508 = vmatmul.f32.gmra.mxu2 %v135_v18  ;;  %625 = vmatmul.f32.gmra.mxu3 %v174_v29  ;;  %v96_v29 = vld [vmem:[%s16787_s0 + $0x168] sm:$0xff] }
  0x91   :  { %298 = vmatmul.f32.gmra.mxu0 %v65_v30  ;;  %v138_v30 = vld [vmem:[%s16787_s0 + $0x2b8] sm:$0xff] }
  0x92   :  { %511 = vmatmul.f32.gmra.mxu2 %v136_v22  ;;  %v95_v22 = vld [vmem:[%s16787_s0 + $0x160] sm:$0xff] }
  0x99   :  { %301 = vmatmul.f32.gmra.mxu0 %v66_v31 }
  0x9a   :  { %514 = vmatmul.f32.gmra.mxu2 %v137_v26  ;;  %v146_v26 = vld [vmem:[%s16787_s0 + $0x2f8] sm:$0xff] }
  0x9e   :  { %v9473_v32 = vpop.f32.mrf.mxu0 }
  0xa1   :  { %304 = vmatmul.f32.gmra.mxu0 %v67_v33  ;;  %v88_v33 = vld [vmem:[%s16787_s0 + $0x128] sm:$0xff] }
  0xa2   :  { %517 = vmatmul.f32.gmra.mxu2 %v138_v30  ;;  %v183_v30 = vld [vmem:[%s16787_s0 + $0x420] sm:$0xff] }
  0xa6   :  { %v9478_v34 = vpop.f32.mrf.mxu0 }
  0xa9   :  { %307 = vmatmul.f32.gmra.mxu0 %v68_v35  ;;  %v175_v35 = vld [vmem:[%s16787_s0 + $0x3e0] sm:$0xff] }
  0xaa   :  { %628 = vmatmul.f32.gmra.mxu3 %v175_v35  ;;  %v147_v35 = vld [vmem:[%s16787_s0 + $0x300] sm:$0xff] }
  0xae   :  { %v9483_v36 = vpop.f32.mrf.mxu0 }
  0xb1   :  { %310 = vmatmul.f32.gmra.mxu0 %v69_v37  ;;  %v9649_v37 = vpop.f32.mrf.mxu2 }
  0xb6   :  { %v9488_v38 = vpop.f32.mrf.mxu0 }
  0xb9   :  { %313 = vmatmul.f32.gmra.mxu0 %v70_v39  ;;  %v139_v39 = vld [vmem:[%s16787_s0 + $0x2c0] sm:$0xff]  ;;  %v9662_v45 = vpop.f32.mrf.mxu2 }
  0xba   :  { %520 = vmatmul.f32.gmra.mxu2 %v139_v39 }
  0xbe   :  { %v9493_v40 = vpop.f32.mrf.mxu0 }
  0xc1   :  { %316 = vmatmul.f32.gmra.mxu0 %v71_v41 }
  0xc6   :  { %v9501_v43 = vpop.f32.mrf.mxu0 }
  0xc9   :  { %319 = vmatmul.f32.gmra.mxu0 %v72_v44  ;;  %v176_v44 = vld [vmem:[%s16787_s0 + $0x3e8] sm:$0xff] }
  0xca   :  { %631 = vmatmul.f32.gmra.mxu3 %v176_v44  ;;  %v184_v44 = vld [vmem:[%s16787_s0 + $0x428] sm:$0xff] }
  0xce   :  { %v9509_v46 = vpop.f32.mrf.mxu0 }
  0xd1   :  { %322 = vmatmul.f32.gmra.mxu0 %v73_v47  ;;  %v140_v47 = vld [vmem:[%s16787_s0 + $0x2c8] sm:$0xff] }
  0xd2   :  { %523 = vmatmul.f32.gmra.mxu2 %v140_v47  ;;  %634 = vmatmul.f32.gmra.mxu3 %v177_v51  ;;  %v148_v51 = vld [vmem:[%s16787_s0 + $0x308] sm:$0xff] }
  0xd6   :  { %v9517_v49 = vpop.f32.mrf.mxu0 }
  0xd9   :  { %325 = vmatmul.f32.gmra.mxu0 %v74_v50  ;;  %v90_v50 = vld [vmem:[%s16787_s0 + $0x138] sm:$0xff] }
  0xda   :  { %526 = vmatmul.f32.gmra.mxu2 %v141_v54 }
  0xde   :  { %v9525_v52 = vpop.f32.mrf.mxu0 }
  0xe1   :  { %328 = vmatmul.f32.gmra.mxu0 %v75_v53  ;;  %v9675_v53 = vpop.f32.mrf.mxu2 }
  0xe6   :  { %v9533_v55 = vpop.f32.mrf.mxu0 }
  0xe9   :  { %331 = vmatmul.f32.gmra.mxu0 %v76_v56  ;;  %v9688_v60 = vpop.f32.mrf.mxu2 }
  0xee   :  { %v9541_v58 = vpop.f32.mrf.mxu0 }
  0xf1   :  { %334 = vmatmul.f32.gmra.mxu0 %v77_v59  ;;  %v178_v59 = vld [vmem:[%s16787_s0 + $0x3f8] sm:$0xff] }
  0xf2   :  { %637 = vmatmul.f32.gmra.mxu3 %v178_v59  ;;  %v185_v59 = vld [vmem:[%s16787_s0 + $0x430] sm:$0xff] }
  0xf6   :  { %v9549_v61 = vpop.f32.mrf.mxu0 }
  0xf9   :  { %337 = vmatmul.f32.gmra.mxu0 %v78_v62  ;;  %v142_v62 = vld [vmem:[%s16787_s0 + $0x2d8] sm:$0xff] }
  0xfa   :  { %529 = vmatmul.f32.gmra.mxu2 %v142_v62  ;;  %640 = vmatmul.f32.gmra.mxu3 %v179_v2  ;;  %v149_v2 = vld [vmem:[%s16787_s0 + $0x310] sm:$0xff] }
  0xfe   :  { %v9557_v0 = vpop.f32.mrf.mxu0 }
 0x101   :  { %340 = vmatmul.f32.gmra.mxu0 %v79_v1  ;;  %v92_v1 = vld [vmem:[%s16787_s0 + $0x148] sm:$0xff] }
 0x102   :  { %532 = vmatmul.f32.gmra.mxu2 %v143_v5 }
 0x106   :  { %v9565_v3 = vpop.f32.mrf.mxu0 }
 0x109   :  { %343 = vmatmul.f32.gmra.mxu0 %v80_v4  ;;  %v9701_v4 = vpop.f32.mrf.mxu2 }
 0x10e   :  { %v9573_v6 = vpop.f32.mrf.mxu0 }
 0x111   :  { %346 = vmatmul.f32.gmra.mxu0 %v81_v7  ;;  %v9714_v11 = vpop.f32.mrf.mxu2 }
 0x116   :  { %v9581_v9 = vpop.f32.mrf.mxu0 }
 0x119   :  { %349 = vmatmul.f32.gmra.mxu0 %v82_v10  ;;  %v180_v10 = vld [vmem:[%s16787_s0 + $0x408] sm:$0xff]  ;;  %v9727_v18 = vpop.f32.mrf.mxu2 }
 0x11a   :  { %643 = vmatmul.f32.gmra.mxu3 %v180_v10  ;;  %17173 = vst [vmem:[#allocation9_spill] sm:$0xff] %v9727_v18  ;;  %v186_v10 = vld [vmem:[%s16787_s0 + $0x438] sm:$0xff] }
 0x11e   :  { %v9589_v12 = vpop.f32.mrf.mxu0 }
 0x121   :  { %352 = vmatmul.f32.gmra.mxu0 %v83_v13  ;;  %v144_v13 = vld [vmem:[%s16787_s0 + $0x2e8] sm:$0xff]  ;;  %v9740_v25 = vpop.f32.mrf.mxu2 }
 0x122   :  { %535 = vmatmul.f32.gmra.mxu2 %v144_v13  ;;  %646 = vmatmul.f32.gmra.mxu3 %v181_v17  ;;  %17174 = vst [vmem:[#allocation10_spill] sm:$0xff] %v9740_v25  ;;  %v150_v17 = vld [vmem:[%s16787_s0 + $0x318] sm:$0xff] }
 0x126   :  { %v9597_v15 = vpop.f32.mrf.mxu0 }
 0x129   :  { %355 = vmatmul.f32.gmra.mxu0 %v84_v16  ;;  %v94_v16 = vld [vmem:[%s16787_s0 + $0x158] sm:$0xff] }
 0x12e   :  { %v9608_v19 = vpop.f32.mrf.mxu0 }
 0x131   :  { %358 = vmatmul.f32.gmra.mxu0 %v85_v20  ;;  %v145_v20 = vld [vmem:[%s16787_s0 + $0x2f0] sm:$0xff] }
 0x132   :  { %538 = vmatmul.f32.gmra.mxu2 %v145_v20 }
 0x136   :  { %v9619_v23 = vpop.f32.mrf.mxu0 }
 0x139   :  { %361 = vmatmul.f32.gmra.mxu0 %v86_v24  ;;  %v182_v24 = vld [vmem:[%s16787_s0 + $0x418] sm:$0xff] }
 0x13a   :  { %649 = vmatmul.f32.gmra.mxu3 %v182_v24  ;;  %541 = vmatmul.f32.gmra.mxu2 %v146_v26  ;;  %v187_v24 = vld [vmem:[%s16787_s0 + $0x440] sm:$0xff] }
 0x13e   :  { %v9630_v27 = vpop.f32.mrf.mxu0 }
 0x141   :  { %364 = vmatmul.f32.gmra.mxu0 %v87_v28 }
 0x142   :  { %652 = vmatmul.f32.gmra.mxu3 %v183_v30  ;;  %544 = vmatmul.f32.gmra.mxu2 %v147_v35  ;;  %v9819_v30 = vpop.f32.mrf.mxu3  ;;  %v151_v35 = vld [vmem:[%s16787_s0 + $0x320] sm:$0xff] }
 0x143   :  { %17180 = vst [vmem:[#allocation16_spill] sm:$0xff] %v9819_v30  ;;  %v193_v30 = vld [vmem:[%s16787_s0 + $0x470] sm:$0xff] }
 0x146   :  { %v9641_v31 = vpop.f32.mrf.mxu0 }
 0x149   :  { %367 = vmatmul.f32.gmra.mxu0 %v88_v33  ;;  %v9753_v33 = vpop.f32.mrf.mxu2 }
 0x14a   :  { %17175 = vst [vmem:[#allocation11_spill] sm:$0xff] %v9753_v33  ;;  %655 = vmatmul.f32.gmra.mxu3 %v184_v44  ;;  %547 = vmatmul.f32.gmra.mxu2 %v148_v51  ;;  %v101_v44 = vld [vmem:[%s16787_s0 + $0x190] sm:$0xff] }
 0x14e   :  { %v9654_v41 = vpop.f32.mrf.mxu0 }
 0x151   :  { %370 = vmatmul.f32.gmra.mxu0 %v89_v42  ;;  %v97_v42 = vld [vmem:[%s16787_s0 + $0x170] sm:$0xff]  ;;  %v9766_v47 = vpop.f32.mrf.mxu2 }
 0x152   :  { %17176 = vst [vmem:[#allocation12_spill] sm:$0xff] %v9766_v47  ;;  %658 = vmatmul.f32.gmra.mxu3 %v185_v59  ;;  %550 = vmatmul.f32.gmra.mxu2 %v149_v2  ;;  %v9837_v59 = vpop.f32.mrf.mxu3 }
 0x153   :  { %17182 = vst [vmem:[#allocation18_spill] sm:$0xff] %v9837_v59 }
 0x156   :  { %v9667_v48 = vpop.f32.mrf.mxu0 }
 0x159   :  { %373 = vmatmul.f32.gmra.mxu0 %v90_v50  ;;  %v110_v50 = vld [vmem:[%s16787_s0 + $0x1d8] sm:$0xff]  ;;  %v9782_v62 = vpop.f32.mrf.mxu2 }
 0x15a   :  { %433 = vmatmul.f32.vlgmr.msra.gmra.mxu1 %v110_v50  ;;  %17177 = vst [vmem:[#allocation13_spill] sm:$0xff] %v9782_v62  ;;  %661 = vmatmul.f32.gmra.mxu3 %v186_v10  ;;  %v188_v50 = vld [vmem:[%s16787_s0 + $0x448] sm:$0xff]  ;;  %v189_v10 = vld [vmem:[%s16787_s0 + $0x450] sm:$0xff] }
 0x15b   :  { %553 = vmatmul.f32.gmra.mxu2 %v150_v17  ;;  %v115_v17 = vld [vmem:[%s16787_s0 + $0x200] sm:$0xff] }
 0x15e   :  { %v9680_v56 = vpop.f32.mrf.mxu0 }
 0x161   :  { %376 = vmatmul.f32.gmra.mxu0 %v91_v57  ;;  %v98_v57 = vld [vmem:[%s16787_s0 + $0x178] sm:$0xff]  ;;  %v9798_v13 = vpop.f32.mrf.mxu2 }
 0x162   :  { %17178 = vst [vmem:[#allocation14_spill] sm:$0xff] %v9798_v13  ;;  %664 = vmatmul.f32.gmra.mxu3 %v187_v24  ;;  %v153_v24 = vld [vmem:[%s16787_s0 + $0x330] sm:$0xff] }
 0x163   :  { %556 = vmatmul.f32.gmra.mxu2 %v151_v35  ;;  %v103_v35 = vld [vmem:[%s16787_s0 + $0x1a0] sm:$0xff] }
 0x166   :  { %v9693_v63 = vpop.f32.mrf.mxu0 }
 0x169   :  { %379 = vmatmul.f32.gmra.mxu0 %v92_v1  ;;  %v111_v1 = vld [vmem:[%s16787_s0 + $0x1e0] sm:$0xff]  ;;  %v9814_v26 = vpop.f32.mrf.mxu2 }
 0x16a   :  { %436 = vmatmul.f32.gmra.mxu1 %v111_v1  ;;  %17179 = vst [vmem:[#allocation15_spill] sm:$0xff] %v9814_v26  ;;  %667 = vmatmul.f32.gmra.mxu3 %v188_v50  ;;  %v152_v1 = vld [vmem:[%s16787_s0 + $0x328] sm:$0xff] }
 0x16b   :  { %559 = vmatmul.f32.gmra.mxu2 %v152_v1 }
 0x16e   :  { %v9706_v7 = vpop.f32.mrf.mxu0 }
 0x171   :  { %382 = vmatmul.f32.gmra.mxu0 %v93_v8  ;;  %v99_v8 = vld [vmem:[%s16787_s0 + $0x180] sm:$0xff]  ;;  %v9832_v51 = vpop.f32.mrf.mxu2 }
 0x172   :  { %17181 = vst [vmem:[#allocation17_spill] sm:$0xff] %v9832_v51  ;;  %670 = vmatmul.f32.gmra.mxu3 %v189_v10 }
 0x173   :  { %562 = vmatmul.f32.gmra.mxu2 %v153_v24  ;;  %v191_v24 = vld [vmem:[%s16787_s0 + $0x460] sm:$0xff] }
 0x176   :  { %v9719_v14 = vpop.f32.mrf.mxu0 }
 0x179   :  { %385 = vmatmul.f32.gmra.mxu0 %v94_v16  ;;  %v112_v16 = vld [vmem:[%s16787_s0 + $0x1e8] sm:$0xff] }
 0x17a   :  { %439 = vmatmul.f32.gmra.mxu1 %v112_v16  ;;  %v9850_v16 = vpop.f32.mrf.mxu2 }
 0x17b   :  { %17183 = vst [vmem:[#allocation19_spill] sm:$0xff] %v9850_v16  ;;  %v197_v16 = vld [vmem:[%s16787_s0 + $0x490] sm:$0xff] }
 0x17e   :  { %v9732_v21 = vpop.f32.mrf.mxu0 }
 0x181   :  { %388 = vmatmul.f32.gmra.mxu0 %v95_v22  ;;  %v100_v22 = vld [vmem:[%s16787_s0 + $0x188] sm:$0xff] }
 0x182   :  { %v9868_v50 = vpop.f32.mrf.mxu2 }
 0x183   :  { %17185 = vst [vmem:[#allocation21_spill] sm:$0xff] %v9868_v50 }
 0x186   :  { %v9745_v28 = vpop.f32.mrf.mxu0 }
 0x189   :  { %391 = vmatmul.f32.gmra.mxu0 %v96_v29  ;;  %v113_v29 = vld [vmem:[%s16787_s0 + $0x1f0] sm:$0xff] }
 0x18a   :  { %442 = vmatmul.f32.gmra.mxu1 %v113_v29 }
 0x18e   :  { %v9758_v39 = vpop.f32.mrf.mxu0 }
 0x191   :  { %394 = vmatmul.f32.gmra.mxu0 %v97_v42 }
 0x196   :  { %v9774_v54 = vpop.f32.mrf.mxu0 }
 0x199   :  { %397 = vmatmul.f32.gmra.mxu0 %v98_v57  ;;  %v114_v57 = vld [vmem:[%s16787_s0 + $0x1f8] sm:$0xff] }
 0x19a   :  { %445 = vmatmul.f32.gmra.mxu1 %v114_v57  ;;  %v116_v57 = vld [vmem:[%s16787_s0 + $0x208] sm:$0xff] }
 0x19e   :  { %v9790_v5 = vpop.f32.mrf.mxu0 }
 0x1a1   :  { %400 = vmatmul.f32.gmra.mxu0 %v99_v8  ;;  %v102_v8 = vld [vmem:[%s16787_s0 + $0x198] sm:$0xff] }
 0x1a2   :  { %448 = vmatmul.f32.gmra.mxu1 %v115_v17  ;;  %v104_v17 = vld [vmem:[%s16787_s0 + $0x1a8] sm:$0xff] }
 0x1a6   :  { %v9806_v20 = vpop.f32.mrf.mxu0 }
 0x1a9   :  { %403 = vmatmul.f32.gmra.mxu0 %v100_v22  ;;  %v9855_v22 = vpop.f32.mrf.mxu3 }
 0x1aa   :  { %17184 = vst [vmem:[#allocation20_spill] sm:$0xff] %v9855_v22  ;;  %451 = vmatmul.f32.gmra.mxu1 %v116_v57  ;;  %v192_v22 = vld [vmem:[%s16787_s0 + $0x468] sm:$0xff] }
 0x1ae   :  { %v9824_v42 = vpop.f32.mrf.mxu0 }
 0x1b1   :  { %406 = vmatmul.f32.gmra.mxu0 %v101_v44  ;;  %v190_v44 = vld [vmem:[%s16787_s0 + $0x458] sm:$0xff]  ;;  %v9873_v1 = vpop.f32.mrf.mxu3 }
 0x1b2   :  { %673 = vmatmul.f32.gmra.mxu3 %v190_v44  ;;  %17186 = vst [vmem:[#allocation22_spill] sm:$0xff] %v9873_v1  ;;  %v117_v44 = vld [vmem:[%s16787_s0 + $0x210] sm:$0xff] }
 0x1b3   :  { %454 = vmatmul.f32.gmra.mxu1 %v117_v44  ;;  %v118_v44 = vld [vmem:[%s16787_s0 + $0x218] sm:$0xff] }
 0x1b6   :  { %v9842_v2 = vpop.f32.mrf.mxu0 }
 0x1b9   :  { %409 = vmatmul.f32.gmra.mxu0 %v102_v8  ;;  %v154_v8 = vld [vmem:[%s16787_s0 + $0x338] sm:$0xff]  ;;  %v9891_v57 = vpop.f32.mrf.mxu3 }
 0x1ba   :  { %565 = vmatmul.f32.gmra.mxu2 %v154_v8  ;;  %676 = vmatmul.f32.gmra.mxu3 %v191_v24  ;;  %17188 = vst [vmem:[#allocation24_spill] sm:$0xff] %v9891_v57  ;;  %v155_v8 = vld [vmem:[%s16787_s0 + $0x340] sm:$0xff]  ;;  %v105_v24 = vld [vmem:[%s16787_s0 + $0x1b0] sm:$0xff]  ;;  %v156_v57 = vld [vmem:[%s16787_s0 + $0x348] sm:$0xff] }
 0x1bb   :  { %457 = vmatmul.f32.gmra.mxu1 %v118_v44  ;;  %v119_v44 = vld [vmem:[%s16787_s0 + $0x220] sm:$0xff] }
 0x1be   :  { %v9860_v29 = vpop.f32.mrf.mxu0 }
 0x1c1   :  { %412 = vmatmul.f32.gmra.mxu0 %v103_v35  ;;  %v9886_v35 = vpop.f32.mrf.mxu2 }
 0x1c2   :  { %17187 = vst [vmem:[#allocation23_spill] sm:$0xff] %v9886_v35  ;;  %568 = vmatmul.f32.gmra.mxu2 %v155_v8  ;;  %679 = vmatmul.f32.gmra.mxu3 %v192_v22  ;;  %v9909_v8 = vpop.f32.mrf.mxu3  ;;  %v106_v22 = vld [vmem:[%s16787_s0 + $0x1b8] sm:$0xff] }
 0x1c3   :  { %17190 = vst [vmem:[#allocation26_spill] sm:$0xff] %v9909_v8  ;;  %460 = vmatmul.f32.gmra.mxu1 %v119_v44  ;;  %v157_v8 = vld [vmem:[%s16787_s0 + $0x350] sm:$0xff]  ;;  %v120_v44 = vld [vmem:[%s16787_s0 + $0x228] sm:$0xff] }
 0x1c6   :  { %v9878_v10 = vpop.f32.mrf.mxu0 }
 0x1c9   :  { %415 = vmatmul.f32.gmra.mxu0 %v104_v17  ;;  %v9904_v17 = vpop.f32.mrf.mxu2 }
 0x1ca   :  { %17189 = vst [vmem:[#allocation25_spill] sm:$0xff] %v9904_v17  ;;  %571 = vmatmul.f32.gmra.mxu2 %v156_v57  ;;  %682 = vmatmul.f32.gmra.mxu3 %v193_v30  ;;  %v9927_v57 = vpop.f32.mrf.mxu3  ;;  %v107_v30 = vld [vmem:[%s16787_s0 + $0x1c0] sm:$0xff] }
 0x1cb   :  { %17192 = vst [vmem:[#allocation28_spill] sm:$0xff] %v9927_v57  ;;  %463 = vmatmul.f32.gmra.mxu1 %v120_v44  ;;  %v158_v57 = vld [vmem:[%s16787_s0 + $0x358] sm:$0xff]  ;;  %v121_v44 = vld [vmem:[%s16787_s0 + $0x230] sm:$0xff] }
 0x1ce   :  { %v9896_v1 = vpop.f32.mrf.mxu0 }
 0x1d1   :  { %418 = vmatmul.f32.gmra.mxu0 %v105_v24  ;;  %v9922_v24 = vpop.f32.mrf.mxu2 }
 0x1d2   :  { %17191 = vst [vmem:[#allocation27_spill] sm:$0xff] %v9922_v24  ;;  %574 = vmatmul.f32.gmra.mxu2 %v157_v8  ;;  %v194_v24 = vld [vmem:[%s16787_s0 + $0x478] sm:$0xff]  ;;  %v9945_v8 = vpop.f32.mrf.mxu3 }
 0x1d3   :  { %685 = vmatmul.f32.gmra.mxu3 %v194_v24  ;;  %17194 = vst [vmem:[#allocation30_spill] sm:$0xff] %v9945_v8  ;;  %v108_v24 = vld [vmem:[%s16787_s0 + $0x1c8] sm:$0xff]  ;;  %466 = vmatmul.f32.gmra.mxu1 %v121_v44  ;;  %v159_v8 = vld [vmem:[%s16787_s0 + $0x360] sm:$0xff] }
 0x1d6   :  { %v9914_v59 = vpop.f32.mrf.mxu0 }
 0x1d9   :  { %421 = vmatmul.f32.gmra.mxu0 %v106_v22  ;;  %v9940_v22 = vpop.f32.mrf.mxu2 }
 0x1da   :  { %17193 = vst [vmem:[#allocation29_spill] sm:$0xff] %v9940_v22  ;;  %577 = vmatmul.f32.gmra.mxu2 %v158_v57  ;;  %v195_v22 = vld [vmem:[%s16787_s0 + $0x480] sm:$0xff]  ;;  %v9963_v57 = vpop.f32.mrf.mxu3 }
 0x1db   :  { %688 = vmatmul.f32.gmra.mxu3 %v195_v22  ;;  %17196 = vst [vmem:[#allocation32_spill] sm:$0xff] %v9963_v57  ;;  %v109_v22 = vld [vmem:[%s16787_s0 + $0x1d0] sm:$0xff] }
 0x1de   :  { %v9932_v17 = vpop.f32.mrf.mxu0 }
 0x1e1   :  { %424 = vmatmul.f32.gmra.mxu0 %v107_v30  ;;  %v9958_v30 = vpop.f32.mrf.mxu2 }
 0x1e2   :  { %17195 = vst [vmem:[#allocation31_spill] sm:$0xff] %v9958_v30  ;;  %580 = vmatmul.f32.gmra.mxu2 %v159_v8  ;;  %v196_v30 = vld [vmem:[%s16787_s0 + $0x488] sm:$0xff]  ;;  %v9978_v44 = vpop.f32.mrf.mxu3 }
 0x1e3   :  { %691 = vmatmul.f32.gmra.mxu3 %v196_v30  ;;  %17198 = vst [vmem:[#allocation34_spill] sm:$0xff] %v9978_v44  ;;  %v160_v8 = vld [vmem:[%s16787_s0 + $0x368] sm:$0xff]  ;;  %v9991_v30 = vld [vmem:[%s16789_s2] ss:$0 sm:$0xff] }
 0x1e4   :  { %v9997_v44 = vadd.f32 %v9991_v30, %v9478_v34  ;;  %v10007_v51 = vadd.f32 %v9991_v30, %v9483_v36  ;;  %v10016_v34 = vadd.f32 %v9991_v30, %v9488_v38  ;;  %v10031_v13 = vadd.f32 %v9991_v30, %v9493_v40 }
 0x1e5   :  { %v10040_v25 = vadd.f32 %v9991_v30, %v9501_v43 }
 0x1e6   :  { %v9950_v35 = vpop.f32.mrf.mxu0  ;;  %17200 = vst [vmem:[#allocation36_spill] sm:$0xff] %v9997_v44  ;;  %v942_v33 = vmul.f32 %v10016_v34, %v10016_v34  ;;  %v943_v40 = vmul.f32 %v10031_v13, %v10031_v13 }
 0x1e7   :  { %17203 = vst [vmem:[#allocation39_spill] sm:$0xff] %v10016_v34 }
 0x1e8   :  { %17204 = vst [vmem:[#allocation40_spill] sm:$0xff] %v10031_v13 }
 0x1e9   :  { %427 = vmatmul.f32.gmra.mxu0 %v108_v24  ;;  %v9976_v24 = vpop.f32.mrf.mxu2  ;;  %17205 = vst [vmem:[#allocation41_spill] sm:$0xff] %v10040_v25 }
 0x1ea   :  { %17197 = vst [vmem:[#allocation33_spill] sm:$0xff] %v9976_v24  ;;  %583 = vmatmul.f32.gmra.mxu2 %v160_v8  ;;  %v9999_v24 = vpop.f32.mrf.mxu3  ;;  %v10003_v8 = vadd.f32 %v9991_v30, %v9473_v32  ;;  %v198_v32 = vld [vmem:[%s16787_s0 + $0x498] sm:$0xff] }
 0x1eb   :  { %694 = vmatmul.f32.gmra.mxu3 %v197_v16  ;;  %17201 = vst [vmem:[#allocation37_spill] sm:$0xff] %v9999_v24  ;;  %v161_v16 = vld [vmem:[%s16787_s0 + $0x370] sm:$0xff] }
 0x1ec   :  { %17202 = vst [vmem:[#allocation38_spill] sm:$0xff] %v10003_v8  ;;  %v939_v36 = vmul.f32 %v10003_v8, %v10003_v8  ;;  %v764_v26 = vadd.f32 %v9997_v44, %v10003_v8 }
 0x1ee   :  { %v9968_v50 = vpop.f32.mrf.mxu0  ;;  %v765_v47 = vadd.f32 %v764_v26, %v10007_v51  ;;  %v162_v26 = vld [vmem:[%s16787_s0 + $0x378] sm:$0xff] }
 0x1f0   :  { %v766_v18 = vadd.f32 %v765_v47, %v10016_v34  ;;  %v10059_v47 = vadd.f32 %v9991_v30, %v9517_v49 }
 0x1f1   :  { %430 = vmatmul.f32.gmra.mxu0 %v109_v22  ;;  %v9993_v22 = vpop.f32.mrf.mxu2 }
 0x1f2   :  { %17199 = vst [vmem:[#allocation35_spill] sm:$0xff] %v9993_v22  ;;  %586 = vmatmul.f32.gmra.mxu2 %v161_v16  ;;  %v940_v22 = vmul.f32 %v9997_v44, %v9997_v44  ;;  %v941_v16 = vmul.f32 %v10007_v51, %v10007_v51  ;;  %v10042_v44 = vpop.f32.mrf.mxu3  ;;  %v767_v43 = vadd.f32 %v766_v18, %v10031_v13 }
 0x1f3   :  { %697 = vmatmul.f32.gmra.mxu3 %v198_v32  ;;  %17206 = vst [vmem:[#allocation42_spill] sm:$0xff] %v10059_v47  ;;  %v10071_v18 = vadd.f32 %v9991_v30, %v9525_v52  ;;  %v946_v13 = vmul.f32 %v10059_v47, %v10059_v47 }
 0x1f4   :  { %v1108_v62 = vadd.f32 %v940_v22, %v939_v36  ;;  %v10049_v22 = vadd.f32 %v9991_v30, %v9509_v46  ;;  %v199_v46 = vld [vmem:[%s16787_s0 + $0x4a0] sm:$0xff]  ;;  %v768_v34 = vadd.f32 %v767_v43, %v10040_v25 }
 0x1f5   :  { %17207 = vst [vmem:[#allocation43_spill] sm:$0xff] %v10071_v18  ;;  %v947_v52 = vmul.f32 %v10071_v18, %v10071_v18 }
 0x1f6   :  { %v9983_v57 = vpop.f32.mrf.mxu0  ;;  %v1109_v8 = vadd.f32 %v1108_v62, %v941_v16  ;;  %v944_v62 = vmul.f32 %v10040_v25, %v10040_v25 }
 0x1f8   :  { %v1110_v32 = vadd.f32 %v1109_v8, %v942_v33  ;;  %v945_v33 = vmul.f32 %v10049_v22, %v10049_v22 }
 0x1f9   :  { %v10033_v38 = vpop.f32.mrf.mxu2 }
 0x1fa   :  { %589 = vmatmul.f32.gmra.mxu2 %v162_v26  ;;  %v1111_v16 = vadd.f32 %v1110_v32, %v943_v40  ;;  %v769_v26 = vadd.f32 %v768_v34, %v10049_v22  ;;  %v10080_v40 = vadd.f32 %v9991_v30, %v9533_v55  ;;  %v10082_v32 = vpop.f32.mrf.mxu3  ;;  %v163_v34 = vld [vmem:[%s16787_s0 + $0x380] sm:$0xff] }
 0x1fb   :  { %700 = vmatmul.f32.gmra.mxu3 %v199_v46 }
 0x1fc   :  { %v1112_v49 = vadd.f32 %v1111_v16, %v944_v62  ;;  %17208 = vst [vmem:[#allocation44_spill] sm:$0xff] %v10080_v40  ;;  %v770_v25 = vadd.f32 %v769_v26, %v10059_v47  ;;  %v10089_v62 = vadd.f32 %v9991_v30, %v9541_v58  ;;  %v948_v16 = vmul.f32 %v10080_v40, %v10080_v40  ;;  %v200_v58 = vld [vmem:[%s16787_s0 + $0x4a8] sm:$0xff] }
 0x1fe   :  { %v10018_v24 = vpop.f32.mrf.mxu0  ;;  %v1113_v43 = vadd.f32 %v1112_v49, %v945_v33  ;;  %17209 = vst [vmem:[#allocation45_spill] sm:$0xff] %v10089_v62  ;;  %v771_v55 = vadd.f32 %v770_v25, %v10071_v18  ;;  %v10099_v33 = vadd.f32 %v9991_v30, %v9549_v61  ;;  %v10111_v25 = vadd.f32 %v9991_v30, %v9557_v0 }
 0x200   :  { %v1114_v46 = vadd.f32 %v1113_v43, %v946_v13  ;;  %17210 = vst [vmem:[#allocation46_spill] sm:$0xff] %v10099_v33  ;;  %v772_v47 = vadd.f32 %v771_v55, %v10080_v40  ;;  %v949_v13 = vmul.f32 %v10089_v62, %v10089_v62  ;;  %v950_v18 = vmul.f32 %v10099_v33, %v10099_v33 }
 0x201   :  { %v10073_v8 = vpop.f32.mrf.mxu2  ;;  %17211 = vst [vmem:[#allocation47_spill] sm:$0xff] %v10111_v25 }
 0x202   :  { %592 = vmatmul.f32.gmra.mxu2 %v163_v34  ;;  %v1115_v26 = vadd.f32 %v1114_v46, %v947_v52  ;;  %v773_v34 = vadd.f32 %v772_v47, %v10089_v62  ;;  %v10120_v52 = vadd.f32 %v9991_v30, %v9565_v3  ;;  %v10122_v46 = vpop.f32.mrf.mxu1  ;;  %v10124_v55 = vpop.f32.mrf.mxu3  ;;  %v10131_v47 = vadd.f32 %v9991_v30, %v9573_v6  ;;  %v201_v6 = vld [vmem:[%s16787_s0 + $0x4b0] sm:$0xff] }
 0x203   :  { %703 = vmatmul.f32.gmra.mxu3 %v200_v58  ;;  %v951_v58 = vmul.f32 %v10111_v25, %v10111_v25 }
 0x204   :  { %v1116_v61 = vadd.f32 %v1115_v26, %v948_v16  ;;  %17212 = vst [vmem:[#allocation48_spill] sm:$0xff] %v10120_v52  ;;  %v774_v0 = vadd.f32 %v773_v34, %v10099_v33  ;;  %v164_v16 = vld [vmem:[%s16787_s0 + $0x388] sm:$0xff] }
 0x205   :  { %17213 = vst [vmem:[#allocation49_spill] sm:$0xff] %v10131_v47 }
 0x206   :  { %v10061_v36 = vpop.f32.mrf.mxu0  ;;  %v1117_v40 = vadd.f32 %v1116_v61, %v949_v13  ;;  %v775_v26 = vadd.f32 %v774_v0, %v10111_v25  ;;  %v952_v13 = vmul.f32 %v10120_v52, %v10120_v52  ;;  %v10141_v61 = vadd.f32 %v9991_v30, %v9581_v9 }
 0x208   :  { %v1118_v3 = vadd.f32 %v1117_v40, %v950_v18  ;;  %17214 = vst [vmem:[#allocation50_spill] sm:$0xff] %v10141_v61  ;;  %v776_v62 = vadd.f32 %v775_v26, %v10120_v52  ;;  %v953_v18 = vmul.f32 %v10131_v47, %v10131_v47  ;;  %v10153_v40 = vadd.f32 %v9991_v30, %v9589_v12 }
 0x209   :  { %v10113_v43 = vpop.f32.mrf.mxu2  ;;  %v954_v25 = vmul.f32 %v10141_v61, %v10141_v61 }
 0x20a   :  { %595 = vmatmul.f32.gmra.mxu2 %v164_v16  ;;  %v1119_v33 = vadd.f32 %v1118_v3, %v951_v58  ;;  %17215 = vst [vmem:[#allocation51_spill] sm:$0xff] %v10153_v40  ;;  %v777_v16 = vadd.f32 %v776_v62, %v10131_v47  ;;  %v10162_v58 = vadd.f32 %v9991_v30, %v9597_v15  ;;  %v10164_v3 = vpop.f32.mrf.mxu3  ;;  %v165_v62 = vld [vmem:[%s16787_s0 + $0x390] sm:$0xff] }
 0x20b   :  { %706 = vmatmul.f32.gmra.mxu3 %v201_v6  ;;  %v955_v12 = vmul.f32 %v10153_v40, %v10153_v40 }
 0x20c   :  { %v1120_v9 = vadd.f32 %v1119_v33, %v952_v13  ;;  %17216 = vst [vmem:[#allocation52_spill] sm:$0xff] %v10162_v58  ;;  %v778_v52 = vadd.f32 %v777_v16, %v10141_v61  ;;  %v10171_v33 = vadd.f32 %v9991_v30, %v9608_v19  ;;  %v10176_v13 = vpop.f32.mrf.mxu1  ;;  %v202_v19 = vld [vmem:[%s16787_s0 + $0x4b8] sm:$0xff] }
 0x20e   :  { %v10101_v49 = vpop.f32.mrf.mxu0  ;;  %v1121_v26 = vadd.f32 %v1120_v9, %v953_v18  ;;  %17217 = vst [vmem:[#allocation53_spill] sm:$0xff] %v10171_v33  ;;  %v779_v6 = vadd.f32 %v778_v52, %v10153_v40  ;;  %v956_v18 = vmul.f32 %v10162_v58, %v10162_v58  ;;  %v10183_v9 = vadd.f32 %v9991_v30, %v9619_v23 }
 0x20f   :  { %v10195_v52 = vadd.f32 %v9991_v30, %v9630_v27 }
 0x210   :  { %v1122_v15 = vadd.f32 %v1121_v26, %v954_v25  ;;  %17218 = vst [vmem:[#allocation54_spill] sm:$0xff] %v10183_v9  ;;  %v780_v47 = vadd.f32 %v779_v6, %v10162_v58  ;;  %v957_v25 = vmul.f32 %v10171_v33, %v10171_v33  ;;  %v958_v40 = vmul.f32 %v10183_v9, %v10183_v9 }
 0x211   :  { %v10155_v0 = vpop.f32.mrf.mxu2  ;;  %17219 = vst [vmem:[#allocation55_spill] sm:$0xff] %v10195_v52  ;;  %v959_v27 = vmul.f32 %v10195_v52, %v10195_v52 }
 0x212   :  { %598 = vmatmul.f32.gmra.mxu2 %v165_v62  ;;  %v1123_v61 = vadd.f32 %v1122_v15, %v955_v12  ;;  %v781_v62 = vadd.f32 %v780_v47, %v10171_v33  ;;  %v10204_v12 = vadd.f32 %v9991_v30, %v9641_v31  ;;  %v10206_v15 = vpop.f32.mrf.mxu3  ;;  %v166_v47 = vld [vmem:[%s16787_s0 + $0x398] sm:$0xff] }
 0x213   :  { %709 = vmatmul.f32.gmra.mxu3 %v202_v19 }
 0x214   :  { %v1124_v23 = vadd.f32 %v1123_v61, %v956_v18  ;;  %17220 = vst [vmem:[#allocation56_spill] sm:$0xff] %v10204_v12  ;;  %v782_v58 = vadd.f32 %v781_v62, %v10183_v9  ;;  %v10213_v61 = vadd.f32 %v9991_v30, %v9654_v41  ;;  %v960_v19 = vmul.f32 %v10204_v12, %v10204_v12  ;;  %v10227_v62 = vpop.f32.mrf.mxu1  ;;  %v203_v41 = vld [vmem:[%s16787_s0 + $0x4c0] sm:$0xff] }
 0x216   :  { %v10143_v34 = vpop.f32.mrf.mxu0  ;;  %v1125_v6 = vadd.f32 %v1124_v23, %v957_v25  ;;  %17221 = vst [vmem:[#allocation57_spill] sm:$0xff] %v10213_v61  ;;  %v783_v31 = vadd.f32 %v782_v58, %v10195_v52  ;;  %v10223_v25 = vadd.f32 %v9991_v30, %v9667_v48  ;;  %v961_v58 = vmul.f32 %v10213_v61, %v10213_v61 }
 0x218   :  { %v1126_v18 = vadd.f32 %v1125_v6, %v958_v40  ;;  %17222 = vst [vmem:[#allocation58_spill] sm:$0xff] %v10223_v25  ;;  %v784_v40 = vadd.f32 %v783_v31, %v10204_v12  ;;  %v10237_v6 = vadd.f32 %v9991_v30, %v9680_v56  ;;  %v962_v33 = vmul.f32 %v10223_v25, %v10223_v25 }
 0x219   :  { %v10197_v26 = vpop.f32.mrf.mxu2 }
 0x21a   :  { %601 = vmatmul.f32.gmra.mxu2 %v166_v47  ;;  %v1127_v9 = vadd.f32 %v1126_v18, %v959_v27  ;;  %17223 = vst [vmem:[#allocation59_spill] sm:$0xff] %v10237_v6  ;;  %v785_v52 = vadd.f32 %v784_v40, %v10213_v61  ;;  %v10246_v27 = vadd.f32 %v9991_v30, %v9693_v63  ;;  %v10248_v18 = vpop.f32.mrf.mxu3 }
 0x21b   :  { %712 = vmatmul.f32.gmra.mxu3 %v203_v41  ;;  %v963_v56 = vmul.f32 %v10237_v6, %v10237_v6 }
 0x21c   :  { %v1128_v47 = vadd.f32 %v1127_v9, %v960_v19  ;;  %17224 = vst [vmem:[#allocation60_spill] sm:$0xff] %v10246_v27  ;;  %v786_v12 = vadd.f32 %v785_v52, %v10223_v25  ;;  %v10255_v9 = vadd.f32 %v9991_v30, %v9706_v7  ;;  %v167_v19 = vld [vmem:[%s16787_s0 + $0x3a0] sm:$0xff]  ;;  %v964_v40 = vmul.f32 %v10246_v27, %v10246_v27  ;;  %v204_v7 = vld [vmem:[%s16787_s0 + $0x4c8] sm:$0xff] }
 0x21d   :  { %v10265_v52 = vadd.f32 %v9991_v30, %v9719_v14 }
 0x21e   :  { %v10185_v16 = vpop.f32.mrf.mxu0  ;;  %v1129_v31 = vadd.f32 %v1128_v47, %v961_v58  ;;  %17225 = vst [vmem:[#allocation61_spill] sm:$0xff] %v10255_v9  ;;  %v787_v63 = vadd.f32 %v786_v12, %v10237_v6  ;;  %v10277_v12 = vadd.f32 %v9991_v30, %v9732_v21 }
 0x21f   :  { %17226 = vst [vmem:[#allocation62_spill] sm:$0xff] %v10265_v52 }
 0x220   :  { %v1130_v41 = vadd.f32 %v1129_v31, %v962_v33  ;;  %v788_v25 = vadd.f32 %v787_v63, %v10246_v27  ;;  %v965_v33 = vmul.f32 %v10255_v9, %v10255_v9  ;;  %17227 = vst [vmem:[#allocation63_spill] sm:$0xff] %v10277_v12  ;;  %v10279_v31 = vpop.f32.mrf.mxu1 }
 0x221   :  { %v10239_v48 = vpop.f32.mrf.mxu2 }
 0x222   :  { %604 = vmatmul.f32.gmra.mxu2 %v167_v19  ;;  %v1131_v47 = vadd.f32 %v1130_v41, %v963_v56  ;;  %v789_v6 = vadd.f32 %v788_v25, %v10255_v9  ;;  %v966_v56 = vmul.f32 %v10265_v52, %v10265_v52  ;;  %v10288_v41 = vadd.f32 %v9991_v30, %v9745_v28  ;;  %v10290_v63 = vpop.f32.mrf.mxu3  ;;  %v168_v25 = vld [vmem:[%s16787_s0 + $0x3a8] sm:$0xff] }
 0x223   :  { %715 = vmatmul.f32.gmra.mxu3 %v204_v7  ;;  %v967_v7 = vmul.f32 %v10277_v12, %v10277_v12 }
 0x224   :  { %v1132_v19 = vadd.f32 %v1131_v47, %v964_v40  ;;  %17228 = vst [vmem:[#allocation64_spill] sm:$0xff] %v10288_v41  ;;  %v790_v21 = vadd.f32 %v789_v6, %v10265_v52  ;;  %v10297_v40 = vadd.f32 %v9991_v30, %v9758_v39  ;;  %v10307_v6 = vadd.f32 %v9991_v30, %v9774_v54  ;;  %v205_v39 = vld [vmem:[%s16787_s0 + $0x4d0] sm:$0xff] }
 0x226   :  { %v10225_v23 = vpop.f32.mrf.mxu0  ;;  %v1133_v27 = vadd.f32 %v1132_v19, %v965_v33  ;;  %17229 = vst [vmem:[#allocation65_spill] sm:$0xff] %v10297_v40  ;;  %v791_v28 = vadd.f32 %v790_v21, %v10277_v12  ;;  %v968_v33 = vmul.f32 %v10288_v41, %v10288_v41  ;;  %v970_v12 = vmul.f32 %v10307_v6, %v10307_v6 }
 0x227   :  { %17230 = vst [vmem:[#allocation66_spill] sm:$0xff] %v10307_v6 }
 0x228   :  { %v1134_v47 = vadd.f32 %v1133_v27, %v966_v56  ;;  %v792_v9 = vadd.f32 %v791_v28, %v10288_v41  ;;  %v969_v27 = vmul.f32 %v10297_v40, %v10297_v40  ;;  %v10319_v56 = vadd.f32 %v9991_v30, %v9790_v5 }
 0x229   :  { %v10281_v14 = vpop.f32.mrf.mxu2 }
 0x22a   :  { %607 = vmatmul.f32.gmra.mxu2 %v168_v25  ;;  %v1135_v52 = vadd.f32 %v1134_v47, %v967_v7  ;;  %17231 = vst [vmem:[#allocation67_spill] sm:$0xff] %v10319_v56  ;;  %v793_v25 = vadd.f32 %v792_v9, %v10297_v40  ;;  %v10328_v7 = vadd.f32 %v9991_v30, %v9806_v20  ;;  %v10330_v47 = vpop.f32.mrf.mxu1  ;;  %v10332_v28 = vpop.f32.mrf.mxu3 }
 0x22b   :  { %718 = vmatmul.f32.gmra.mxu3 %v205_v39  ;;  %v971_v39 = vmul.f32 %v10319_v56, %v10319_v56  ;;  %v10339_v9 = vadd.f32 %v9991_v30, %v9824_v42  ;;  %v206_v42 = vld [vmem:[%s16787_s0 + $0x4d8] sm:$0xff] }
 0x22c   :  { %v1136_v54 = vadd.f32 %v1135_v52, %v968_v33  ;;  %17232 = vst [vmem:[#allocation68_spill] sm:$0xff] %v10328_v7  ;;  %v794_v5 = vadd.f32 %v793_v25, %v10307_v6  ;;  %v169_v52 = vld [vmem:[%s16787_s0 + $0x3b0] sm:$0xff] }
 0x22d   :  { %17233 = vst [vmem:[#allocation69_spill] sm:$0xff] %v10339_v9 }
 0x22e   :  { %v10267_v58 = vpop.f32.mrf.mxu0  ;;  %v1137_v41 = vadd.f32 %v1136_v54, %v969_v27  ;;  %v795_v33 = vadd.f32 %v794_v5, %v10319_v56  ;;  %v972_v27 = vmul.f32 %v10328_v7, %v10328_v7  ;;  %v10349_v54 = vadd.f32 %v9991_v30, %v9842_v2 }
 0x230   :  { %v1138_v20 = vadd.f32 %v1137_v41, %v970_v12  ;;  %17234 = vst [vmem:[#allocation70_spill] sm:$0xff] %v10349_v54  ;;  %v796_v40 = vadd.f32 %v795_v33, %v10328_v7  ;;  %v973_v12 = vmul.f32 %v10339_v9, %v10339_v9  ;;  %v10361_v41 = vadd.f32 %v9991_v30, %v9860_v29 }
 0x231   :  { %v10321_v21 = vpop.f32.mrf.mxu2  ;;  %v974_v56 = vmul.f32 %v10349_v54, %v10349_v54 }
 0x232   :  { %610 = vmatmul.f32.gmra.mxu2 %v169_v52  ;;  %v1139_v6 = vadd.f32 %v1138_v20, %v971_v39  ;;  %17235 = vst [vmem:[#allocation71_spill] sm:$0xff] %v10361_v41  ;;  %v797_v52 = vadd.f32 %v796_v40, %v10339_v9  ;;  %v10370_v39 = vadd.f32 %v9991_v30, %v9878_v10  ;;  %v170_v40 = vld [vmem:[%s16787_s0 + $0x3b8] sm:$0xff] }
 0x233   :  { %721 = vmatmul.f32.gmra.mxu3 %v206_v42  ;;  %v975_v29 = vmul.f32 %v10361_v41, %v10361_v41 }
 0x234   :  { %v1140_v2 = vadd.f32 %v1139_v6, %v972_v27  ;;  %17236 = vst [vmem:[#allocation72_spill] sm:$0xff] %v10370_v39  ;;  %v798_v7 = vadd.f32 %v797_v52, %v10349_v54  ;;  %v10379_v6 = vadd.f32 %v9991_v30, %v9896_v1  ;;  %v10384_v27 = vpop.f32.mrf.mxu1  ;;  %v207_v1 = vld [vmem:[%s16787_s0 + $0x4e0] sm:$0xff] }
 0x235   :  { %v10372_v20 = vpop.f32.mrf.mxu3 }
 0x236   :  { %v10309_v19 = vpop.f32.mrf.mxu0  ;;  %v1141_v33 = vadd.f32 %v1140_v2, %v973_v12  ;;  %17237 = vst [vmem:[#allocation73_spill] sm:$0xff] %v10379_v6  ;;  %v799_v42 = vadd.f32 %v798_v7, %v10361_v41  ;;  %v976_v12 = vmul.f32 %v10370_v39, %v10370_v39  ;;  %v10391_v2 = vadd.f32 %v9991_v30, %v9914_v59 }
 0x237   :  { %v10403_v7 = vadd.f32 %v9991_v30, %v9932_v17 }
 0x238   :  { %v1142_v10 = vadd.f32 %v1141_v33, %v974_v56  ;;  %17238 = vst [vmem:[#allocation74_spill] sm:$0xff] %v10391_v2  ;;  %v800_v9 = vadd.f32 %v799_v42, %v10370_v39  ;;  %v977_v56 = vmul.f32 %v10379_v6, %v10379_v6  ;;  %v978_v41 = vmul.f32 %v10391_v2, %v10391_v2 }
 0x239   :  { %v10363_v5 = vpop.f32.mrf.mxu2  ;;  %17239 = vst [vmem:[#allocation75_spill] sm:$0xff] %v10403_v7  ;;  %v979_v17 = vmul.f32 %v10403_v7, %v10403_v7 }
 0x23a   :  { %613 = vmatmul.f32.gmra.mxu2 %v170_v40  ;;  %v1143_v54 = vadd.f32 %v1142_v10, %v975_v29  ;;  %v801_v40 = vadd.f32 %v800_v9, %v10379_v6  ;;  %v10412_v29 = vadd.f32 %v9991_v30, %v9950_v35  ;;  %v10428_v35 = vadd.f32 %v9991_v30, %v9983_v57 }
 0x23b   :  { %724 = vmatmul.f32.gmra.mxu3 %v207_v1 }
 0x23c   :  { %v1144_v59 = vadd.f32 %v1143_v54, %v976_v12  ;;  %17240 = vst [vmem:[#allocation76_spill] sm:$0xff] %v10412_v29  ;;  %v802_v39 = vadd.f32 %v801_v40, %v10391_v2  ;;  %v10421_v54 = vadd.f32 %v9991_v30, %v9968_v50  ;;  %v980_v1 = vmul.f32 %v10412_v29, %v10412_v29  ;;  %v208_v40 = vld [vmem:[%s16787_s0 + $0x4e8] sm:$0xff] }
 0x23d   :  { %v10414_v10 = vpop.f32.mrf.mxu3  ;;  %17242 = vst [vmem:[#allocation78_spill] sm:$0xff] %v10428_v35  ;;  %v982_v6 = vmul.f32 %v10428_v35, %v10428_v35 }
 0x23e   :  { %v10351_v25 = vpop.f32.mrf.mxu0  ;;  %v1145_v42 = vadd.f32 %v1144_v59, %v977_v56  ;;  %17241 = vst [vmem:[#allocation77_spill] sm:$0xff] %v10421_v54  ;;  %v803_v12 = vadd.f32 %v802_v39, %v10403_v7  ;;  %v10430_v59 = vpop.f32.mrf.mxu1  ;;  %v10440_v39 = vadd.f32 %v9991_v30, %v10018_v24 }
 0x240   :  { %v1146_v9 = vadd.f32 %v1145_v42, %v978_v41  ;;  %v804_v50 = vadd.f32 %v803_v12, %v10412_v29  ;;  %v981_v41 = vmul.f32 %v10421_v54, %v10421_v54  ;;  %17243 = vst [vmem:[#allocation79_spill] sm:$0xff] %v10440_v39  ;;  %v983_v24 = vmul.f32 %v10440_v39, %v10440_v39 }
 0x241   :  { %v10405_v33 = vpop.f32.mrf.mxu2 }
 0x242   :  { %v1147_v2 = vadd.f32 %v1146_v9, %v979_v17  ;;  %v805_v7 = vadd.f32 %v804_v50, %v10421_v54  ;;  %v10449_v17 = vadd.f32 %v9991_v30, %v10061_v36  ;;  %v10465_v36 = vadd.f32 %v9991_v30, %v10143_v34 }
 0x243   :  { %727 = vmatmul.f32.gmra.mxu3 %v208_v40 }
 0x244   :  { %v1148_v42 = vadd.f32 %v1147_v2, %v980_v1  ;;  %17244 = vst [vmem:[#allocation80_spill] sm:$0xff] %v10449_v17  ;;  %v806_v29 = vadd.f32 %v805_v7, %v10428_v35  ;;  %v10458_v2 = vadd.f32 %v9991_v30, %v10101_v49  ;;  %v984_v50 = vmul.f32 %v10449_v17, %v10449_v17  ;;  %v209_v7 = vld [vmem:[%s16787_s0 + $0x4f0] sm:$0xff] }
 0x245   :  { %v10451_v9 = vpop.f32.mrf.mxu3  ;;  %17246 = vst [vmem:[#allocation82_spill] sm:$0xff] %v10465_v36 }
 0x246   :  { %v10393_v52 = vpop.f32.mrf.mxu0  ;;  %v1149_v12 = vadd.f32 %v1148_v42, %v981_v41  ;;  %17245 = vst [vmem:[#allocation81_spill] sm:$0xff] %v10458_v2  ;;  %v807_v40 = vadd.f32 %v806_v29, %v10440_v39  ;;  %v985_v49 = vmul.f32 %v10458_v2, %v10458_v2  ;;  %v10477_v29 = vpop.f32.mrf.mxu1 }
 0x248   :  { %v1150_v1 = vadd.f32 %v1149_v12, %v982_v6  ;;  %v808_v35 = vadd.f32 %v807_v40, %v10449_v17  ;;  %v10475_v6 = vadd.f32 %v9991_v30, %v10185_v16 }
 0x249   :  { %v10442_v57 = vpop.f32.mrf.mxu2 }
 0x24a   :  { %v1151_v42 = vadd.f32 %v1150_v1, %v983_v24  ;;  %17247 = vst [vmem:[#allocation83_spill] sm:$0xff] %v10475_v6  ;;  %v809_v39 = vadd.f32 %v808_v35, %v10458_v2  ;;  %v986_v24 = vmul.f32 %v10465_v36, %v10465_v36  ;;  %v10486_v1 = vadd.f32 %v9991_v30, %v10225_v23 }
 0x24b   :  { %730 = vmatmul.f32.gmra.mxu3 %v209_v7  ;;  %v987_v7 = vmul.f32 %v10475_v6, %v10475_v6  ;;  %v10502_v23 = vadd.f32 %v9991_v30, %v10309_v19 }
 0x24c   :  { %v1152_v12 = vadd.f32 %v1151_v42, %v984_v50  ;;  %17248 = vst [vmem:[#allocation84_spill] sm:$0xff] %v10486_v1  ;;  %v810_v16 = vadd.f32 %v809_v39, %v10465_v36  ;;  %v10495_v50 = vadd.f32 %v9991_v30, %v10267_v58  ;;  %v988_v2 = vmul.f32 %v10486_v1, %v10486_v1  ;;  %v210_v39 = vld [vmem:[%s16787_s0 + $0x4f8] sm:$0xff] }
 0x24d   :  { %v10488_v40 = vpop.f32.mrf.mxu3  ;;  %17250 = vst [vmem:[#allocation86_spill] sm:$0xff] %v10502_v23 }
 0x24e   :  { %v419_v56 = vpop.f32.mrf.mxu0  ;;  %v1153_v17 = vadd.f32 %v1152_v12, %v985_v49  ;;  %17249 = vst [vmem:[#allocation85_spill] sm:$0xff] %v10495_v50  ;;  %v811_v42 = vadd.f32 %v810_v16, %v10475_v6  ;;  %v989_v58 = vmul.f32 %v10495_v50, %v10495_v50  ;;  %v990_v6 = vmul.f32 %v10502_v23, %v10502_v23 }
 0x250   :  { %v1154_v35 = vadd.f32 %v1153_v17, %v986_v24  ;;  %v812_v36 = vadd.f32 %v811_v42, %v10486_v1  ;;  %v10512_v17 = vadd.f32 %v9991_v30, %v10351_v25 }
 0x251   :  { %v10479_v34 = vpop.f32.mrf.mxu2 }
 0x252   :  { %v1155_v12 = vadd.f32 %v1154_v35, %v987_v7  ;;  %17251 = vst [vmem:[#allocation87_spill] sm:$0xff] %v10512_v17  ;;  %v813_v16 = vadd.f32 %v812_v36, %v10495_v50  ;;  %v10521_v7 = vadd.f32 %v9991_v30, %v10393_v52  ;;  %v10523_v35 = vpop.f32.mrf.mxu1 }
 0x253   :  { %733 = vmatmul.f32.gmra.mxu3 %v210_v39  ;;  %v991_v39 = vmul.f32 %v10512_v17, %v10512_v17 }
 0x254   :  { %v1156_v19 = vadd.f32 %v1155_v12, %v988_v2  ;;  %17252 = vst [vmem:[#allocation88_spill] sm:$0xff] %v10521_v7  ;;  %v814_v25 = vadd.f32 %v813_v16, %v10502_v23  ;;  %v10531_v2 = vadd.f32 %v9991_v30, %v419_v56  ;;  %v992_v52 = vmul.f32 %v10521_v7, %v10521_v7 }
 0x256   :  { %v422_v41 = vpop.f32.mrf.mxu0  ;;  %v10525_v42 = vpop.f32.mrf.mxu3  ;;  %v1157_v1 = vadd.f32 %v1156_v19, %v989_v58  ;;  %17253 = vst [vmem:[#allocation89_spill] sm:$0xff] %v10531_v2  ;;  %v815_v12 = vadd.f32 %v814_v25, %v10512_v17  ;;  %v211_v58 = vld [vmem:[%s16787_s0 + $0x500] sm:$0xff]  ;;  %v993_v56 = vmul.f32 %v10531_v2, %v10531_v2 }
 0x257   :  { %v10537_v50 = vadd.f32 %v9991_v30, %v422_v41 }
 0x258   :  { %v1158_v36 = vadd.f32 %v1157_v1, %v990_v6  ;;  %v816_v16 = vadd.f32 %v815_v12, %v10521_v7 }
 0x259   :  { %v10514_v24 = vpop.f32.mrf.mxu2  ;;  %17254 = vst [vmem:[#allocation90_spill] sm:$0xff] %v10537_v50  ;;  %v994_v41 = vmul.f32 %v10537_v50, %v10537_v50 }
 0x25a   :  { %v1159_v19 = vadd.f32 %v1158_v36, %v991_v39  ;;  %v817_v25 = vadd.f32 %v816_v16, %v10531_v2 }
 0x25b   :  { %736 = vmatmul.f32.gmra.mxu3 %v211_v58  ;;  %v461_v58 = vpop.f32.mrf.mxu1 }
 0x25c   :  { %v1160_v1 = vadd.f32 %v1159_v19, %v992_v52  ;;  %v818_v12 = vadd.f32 %v817_v25, %v10537_v50 }
 0x25e   :  { %v425_v49 = vpop.f32.mrf.mxu0  ;;  %v10556_v39 = vpop.f32.mrf.mxu3  ;;  %v1161_v36 = vadd.f32 %v1160_v1, %v993_v56  ;;  %v10569_v56 = vadd.f32 %v9991_v30, %v10122_v46 }
 0x25f   :  { %v10546_v6 = vadd.f32 %v9991_v30, %v425_v49 }
 0x260   :  { %v1162_v52 = vadd.f32 %v1161_v36, %v994_v41  ;;  %17257 = vst [vmem:[#allocation93_spill] sm:$0xff] %v10569_v56  ;;  %v10577_v41 = vadd.f32 %v9991_v30, %v10176_v13  ;;  %v998_v46 = vmul.f32 %v10569_v56, %v10569_v56 }
 0x261   :  { %17255 = vst [vmem:[#allocation91_spill] sm:$0xff] %v10546_v6  ;;  %v10554_v23 = vpop.f32.mrf.mxu2  ;;  %v995_v49 = vmul.f32 %v10546_v6, %v10546_v6  ;;  %v819_v19 = vadd.f32 %v818_v12, %v10546_v6 }
 0x262   :  { %17259 = vst [vmem:[#allocation95_spill] sm:$0xff] %v10577_v41 }
 0x263   :  { %v1163_v1 = vadd.f32 %v1162_v52, %v995_v49 }
 0x266   :  { %v428_v54 = vpop.f32.mrf.mxu0  ;;  %v10582_v7 = vpop.f32.mrf.mxu3 }
 0x267   :  { %v10552_v17 = vadd.f32 %v9991_v30, %v428_v54  ;;  %v212_v54 = vld [vmem:[%s16787_s0 + $0x508] sm:$0xff] }
 0x268   :  { %739 = vmatmul.f32.gmra.mxu3 %v212_v54 }
 0x269   :  { %17256 = vst [vmem:[#allocation92_spill] sm:$0xff] %v10552_v17  ;;  %v996_v16 = vmul.f32 %v10552_v17, %v10552_v17  ;;  %v820_v25 = vadd.f32 %v819_v19, %v10552_v17  ;;  %v10591_v13 = vpop.f32.mrf.mxu2  ;;  %v999_v19 = vmul.f32 %v10577_v41, %v10577_v41 }
 0x26b   :  { %v1164_v36 = vadd.f32 %v1163_v1, %v996_v16  ;;  %v10597_v16 = vadd.f32 %v9991_v30, %v10279_v31 }
 0x26d   :  { %17261 = vst [vmem:[#allocation97_spill] sm:$0xff] %v10597_v16  ;;  %v1001_v31 = vmul.f32 %v10597_v16, %v10597_v16 }
 0x26e   :  { %v431_v2 = vpop.f32.mrf.mxu0 }
 0x26f   :  { %v10573_v50 = vadd.f32 %v9991_v30, %v431_v2  ;;  %v10588_v2 = vadd.f32 %v9991_v30, %v10227_v62  ;;  %v213_v62 = vld [vmem:[%s16787_s0 + $0x510] sm:$0xff] }
 0x270   :  { %742 = vmatmul.f32.gmra.mxu3 %v213_v62 }
 0x271   :  { %17258 = vst [vmem:[#allocation94_spill] sm:$0xff] %v10573_v50  ;;  %v821_v12 = vadd.f32 %v820_v25, %v10573_v50  ;;  %v997_v6 = vmul.f32 %v10573_v50, %v10573_v50  ;;  %v464_v25 = vpop.f32.mrf.mxu1  ;;  %v17300_v50 = vld [vmem:[#allocation27_spill] sm:$0xff] }
 0x272   :  { %17260 = vst [vmem:[#allocation96_spill] sm:$0xff] %v10588_v2 }
 0x273   :  { %v822_v49 = vadd.f32 %v821_v12, %v10569_v56  ;;  %v1165_v52 = vadd.f32 %v1164_v36, %v997_v6  ;;  %v1000_v6 = vmul.f32 %v10588_v2, %v10588_v2  ;;  %v10607_v36 = vadd.f32 %v9991_v30, %v10330_v47 }
 0x275   :  { %v823_v54 = vadd.f32 %v822_v49, %v10577_v41  ;;  %v1166_v1 = vadd.f32 %v1165_v52, %v998_v46  ;;  %17262 = vst [vmem:[#allocation98_spill] sm:$0xff] %v10607_v36  ;;  %v10614_v46 = vadd.f32 %v9991_v30, %v10384_v27  ;;  %v10617_v41 = vpop.f32.mrf.mxu3  ;;  %v1002_v47 = vmul.f32 %v10607_v36, %v10607_v36 }
 0x276   :  { %v10630_v27 = vadd.f32 %v9991_v30, %v10477_v29 }
 0x277   :  { %v824_v12 = vadd.f32 %v823_v54, %v10588_v2  ;;  %v1167_v56 = vadd.f32 %v1166_v1, %v999_v19  ;;  %17263 = vst [vmem:[#allocation99_spill] sm:$0xff] %v10614_v46  ;;  %v10623_v54 = vadd.f32 %v9991_v30, %v10430_v59  ;;  %v1003_v62 = vmul.f32 %v10614_v46, %v10614_v46  ;;  %v214_v59 = vld [vmem:[%s16787_s0 + $0x518] sm:$0xff] }
 0x278   :  { %17265 = vst [vmem:[#allocation101_spill] sm:$0xff] %v10630_v27  ;;  %745 = vmatmul.f32.gmra.mxu3 %v214_v59 }
 0x279   :  { %v825_v49 = vadd.f32 %v824_v12, %v10597_v16  ;;  %v1168_v52 = vadd.f32 %v1167_v56, %v1000_v6  ;;  %17264 = vst [vmem:[#allocation100_spill] sm:$0xff] %v10623_v54  ;;  %v10635_v12 = vadd.f32 %v9991_v30, %v10523_v35  ;;  %v10637_v16 = vpop.f32.mrf.mxu2 }
 0x27b   :  { %v1169_v19 = vadd.f32 %v1168_v52, %v1001_v31  ;;  %v826_v1 = vadd.f32 %v825_v49, %v10607_v36  ;;  %17266 = vst [vmem:[#allocation102_spill] sm:$0xff] %v10635_v12  ;;  %v1004_v31 = vmul.f32 %v10623_v54, %v10623_v54  ;;  %v467_v52 = vpop.f32.mrf.mxu1 }
 0x27d   :  { %v827_v56 = vadd.f32 %v826_v1, %v10614_v46  ;;  %v1170_v6 = vadd.f32 %v1169_v19, %v1002_v47  ;;  %v1005_v47 = vmul.f32 %v10630_v27, %v10630_v27  ;;  %v10649_v1 = vadd.f32 %v9991_v30, %v461_v58  ;;  %v10653_v36 = vpop.f32.mrf.mxu3 }
 0x27e   :  { %v1006_v46 = vmul.f32 %v10635_v12, %v10635_v12 }
 0x27f   :  { %v828_v49 = vadd.f32 %v827_v56, %v10623_v54  ;;  %v1171_v29 = vadd.f32 %v1170_v6, %v1003_v62  ;;  %17267 = vst [vmem:[#allocation103_spill] sm:$0xff] %v10649_v1  ;;  %v10657_v62 = vadd.f32 %v9991_v30, %v464_v25  ;;  %v10660_v6 = vadd.f32 %v9991_v30, %v467_v52 }
 0x280   :  { %v1007_v58 = vmul.f32 %v10649_v1, %v10649_v1 }
 0x281   :  { %v829_v35 = vadd.f32 %v828_v49, %v10630_v27  ;;  %v1172_v19 = vadd.f32 %v1171_v29, %v1004_v31  ;;  %17268 = vst [vmem:[#allocation104_spill] sm:$0xff] %v10657_v62  ;;  %v10667_v49 = vadd.f32 %v9991_v30, %v9649_v37  ;;  %v215_v29 = vld [vmem:[%s16787_s0 + $0x520] sm:$0xff]  ;;  %v1008_v52 = vmul.f32 %v10657_v62, %v10657_v62 }
 0x282   :  { %17269 = vst [vmem:[#allocation105_spill] sm:$0xff] %v10660_v6  ;;  %748 = vmatmul.f32.gmra.mxu3 %v215_v29  ;;  %v10681_v37 = vadd.f32 %v9991_v30, %v9662_v45  ;;  %v10697_v45 = vadd.f32 %v9991_v30, %v9688_v60  ;;  %v17292_v27 = vld [vmem:[#allocation19_spill] sm:$0xff] }
 0x283   :  { %v830_v2 = vadd.f32 %v829_v35, %v10635_v12  ;;  %v1173_v56 = vadd.f32 %v1172_v19, %v1005_v47  ;;  %17270 = vst [vmem:[#allocation106_spill] sm:$0xff] %v10667_v49 }
 0x284   :  { %17271 = vst [vmem:[#allocation107_spill] sm:$0xff] %v10681_v37  ;;  %v1013_v60 = vmul.f32 %v10697_v45, %v10697_v45 }
 0x285   :  { %v1174_v59 = vadd.f32 %v1173_v56, %v1006_v46  ;;  %v831_v31 = vadd.f32 %v830_v2, %v10649_v1  ;;  %v1009_v2 = vmul.f32 %v10660_v6, %v10660_v6  ;;  %v10677_v46 = vpop.f32.mrf.mxu2  ;;  %v10684_v56 = vpop.f32.mrf.mxu3  ;;  %17273 = vst [vmem:[#allocation109_spill] sm:$0xff] %v10697_v45  ;;  %v17284_v1 = vld [vmem:[#allocation13_spill] sm:$0xff] }
 0x287   :  { %v1175_v47 = vadd.f32 %v1174_v59, %v1007_v58  ;;  %v832_v25 = vadd.f32 %v831_v31, %v10657_v62  ;;  %v1010_v59 = vmul.f32 %v10667_v49, %v10667_v49  ;;  %v10690_v31 = vadd.f32 %v9991_v30, %v9675_v53 }
 0x288   :  { %v1011_v62 = vmul.f32 %v10681_v37, %v10681_v37 }
 0x289   :  { %v1176_v35 = vadd.f32 %v1175_v47, %v1008_v52  ;;  %v833_v19 = vadd.f32 %v832_v25, %v10660_v6  ;;  %17272 = vst [vmem:[#allocation108_spill] sm:$0xff] %v10690_v31  ;;  %v216_v52 = vld [vmem:[%s16787_s0 + $0x528] sm:$0xff]  ;;  %v1012_v53 = vmul.f32 %v10690_v31, %v10690_v31  ;;  %v17280_v6 = vld [vmem:[#allocation11_spill] sm:$0xff] }
 0x28a   :  { %751 = vmatmul.f32.gmra.mxu3 %v216_v52 }
 0x28b   :  { %v834_v58 = vadd.f32 %v833_v19, %v10667_v49  ;;  %v1177_v29 = vadd.f32 %v1176_v35, %v1009_v2  ;;  %v10707_v2 = vadd.f32 %v9991_v30, %v9701_v4 }
 0x28d   :  { %v835_v47 = vadd.f32 %v834_v58, %v10681_v37  ;;  %v1178_v25 = vadd.f32 %v1177_v29, %v1010_v59  ;;  %17274 = vst [vmem:[#allocation110_spill] sm:$0xff] %v10707_v2  ;;  %v10714_v59 = vadd.f32 %v9991_v30, %v9714_v11  ;;  %v10717_v37 = vpop.f32.mrf.mxu2  ;;  %v10719_v49 = vpop.f32.mrf.mxu3  ;;  %v1014_v4 = vmul.f32 %v10707_v2, %v10707_v2 }
 0x28f   :  { %v836_v35 = vadd.f32 %v835_v47, %v10690_v31  ;;  %v1179_v19 = vadd.f32 %v1178_v25, %v1011_v62  ;;  %17275 = vst [vmem:[#allocation111_spill] sm:$0xff] %v10714_v59  ;;  %v17276_v47 = vld [vmem:[#allocation9_spill] sm:$0xff]  ;;  %v1015_v11 = vmul.f32 %v10714_v59, %v10714_v59  ;;  %v17278_v31 = vld [vmem:[#allocation10_spill] sm:$0xff] }
 0x290   :  { %v10725_v62 = vadd.f32 %v9991_v30, %v17276_v47 }
 0x291   :  { %v837_v58 = vadd.f32 %v836_v35, %v10697_v45  ;;  %v1180_v29 = vadd.f32 %v1179_v19, %v1012_v53  ;;  %v10732_v53 = vadd.f32 %v9991_v30, %v17278_v31  ;;  %v217_v45 = vld [vmem:[%s16787_s0 + $0x530] sm:$0xff] }
 0x292   :  { %17277 = vst [vmem:[#allocation9_spill] sm:$0xff] %v10725_v62  ;;  %v1016_v47 = vmul.f32 %v10725_v62, %v10725_v62  ;;  %754 = vmatmul.f32.gmra.mxu3 %v217_v45 }
 0x293   :  { %v838_v25 = vadd.f32 %v837_v58, %v10707_v2  ;;  %v1181_v52 = vadd.f32 %v1180_v29, %v1013_v60  ;;  %17279 = vst [vmem:[#allocation10_spill] sm:$0xff] %v10732_v53  ;;  %v10742_v60 = vadd.f32 %v9991_v30, %v17280_v6  ;;  %v1017_v31 = vmul.f32 %v10732_v53, %v10732_v53 }
 0x295   :  { %v839_v35 = vadd.f32 %v838_v25, %v10714_v59  ;;  %v1182_v19 = vadd.f32 %v1181_v52, %v1014_v4  ;;  %17281 = vst [vmem:[#allocation11_spill] sm:$0xff] %v10742_v60  ;;  %v17282_v25 = vld [vmem:[#allocation12_spill] sm:$0xff]  ;;  %v10752_v2 = vpop.f32.mrf.mxu3  ;;  %v1018_v6 = vmul.f32 %v10742_v60, %v10742_v60 }
 0x296   :  { %v10749_v4 = vadd.f32 %v9991_v30, %v17282_v25 }
 0x297   :  { %v840_v58 = vadd.f32 %v839_v35, %v10725_v62  ;;  %v1183_v29 = vadd.f32 %v1182_v19, %v1015_v11  ;;  %v10758_v35 = vadd.f32 %v9991_v30, %v17284_v1  ;;  %v10761_v19 = vpop.f32.mrf.mxu2  ;;  %v17286_v62 = vld [vmem:[#allocation14_spill] sm:$0xff] }
 0x298   :  { %17283 = vst [vmem:[#allocation12_spill] sm:$0xff] %v10749_v4  ;;  %v1019_v25 = vmul.f32 %v10749_v4, %v10749_v4  ;;  %v218_v1 = vld [vmem:[%s16787_s0 + $0x538] sm:$0xff] }
 0x299   :  { %v841_v52 = vadd.f32 %v840_v58, %v10732_v53  ;;  %v1184_v59 = vadd.f32 %v1183_v29, %v1016_v47  ;;  %17285 = vst [vmem:[#allocation13_spill] sm:$0xff] %v10758_v35  ;;  %v10767_v47 = vadd.f32 %v9991_v30, %v17286_v62 }
 0x29a   :  { %757 = vmatmul.f32.gmra.mxu3 %v218_v1 }
 0x29b   :  { %v842_v45 = vadd.f32 %v841_v52, %v10742_v60  ;;  %v1185_v11 = vadd.f32 %v1184_v59, %v1017_v31  ;;  %17287 = vst [vmem:[#allocation14_spill] sm:$0xff] %v10767_v47  ;;  %v1020_v52 = vmul.f32 %v10758_v35, %v10758_v35  ;;  %v17288_v59 = vld [vmem:[#allocation15_spill] sm:$0xff]  ;;  %v1021_v62 = vmul.f32 %v10767_v47, %v10767_v47 }
 0x29c   :  { %v10777_v31 = vadd.f32 %v9991_v30, %v17288_v59 }
 0x29d   :  { %v843_v58 = vadd.f32 %v842_v45, %v10749_v4  ;;  %v1186_v29 = vadd.f32 %v1185_v11, %v1018_v6  ;;  %v17290_v45 = vld [vmem:[#allocation17_spill] sm:$0xff]  ;;  %v10787_v12 = vpop.f32.mrf.mxu3 }
 0x29e   :  { %17289 = vst [vmem:[#allocation15_spill] sm:$0xff] %v10777_v31  ;;  %v10784_v6 = vadd.f32 %v9991_v30, %v17290_v45  ;;  %v1022_v59 = vmul.f32 %v10777_v31, %v10777_v31  ;;  %v17294_v45 = vld [vmem:[#allocation21_spill] sm:$0xff] }
 0x29f   :  { %v844_v60 = vadd.f32 %v843_v58, %v10758_v35  ;;  %v1187_v53 = vadd.f32 %v1186_v29, %v1019_v25  ;;  %v10793_v58 = vadd.f32 %v9991_v30, %v17292_v27  ;;  %v10800_v35 = vadd.f32 %v9991_v30, %v17294_v45  ;;  %v219_v27 = vld [vmem:[%s16787_s0 + $0x540] sm:$0xff] }
 0x2a0   :  { %17291 = vst [vmem:[#allocation17_spill] sm:$0xff] %v10784_v6  ;;  %v1023_v1 = vmul.f32 %v10784_v6, %v10784_v6 }
 0x2a1   :  { %v845_v11 = vadd.f32 %v844_v60, %v10767_v47  ;;  %v1188_v4 = vadd.f32 %v1187_v53, %v1020_v52  ;;  %17293 = vst [vmem:[#allocation19_spill] sm:$0xff] %v10793_v58  ;;  %v10803_v52 = vpop.f32.mrf.mxu2 }
 0x2a2   :  { %17295 = vst [vmem:[#allocation21_spill] sm:$0xff] %v10800_v35  ;;  %760 = vmatmul.f32.gmra.mxu3 %v219_v27 }
 0x2a3   :  { %v846_v25 = vadd.f32 %v845_v11, %v10777_v31  ;;  %v1189_v29 = vadd.f32 %v1188_v4, %v1021_v62  ;;  %v1024_v11 = vmul.f32 %v10793_v58, %v10793_v58  ;;  %v17296_v4 = vld [vmem:[#allocation23_spill] sm:$0xff] }
 0x2a4   :  { %v10812_v62 = vadd.f32 %v9991_v30, %v17296_v4 }
 0x2a5   :  { %v847_v53 = vadd.f32 %v846_v25, %v10784_v6  ;;  %v1190_v60 = vadd.f32 %v1189_v29, %v1022_v59  ;;  %v1025_v59 = vmul.f32 %v10800_v35, %v10800_v35  ;;  %v17298_v25 = vld [vmem:[#allocation25_spill] sm:$0xff]  ;;  %v10822_v54 = vpop.f32.mrf.mxu3 }
 0x2a6   :  { %17297 = vst [vmem:[#allocation23_spill] sm:$0xff] %v10812_v62  ;;  %v10819_v29 = vadd.f32 %v9991_v30, %v17298_v25  ;;  %v1026_v4 = vmul.f32 %v10812_v62, %v10812_v62  ;;  %v17302_v25 = vld [vmem:[#allocation29_spill] sm:$0xff] }
 0x2a7   :  { %v848_v31 = vadd.f32 %v847_v53, %v10793_v58  ;;  %v1191_v45 = vadd.f32 %v1190_v60, %v1023_v1  ;;  %v10828_v53 = vadd.f32 %v9991_v30, %v17300_v50  ;;  %v10835_v58 = vadd.f32 %v9991_v30, %v17302_v25  ;;  %v17305_v25 = vld [vmem:[#allocation33_spill] sm:$0xff] }
 0x2a8   :  { %17299 = vst [vmem:[#allocation25_spill] sm:$0xff] %v10819_v29  ;;  %v1027_v27 = vmul.f32 %v10819_v29, %v10819_v29 }
 0x2a9   :  { %v849_v6 = vadd.f32 %v848_v31, %v10800_v35  ;;  %v1192_v47 = vadd.f32 %v1191_v45, %v1024_v11  ;;  %17301 = vst [vmem:[#allocation27_spill] sm:$0xff] %v10828_v53  ;;  %v1028_v45 = vmul.f32 %v10828_v53, %v10828_v53  ;;  %v17303_v35 = vld [vmem:[#allocation31_spill] sm:$0xff] }
 0x2aa   :  { %v10842_v50 = vadd.f32 %v9991_v30, %v17303_v35 }
 0x2ab   :  { %v850_v1 = vadd.f32 %v849_v6, %v10812_v62  ;;  %v1193_v60 = vadd.f32 %v1192_v47, %v1025_v59  ;;  %v10845_v6 = vpop.f32.mrf.mxu2  ;;  %v1029_v59 = vmul.f32 %v10835_v58, %v10835_v58  ;;  %v10851_v62 = vadd.f32 %v9991_v30, %v17305_v25 }
 0x2ac   :  { %17304 = vst [vmem:[#allocation29_spill] sm:$0xff] %v10842_v50  ;;  %v1030_v35 = vmul.f32 %v10842_v50, %v10842_v50  ;;  %v10867_v25 = vadd.f32 %v9991_v30, %v10033_v38  ;;  %v10882_v38 = vld [vmem:[%s16789_s2] ss:$0 sm:$0xff] }
 0x2ad   :  { %v851_v31 = vadd.f32 %v850_v1, %v10819_v29  ;;  %v1194_v11 = vadd.f32 %v1193_v60, %v1026_v4  ;;  %v10854_v60 = vpop.f32.mrf.mxu3  ;;  %v1031_v29 = vmul.f32 %v10851_v62, %v10851_v62 }
 0x2ae   :  { %17308 = vst [vmem:[#allocation33_spill] sm:$0xff] %v10867_v25 }
 0x2af   :  { %v1195_v17 = vadd.f32 %v1194_v11, %v1027_v27  ;;  %v852_v47 = vadd.f32 %v851_v31, %v10828_v53  ;;  %v17306_v27 = vld [vmem:[#allocation35_spill] sm:$0xff] }
 0x2b0   :  { %v10860_v31 = vadd.f32 %v9991_v30, %v17306_v27  ;;  %v10874_v27 = vadd.f32 %v9991_v30, %v10073_v8 }
 0x2b1   :  { %v853_v4 = vadd.f32 %v852_v47, %v10835_v58  ;;  %v1196_v1 = vadd.f32 %v1195_v17, %v1028_v45 }
 0x2b2   :  { %17307 = vst [vmem:[#allocation31_spill] sm:$0xff] %v10860_v31  ;;  %v1032_v47 = vmul.f32 %v10860_v31, %v10860_v31 }
 0x2b3   :  { %v854_v11 = vadd.f32 %v853_v4, %v10842_v50  ;;  %v1197_v53 = vadd.f32 %v1196_v1, %v1029_v59  ;;  %17309 = vst [vmem:[#allocation35_spill] sm:$0xff] %v10874_v27  ;;  %v1033_v1 = vmul.f32 %v10867_v25, %v10867_v25  ;;  %v10889_v30 = vpop.f32.mrf.mxu2 }
 0x2b5   :  { %v855_v17 = vadd.f32 %v854_v11, %v10851_v62  ;;  %v1198_v45 = vadd.f32 %v1197_v53, %v1030_v35  ;;  %v10886_v53 = vadd.f32 %v10882_v38, %v10113_v43  ;;  %v10891_v8 = vpop.f32.mrf.mxu3 }
 0x2b7   :  { %v856_v4 = vadd.f32 %v855_v17, %v10860_v31  ;;  %v1199_v59 = vadd.f32 %v1198_v45, %v1031_v29  ;;  %17310 = vst [vmem:[#allocation112_spill] sm:$0xff] %v10886_v53  ;;  %v1034_v29 = vmul.f32 %v10874_v27, %v10874_v27  ;;  %v10897_v17 = vadd.f32 %v10882_v38, %v10155_v0 }
 0x2b8   :  { %v1035_v43 = vmul.f32 %v10886_v53, %v10886_v53  ;;  %v10911_v0 = vadd.f32 %v10882_v38, %v10239_v48  ;;  %v10927_v48 = vadd.f32 %v10882_v38, %v10321_v21  ;;  %v10941_v21 = vadd.f32 %v10882_v38, %v10405_v33 }
 0x2b9   :  { %v857_v35 = vadd.f32 %v856_v4, %v10867_v25  ;;  %v1200_v11 = vadd.f32 %v1199_v59, %v1032_v47  ;;  %v10904_v47 = vadd.f32 %v10882_v38, %v10197_v26  ;;  %v1036_v25 = vmul.f32 %v10897_v17, %v10897_v17 }
 0x2ba   :  { %v10918_v26 = vadd.f32 %v10882_v38, %v10281_v14  ;;  %17312 = vst [vmem:[#allocation114_spill] sm:$0xff] %v10927_v48  ;;  %v10955_v33 = vadd.f32 %v10882_v38, %v10479_v34 }
 0x2bb   :  { %v858_v45 = vadd.f32 %v857_v35, %v10874_v27  ;;  %v1201_v31 = vadd.f32 %v1200_v11, %v1033_v1  ;;  %17311 = vst [vmem:[#allocation113_spill] sm:$0xff] %v10904_v47  ;;  %v1037_v11 = vmul.f32 %v10904_v47, %v10904_v47 }
 0x2bc   :  { %v1039_v14 = vmul.f32 %v10918_v26, %v10918_v26  ;;  %17314 = vst [vmem:[#allocation116_spill] sm:$0xff] %v10941_v21  ;;  %v1044_v34 = vmul.f32 %v10955_v33, %v10955_v33 }
 0x2bd   :  { %v859_v4 = vadd.f32 %v858_v45, %v10886_v53  ;;  %v1202_v59 = vadd.f32 %v1201_v31, %v1034_v29  ;;  %v10921_v29 = vpop.f32.mrf.mxu3  ;;  %v1038_v53 = vmul.f32 %v10911_v0, %v10911_v0  ;;  %17316 = vst [vmem:[#allocation118_spill] sm:$0xff] %v10955_v33 }
 0x2bf   :  { %v860_v35 = vadd.f32 %v859_v4, %v10897_v17  ;;  %v1203_v1 = vadd.f32 %v1202_v59, %v1035_v43  ;;  %v605_v59 = vpop.f32.mrf.mxu2 }
 0x2c1   :  { %v861_v45 = vadd.f32 %v860_v35, %v10904_v47  ;;  %v1204_v31 = vadd.f32 %v1203_v1, %v1036_v25  ;;  %v10934_v35 = vadd.f32 %v10882_v38, %v10363_v5  ;;  %v1040_v47 = vmul.f32 %v10927_v48, %v10927_v48 }
 0x2c2   :  { %v10948_v5 = vadd.f32 %v10882_v38, %v10442_v57  ;;  %v10964_v57 = vadd.f32 %v10882_v38, %v10514_v24 }
 0x2c3   :  { %v862_v43 = vadd.f32 %v861_v45, %v10911_v0  ;;  %v1205_v4 = vadd.f32 %v1204_v31, %v1037_v11  ;;  %17313 = vst [vmem:[#allocation115_spill] sm:$0xff] %v10934_v35  ;;  %v1041_v31 = vmul.f32 %v10934_v35, %v10934_v35 }
 0x2c4   :  { %17315 = vst [vmem:[#allocation117_spill] sm:$0xff] %v10948_v5 }
 0x2c5   :  { %v863_v25 = vadd.f32 %v862_v43, %v10918_v26  ;;  %v1206_v1 = vadd.f32 %v1205_v4, %v1038_v53  ;;  %v1042_v4 = vmul.f32 %v10941_v21, %v10941_v21  ;;  %17317 = vst [vmem:[#allocation119_spill] sm:$0xff] %v10964_v57 }
 0x2c7   :  { %v864_v11 = vadd.f32 %v863_v25, %v10927_v48  ;;  %v1207_v45 = vadd.f32 %v1206_v1, %v1039_v14  ;;  %v10958_v1 = vpop.f32.mrf.mxu3  ;;  %v1043_v48 = vmul.f32 %v10948_v5, %v10948_v5 }
 0x2c9   :  { %v865_v43 = vadd.f32 %v864_v11, %v10934_v35  ;;  %v1208_v53 = vadd.f32 %v1207_v45, %v1040_v47  ;;  %v608_v45 = vpop.f32.mrf.mxu2 }
 0x2cb   :  { %v866_v25 = vadd.f32 %v865_v43, %v10941_v21  ;;  %v1209_v14 = vadd.f32 %v1208_v53, %v1041_v31  ;;  %v10971_v43 = vadd.f32 %v10882_v38, %v10554_v23  ;;  %v1045_v21 = vmul.f32 %v10964_v57, %v10964_v57 }
 0x2cd   :  { %v867_v47 = vadd.f32 %v866_v25, %v10948_v5  ;;  %v1210_v11 = vadd.f32 %v1209_v14, %v1042_v4  ;;  %17318 = vst [vmem:[#allocation120_spill] sm:$0xff] %v10971_v43  ;;  %v10979_v4 = vadd.f32 %v10882_v38, %v10591_v13  ;;  %v1046_v14 = vmul.f32 %v10971_v43, %v10971_v43 }
 0x2ce   :  { %v10993_v13 = vadd.f32 %v10882_v38, %v10677_v46 }
 0x2cf   :  { %v868_v31 = vadd.f32 %v867_v47, %v10955_v33  ;;  %v1211_v53 = vadd.f32 %v1210_v11, %v1043_v48  ;;  %17319 = vst [vmem:[#allocation121_spill] sm:$0xff] %v10979_v4  ;;  %v10986_v47 = vadd.f32 %v10882_v38, %v10637_v16  ;;  %v11002_v16 = vadd.f32 %v10882_v38, %v10717_v37 }
 0x2d0   :  { %17321 = vst [vmem:[#allocation123_spill] sm:$0xff] %v10993_v13  ;;  %v1049_v46 = vmul.f32 %v10993_v13, %v10993_v13  ;;  %v11016_v37 = vadd.f32 %v10882_v38, %v10803_v52  ;;  %v11030_v52 = vadd.f32 %v10882_v38, %v10889_v30  ;;  %v11044_v30 = vadd.f32 %v10882_v38, %v608_v45  ;;  %v17331_v45 = vld [vmem:[#allocation16_spill] sm:$0xff] }
 0x2d1   :  { %v869_v24 = vadd.f32 %v868_v31, %v10964_v57  ;;  %v1212_v35 = vadd.f32 %v1211_v53, %v1044_v34  ;;  %17320 = vst [vmem:[#allocation122_spill] sm:$0xff] %v10986_v47  ;;  %v1047_v34 = vmul.f32 %v10979_v4, %v10979_v4  ;;  %v10995_v31 = vpop.f32.mrf.mxu3 }
 0x2d2   :  { %17322 = vst [vmem:[#allocation124_spill] sm:$0xff] %v11002_v16 }
 0x2d3   :  { %v870_v25 = vadd.f32 %v869_v24, %v10971_v43  ;;  %v1213_v23 = vadd.f32 %v1212_v35, %v1045_v21  ;;  %v1048_v35 = vmul.f32 %v10986_v47, %v10986_v47  ;;  %v611_v21 = vpop.f32.mrf.mxu2  ;;  %17324 = vst [vmem:[#allocation126_spill] sm:$0xff] %v11016_v37 }
 0x2d4   :  { %17326 = vst [vmem:[#allocation128_spill] sm:$0xff] %v11030_v52 }
 0x2d5   :  { %v1214_v48 = vadd.f32 %v1213_v23, %v1046_v14  ;;  %v871_v11 = vadd.f32 %v870_v25, %v10979_v4  ;;  %v11009_v23 = vadd.f32 %v10882_v38, %v10761_v19  ;;  %v11023_v19 = vadd.f32 %v10882_v38, %v10845_v6  ;;  %17328 = vst [vmem:[#allocation130_spill] sm:$0xff] %v11044_v30 }
 0x2d7   :  { %v1215_v53 = vadd.f32 %v1214_v48, %v1047_v34  ;;  %v872_v24 = vadd.f32 %v871_v11, %v10986_v47  ;;  %17323 = vst [vmem:[#allocation125_spill] sm:$0xff] %v11009_v23  ;;  %v1050_v34 = vmul.f32 %v11002_v16, %v11002_v16  ;;  %v1053_v6 = vmul.f32 %v11023_v19, %v11023_v19 }
 0x2d8   :  { %17325 = vst [vmem:[#allocation127_spill] sm:$0xff] %v11023_v19 }
 0x2d9   :  { %v1216_v25 = vadd.f32 %v1215_v53, %v1048_v35  ;;  %v873_v14 = vadd.f32 %v872_v24, %v10993_v13  ;;  %v1051_v35 = vmul.f32 %v11009_v23, %v11009_v23 }
 0x2db   :  { %v1217_v48 = vadd.f32 %v1216_v25, %v1049_v46  ;;  %v874_v11 = vadd.f32 %v873_v14, %v11002_v16  ;;  %v1052_v46 = vmul.f32 %v11016_v37, %v11016_v37 }
 0x2dd   :  { %v1218_v53 = vadd.f32 %v1217_v48, %v1050_v34  ;;  %v875_v24 = vadd.f32 %v874_v11, %v11009_v23  ;;  %v11033_v48 = vadd.f32 %v10882_v38, %v605_v59  ;;  %v11035_v11 = vpop.f32.mrf.mxu3 }
 0x2df   :  { %v1219_v25 = vadd.f32 %v1218_v53, %v1051_v35  ;;  %v876_v14 = vadd.f32 %v875_v24, %v11016_v37  ;;  %17327 = vst [vmem:[#allocation129_spill] sm:$0xff] %v11033_v48  ;;  %v614_v53 = vpop.f32.mrf.mxu2  ;;  %v1054_v37 = vmul.f32 %v11030_v52, %v11030_v52  ;;  %v1055_v59 = vmul.f32 %v11033_v48, %v11033_v48 }
 0x2e1   :  { %v1220_v34 = vadd.f32 %v1219_v25, %v1052_v46  ;;  %v877_v23 = vadd.f32 %v876_v14, %v11023_v19  ;;  %v11050_v14 = vadd.f32 %v10882_v38, %v611_v21  ;;  %v11053_v46 = vadd.f32 %v10882_v38, %v614_v53 }
 0x2e3   :  { %v1221_v24 = vadd.f32 %v1220_v34, %v1053_v6  ;;  %v878_v35 = vadd.f32 %v877_v23, %v11030_v52  ;;  %17329 = vst [vmem:[#allocation131_spill] sm:$0xff] %v11050_v14  ;;  %v1056_v6 = vmul.f32 %v11044_v30, %v11044_v30  ;;  %v11060_v52 = vadd.f32 %v10882_v38, %v17331_v45 }
 0x2e4   :  { %17330 = vst [vmem:[#allocation132_spill] sm:$0xff] %v11053_v46  ;;  %v1057_v21 = vmul.f32 %v11050_v14, %v11050_v14  ;;  %v1058_v53 = vmul.f32 %v11053_v46, %v11053_v46 }
 0x2e5   :  { %v1222_v16 = vadd.f32 %v1221_v24, %v1054_v37  ;;  %v879_v25 = vadd.f32 %v878_v35, %v11033_v48  ;;  %17332 = vst [vmem:[#allocation16_spill] sm:$0xff] %v11060_v52  ;;  %v11067_v24 = vpop.f32.mrf.mxu3  ;;  %v17337_v48 = vld [vmem:[#allocation22_spill] sm:$0xff] }
 0x2e7   :  { %v1223_v34 = vadd.f32 %v1222_v16, %v1055_v59  ;;  %v880_v23 = vadd.f32 %v879_v25, %v11044_v30  ;;  %v17333_v16 = vld [vmem:[#allocation18_spill] sm:$0xff] }
 0x2e8   :  { %v11071_v35 = vadd.f32 %v10882_v38, %v17333_v16  ;;  %v11085_v16 = vadd.f32 %v10882_v38, %v17337_v48 }
 0x2e9   :  { %v1224_v19 = vadd.f32 %v1223_v34, %v1056_v6  ;;  %v881_v37 = vadd.f32 %v880_v23, %v11050_v14  ;;  %v1059_v34 = vmul.f32 %v11060_v52, %v11060_v52  ;;  %v17335_v6 = vld [vmem:[#allocation20_spill] sm:$0xff] }
 0x2ea   :  { %17334 = vst [vmem:[#allocation18_spill] sm:$0xff] %v11071_v35  ;;  %v11078_v23 = vadd.f32 %v10882_v38, %v17335_v6  ;;  %v1060_v30 = vmul.f32 %v11071_v35, %v11071_v35 }
 0x2eb   :  { %v1225_v59 = vadd.f32 %v1224_v19, %v1057_v21  ;;  %v882_v25 = vadd.f32 %v881_v37, %v11053_v46  ;;  %17338 = vst [vmem:[#allocation22_spill] sm:$0xff] %v11085_v16  ;;  %v17339_v46 = vld [vmem:[#allocation24_spill] sm:$0xff] }
 0x2ec   :  { %17336 = vst [vmem:[#allocation20_spill] sm:$0xff] %v11078_v23  ;;  %v1061_v21 = vmul.f32 %v11078_v23, %v11078_v23  ;;  %v11092_v6 = vadd.f32 %v10882_v38, %v17339_v46  ;;  %v17343_v46 = vld [vmem:[#allocation28_spill] sm:$0xff] }
 0x2ed   :  { %v883_v45 = vadd.f32 %v882_v25, %v11060_v52  ;;  %v1226_v14 = vadd.f32 %v1225_v59, %v1058_v53  ;;  %v1062_v59 = vmul.f32 %v11085_v16, %v11085_v16  ;;  %v17341_v52 = vld [vmem:[#allocation26_spill] sm:$0xff]  ;;  %v11108_v13 = vadd.f32 %v10882_v38, %v17343_v46  ;;  %v17480_v33 = vld [vmem:[#allocation132_spill] sm:$0xff] }
 0x2ee   :  { %17340 = vst [vmem:[#allocation24_spill] sm:$0xff] %v11092_v6  ;;  %v11099_v48 = vadd.f32 %v10882_v38, %v17341_v52  ;;  %v17344_v52 = vld [vmem:[#allocation30_spill] sm:$0xff]  ;;  %v17481_v57 = vld [vmem:[#allocation16_spill] sm:$0xff] }
 0x2ef   :  { %v884_v19 = vadd.f32 %v883_v45, %v11071_v35  ;;  %v1227_v37 = vadd.f32 %v1226_v14, %v1059_v34  ;;  %v11102_v34 = vpop.f32.mrf.mxu3  ;;  %v1063_v35 = vmul.f32 %v11092_v6, %v11092_v6 }
 0x2f0   :  { %17342 = vst [vmem:[#allocation26_spill] sm:$0xff] %v11099_v48 }
 0x2f1   :  { %v885_v25 = vadd.f32 %v884_v19, %v11078_v23  ;;  %v1228_v53 = vadd.f32 %v1227_v37, %v1060_v30  ;;  %v1064_v37 = vmul.f32 %v11099_v48, %v11099_v48  ;;  %v11115_v23 = vadd.f32 %v10882_v38, %v17344_v52  ;;  %v17482_v43 = vld [vmem:[#allocation18_spill] sm:$0xff] }
 0x2f2   :  { %v17484_v27 = vld [vmem:[#allocation22_spill] sm:$0xff] }
 0x2f3   :  { %v886_v45 = vadd.f32 %v885_v25, %v11085_v16  ;;  %v1229_v14 = vadd.f32 %v1228_v53, %v1061_v21  ;;  %v1065_v53 = vmul.f32 %v11108_v13, %v11108_v13  ;;  %v17345_v16 = vld [vmem:[#allocation32_spill] sm:$0xff] }
 0x2f4   :  { %v11122_v46 = vadd.f32 %v10882_v38, %v17345_v16 }
 0x2f5   :  { %v887_v30 = vadd.f32 %v886_v45, %v11092_v6  ;;  %v1230_v19 = vadd.f32 %v1229_v14, %v1062_v59  ;;  %v1066_v14 = vmul.f32 %v11115_v23, %v11115_v23  ;;  %v17347_v6 = vld [vmem:[#allocation34_spill] sm:$0xff] }
 0x2f6   :  { %17346 = vst [vmem:[#allocation28_spill] sm:$0xff] %v11122_v46  ;;  %v11129_v52 = vadd.f32 %v10882_v38, %v17347_v6  ;;  %v11145_v6 = vadd.f32 %v10882_v38, %v10042_v44  ;;  %v11159_v44 = vadd.f32 %v10882_v38, %v10124_v55  ;;  %v11173_v55 = vadd.f32 %v10882_v38, %v10206_v15 }
 0x2f7   :  { %v888_v21 = vadd.f32 %v887_v30, %v11099_v48  ;;  %v1231_v25 = vadd.f32 %v1230_v19, %v1063_v35  ;;  %v1067_v19 = vmul.f32 %v11122_v46, %v11122_v46  ;;  %v17348_v48 = vld [vmem:[#allocation37_spill] sm:$0xff]  ;;  %v11189_v15 = vadd.f32 %v10882_v38, %v10290_v63 }
 0x2f8   :  { %v11136_v16 = vadd.f32 %v10882_v38, %v17348_v48  ;;  %v1068_v47 = vmul.f32 %v11129_v52, %v11129_v52  ;;  %17349 = vst [vmem:[#allocation30_spill] sm:$0xff] %v11145_v6  ;;  %v11152_v48 = vadd.f32 %v10882_v38, %v10082_v32  ;;  %v11166_v32 = vadd.f32 %v10882_v38, %v10164_v3 }
 0x2f9   :  { %v889_v45 = vadd.f32 %v888_v21, %v11108_v13  ;;  %v1232_v59 = vadd.f32 %v1231_v25, %v1064_v37  ;;  %v11139_v25 = vpop.f32.mrf.mxu3  ;;  %17351 = vst [vmem:[#allocation34_spill] sm:$0xff] %v11173_v55  ;;  %v11182_v3 = vadd.f32 %v10882_v38, %v10248_v18  ;;  %v11196_v18 = vadd.f32 %v10882_v38, %v10332_v28 }
 0x2fa   :  { %17350 = vst [vmem:[#allocation32_spill] sm:$0xff] %v11166_v32  ;;  %v11203_v63 = vadd.f32 %v10882_v38, %v10372_v20  ;;  %v11210_v28 = vadd.f32 %v10882_v38, %v10414_v10  ;;  %v11219_v20 = vadd.f32 %v10882_v38, %v10451_v9  ;;  %v11226_v10 = vadd.f32 %v10882_v38, %v10488_v40 }
 0x2fb   :  { %v890_v30 = vadd.f32 %v889_v45, %v11115_v23  ;;  %v1233_v35 = vadd.f32 %v1232_v59, %v1065_v53  ;;  %v1069_v59 = vmul.f32 %v11136_v16, %v11136_v16  ;;  %v11233_v9 = vadd.f32 %v10882_v38, %v10525_v42 }
 0x2fc   :  { %17352 = vst [vmem:[#allocation37_spill] sm:$0xff] %v11203_v63  ;;  %v11240_v40 = vadd.f32 %v10882_v38, %v10556_v39  ;;  %v11247_v42 = vadd.f32 %v10882_v38, %v10582_v7  ;;  %v11256_v39 = vadd.f32 %v10882_v38, %v10617_v41  ;;  %v11263_v7 = vadd.f32 %v10882_v38, %v10653_v36 }
 0x2fd   :  { %v891_v21 = vadd.f32 %v890_v30, %v11122_v46  ;;  %v1234_v37 = vadd.f32 %v1233_v35, %v1066_v14  ;;  %v1070_v35 = vmul.f32 %v11145_v6, %v11145_v6  ;;  %17353 = vst [vmem:[#allocation133_spill] sm:$0xff] %v11219_v20  ;;  %v11270_v41 = vadd.f32 %v10882_v38, %v10684_v56 }
 0x2fe   :  { %17354 = vst [vmem:[#allocation134_spill] sm:$0xff] %v11240_v40  ;;  %v11277_v36 = vadd.f32 %v10882_v38, %v10719_v49  ;;  %v11284_v56 = vadd.f32 %v10882_v38, %v10752_v2  ;;  %v11291_v49 = vadd.f32 %v10882_v38, %v10787_v12  ;;  %v11298_v2 = vadd.f32 %v10882_v38, %v10822_v54 }
 0x2ff   :  { %v892_v53 = vadd.f32 %v891_v21, %v11129_v52  ;;  %v1235_v45 = vadd.f32 %v1234_v37, %v1067_v19  ;;  %v1071_v37 = vmul.f32 %v11152_v48, %v11152_v48  ;;  %17355 = vst [vmem:[#allocation135_spill] sm:$0xff] %v11247_v42  ;;  %v11305_v12 = vadd.f32 %v10882_v38, %v10854_v60 }
 0x300   :  { %17356 = vst [vmem:[#allocation136_spill] sm:$0xff] %v11256_v39  ;;  %v11312_v54 = vadd.f32 %v10882_v38, %v10891_v8  ;;  %v11319_v60 = vadd.f32 %v10882_v38, %v10921_v29  ;;  %v11326_v8 = vadd.f32 %v10882_v38, %v10958_v1  ;;  %v17488_v50 = vld [vmem:[#allocation34_spill] sm:$0xff] }
 0x301   :  { %v893_v14 = vadd.f32 %v892_v53, %v11136_v16  ;;  %v1236_v30 = vadd.f32 %v1235_v45, %v1068_v47  ;;  %v1072_v45 = vmul.f32 %v11159_v44, %v11159_v44  ;;  %17357 = vst [vmem:[#allocation137_spill] sm:$0xff] %v11291_v49 }
 0x302   :  { %17358 = vst [vmem:[#allocation138_spill] sm:$0xff] %v11298_v2 }
 0x303   :  { %v894_v21 = vadd.f32 %v893_v14, %v11145_v6  ;;  %v1237_v19 = vadd.f32 %v1236_v30, %v1069_v59  ;;  %v11176_v30 = vpop.f32.mrf.mxu3  ;;  %v1073_v6 = vmul.f32 %v11166_v32, %v11166_v32  ;;  %17359 = vst [vmem:[#allocation139_spill] sm:$0xff] %v11305_v12 }
 0x304   :  { %17360 = vst [vmem:[#allocation140_spill] sm:$0xff] %v11312_v54  ;;  %v17489_v5 = vld [vmem:[#allocation133_spill] sm:$0xff] }
 0x305   :  { %v895_v53 = vadd.f32 %v894_v21, %v11152_v48  ;;  %v1238_v47 = vadd.f32 %v1237_v19, %v1070_v35  ;;  %v1074_v19 = vmul.f32 %v11173_v55, %v11173_v55  ;;  %17361 = vst [vmem:[#allocation141_spill] sm:$0xff] %v11319_v60 }
 0x306   :  { %17362 = vst [vmem:[#allocation142_spill] sm:$0xff] %v11326_v8 }
 0x307   :  { %v896_v14 = vadd.f32 %v895_v53, %v11159_v44  ;;  %v1239_v59 = vadd.f32 %v1238_v47, %v1071_v37  ;;  %v1075_v47 = vmul.f32 %v11182_v3, %v11182_v3 }
 0x309   :  { %v897_v35 = vadd.f32 %v896_v14, %v11166_v32  ;;  %v1240_v21 = vadd.f32 %v1239_v59, %v1072_v45  ;;  %v1076_v59 = vmul.f32 %v11189_v15, %v11189_v15 }
 0x30b   :  { %v898_v37 = vadd.f32 %v897_v35, %v11173_v55  ;;  %v1241_v53 = vadd.f32 %v1240_v21, %v1073_v6  ;;  %v1077_v21 = vmul.f32 %v11196_v18, %v11196_v18 }
 0x30d   :  { %v899_v14 = vadd.f32 %v898_v37, %v11182_v3  ;;  %v1242_v45 = vadd.f32 %v1241_v53, %v1074_v19  ;;  %v11213_v37 = vpop.f32.mrf.mxu3  ;;  %v1078_v53 = vmul.f32 %v11203_v63, %v11203_v63 }
 0x30f   :  { %v900_v35 = vadd.f32 %v899_v14, %v11189_v15  ;;  %v1243_v6 = vadd.f32 %v1242_v45, %v1075_v47  ;;  %v1079_v45 = vmul.f32 %v11210_v28, %v11210_v28 }
 0x311   :  { %v1244_v55 = vadd.f32 %v1243_v6, %v1076_v59  ;;  %v901_v19 = vadd.f32 %v900_v35, %v11196_v18  ;;  %v1080_v6 = vmul.f32 %v11219_v20, %v11219_v20 }
 0x313   :  { %v902_v47 = vadd.f32 %v901_v19, %v11203_v63  ;;  %v1245_v14 = vadd.f32 %v1244_v55, %v1077_v21  ;;  %v1081_v21 = vmul.f32 %v11226_v10, %v11226_v10 }
 0x315   :  { %v903_v59 = vadd.f32 %v902_v47, %v11210_v28  ;;  %v1246_v35 = vadd.f32 %v1245_v14, %v1078_v53  ;;  %v1082_v14 = vmul.f32 %v11233_v9, %v11233_v9 }
 0x317   :  { %v904_v19 = vadd.f32 %v903_v59, %v11219_v20  ;;  %v1247_v55 = vadd.f32 %v1246_v35, %v1079_v45  ;;  %v11250_v35 = vpop.f32.mrf.mxu3  ;;  %v1083_v20 = vmul.f32 %v11240_v40, %v11240_v40 }
 0x319   :  { %v905_v47 = vadd.f32 %v904_v19, %v11226_v10  ;;  %v1248_v53 = vadd.f32 %v1247_v55, %v1080_v6  ;;  %v1084_v55 = vmul.f32 %v11247_v42, %v11247_v42 }
 0x31b   :  { %v906_v59 = vadd.f32 %v905_v47, %v11233_v9  ;;  %v1249_v45 = vadd.f32 %v1248_v53, %v1081_v21  ;;  %v1085_v53 = vmul.f32 %v11256_v39, %v11256_v39 }
 0x31d   :  { %v907_v6 = vadd.f32 %v906_v59, %v11240_v40  ;;  %v1250_v19 = vadd.f32 %v1249_v45, %v1082_v14  ;;  %v1086_v45 = vmul.f32 %v11263_v7, %v11263_v7 }
 0x31f   :  { %v908_v21 = vadd.f32 %v907_v6, %v11247_v42  ;;  %v1251_v47 = vadd.f32 %v1250_v19, %v1083_v20  ;;  %v1087_v19 = vmul.f32 %v11270_v41, %v11270_v41 }
 0x321   :  { %v909_v59 = vadd.f32 %v908_v21, %v11256_v39  ;;  %v1252_v14 = vadd.f32 %v1251_v47, %v1084_v55  ;;  %v752_v47 = vpop.f32.mrf.mxu3  ;;  %v1088_v39 = vmul.f32 %v11277_v36, %v11277_v36 }
 0x323   :  { %v910_v6 = vadd.f32 %v909_v59, %v11263_v7  ;;  %v1253_v20 = vadd.f32 %v1252_v14, %v1085_v53  ;;  %v1089_v14 = vmul.f32 %v11284_v56, %v11284_v56 }
 0x325   :  { %v911_v21 = vadd.f32 %v910_v6, %v11270_v41  ;;  %v1254_v55 = vadd.f32 %v1253_v20, %v1086_v45  ;;  %v1090_v20 = vmul.f32 %v11291_v49, %v11291_v49 }
 0x327   :  { %v912_v53 = vadd.f32 %v911_v21, %v11277_v36  ;;  %v1255_v59 = vadd.f32 %v1254_v55, %v1087_v19  ;;  %v1091_v55 = vmul.f32 %v11298_v2, %v11298_v2 }
 0x329   :  { %v913_v45 = vadd.f32 %v912_v53, %v11284_v56  ;;  %v1256_v6 = vadd.f32 %v1255_v59, %v1088_v39  ;;  %v1092_v59 = vmul.f32 %v11305_v12, %v11305_v12 }
 0x32b   :  { %v914_v21 = vadd.f32 %v913_v45, %v11291_v49  ;;  %v1257_v19 = vadd.f32 %v1256_v6, %v1089_v14  ;;  %v755_v6 = vpop.f32.mrf.mxu3  ;;  %v1093_v49 = vmul.f32 %v11312_v54, %v11312_v54 }
 0x32d   :  { %v915_v53 = vadd.f32 %v914_v21, %v11298_v2  ;;  %v1258_v39 = vadd.f32 %v1257_v19, %v1090_v20  ;;  %v1094_v19 = vmul.f32 %v11319_v60, %v11319_v60 }
 0x32f   :  { %v916_v45 = vadd.f32 %v915_v53, %v11305_v12  ;;  %v1259_v14 = vadd.f32 %v1258_v39, %v1091_v55  ;;  %v11334_v55 = vadd.f32 %v10882_v38, %v10995_v31  ;;  %v1095_v39 = vmul.f32 %v11326_v8, %v11326_v8 }
 0x330   :  { %v11348_v31 = vadd.f32 %v10882_v38, %v11067_v24  ;;  %v11362_v24 = vadd.f32 %v10882_v38, %v11139_v25  ;;  %v11376_v25 = vadd.f32 %v10882_v38, %v11213_v37 }
 0x331   :  { %v917_v20 = vadd.f32 %v916_v45, %v11312_v54  ;;  %v1260_v21 = vadd.f32 %v1259_v14, %v1092_v59  ;;  %17363 = vst [vmem:[#allocation143_spill] sm:$0xff] %v11334_v55  ;;  %v11341_v45 = vadd.f32 %v10882_v38, %v11035_v11  ;;  %v11355_v11 = vadd.f32 %v10882_v38, %v11102_v34 }
 0x332   :  { %17365 = vst [vmem:[#allocation145_spill] sm:$0xff] %v11348_v31  ;;  %v11369_v34 = vadd.f32 %v10882_v38, %v11176_v30  ;;  %v11383_v30 = vadd.f32 %v10882_v38, %v11250_v35  ;;  %v1102_v37 = vmul.f32 %v11376_v25, %v11376_v25 }
 0x333   :  { %v918_v29 = vadd.f32 %v917_v20, %v11319_v60  ;;  %v1261_v2 = vadd.f32 %v1260_v21, %v1093_v49  ;;  %17364 = vst [vmem:[#allocation144_spill] sm:$0xff] %v11341_v45  ;;  %v1096_v49 = vmul.f32 %v11334_v55, %v11334_v55 }
 0x334   :  { %17366 = vst [vmem:[#allocation146_spill] sm:$0xff] %v11355_v11 }
 0x335   :  { %v919_v53 = vadd.f32 %v918_v29, %v11326_v8  ;;  %v1262_v1 = vadd.f32 %v1261_v2, %v1094_v19  ;;  %v1097_v2 = vmul.f32 %v11341_v45, %v11341_v45  ;;  %v758_v19 = vpop.f32.mrf.mxu3  ;;  %17367 = vst [vmem:[#allocation147_spill] sm:$0xff] %v11362_v24 }
 0x336   :  { %17368 = vst [vmem:[#allocation148_spill] sm:$0xff] %v11369_v34 }
 0x337   :  { %v1263_v59 = vadd.f32 %v1262_v1, %v1095_v39  ;;  %v920_v14 = vadd.f32 %v919_v53, %v11334_v55  ;;  %v1098_v39 = vmul.f32 %v11348_v31, %v11348_v31  ;;  %17369 = vst [vmem:[#allocation149_spill] sm:$0xff] %v11376_v25 }
 0x338   :  { %17370 = vst [vmem:[#allocation150_spill] sm:$0xff] %v11383_v30 }
 0x339   :  { %v1264_v20 = vadd.f32 %v1263_v59, %v1096_v49  ;;  %v921_v21 = vadd.f32 %v920_v14, %v11341_v45  ;;  %v1099_v14 = vmul.f32 %v11355_v11, %v11355_v11 }
 0x33b   :  { %v1265_v29 = vadd.f32 %v1264_v20, %v1097_v2  ;;  %v922_v53 = vadd.f32 %v921_v21, %v11348_v31  ;;  %v1100_v21 = vmul.f32 %v11362_v24, %v11362_v24  ;;  %v17495_v63 = vld [vmem:[#allocation146_spill] sm:$0xff] }
 0x33d   :  { %v1266_v1 = vadd.f32 %v1265_v29, %v1098_v39  ;;  %v923_v59 = vadd.f32 %v922_v53, %v11355_v11  ;;  %v1101_v53 = vmul.f32 %v11369_v34, %v11369_v34  ;;  %v11386_v39 = vadd.f32 %v10882_v38, %v752_v47  ;;  %v17497_v32 = vld [vmem:[#allocation148_spill] sm:$0xff] }
 0x33e   :  { %v17498_v46 = vld [vmem:[#allocation149_spill] sm:$0xff] }
 0x33f   :  { %v1267_v49 = vadd.f32 %v1266_v1, %v1099_v14  ;;  %v924_v20 = vadd.f32 %v923_v59, %v11362_v24  ;;  %17371 = vst [vmem:[#allocation151_spill] sm:$0xff] %v11386_v39  ;;  %v761_v14 = vpop.f32.mrf.mxu3  ;;  %v1104_v35 = vmul.f32 %v11386_v39, %v11386_v39 }
 0x341   :  { %v1268_v2 = vadd.f32 %v1267_v49, %v1100_v21  ;;  %v925_v29 = vadd.f32 %v924_v20, %v11369_v34  ;;  %v1103_v21 = vmul.f32 %v11383_v30, %v11383_v30  ;;  %v11395_v34 = vadd.f32 %v10882_v38, %v755_v6 }
 0x343   :  { %v1269_v1 = vadd.f32 %v1268_v2, %v1101_v53  ;;  %v926_v59 = vadd.f32 %v925_v29, %v11376_v25  ;;  %17372 = vst [vmem:[#allocation152_spill] sm:$0xff] %v11395_v34  ;;  %v11401_v29 = vadd.f32 %v10882_v38, %v758_v19  ;;  %v762_v53 = vadd.f32 %v10882_v38, %v761_v14 }
 0x345   :  { %v1270_v49 = vadd.f32 %v1269_v1, %v1102_v37  ;;  %v927_v20 = vadd.f32 %v926_v59, %v11383_v30  ;;  %17373 = vst [vmem:[#allocation153_spill] sm:$0xff] %v11401_v29  ;;  %v1105_v37 = vmul.f32 %v11395_v34, %v11395_v34  ;;  %v1106_v25 = vmul.f32 %v11401_v29, %v11401_v29 }
 0x347   :  { %v1271_v47 = vadd.f32 %v1270_v49, %v1103_v21  ;;  %v928_v2 = vadd.f32 %v927_v20, %v11386_v39  ;;  %v1107_v49 = vmul.f32 %v762_v53, %v762_v53 }
 0x349   :  { %v1272_v1 = vadd.f32 %v1271_v47, %v1104_v35  ;;  %v929_v59 = vadd.f32 %v928_v2, %v11395_v34 }
 0x34a   :  { %v17501_v4 = vld [vmem:[#allocation152_spill] sm:$0xff] }
 0x34b   :  { %v1273_v30 = vadd.f32 %v1272_v1, %v1105_v37  ;;  %v930_v6 = vadd.f32 %v929_v59, %v11401_v29 }
 0x34d   :  { %v1274_v21 = vadd.f32 %v1273_v30, %v1106_v25  ;;  %v931_v20 = vadd.f32 %v930_v6, %v762_v53 }
 0x34f   :  { %v932_v39 = vrot.slane %v931_v20, 4  ;;  %v1275_v19 = vadd.f32 %v1274_v21, %v1107_v49 }
 0x351   :  { %v933_v24 = vadd.f32 %v932_v39, %v931_v20  ;;  %v1276_v11 = vrot.slane %v1275_v19, 4 }
 0x353   :  { %v934_v38 = vrot.slane %v933_v24, 2  ;;  %v1277_v14 = vadd.f32 %v1276_v11, %v1275_v19 }
 0x355   :  { %v935_v35 = vadd.f32 %v934_v38, %v933_v24  ;;  %v1278_v47 = vrot.slane %v1277_v14, 2 }
 0x357   :  { %v936_v2 = vrot.slane %v935_v35, 1  ;;  %v1279_v31 = vadd.f32 %v1278_v47, %v1277_v14  ;;  %v11429_v14 = vld [vmem:[%s16791_s4] ss:$0 sm:$0xff] }
 0x358   :  { %17375 = vst [vmem:[#allocation155_spill] sm:$0xff] %v11429_v14 }
 0x359   :  { %v937_v34 = vadd.f32 %v936_v2, %v935_v35  ;;  %v1280_v1 = vrot.slane %v1279_v31, 1 }
 0x35b   :  { %v11410_v37 = vmul.f32 0.000739645, %v937_v34  ;;  %v1281_v59 = vadd.f32 %v1280_v1, %v1279_v31  ;;  %v11417_v34 = vld [vmem:[%s16790_s3] ss:$0 sm:$0xff] }
 0x35c   :  { %17374 = vst [vmem:[#allocation154_spill] sm:$0xff] %v11417_v34 }
 0x35d   :  { %v1282_v45 = vmul.f32 0.000739645, %v1281_v59  ;;  %v1283_v25 = vmul.f32 %v11410_v37, %v11410_v37  ;;  %v1422_v31 = vsub.f32 %v11108_v13, %v11410_v37  ;;  %v1464_v19 = vsub.f32 %v762_v53, %v11410_v37 }
 0x35e   :  { %v17504_v40 = vsub.f32 %v10007_v51, %v11410_v37  ;;  %v17512_v51 = vsub.f32 %v10049_v22, %v11410_v37  ;;  %v17522_v22 = vld [vmem:[#allocation45_spill] sm:$0xff] }
 0x35f   :  { %v1284_v30 = vsub.f32 %v1282_v45, %v1283_v25  ;;  %v1423_v45 = vsub.f32 %v11115_v23, %v11410_v37 }
 0x361   :  { %v1285_v6 = vadd.f32 1e-05, %v1284_v30 }
 0x363   :  { %9232 = vrsqrt.f32 %v1285_v6  ;;  %vm1292_vm1 = vweird.f32 %v1285_v6 }
 0x369   :  { %v9233_v39 = vpop.eup %9232 }
 0x36a   :  { %v1287_v49 = vmul.f32 %v9233_v39, %v1285_v6  ;;  %vm1293_vm0 = vweird.f32 %v9233_v39 }
 0x36b   :  { %vm1294_vm2 = vmor %vm1292_vm1, %vm1293_vm0 }
 0x36c   :  { %v1288_v21 = vmul.f32 %v9233_v39, %v1287_v49 }
 0x36e   :  { %v1289_v11 = vmul.f32 0.5, %v1288_v21 }
 0x370   :  { %v1290_v24 = vsub.f32 1.5, %v1289_v11  ;;  %v17376_v11 = vld [vmem:[#allocation38_spill] sm:$0xff] }
 0x371   :  { %v17502_v54 = vsub.f32 %v17376_v11, %v11410_v37 }
 0x372   :  { %v1291_v20 = vmul.f32 %v9233_v39, %v1290_v24  ;;  %v17490_v24 = vld [vmem:[#allocation136_spill] sm:$0xff] }
 0x374   :  { %v11424_v38 = vsel %vm1294_vm2, %v9233_v39, %v1291_v20  ;;  %v17377_v20 = vld [vmem:[#allocation36_spill] sm:$0xff] }
 0x375   :  { %v1591_v35 = vmul.f32 %v1422_v31, %v11424_v38  ;;  %v1592_v47 = vmul.f32 %v1423_v45, %v11424_v38  ;;  %v1633_v2 = vmul.f32 %v1464_v19, %v11424_v38  ;;  %v17378_v19 = vld [vmem:[#allocation39_spill] sm:$0xff]  ;;  %v17487_v31 = vld [vmem:[#allocation30_spill] sm:$0xff]  ;;  %v11777_v60 = vmul.f32 %v17502_v54, %v11424_v38 }
 0x376   :  { %v17503_v8 = vsub.f32 %v17377_v20, %v11410_v37  ;;  %v11789_v42 = vmul.f32 %v17504_v40, %v11424_v38  ;;  %v17506_v12 = vsub.f32 %v17378_v19, %v11410_v37  ;;  %v11813_v40 = vmul.f32 %v17512_v51, %v11424_v38 }
 0x377   :  { %v1764_v13 = vmul.f32 %v11417_v34, %v1591_v35  ;;  %v1765_v1 = vmul.f32 %v11417_v34, %v1592_v47  ;;  %v1806_v23 = vmul.f32 %v11417_v34, %v1633_v2  ;;  %v17379_v47 = vld [vmem:[#allocation40_spill] sm:$0xff]  ;;  %v17456_v2 = vld [vmem:[#allocation15_spill] sm:$0xff]  ;;  %v17499_v35 = vld [vmem:[#allocation150_spill] sm:$0xff]  ;;  %v17523_v51 = vsub.f32 %v17522_v22, %v11410_v37 }
 0x378   :  { %v17460_v34 = vld [vmem:[#allocation23_spill] sm:$0xff]  ;;  %v11783_v55 = vmul.f32 %v17503_v8, %v11424_v38  ;;  %17505 = vst [vmem:[#allocation38_spill] sm:$0xff] %v11789_v42  ;;  %v11795_v29 = vmul.f32 %v17506_v12, %v11424_v38  ;;  %v17508_v54 = vsub.f32 %v17379_v47, %v11410_v37  ;;  %v17534_v22 = vld [vmem:[#allocation49_spill] sm:$0xff] }
 0x379   :  { %v1937_v53 = vadd.f32 %v11429_v14, %v1764_v13  ;;  %v1938_v59 = vadd.f32 %v11429_v14, %v1765_v1  ;;  %v1979_v25 = vadd.f32 %v11429_v14, %v1806_v23  ;;  %v17380_v13 = vld [vmem:[#allocation41_spill] sm:$0xff]  ;;  %v17462_v23 = vld [vmem:[#allocation27_spill] sm:$0xff] }
 0x37a   :  { %v17461_v1 = vld [vmem:[#allocation25_spill] sm:$0xff]  ;;  %17507 = vst [vmem:[#allocation36_spill] sm:$0xff] %v11795_v29  ;;  %v11801_v11 = vmul.f32 %v17508_v54, %v11424_v38  ;;  %v17510_v8 = vsub.f32 %v17380_v13, %v11410_v37  ;;  %v17516_v47 = vld [vmem:[#allocation43_spill] sm:$0xff]  ;;  %v17519_v13 = vld [vmem:[#allocation44_spill] sm:$0xff] }
 0x37b   :  { %v2106_v30 = vmax.f32 %v1937_v53, 0.0  ;;  %v2107_v6 = vmax.f32 %v1938_v59, 0.0  ;;  %v2148_v39 = vmax.f32 %v1979_v25, 0.0  ;;  %v17381_v53 = vld [vmem:[#allocation42_spill] sm:$0xff]  ;;  %v17463_v25 = vld [vmem:[#allocation31_spill] sm:$0xff]  ;;  %17513 = vst [vmem:[#allocation41_spill] sm:$0xff] %v11813_v40  ;;  %v17517_v54 = vsub.f32 %v17516_v47, %v11410_v37 }
 0x37c   :  { %v17500_v59 = vld [vmem:[#allocation151_spill] sm:$0xff]  ;;  %17509 = vst [vmem:[#allocation39_spill] sm:$0xff] %v11801_v11  ;;  %v11807_v20 = vmul.f32 %v17510_v8, %v11424_v38  ;;  %v17514_v12 = vsub.f32 %v17381_v53, %v11410_v37  ;;  %v17520_v8 = vsub.f32 %v17519_v13, %v11410_v37  ;;  %v11837_v40 = vmul.f32 %v17523_v51, %v11424_v38  ;;  %v17525_v53 = vld [vmem:[#allocation46_spill] sm:$0xff]  ;;  %v17531_v13 = vld [vmem:[#allocation48_spill] sm:$0xff] }
 0x37d   :  { %v2317_v49 = vpack.c.bf16 %v2148_v39, %v2148_v39  ;;  %v7733_v21 = vpack.c.bf16 %v2107_v6, %v2106_v30  ;;  %v9284_v30 = vmov 0.0   ;;  %v17467_v39 = vld [vmem:[#allocation114_spill] sm:$0xff]  ;;  %v17496_v6 = vld [vmem:[#allocation147_spill] sm:$0xff]  ;;  %v11825_v11 = vmul.f32 %v17517_v54, %v11424_v38 }
 0x37e   :  { %2530 = vst [vmem:[#allocation3 + $0x158] sm:$0xff] %v9284_v30  ;;  %v11819_v19 = vmul.f32 %v17514_v12, %v11424_v38  ;;  %v17526_v12 = vsub.f32 %v17525_v53, %v11410_v37  ;;  %v17528_v47 = vld [vmem:[#allocation47_spill] sm:$0xff]  ;;  %v17535_v51 = vsub.f32 %v17534_v22, %v11410_v37  ;;  %v17537_v53 = vld [vmem:[#allocation50_spill] sm:$0xff]  ;;  %v17546_v22 = vld [vmem:[#allocation53_spill] sm:$0xff] }
 0x37f   :  { %8221 = vst [vmem:[#allocation2 + $0x1f8] sm:$0xff] %v7733_v21   ;;  %v17459_v21 = vld [vmem:[#allocation21_spill] sm:$0xff]  ;;  %v17529_v54 = vsub.f32 %v17528_v47, %v11410_v37  ;;  %v17540_v47 = vld [vmem:[#allocation51_spill] sm:$0xff] }
 0x380   :  { %2486 = vst [vmem:[#allocation2 + $0x2a0] sm:$0xf] %v2317_v49  ;;  %v17458_v49 = vld [vmem:[#allocation19_spill] sm:$0xff] }
 0x381   :  { %2531 = vst [vmem:[#allocation3 + $0x160] sm:$0xff] %v9284_v30 }
 0x382   :  { %2532 = vst [vmem:[#allocation3 + $0x168] sm:$0xff] %v9284_v30 }
 0x383   :  { %2529 = vst [vmem:[#allocation3 + $0x150] sm:$0xff] %v9284_v30  ;;  %v17457_v30 = vld [vmem:[#allocation17_spill] sm:$0xff] }
 0x384   :  { %17511 = vst [vmem:[#allocation40_spill] sm:$0xff] %v11807_v20  ;;  %v11831_v20 = vmul.f32 %v17520_v8, %v11424_v38  ;;  %v17532_v8 = vsub.f32 %v17531_v13, %v11410_v37  ;;  %v17543_v13 = vld [vmem:[#allocation52_spill] sm:$0xff] }
 0x385   :  { %17515 = vst [vmem:[#allocation42_spill] sm:$0xff] %v11819_v19  ;;  %v11843_v19 = vmul.f32 %v17526_v12, %v11424_v38  ;;  %v17538_v12 = vsub.f32 %v17537_v53, %v11410_v37  ;;  %v17549_v53 = vld [vmem:[#allocation54_spill] sm:$0xff] }
 0x386   :  { %17518 = vst [vmem:[#allocation15_spill] sm:$0xff] %v11825_v11  ;;  %v11849_v11 = vmul.f32 %v17529_v54, %v11424_v38  ;;  %v17541_v54 = vsub.f32 %v17540_v47, %v11410_v37  ;;  %v17552_v47 = vld [vmem:[#allocation55_spill] sm:$0xff] }
 0x387   :  { %17521 = vst [vmem:[#allocation17_spill] sm:$0xff] %v11831_v20  ;;  %v11855_v20 = vmul.f32 %v17532_v8, %v11424_v38  ;;  %v17544_v8 = vsub.f32 %v17543_v13, %v11410_v37  ;;  %v17555_v13 = vld [vmem:[#allocation56_spill] sm:$0xff] }
 0x388   :  { %v4641_v14 = vld [vmem:[#allocation3 + $0x15b] sm:$0xff]  ;;  %17524 = vst [vmem:[#allocation19_spill] sm:$0xff] %v11837_v40  ;;  %v11861_v40 = vmul.f32 %v17535_v51, %v11424_v38  ;;  %v17547_v51 = vsub.f32 %v17546_v22, %v11410_v37  ;;  %v17558_v22 = vld [vmem:[#allocation57_spill] sm:$0xff] }
 0x389   :  { %v4642_v45 = vld [vmem:[#allocation3 + $0x163] sm:$0xff]  ;;  %17527 = vst [vmem:[#allocation21_spill] sm:$0xff] %v11843_v19  ;;  %v11867_v19 = vmul.f32 %v17538_v12, %v11424_v38  ;;  %v17550_v12 = vsub.f32 %v17549_v53, %v11410_v37  ;;  %v17561_v53 = vld [vmem:[#allocation58_spill] sm:$0xff] }
 0x38a   :  { %v8388_v61 = vpack.i.bf16 %v4642_v45, %v4641_v14  ;;  %v17485_v14 = vld [vmem:[#allocation24_spill] sm:$0xff]  ;;  %v17486_v45 = vld [vmem:[#allocation26_spill] sm:$0xff]  ;;  %17530 = vst [vmem:[#allocation23_spill] sm:$0xff] %v11849_v11  ;;  %v11873_v11 = vmul.f32 %v17541_v54, %v11424_v38  ;;  %v17553_v54 = vsub.f32 %v17552_v47, %v11410_v37  ;;  %v17564_v47 = vld [vmem:[#allocation59_spill] sm:$0xff] }
 0x38b   :  { %17533 = vst [vmem:[#allocation25_spill] sm:$0xff] %v11855_v20  ;;  %v11879_v20 = vmul.f32 %v17544_v8, %v11424_v38  ;;  %v17556_v8 = vsub.f32 %v17555_v13, %v11410_v37  ;;  %v17567_v13 = vld [vmem:[#allocation60_spill] sm:$0xff] }
 0x38c   :  { %8389 = vrot.lane.b32.xlu1 %v8388_v61, %s9285_s27  ;;  %v17466_v61 = vld [vmem:[#allocation113_spill] sm:$0xff]  ;;  %17536 = vst [vmem:[#allocation27_spill] sm:$0xff] %v11861_v40  ;;  %v11885_v40 = vmul.f32 %v17547_v51, %v11424_v38  ;;  %v17559_v51 = vsub.f32 %v17558_v22, %v11410_v37 }
 0x38d   :  { %17539 = vst [vmem:[#allocation31_spill] sm:$0xff] %v11867_v19  ;;  %v11891_v19 = vmul.f32 %v17550_v12, %v11424_v38  ;;  %v17562_v12 = vsub.f32 %v17561_v53, %v11410_v37  ;;  %v17570_v22 = vld [vmem:[#allocation61_spill] sm:$0xff]  ;;  %v17573_v53 = vld [vmem:[#allocation62_spill] sm:$0xff] }
 0x38e   :  { %17542 = vst [vmem:[#allocation113_spill] sm:$0xff] %v11873_v11  ;;  %v11897_v11 = vmul.f32 %v17553_v54, %v11424_v38  ;;  %v17565_v54 = vsub.f32 %v17564_v47, %v11410_v37  ;;  %v17576_v47 = vld [vmem:[#allocation63_spill] sm:$0xff] }
 0x38f   :  { %17545 = vst [vmem:[#allocation114_spill] sm:$0xff] %v11879_v20  ;;  %v11903_v20 = vmul.f32 %v17556_v8, %v11424_v38  ;;  %v17568_v8 = vsub.f32 %v17567_v13, %v11410_v37  ;;  %v17579_v13 = vld [vmem:[#allocation64_spill] sm:$0xff] }
 0x390   :  { %17548 = vst [vmem:[#allocation132_spill] sm:$0xff] %v11885_v40  ;;  %v11909_v40 = vmul.f32 %v17559_v51, %v11424_v38  ;;  %v17571_v51 = vsub.f32 %v17570_v22, %v11410_v37  ;;  %v4469_v22 = vld [vmem:[#allocation3 + $0x15a] sm:$0xff] }
 0x391   :  { %17551 = vst [vmem:[#allocation16_spill] sm:$0xff] %v11891_v19  ;;  %v11915_v19 = vmul.f32 %v17562_v12, %v11424_v38  ;;  %v17574_v12 = vsub.f32 %v17573_v53, %v11410_v37 }
 0x392   :  { %17554 = vst [vmem:[#allocation18_spill] sm:$0xff] %v11897_v11  ;;  %v11921_v11 = vmul.f32 %v17565_v54, %v11424_v38  ;;  %v17577_v54 = vsub.f32 %v17576_v47, %v11410_v37 }
 0x393   :  { %17557 = vst [vmem:[#allocation22_spill] sm:$0xff] %v11903_v20  ;;  %v11927_v20 = vmul.f32 %v17568_v8, %v11424_v38  ;;  %v17580_v8 = vsub.f32 %v17579_v13, %v11410_v37 }
 0x394   :  { %17560 = vst [vmem:[#allocation24_spill] sm:$0xff] %v11909_v40  ;;  %v11933_v40 = vmul.f32 %v17571_v51, %v11424_v38  ;;  %v4470_v51 = vld [vmem:[#allocation3 + $0x162] sm:$0xff] }
 0x395   :  { %17563 = vst [vmem:[#allocation26_spill] sm:$0xff] %v11915_v19  ;;  %v11939_v19 = vmul.f32 %v17574_v12, %v11424_v38 }
 0x396   :  { %17566 = vst [vmem:[#allocation30_spill] sm:$0xff] %v11921_v11  ;;  %v11945_v11 = vmul.f32 %v17577_v54, %v11424_v38 }
 0x397   :  { %17569 = vst [vmem:[#allocation34_spill] sm:$0xff] %v11927_v20  ;;  %v11951_v20 = vmul.f32 %v17580_v8, %v11424_v38 }
 0x398   :  { %17572 = vst [vmem:[#allocation133_spill] sm:$0xff] %v11933_v40  ;;  %v17582_v40 = vld [vmem:[#allocation65_spill] sm:$0xff] }
 0x399   :  { %17575 = vst [vmem:[#allocation136_spill] sm:$0xff] %v11939_v19  ;;  %v17583_v53 = vsub.f32 %v17582_v40, %v11410_v37  ;;  %v17585_v19 = vld [vmem:[#allocation66_spill] sm:$0xff]  ;;  %v17594_v40 = vld [vmem:[#allocation69_spill] sm:$0xff] }
 0x39a   :  { %17578 = vst [vmem:[#allocation146_spill] sm:$0xff] %v11945_v11  ;;  %v17586_v47 = vsub.f32 %v17585_v19, %v11410_v37  ;;  %v17588_v11 = vld [vmem:[#allocation67_spill] sm:$0xff]  ;;  %v17597_v19 = vld [vmem:[#allocation70_spill] sm:$0xff] }
 0x39b   :  { %17581 = vst [vmem:[#allocation147_spill] sm:$0xff] %v11951_v20  ;;  %v11957_v12 = vmul.f32 %v17583_v53, %v11424_v38  ;;  %v17589_v13 = vsub.f32 %v17588_v11, %v11410_v37  ;;  %v17591_v20 = vld [vmem:[#allocation68_spill] sm:$0xff]  ;;  %v17595_v53 = vsub.f32 %v17594_v40, %v11410_v37  ;;  %v17600_v11 = vld [vmem:[#allocation71_spill] sm:$0xff]  ;;  %v17606_v40 = vld [vmem:[#allocation73_spill] sm:$0xff] }
 0x39c   :  { %v11963_v54 = vmul.f32 %v17586_v47, %v11424_v38  ;;  %v17592_v29 = vsub.f32 %v17591_v20, %v11410_v37  ;;  %v17598_v47 = vsub.f32 %v17597_v19, %v11410_v37  ;;  %v17609_v19 = vld [vmem:[#allocation74_spill] sm:$0xff] }
 0x39d   :  { %17584 = vst [vmem:[#allocation148_spill] sm:$0xff] %v11957_v12  ;;  %v11969_v8 = vmul.f32 %v17589_v13, %v11424_v38  ;;  %v11981_v12 = vmul.f32 %v17595_v53, %v11424_v38  ;;  %v17601_v13 = vsub.f32 %v17600_v11, %v11410_v37  ;;  %v17607_v53 = vsub.f32 %v17606_v40, %v11410_v37  ;;  %v17612_v11 = vld [vmem:[#allocation75_spill] sm:$0xff] }
 0x39e   :  { %17587 = vst [vmem:[#allocation149_spill] sm:$0xff] %v11963_v54  ;;  %v11975_v42 = vmul.f32 %v17592_v29, %v11424_v38  ;;  %v11987_v54 = vmul.f32 %v17598_v47, %v11424_v38  ;;  %v17603_v29 = vld [vmem:[#allocation72_spill] sm:$0xff]  ;;  %v17610_v47 = vsub.f32 %v17609_v19, %v11410_v37 }
 0x39f   :  { %17590 = vst [vmem:[#allocation150_spill] sm:$0xff] %v11969_v8  ;;  %v11993_v8 = vmul.f32 %v17601_v13, %v11424_v38  ;;  %v17604_v20 = vsub.f32 %v17603_v29, %v11410_v37  ;;  %v17613_v13 = vsub.f32 %v17612_v11, %v11410_v37  ;;  %v8383_v29 = vpack.i.bf16 %v4470_v51, %v4469_v22  ;;  %v17624_v22 = vld [vmem:[#allocation79_spill] sm:$0xff] }
 0x3a0   :  { %17593 = vst [vmem:[#allocation151_spill] sm:$0xff] %v11975_v42  ;;  %v17625_v51 = vsub.f32 %v17624_v22, %v11410_v37  ;;  %v17634_v22 = vld [vmem:[#allocation83_spill] sm:$0xff] }
 0x3a1   :  { %17596 = vst [vmem:[#allocation152_spill] sm:$0xff] %v11981_v12  ;;  %v11999_v42 = vmul.f32 %v17604_v20, %v11424_v38  ;;  %v12005_v12 = vmul.f32 %v17607_v53, %v11424_v38  ;;  %v17615_v20 = vld [vmem:[#allocation76_spill] sm:$0xff]  ;;  %v17618_v53 = vld [vmem:[#allocation77_spill] sm:$0xff]  ;;  %8384 = vrot.lane.b32.xlu0 %v8383_v29, %s9286_s28  ;;  %v17646_v29 = vld [vmem:[#allocation87_spill] sm:$0xff] }
 0x3a2   :  { %17599 = vst [vmem:[#allocation43_spill] sm:$0xff] %v11987_v54  ;;  %v12011_v54 = vmul.f32 %v17610_v47, %v11424_v38  ;;  %v17621_v47 = vld [vmem:[#allocation78_spill] sm:$0xff] }
 0x3a3   :  { %17602 = vst [vmem:[#allocation44_spill] sm:$0xff] %v11993_v8  ;;  %v12017_v8 = vmul.f32 %v17613_v13, %v11424_v38  ;;  %v12041_v13 = vmul.f32 %v17625_v51, %v11424_v38  ;;  %v17635_v51 = vsub.f32 %v17634_v22, %v11410_v37 }
 0x3a4   :  { %17605 = vst [vmem:[#allocation45_spill] sm:$0xff] %v11999_v42  ;;  %v17616_v42 = vsub.f32 %v17615_v20, %v11410_v37 }
 0x3a5   :  { %17608 = vst [vmem:[#allocation46_spill] sm:$0xff] %v12005_v12  ;;  %v17619_v12 = vsub.f32 %v17618_v53, %v11410_v37 }
 0x3a6   :  { %17611 = vst [vmem:[#allocation47_spill] sm:$0xff] %v12011_v54  ;;  %v12023_v40 = vmul.f32 %v17616_v42, %v11424_v38  ;;  %v17622_v54 = vsub.f32 %v17621_v47, %v11410_v37  ;;  %v17627_v42 = vld [vmem:[#allocation80_spill] sm:$0xff] }
 0x3a7   :  { %17614 = vst [vmem:[#allocation48_spill] sm:$0xff] %v12017_v8  ;;  %v12029_v19 = vmul.f32 %v17619_v12, %v11424_v38  ;;  %v17628_v20 = vsub.f32 %v17627_v42, %v11410_v37  ;;  %v17630_v12 = vld [vmem:[#allocation81_spill] sm:$0xff]  ;;  %v17637_v42 = vld [vmem:[#allocation84_spill] sm:$0xff]  ;;  %v17647_v8 = vsub.f32 %v17646_v29, %v11410_v37 }
 0x3a8   :  { %17617 = vst [vmem:[#allocation49_spill] sm:$0xff] %v12023_v40  ;;  %v12035_v11 = vmul.f32 %v17622_v54, %v11424_v38  ;;  %v17631_v53 = vsub.f32 %v17630_v12, %v11410_v37  ;;  %v17632_v54 = vld [vmem:[#allocation82_spill] sm:$0xff] }
 0x3a9   :  { %17620 = vst [vmem:[#allocation50_spill] sm:$0xff] %v12029_v19  ;;  %v12047_v40 = vmul.f32 %v17628_v20, %v11424_v38  ;;  %v17633_v47 = vsub.f32 %v17632_v54, %v11410_v37  ;;  %v17638_v20 = vsub.f32 %v17637_v42, %v11410_v37  ;;  %v17649_v42 = vld [vmem:[#allocation88_spill] sm:$0xff] }
 0x3aa   :  { %17623 = vst [vmem:[#allocation51_spill] sm:$0xff] %v12035_v11  ;;  %v12053_v19 = vmul.f32 %v17631_v53, %v11424_v38  ;;  %v17640_v53 = vld [vmem:[#allocation85_spill] sm:$0xff] }
 0x3ab   :  { %17626 = vst [vmem:[#allocation52_spill] sm:$0xff] %v12041_v13  ;;  %v12059_v11 = vmul.f32 %v17633_v47, %v11424_v38  ;;  %v12065_v13 = vmul.f32 %v17635_v51, %v11424_v38  ;;  %v12072_v12 = vmul.f32 %v17638_v20, %v11424_v38  ;;  %v17641_v54 = vsub.f32 %v17640_v53, %v11410_v37  ;;  %v17652_v53 = vld [vmem:[#allocation89_spill] sm:$0xff] }
 0x3ac   :  { %17629 = vst [vmem:[#allocation53_spill] sm:$0xff] %v12047_v40  ;;  %v17643_v40 = vld [vmem:[#allocation86_spill] sm:$0xff]  ;;  %v17650_v20 = vsub.f32 %v17649_v42, %v11410_v37  ;;  %v17661_v42 = vld [vmem:[#allocation92_spill] sm:$0xff] }
 0x3ad   :  { %17636 = vst [vmem:[#allocation54_spill] sm:$0xff] %v12065_v13  ;;  %v12078_v47 = vmul.f32 %v17641_v54, %v11424_v38  ;;  %v17644_v22 = vsub.f32 %v17643_v40, %v11410_v37  ;;  %v12090_v13 = vmul.f32 %v17647_v8, %v11424_v38  ;;  %v17653_v54 = vsub.f32 %v17652_v53, %v11410_v37  ;;  %v17655_v40 = vld [vmem:[#allocation90_spill] sm:$0xff]  ;;  %v17658_v8 = vld [vmem:[#allocation91_spill] sm:$0xff] }
 0x3ae   :  { %17639 = vst [vmem:[#allocation55_spill] sm:$0xff] %v12072_v12  ;;  %v12096_v12 = vmul.f32 %v17650_v20, %v11424_v38  ;;  %v17659_v29 = vsub.f32 %v17658_v8, %v11410_v37  ;;  %v17662_v20 = vsub.f32 %v17661_v42, %v11410_v37  ;;  %v17664_v53 = vld [vmem:[#allocation94_spill] sm:$0xff]  ;;  %v17670_v8 = vld [vmem:[#allocation95_spill] sm:$0xff]  ;;  %v17673_v42 = vld [vmem:[#allocation96_spill] sm:$0xff] }
 0x3af   :  { %17642 = vst [vmem:[#allocation56_spill] sm:$0xff] %v12078_v47  ;;  %v12084_v51 = vmul.f32 %v17644_v22, %v11424_v38  ;;  %v12102_v47 = vmul.f32 %v17653_v54, %v11424_v38  ;;  %v17656_v22 = vsub.f32 %v17655_v40, %v11410_v37  ;;  %v17665_v54 = vsub.f32 %v17664_v53, %v11410_v37  ;;  %v17667_v40 = vld [vmem:[#allocation93_spill] sm:$0xff] }
 0x3b0   :  { %17648 = vst [vmem:[#allocation58_spill] sm:$0xff] %v12090_v13  ;;  %v12114_v13 = vmul.f32 %v17659_v29, %v11424_v38  ;;  %v17671_v29 = vsub.f32 %v17670_v8, %v11410_v37  ;;  %v17676_v53 = vld [vmem:[#allocation97_spill] sm:$0xff]  ;;  %v17682_v8 = vld [vmem:[#allocation99_spill] sm:$0xff] }
 0x3b1   :  { %17645 = vst [vmem:[#allocation57_spill] sm:$0xff] %v12084_v51  ;;  %v12108_v51 = vmul.f32 %v17656_v22, %v11424_v38  ;;  %v17668_v22 = vsub.f32 %v17667_v40, %v11410_v37  ;;  %v17679_v40 = vld [vmem:[#allocation98_spill] sm:$0xff] }
 0x3b2   :  { %17651 = vst [vmem:[#allocation59_spill] sm:$0xff] %v12096_v12  ;;  %v12120_v12 = vmul.f32 %v17662_v20, %v11424_v38  ;;  %v17674_v20 = vsub.f32 %v17673_v42, %v11410_v37  ;;  %v17685_v42 = vld [vmem:[#allocation100_spill] sm:$0xff] }
 0x3b3   :  { %17654 = vst [vmem:[#allocation60_spill] sm:$0xff] %v12102_v47  ;;  %v12126_v47 = vmul.f32 %v17665_v54, %v11424_v38  ;;  %v17677_v54 = vsub.f32 %v17676_v53, %v11410_v37  ;;  %v17688_v53 = vld [vmem:[#allocation101_spill] sm:$0xff] }
 0x3b4   :  { %17657 = vst [vmem:[#allocation61_spill] sm:$0xff] %v12108_v51  ;;  %v12132_v51 = vmul.f32 %v17668_v22, %v11424_v38  ;;  %v17680_v22 = vsub.f32 %v17679_v40, %v11410_v37  ;;  %v17691_v40 = vld [vmem:[#allocation102_spill] sm:$0xff] }
 0x3b5   :  { %17660 = vst [vmem:[#allocation62_spill] sm:$0xff] %v12114_v13  ;;  %v12138_v13 = vmul.f32 %v17671_v29, %v11424_v38  ;;  %v17683_v29 = vsub.f32 %v17682_v8, %v11410_v37  ;;  %v17694_v8 = vld [vmem:[#allocation103_spill] sm:$0xff] }
 0x3b6   :  { %17663 = vst [vmem:[#allocation63_spill] sm:$0xff] %v12120_v12  ;;  %v12144_v12 = vmul.f32 %v17674_v20, %v11424_v38  ;;  %v17686_v20 = vsub.f32 %v17685_v42, %v11410_v37  ;;  %v17697_v42 = vld [vmem:[#allocation104_spill] sm:$0xff] }
 0x3b7   :  { %17666 = vst [vmem:[#allocation64_spill] sm:$0xff] %v12126_v47  ;;  %v12150_v47 = vmul.f32 %v17677_v54, %v11424_v38  ;;  %v17689_v54 = vsub.f32 %v17688_v53, %v11410_v37  ;;  %v17700_v53 = vld [vmem:[#allocation105_spill] sm:$0xff] }
 0x3b8   :  { %17669 = vst [vmem:[#allocation65_spill] sm:$0xff] %v12132_v51  ;;  %v12156_v51 = vmul.f32 %v17680_v22, %v11424_v38  ;;  %v17692_v22 = vsub.f32 %v17691_v40, %v11410_v37  ;;  %v17703_v40 = vld [vmem:[#allocation106_spill] sm:$0xff] }
 0x3b9   :  { %17672 = vst [vmem:[#allocation66_spill] sm:$0xff] %v12138_v13  ;;  %v12162_v13 = vmul.f32 %v17683_v29, %v11424_v38  ;;  %v17695_v29 = vsub.f32 %v17694_v8, %v11410_v37  ;;  %v17706_v8 = vld [vmem:[#allocation107_spill] sm:$0xff] }
 0x3ba   :  { %17675 = vst [vmem:[#allocation67_spill] sm:$0xff] %v12144_v12  ;;  %v12168_v12 = vmul.f32 %v17686_v20, %v11424_v38  ;;  %v17698_v20 = vsub.f32 %v17697_v42, %v11410_v37  ;;  %v17709_v42 = vld [vmem:[#allocation108_spill] sm:$0xff] }
 0x3bb   :  { %17678 = vst [vmem:[#allocation68_spill] sm:$0xff] %v12150_v47  ;;  %v12174_v47 = vmul.f32 %v17689_v54, %v11424_v38  ;;  %v17701_v54 = vsub.f32 %v17700_v53, %v11410_v37  ;;  %v17712_v53 = vld [vmem:[#allocation109_spill] sm:$0xff] }
 0x3bc   :  { %17681 = vst [vmem:[#allocation69_spill] sm:$0xff] %v12156_v51  ;;  %v12180_v51 = vmul.f32 %v17692_v22, %v11424_v38  ;;  %v17704_v22 = vsub.f32 %v17703_v40, %v11410_v37  ;;  %v17715_v40 = vld [vmem:[#allocation110_spill] sm:$0xff] }
 0x3bd   :  { %17684 = vst [vmem:[#allocation70_spill] sm:$0xff] %v12162_v13  ;;  %v12186_v13 = vmul.f32 %v17695_v29, %v11424_v38  ;;  %v17707_v29 = vsub.f32 %v17706_v8, %v11410_v37  ;;  %v17718_v8 = vld [vmem:[#allocation111_spill] sm:$0xff] }
 0x3be   :  { %17687 = vst [vmem:[#allocation71_spill] sm:$0xff] %v12168_v12  ;;  %v12192_v12 = vmul.f32 %v17698_v20, %v11424_v38  ;;  %v17710_v20 = vsub.f32 %v17709_v42, %v11410_v37  ;;  %v17721_v42 = vld [vmem:[#allocation9_spill] sm:$0xff] }
 0x3bf   :  { %17690 = vst [vmem:[#allocation72_spill] sm:$0xff] %v12174_v47  ;;  %v12198_v47 = vmul.f32 %v17701_v54, %v11424_v38  ;;  %v17713_v54 = vsub.f32 %v17712_v53, %v11410_v37  ;;  %v17724_v53 = vld [vmem:[#allocation10_spill] sm:$0xff] }
 0x3c0   :  { %17693 = vst [vmem:[#allocation73_spill] sm:$0xff] %v12180_v51  ;;  %v12204_v51 = vmul.f32 %v17704_v22, %v11424_v38  ;;  %v17716_v22 = vsub.f32 %v17715_v40, %v11410_v37  ;;  %v17727_v40 = vld [vmem:[#allocation11_spill] sm:$0xff] }
 0x3c1   :  { %17696 = vst [vmem:[#allocation74_spill] sm:$0xff] %v12186_v13  ;;  %v12210_v13 = vmul.f32 %v17707_v29, %v11424_v38  ;;  %v17719_v29 = vsub.f32 %v17718_v8, %v11410_v37  ;;  %v17729_v8 = vld [vmem:[#allocation12_spill] sm:$0xff] }
 0x3c2   :  { %17699 = vst [vmem:[#allocation75_spill] sm:$0xff] %v12192_v12  ;;  %v12216_v12 = vmul.f32 %v17710_v20, %v11424_v38  ;;  %v17722_v20 = vsub.f32 %v17721_v42, %v11410_v37  ;;  %v17731_v42 = vld [vmem:[#allocation13_spill] sm:$0xff] }
 0x3c3   :  { %17702 = vst [vmem:[#allocation76_spill] sm:$0xff] %v12198_v47  ;;  %v12222_v47 = vmul.f32 %v17713_v54, %v11424_v38  ;;  %v17725_v54 = vsub.f32 %v17724_v53, %v11410_v37  ;;  %v17733_v53 = vld [vmem:[#allocation14_spill] sm:$0xff] }
 0x3c4   :  { %17705 = vst [vmem:[#allocation77_spill] sm:$0xff] %v12204_v51  ;;  %v12228_v51 = vmul.f32 %v17716_v22, %v11424_v38  ;;  %v17728_v22 = vsub.f32 %v17727_v40, %v11410_v37  ;;  %v17735_v40 = vsub.f32 %v17456_v2, %v11410_v37  ;;  %v17741_v2 = vsub.f32 %v17460_v34, %v11410_v37  ;;  %v17746_v34 = vld [vmem:[#allocation29_spill] sm:$0xff] }
 0x3c5   :  { %17708 = vst [vmem:[#allocation78_spill] sm:$0xff] %v12210_v13  ;;  %v12234_v13 = vmul.f32 %v17719_v29, %v11424_v38  ;;  %v17730_v29 = vsub.f32 %v17729_v8, %v11410_v37  ;;  %v17736_v8 = vsub.f32 %v17457_v30, %v11410_v37  ;;  %v17743_v30 = vsub.f32 %v17461_v1, %v11410_v37 }
 0x3c6   :  { %17711 = vst [vmem:[#allocation79_spill] sm:$0xff] %v12216_v12  ;;  %v12240_v12 = vmul.f32 %v17722_v20, %v11424_v38  ;;  %v17732_v20 = vsub.f32 %v17731_v42, %v11410_v37  ;;  %v17737_v42 = vsub.f32 %v17458_v49, %v11410_v37  ;;  %v17744_v49 = vsub.f32 %v17462_v23, %v11410_v37 }
 0x3c7   :  { %17714 = vst [vmem:[#allocation80_spill] sm:$0xff] %v12222_v47  ;;  %v12246_v47 = vmul.f32 %v17725_v54, %v11424_v38  ;;  %v17734_v54 = vsub.f32 %v17733_v53, %v11410_v37  ;;  %v17739_v53 = vsub.f32 %v17459_v21, %v11410_v37  ;;  %v17745_v21 = vsub.f32 %v10835_v58, %v11410_v37  ;;  %v17751_v58 = vld [vmem:[#allocation33_spill] sm:$0xff] }
 0x3c8   :  { %17717 = vst [vmem:[#allocation81_spill] sm:$0xff] %v12228_v51  ;;  %v12252_v51 = vmul.f32 %v17728_v22, %v11424_v38  ;;  %v12276_v22 = vmul.f32 %v17735_v40, %v11424_v38  ;;  %v12300_v40 = vmul.f32 %v17741_v2, %v11424_v38  ;;  %v17747_v2 = vsub.f32 %v17746_v34, %v11410_v37  ;;  %v17753_v34 = vld [vmem:[#allocation35_spill] sm:$0xff] }
 0x3c9   :  { %17720 = vst [vmem:[#allocation82_spill] sm:$0xff] %v12234_v13  ;;  %v12258_v13 = vmul.f32 %v17730_v29, %v11424_v38  ;;  %v12282_v29 = vmul.f32 %v17736_v8, %v11424_v38  ;;  %v12306_v8 = vmul.f32 %v17743_v30, %v11424_v38  ;;  %v17748_v1 = vsub.f32 %v10851_v62, %v11410_v37  ;;  %v17755_v62 = vld [vmem:[#allocation112_spill] sm:$0xff] }
 0x3ca   :  { %17723 = vst [vmem:[#allocation83_spill] sm:$0xff] %v12240_v12  ;;  %v12264_v12 = vmul.f32 %v17732_v20, %v11424_v38  ;;  %v12288_v20 = vmul.f32 %v17737_v42, %v11424_v38  ;;  %v12312_v42 = vmul.f32 %v17744_v49, %v11424_v38  ;;  %v17750_v23 = vsub.f32 %v17463_v25, %v11410_v37 }
 0x3cb   :  { %17726 = vst [vmem:[#allocation84_spill] sm:$0xff] %v12246_v47  ;;  %v12270_v47 = vmul.f32 %v17734_v54, %v11424_v38  ;;  %v12294_v54 = vmul.f32 %v17739_v53, %v11424_v38  ;;  %v12318_v53 = vmul.f32 %v17745_v21, %v11424_v38  ;;  %v12330_v30 = vmul.f32 %v17748_v1, %v11424_v38 }
 0x3cc   :  { %17738 = vst [vmem:[#allocation85_spill] sm:$0xff] %v12288_v20  ;;  %v12336_v49 = vmul.f32 %v17750_v23, %v11424_v38  ;;  %v17752_v21 = vsub.f32 %v17751_v58, %v11410_v37  ;;  %v17756_v1 = vsub.f32 %v17755_v62, %v11410_v37  ;;  %v17757_v25 = vsub.f32 %v10897_v17, %v11410_v37 }
 0x3cd   :  { %17740 = vst [vmem:[#allocation86_spill] sm:$0xff] %v12294_v54  ;;  %v17758_v58 = vsub.f32 %v17466_v61, %v11410_v37  ;;  %v17762_v62 = vsub.f32 %v10918_v26, %v11410_v37  ;;  %v17764_v17 = vsub.f32 %v17467_v39, %v11410_v37  ;;  %v17766_v61 = vld [vmem:[#allocation115_spill] sm:$0xff]  ;;  %v17772_v26 = vld [vmem:[#allocation117_spill] sm:$0xff]  ;;  %v17775_v39 = vld [vmem:[#allocation118_spill] sm:$0xff] }
 0x3ce   :  { %17742 = vst [vmem:[#allocation87_spill] sm:$0xff] %v12300_v40  ;;  %v12324_v40 = vmul.f32 %v17747_v2, %v11424_v38  ;;  %v12342_v54 = vmul.f32 %v17752_v21, %v11424_v38  ;;  %v17754_v2 = vsub.f32 %v17753_v34, %v11410_v37  ;;  %v12360_v23 = vmul.f32 %v17757_v25, %v11424_v38 }
 0x3cf   :  { %17749 = vst [vmem:[#allocation88_spill] sm:$0xff] %v12330_v30  ;;  %v12354_v30 = vmul.f32 %v17756_v1, %v11424_v38  ;;  %v12366_v21 = vmul.f32 %v17758_v58, %v11424_v38  ;;  %v17760_v34 = vsub.f32 %v10911_v0, %v11410_v37  ;;  %v12378_v1 = vmul.f32 %v17762_v62, %v11424_v38  ;;  %v17769_v0 = vld [vmem:[#allocation116_spill] sm:$0xff] }
 0x3d0   :  { %v12348_v20 = vmul.f32 %v17754_v2, %v11424_v38  ;;  %v12384_v25 = vmul.f32 %v17764_v17, %v11424_v38  ;;  %v17767_v58 = vsub.f32 %v17766_v61, %v11410_v37  ;;  %v17773_v62 = vsub.f32 %v17772_v26, %v11410_v37  ;;  %v17778_v61 = vld [vmem:[#allocation119_spill] sm:$0xff]  ;;  %v17784_v26 = vld [vmem:[#allocation121_spill] sm:$0xff] }
 0x3d1   :  { %17759 = vst [vmem:[#allocation89_spill] sm:$0xff] %v12366_v21  ;;  %v12372_v2 = vmul.f32 %v17760_v34, %v11424_v38  ;;  %v17770_v34 = vsub.f32 %v17769_v0, %v11410_v37  ;;  %v17776_v17 = vsub.f32 %v17775_v39, %v11410_v37  ;;  %v17781_v0 = vld [vmem:[#allocation120_spill] sm:$0xff]  ;;  %v17787_v39 = vld [vmem:[#allocation122_spill] sm:$0xff] }
 0x3d2   :  { %17763 = vst [vmem:[#allocation91_spill] sm:$0xff] %v12378_v1  ;;  %v12390_v21 = vmul.f32 %v17767_v58, %v11424_v38  ;;  %v12402_v1 = vmul.f32 %v17773_v62, %v11424_v38  ;;  %v17779_v58 = vsub.f32 %v17778_v61, %v11410_v37  ;;  %v17785_v62 = vsub.f32 %v17784_v26, %v11410_v37  ;;  %v17790_v61 = vld [vmem:[#allocation123_spill] sm:$0xff]  ;;  %v17796_v26 = vld [vmem:[#allocation125_spill] sm:$0xff] }
 0x3d3   :  { %17761 = vst [vmem:[#allocation90_spill] sm:$0xff] %v12372_v2  ;;  %v12396_v2 = vmul.f32 %v17770_v34, %v11424_v38  ;;  %v17782_v34 = vsub.f32 %v17781_v0, %v11410_v37  ;;  %v17793_v0 = vld [vmem:[#allocation124_spill] sm:$0xff] }
 0x3d4   :  { %17765 = vst [vmem:[#allocation92_spill] sm:$0xff] %v12384_v25  ;;  %v12408_v25 = vmul.f32 %v17776_v17, %v11424_v38  ;;  %v17788_v17 = vsub.f32 %v17787_v39, %v11410_v37  ;;  %v17799_v39 = vld [vmem:[#allocation126_spill] sm:$0xff] }
 0x3d5   :  { %17768 = vst [vmem:[#allocation94_spill] sm:$0xff] %v12390_v21  ;;  %v12414_v21 = vmul.f32 %v17779_v58, %v11424_v38  ;;  %v17791_v58 = vsub.f32 %v17790_v61, %v11410_v37  ;;  %v17802_v61 = vld [vmem:[#allocation127_spill] sm:$0xff] }
 0x3d6   :  { %17771 = vst [vmem:[#allocation93_spill] sm:$0xff] %v12396_v2  ;;  %v12420_v2 = vmul.f32 %v17782_v34, %v11424_v38  ;;  %v17794_v34 = vsub.f32 %v17793_v0, %v11410_v37  ;;  %v17805_v0 = vld [vmem:[#allocation128_spill] sm:$0xff] }
 0x3d7   :  { %17774 = vst [vmem:[#allocation95_spill] sm:$0xff] %v12402_v1  ;;  %v12426_v1 = vmul.f32 %v17785_v62, %v11424_v38  ;;  %v17797_v62 = vsub.f32 %v17796_v26, %v11410_v37  ;;  %v17807_v26 = vld [vmem:[#allocation129_spill] sm:$0xff] }
 0x3d8   :  { %17777 = vst [vmem:[#allocation96_spill] sm:$0xff] %v12408_v25  ;;  %v12432_v25 = vmul.f32 %v17788_v17, %v11424_v38  ;;  %v17800_v17 = vsub.f32 %v17799_v39, %v11410_v37  ;;  %v17809_v39 = vld [vmem:[#allocation130_spill] sm:$0xff] }
 0x3d9   :  { %17780 = vst [vmem:[#allocation97_spill] sm:$0xff] %v12414_v21  ;;  %v12438_v21 = vmul.f32 %v17791_v58, %v11424_v38  ;;  %v17803_v58 = vsub.f32 %v17802_v61, %v11410_v37  ;;  %v17811_v61 = vld [vmem:[#allocation131_spill] sm:$0xff] }
 0x3da   :  { %17783 = vst [vmem:[#allocation98_spill] sm:$0xff] %v12420_v2  ;;  %v12444_v2 = vmul.f32 %v17794_v34, %v11424_v38  ;;  %v17806_v34 = vsub.f32 %v17805_v0, %v11410_v37  ;;  %v17814_v0 = vsub.f32 %v17480_v33, %v11410_v37  ;;  %v17820_v33 = vsub.f32 %v17484_v27, %v11410_v37 }
 0x3db   :  { %17786 = vst [vmem:[#allocation99_spill] sm:$0xff] %v12426_v1  ;;  %v12450_v1 = vmul.f32 %v17797_v62, %v11424_v38  ;;  %v17808_v62 = vsub.f32 %v17807_v26, %v11410_v37  ;;  %v17815_v26 = vsub.f32 %v17481_v57, %v11410_v37  ;;  %v17821_v57 = vsub.f32 %v17485_v14, %v11410_v37 }
 0x3dc   :  { %17789 = vst [vmem:[#allocation100_spill] sm:$0xff] %v12432_v25  ;;  %v12456_v25 = vmul.f32 %v17800_v17, %v11424_v38  ;;  %v17810_v17 = vsub.f32 %v17809_v39, %v11410_v37  ;;  %v17816_v39 = vsub.f32 %v17482_v43, %v11410_v37  ;;  %v17822_v43 = vsub.f32 %v17486_v45, %v11410_v37 }
 0x3dd   :  { %17792 = vst [vmem:[#allocation101_spill] sm:$0xff] %v12438_v21  ;;  %v12462_v21 = vmul.f32 %v17803_v58, %v11424_v38  ;;  %v17812_v58 = vsub.f32 %v17811_v61, %v11410_v37  ;;  %v17817_v61 = vld [vmem:[#allocation20_spill] sm:$0xff]  ;;  %v17826_v27 = vsub.f32 %v11129_v52, %v11410_v37  ;;  %v17828_v14 = vsub.f32 %v11136_v16, %v11410_v37 }
 0x3de   :  { %17795 = vst [vmem:[#allocation102_spill] sm:$0xff] %v12444_v2  ;;  %v12468_v2 = vmul.f32 %v17806_v34, %v11424_v38  ;;  %v12492_v34 = vmul.f32 %v17814_v0, %v11424_v38  ;;  %v12516_v0 = vmul.f32 %v17820_v33, %v11424_v38  ;;  %v17829_v45 = vsub.f32 %v17487_v31, %v11410_v37  ;;  %v17832_v16 = vld [vmem:[#allocation32_spill] sm:$0xff] }
 0x3df   :  { %17798 = vst [vmem:[#allocation103_spill] sm:$0xff] %v12450_v1  ;;  %v12474_v1 = vmul.f32 %v17808_v62, %v11424_v38  ;;  %v12498_v62 = vmul.f32 %v17815_v26, %v11424_v38  ;;  %v12522_v26 = vmul.f32 %v17821_v57, %v11424_v38  ;;  %v12540_v33 = vmul.f32 %v17826_v27, %v11424_v38 }
 0x3e0   :  { %17801 = vst [vmem:[#allocation104_spill] sm:$0xff] %v12456_v25  ;;  %v12480_v25 = vmul.f32 %v17810_v17, %v11424_v38  ;;  %v12504_v17 = vmul.f32 %v17816_v39, %v11424_v38  ;;  %v12528_v39 = vmul.f32 %v17822_v43, %v11424_v38  ;;  %v12546_v57 = vmul.f32 %v17828_v14, %v11424_v38 }
 0x3e1   :  { %17804 = vst [vmem:[#allocation105_spill] sm:$0xff] %v12462_v21  ;;  %v12486_v21 = vmul.f32 %v17812_v58, %v11424_v38  ;;  %v17818_v58 = vsub.f32 %v17817_v61, %v11410_v37  ;;  %v17823_v61 = vld [vmem:[#allocation28_spill] sm:$0xff]  ;;  %v12552_v43 = vmul.f32 %v17829_v45, %v11424_v38  ;;  %v17831_v52 = vsub.f32 %v11159_v44, %v11410_v37 }
 0x3e2   :  { %17827 = vst [vmem:[#allocation109_spill] sm:$0xff] %v12540_v33  ;;  %v17833_v14 = vsub.f32 %v17832_v16, %v11410_v37  ;;  %v17834_v31 = vsub.f32 %v17488_v50, %v11410_v37  ;;  %v17836_v44 = vsub.f32 %v11189_v15, %v11410_v37  ;;  %v17837_v16 = vsub.f32 %v11196_v18, %v11410_v37  ;;  %v17838_v50 = vld [vmem:[#allocation37_spill] sm:$0xff] }
 0x3e3   :  { %17813 = vst [vmem:[#allocation106_spill] sm:$0xff] %v12486_v21  ;;  %v12510_v21 = vmul.f32 %v17818_v58, %v11424_v38  ;;  %v17824_v58 = vsub.f32 %v17823_v61, %v11410_v37  ;;  %v17830_v61 = vsub.f32 %v11152_v48, %v11410_v37  ;;  %v12564_v27 = vmul.f32 %v17831_v52, %v11424_v38 }
 0x3e4   :  { %v12570_v33 = vmul.f32 %v17833_v14, %v11424_v38  ;;  %v12576_v45 = vmul.f32 %v17834_v31, %v11424_v38  ;;  %v17835_v48 = vsub.f32 %v11182_v3, %v11410_v37  ;;  %v12588_v52 = vmul.f32 %v17836_v44, %v11424_v38 }
 0x3e5   :  { %17819 = vst [vmem:[#allocation107_spill] sm:$0xff] %v12510_v21  ;;  %v12534_v21 = vmul.f32 %v17824_v58, %v11424_v38  ;;  %v12558_v58 = vmul.f32 %v17830_v61, %v11424_v38  ;;  %v12594_v14 = vmul.f32 %v17837_v16, %v11424_v38  ;;  %v17839_v31 = vsub.f32 %v17838_v50, %v11410_v37 }
 0x3e6   :  { %v12582_v61 = vmul.f32 %v17835_v48, %v11424_v38  ;;  %v17840_v3 = vsub.f32 %v11210_v28, %v11410_v37  ;;  %v17842_v15 = vsub.f32 %v17489_v5, %v11410_v37  ;;  %v17844_v18 = vsub.f32 %v11226_v10, %v11410_v37  ;;  %v17848_v28 = vld [vmem:[#allocation134_spill] sm:$0xff]  ;;  %v17851_v5 = vld [vmem:[#allocation135_spill] sm:$0xff] }
 0x3e7   :  { %17825 = vst [vmem:[#allocation108_spill] sm:$0xff] %v12534_v21  ;;  %v12600_v21 = vmul.f32 %v17839_v31, %v11424_v38  ;;  %v17846_v50 = vsub.f32 %v11233_v9, %v11410_v37  ;;  %v17854_v10 = vsub.f32 %v17490_v24, %v11410_v37  ;;  %v17856_v9 = vsub.f32 %v11263_v7, %v11410_v37  ;;  %v17864_v7 = vld [vmem:[#allocation137_spill] sm:$0xff] }
 0x3e8   :  { %v12606_v48 = vmul.f32 %v17840_v3, %v11424_v38  ;;  %v12612_v44 = vmul.f32 %v17842_v15, %v11424_v38  ;;  %v12618_v16 = vmul.f32 %v17844_v18, %v11424_v38  ;;  %v17849_v3 = vsub.f32 %v17848_v28, %v11410_v37 }
 0x3e9   :  { %v12624_v31 = vmul.f32 %v17846_v50, %v11424_v38  ;;  %v17852_v15 = vsub.f32 %v17851_v5, %v11410_v37  ;;  %v12642_v18 = vmul.f32 %v17854_v10, %v11424_v38  ;;  %v12648_v50 = vmul.f32 %v17856_v9, %v11424_v38 }
 0x3ea   :  { %17841 = vst [vmem:[#allocation110_spill] sm:$0xff] %v12606_v48  ;;  %v12630_v48 = vmul.f32 %v17849_v3, %v11424_v38  ;;  %v17858_v28 = vsub.f32 %v11270_v41, %v11410_v37  ;;  %v17860_v5 = vsub.f32 %v11277_v36, %v11410_v37  ;;  %v17862_v24 = vsub.f32 %v11284_v56, %v11410_v37  ;;  %v17867_v41 = vld [vmem:[#allocation138_spill] sm:$0xff]  ;;  %v17870_v36 = vld [vmem:[#allocation139_spill] sm:$0xff]  ;;  %v17873_v56 = vld [vmem:[#allocation140_spill] sm:$0xff] }
 0x3eb   :  { %17843 = vst [vmem:[#allocation111_spill] sm:$0xff] %v12612_v44  ;;  %v12636_v44 = vmul.f32 %v17852_v15, %v11424_v38  ;;  %v17865_v9 = vsub.f32 %v17864_v7, %v11410_v37  ;;  %v12692_v7 = vld [vmem:[#allocation2 + $0x1f8] sm:$0x8] }
 0x3ec   :  { %17845 = vst [vmem:[#allocation9_spill] sm:$0xff] %v12618_v16  ;;  %v12654_v3 = vmul.f32 %v17858_v28, %v11424_v38  ;;  %v12660_v15 = vmul.f32 %v17860_v5, %v11424_v38  ;;  %v12666_v10 = vmul.f32 %v17862_v24, %v11424_v38  ;;  %v17868_v28 = vsub.f32 %v17867_v41, %v11410_v37  ;;  %v17878_v41 = vld [vmem:[#allocation141_spill] sm:$0xff] }
 0x3ed   :  { %17847 = vst [vmem:[#allocation10_spill] sm:$0xff] %v12624_v31  ;;  %v17871_v5 = vsub.f32 %v17870_v36, %v11410_v37  ;;  %v17874_v24 = vsub.f32 %v17873_v56, %v11410_v37  ;;  %v17881_v36 = vld [vmem:[#allocation142_spill] sm:$0xff]  ;;  %v17884_v56 = vld [vmem:[#allocation143_spill] sm:$0xff] }
 0x3ee   :  { %17850 = vst [vmem:[#allocation11_spill] sm:$0xff] %v12630_v48 }
 0x3ef   :  { %17853 = vst [vmem:[#allocation12_spill] sm:$0xff] %v12636_v44 }
 0x3f0   :  { %17855 = vst [vmem:[#allocation13_spill] sm:$0xff] %v12642_v18 }
 0x3f1   :  { %17857 = vst [vmem:[#allocation14_spill] sm:$0xff] %v12648_v50  ;;  %v12672_v50 = vmul.f32 %v17865_v9, %v11424_v38  ;;  %v12694_v9 = vld [vmem:[#allocation2 + $0x1fc] sm:$0xf] }
 0x3f2   :  { %17859 = vst [vmem:[#allocation29_spill] sm:$0xff] %v12654_v3  ;;  %v12678_v3 = vmul.f32 %v17868_v28, %v11424_v38  ;;  %v17879_v28 = vsub.f32 %v17878_v41, %v11410_v37  ;;  %v17890_v41 = vld [vmem:[#allocation145_spill] sm:$0xff] }
 0x3f3   :  { %17861 = vst [vmem:[#allocation33_spill] sm:$0xff] %v12660_v15  ;;  %v12684_v15 = vmul.f32 %v17871_v5, %v11424_v38  ;;  %v17882_v5 = vsub.f32 %v17881_v36, %v11410_v37  ;;  %v17893_v36 = vsub.f32 %v17495_v63, %v11410_v37  ;;  %v17901_v63 = vsub.f32 %v17499_v35, %v11410_v37 }
 0x3f4   :  { %17863 = vst [vmem:[#allocation35_spill] sm:$0xff] %v12666_v10  ;;  %v12690_v10 = vmul.f32 %v17874_v24, %v11424_v38  ;;  %v17885_v24 = vsub.f32 %v17884_v56, %v11410_v37  ;;  %v17895_v56 = vsub.f32 %v17496_v6, %v11410_v37  ;;  %v17903_v6 = vsub.f32 %v17500_v59, %v11410_v37  ;;  %v17910_v59 = vld [vmem:[#allocation154_spill] sm:$0xff] }
 0x3f5   :  { %17866 = vst [vmem:[#allocation112_spill] sm:$0xff] %v12672_v50  ;;  %v17887_v50 = vld [vmem:[#allocation144_spill] sm:$0xff] }
 0x3f6   :  { %17869 = vst [vmem:[#allocation115_spill] sm:$0xff] %v12678_v3  ;;  %v12700_v3 = vmul.f32 %v17879_v28, %v11424_v38  ;;  %v17888_v18 = vsub.f32 %v17887_v50, %v11410_v37  ;;  %v17891_v28 = vsub.f32 %v17890_v41, %v11410_v37  ;;  %v17899_v41 = vsub.f32 %v17498_v46, %v11410_v37  ;;  %v17907_v46 = vld [vmem:[#allocation153_spill] sm:$0xff] }
 0x3f7   :  { %17872 = vst [vmem:[#allocation116_spill] sm:$0xff] %v12684_v15  ;;  %v12706_v15 = vmul.f32 %v17882_v5, %v11424_v38  ;;  %v12730_v5 = vmul.f32 %v17893_v36, %v11424_v38  ;;  %v12754_v36 = vmul.f32 %v17901_v63, %v11424_v38 }
 0x3f8   :  { %17875 = vst [vmem:[#allocation117_spill] sm:$0xff] %v12690_v10  ;;  %v12712_v10 = vmul.f32 %v17885_v24, %v11424_v38  ;;  %v12718_v44 = vmul.f32 %v17888_v18, %v11424_v38  ;;  %v12736_v24 = vmul.f32 %v17895_v56, %v11424_v38  ;;  %v17897_v18 = vsub.f32 %v17497_v32, %v11410_v37 }
 0x3f9   :  { %17876 = vst [vmem:[#allocation118_spill] sm:$0xff] %v12692_v7  ;;  %v12760_v56 = vmul.f32 %v17903_v6, %v11424_v38  ;;  %v17905_v32 = vsub.f32 %v17501_v4, %v11410_v37  ;;  %v12778_v6 = vmul.f32 %v17910_v59, %v11777_v60  ;;  %v17913_v4 = vld [vmem:[#allocation38_spill] sm:$0xff]  ;;  %v17919_v60 = vld [vmem:[#allocation41_spill] sm:$0xff] }
 0x3fa   :  { %17877 = vst [vmem:[#allocation119_spill] sm:$0xff] %v12694_v9  ;;  %v12742_v50 = vmul.f32 %v17897_v18, %v11424_v38  ;;  %v1644_v35 = vmul.f32 %v17910_v59, %v17919_v60  ;;  %v17920_v9 = vld [vmem:[#allocation42_spill] sm:$0xff]  ;;  %v17929_v60 = vld [vmem:[#allocation23_spill] sm:$0xff] }
 0x3fb   :  { %17880 = vst [vmem:[#allocation120_spill] sm:$0xff] %v12700_v3  ;;  %v12724_v3 = vmul.f32 %v17891_v28, %v11424_v38  ;;  %v12748_v28 = vmul.f32 %v17899_v41, %v11424_v38  ;;  %v12766_v18 = vmul.f32 %v17905_v32, %v11424_v38  ;;  %v17908_v41 = vsub.f32 %v17907_v46, %v11410_v37 }
 0x3fc   :  { %17883 = vst [vmem:[#allocation121_spill] sm:$0xff] %v12706_v15  ;;  %v12786_v32 = vmul.f32 %v17910_v59, %v17913_v4  ;;  %v12818_v7 = vmul.f32 %v17910_v59, %v17929_v60 }
 0x3fd   :  { %17886 = vst [vmem:[#allocation122_spill] sm:$0xff] %v12712_v10 }
 0x3fe   :  { %17889 = vst [vmem:[#allocation123_spill] sm:$0xff] %v12718_v44 }
 0x3ff   :  { %17892 = vst [vmem:[#allocation124_spill] sm:$0xff] %v12724_v3 }
 0x400   :  { %17894 = vst [vmem:[#allocation125_spill] sm:$0xff] %v12730_v5 }
 0x401   :  { %17896 = vst [vmem:[#allocation126_spill] sm:$0xff] %v12736_v24 }
 0x402   :  { %17898 = vst [vmem:[#allocation127_spill] sm:$0xff] %v12742_v50 }
 0x403   :  { %17900 = vst [vmem:[#allocation128_spill] sm:$0xff] %v12748_v28  ;;  %v12772_v28 = vmul.f32 %v17908_v41, %v11424_v38  ;;  %v17917_v38 = vld [vmem:[#allocation39_spill] sm:$0xff]  ;;  %v17918_v41 = vld [vmem:[#allocation40_spill] sm:$0xff] }
 0x404   :  { %17902 = vst [vmem:[#allocation129_spill] sm:$0xff] %v12754_v36  ;;  %v1642_v46 = vmul.f32 %v17910_v59, %v17917_v38  ;;  %v1643_v63 = vmul.f32 %v17910_v59, %v17918_v41 }
 0x405   :  { %17904 = vst [vmem:[#allocation130_spill] sm:$0xff] %v12760_v56  ;;  %v12782_v56 = vmul.f32 %v17910_v59, %v11783_v55  ;;  %v1645_v55 = vmul.f32 %v17910_v59, %v17920_v9  ;;  %v17931_v9 = vld [vmem:[#allocation25_spill] sm:$0xff] }
 0x406   :  { %17906 = vst [vmem:[#allocation131_spill] sm:$0xff] %v12766_v18  ;;  %v17915_v18 = vld [vmem:[#allocation36_spill] sm:$0xff] }
 0x407   :  { %17909 = vst [vmem:[#allocation20_spill] sm:$0xff] %v12772_v28  ;;  %v12790_v37 = vmul.f32 %v17910_v59, %v17915_v18 }
 0x408   :  { %17911 = vst [vmem:[#allocation28_spill] sm:$0xff] %v12778_v6  ;;  %v17927_v6 = vld [vmem:[#allocation21_spill] sm:$0xff] }
 0x409   :  { %17912 = vst [vmem:[#allocation32_spill] sm:$0xff] %v12782_v56  ;;  %v17921_v56 = vld [vmem:[#allocation15_spill] sm:$0xff]  ;;  %v12814_v41 = vmul.f32 %v17910_v59, %v17927_v6 }
 0x40a   :  { %17914 = vst [vmem:[#allocation37_spill] sm:$0xff] %v12786_v32  ;;  %v12802_v4 = vmul.f32 %v17910_v59, %v17921_v56  ;;  %v17923_v32 = vld [vmem:[#allocation17_spill] sm:$0xff]  ;;  %v12822_v56 = vmul.f32 %v17910_v59, %v17931_v9 }
 0x40b   :  { %17916 = vst [vmem:[#allocation134_spill] sm:$0xff] %v12790_v37  ;;  %v12806_v18 = vmul.f32 %v17910_v59, %v17923_v32  ;;  %v17925_v37 = vld [vmem:[#allocation19_spill] sm:$0xff] }
 0x40c   :  { %17922 = vst [vmem:[#allocation135_spill] sm:$0xff] %v12802_v4  ;;  %v12810_v38 = vmul.f32 %v17910_v59, %v17925_v37  ;;  %v17933_v4 = vld [vmem:[#allocation27_spill] sm:$0xff] }
 0x40d   :  { %17924 = vst [vmem:[#allocation137_spill] sm:$0xff] %v12806_v18  ;;  %v12826_v32 = vmul.f32 %v17910_v59, %v17933_v4  ;;  %v17935_v18 = vld [vmem:[#allocation31_spill] sm:$0xff] }
 0x40e   :  { %17926 = vst [vmem:[#allocation138_spill] sm:$0xff] %v12810_v38  ;;  %v12830_v37 = vmul.f32 %v17910_v59, %v17935_v18  ;;  %v17937_v38 = vld [vmem:[#allocation113_spill] sm:$0xff] }
 0x40f   :  { %17928 = vst [vmem:[#allocation139_spill] sm:$0xff] %v12814_v41  ;;  %v12834_v6 = vmul.f32 %v17910_v59, %v17937_v38  ;;  %v17939_v41 = vld [vmem:[#allocation114_spill] sm:$0xff] }
 0x410   :  { %17930 = vst [vmem:[#allocation140_spill] sm:$0xff] %v12818_v7  ;;  %v12838_v60 = vmul.f32 %v17910_v59, %v17939_v41  ;;  %v17941_v7 = vld [vmem:[#allocation132_spill] sm:$0xff] }
 0x411   :  { %17932 = vst [vmem:[#allocation141_spill] sm:$0xff] %v12822_v56  ;;  %v12842_v9 = vmul.f32 %v17910_v59, %v17941_v7  ;;  %v17943_v56 = vld [vmem:[#allocation16_spill] sm:$0xff] }
 0x412   :  { %17934 = vst [vmem:[#allocation142_spill] sm:$0xff] %v12826_v32  ;;  %v12846_v4 = vmul.f32 %v17910_v59, %v17943_v56  ;;  %v17945_v32 = vld [vmem:[#allocation18_spill] sm:$0xff] }
 0x413   :  { %17936 = vst [vmem:[#allocation143_spill] sm:$0xff] %v12830_v37  ;;  %v12850_v18 = vmul.f32 %v17910_v59, %v17945_v32  ;;  %v17947_v37 = vld [vmem:[#allocation22_spill] sm:$0xff] }
 0x414   :  { %17938 = vst [vmem:[#allocation144_spill] sm:$0xff] %v12834_v6  ;;  %v12854_v38 = vmul.f32 %v17910_v59, %v17947_v37  ;;  %v17949_v6 = vld [vmem:[#allocation24_spill] sm:$0xff]  ;;  %v1684_v37 = vmul.f32 %v17910_v59, %v12053_v19  ;;  %v1729_v19 = vmul.f32 %v17910_v59, %v12324_v40 }
 0x415   :  { %17940 = vst [vmem:[#allocation145_spill] sm:$0xff] %v12838_v60  ;;  %v12858_v41 = vmul.f32 %v17910_v59, %v17949_v6  ;;  %v17951_v60 = vld [vmem:[#allocation26_spill] sm:$0xff] }
 0x416   :  { %17942 = vst [vmem:[#allocation153_spill] sm:$0xff] %v12842_v9  ;;  %v12862_v7 = vmul.f32 %v17910_v59, %v17951_v60  ;;  %v17953_v9 = vld [vmem:[#allocation30_spill] sm:$0xff] }
 0x417   :  { %17944 = vst [vmem:[#allocation154_spill] sm:$0xff] %v12846_v4  ;;  %v12866_v56 = vmul.f32 %v17910_v59, %v17953_v9  ;;  %v17955_v4 = vld [vmem:[#allocation34_spill] sm:$0xff]  ;;  %v1726_v9 = vmul.f32 %v17910_v59, %v12306_v8  ;;  %v1771_v8 = vmul.f32 %v17910_v59, %v12564_v27 }
 0x418   :  { %17946 = vst [vmem:[#allocation38_spill] sm:$0xff] %v12850_v18  ;;  %v12870_v32 = vmul.f32 %v17910_v59, %v17955_v4  ;;  %v17957_v6 = vld [vmem:[#allocation54_spill] sm:$0xff]  ;;  %v17958_v18 = vld [vmem:[#allocation55_spill] sm:$0xff]  ;;  %v1728_v4 = vmul.f32 %v17910_v59, %v12318_v53  ;;  %v1773_v53 = vmul.f32 %v17910_v59, %v12576_v45 }
 0x419   :  { %17948 = vst [vmem:[#allocation36_spill] sm:$0xff] %v12854_v38  ;;  %v1685_v38 = vmul.f32 %v17910_v59, %v12059_v11  ;;  %v1687_v60 = vmul.f32 %v17910_v59, %v17958_v18  ;;  %v1768_v11 = vmul.f32 %v17910_v59, %v12546_v57  ;;  %v1770_v18 = vmul.f32 %v17910_v59, %v12558_v58 }
 0x41a   :  { %17950 = vst [vmem:[#allocation39_spill] sm:$0xff] %v12858_v41  ;;  %v1686_v41 = vmul.f32 %v17910_v59, %v17957_v6  ;;  %v1769_v6 = vmul.f32 %v17910_v59, %v12552_v43 }
 0x41b   :  { %17952 = vst [vmem:[#allocation40_spill] sm:$0xff] %v12862_v7 }
 0x41c   :  { %17954 = vst [vmem:[#allocation41_spill] sm:$0xff] %v12866_v56  ;;  %v1727_v56 = vmul.f32 %v17910_v59, %v12312_v42  ;;  %v1772_v42 = vmul.f32 %v17910_v59, %v12570_v33 }
 0x41d   :  { %17956 = vst [vmem:[#allocation42_spill] sm:$0xff] %v12870_v32  ;;  %v17959_v32 = vld [vmem:[#allocation155_spill] sm:$0xff] }
 0x41e   :  { %v1815_v40 = vadd.f32 %v17959_v32, %v1642_v46  ;;  %v1816_v7 = vadd.f32 %v17959_v32, %v1643_v63  ;;  %v1817_v57 = vadd.f32 %v17959_v32, %v1644_v35  ;;  %v1818_v43 = vadd.f32 %v17959_v32, %v1645_v55 }
 0x41f   :  { %v1857_v28 = vadd.f32 %v17959_v32, %v1684_v37  ;;  %v1858_v58 = vadd.f32 %v17959_v32, %v1685_v38  ;;  %v1859_v27 = vadd.f32 %v17959_v32, %v1686_v41  ;;  %v1860_v36 = vadd.f32 %v17959_v32, %v1687_v60 }
 0x420   :  { %v1899_v33 = vadd.f32 %v17959_v32, %v1726_v9  ;;  %v1900_v45 = vadd.f32 %v17959_v32, %v1727_v56  ;;  %v1901_v46 = vadd.f32 %v17959_v32, %v1728_v4  ;;  %v1902_v63 = vadd.f32 %v17959_v32, %v1729_v19 }
 0x421   :  { %v1941_v35 = vadd.f32 %v17959_v32, %v1768_v11  ;;  %v1942_v55 = vadd.f32 %v17959_v32, %v1769_v6  ;;  %v1943_v37 = vadd.f32 %v17959_v32, %v1770_v18  ;;  %v1944_v38 = vadd.f32 %v17959_v32, %v1771_v8 }
 0x422   :  { %v1945_v41 = vadd.f32 %v17959_v32, %v1772_v42  ;;  %v1946_v60 = vadd.f32 %v17959_v32, %v1773_v53  ;;  %v1984_v50 = vmax.f32 %v1815_v40, 0.0  ;;  %v1985_v9 = vmax.f32 %v1816_v7, 0.0  ;;  %v17960_v40 = vld [vmem:[#allocation133_spill] sm:$0xff] }
 0x423   :  { %v1986_v24 = vmax.f32 %v1817_v57, 0.0  ;;  %v1987_v56 = vmax.f32 %v1818_v43, 0.0  ;;  %v2026_v5 = vmax.f32 %v1857_v28, 0.0  ;;  %v2027_v4 = vmax.f32 %v1858_v58, 0.0 }
 0x424   :  { %v2028_v3 = vmax.f32 %v1859_v27, 0.0  ;;  %v2029_v19 = vmax.f32 %v1860_v36, 0.0  ;;  %v2068_v44 = vmax.f32 %v1899_v33, 0.0  ;;  %v2069_v11 = vmax.f32 %v1900_v45, 0.0  ;;  %v17961_v27 = vld [vmem:[#allocation136_spill] sm:$0xff]  ;;  %v17962_v45 = vld [vmem:[#allocation146_spill] sm:$0xff] }
 0x425   :  { %v2070_v10 = vmax.f32 %v1901_v46, 0.0  ;;  %v2071_v6 = vmax.f32 %v1902_v63, 0.0  ;;  %v2110_v15 = vmax.f32 %v1941_v35, 0.0  ;;  %v2111_v18 = vmax.f32 %v1942_v55, 0.0  ;;  %v17965_v35 = vld [vmem:[#allocation149_spill] sm:$0xff] }
 0x426   :  { %v2112_v48 = vmax.f32 %v1943_v37, 0.0  ;;  %v2113_v8 = vmax.f32 %v1944_v38, 0.0  ;;  %v2114_v31 = vmax.f32 %v1945_v41, 0.0  ;;  %v2115_v42 = vmax.f32 %v1946_v60, 0.0 }
 0x427   :  { %v12918_v16 = vpack.c.bf16 %v1985_v9, %v1984_v50  ;;  %v12920_v32 = vpack.c.bf16 %v1987_v56, %v1986_v24  ;;  %v7533_v7 = vpack.c.bf16 %v2027_v4, %v2026_v5  ;;  %v7538_v53 = vpack.c.bf16 %v2029_v19, %v2028_v3 }
 0x428   :  { %v7638_v28 = vpack.c.bf16 %v2069_v11, %v2068_v44  ;;  %v12924_v36 = vmul.f32 %v17910_v59, %v17960_v40  ;;  %v7743_v57 = vpack.c.bf16 %v2111_v18, %v2110_v15  ;;  %v7748_v43 = vpack.c.bf16 %v2113_v8, %v2112_v48  ;;  %v17963_v44 = vld [vmem:[#allocation147_spill] sm:$0xff] }
 0x429   :  { %v7753_v58 = vpack.c.bf16 %v2115_v42, %v2114_v31  ;;  %v12928_v33 = vmul.f32 %v17910_v59, %v17961_v27  ;;  %v12932_v50 = vmul.f32 %v17910_v59, %v17962_v45  ;;  %8161 = vst [vmem:[#allocation2 + $0x18] sm:$0xff] %v12920_v32   ;;  %v7643_v5 = vpack.c.bf16 %v2071_v6, %v2070_v10  ;;  %v17964_v31 = vld [vmem:[#allocation148_spill] sm:$0xff] }
 0x42a   :  { %v7925_v3 = vunpack.c.l.bf16 %v7533_v7  ;;  %v12937_v24 = vmul.f32 %v17910_v59, %v17963_v44  ;;  %v7926_v46 = vunpack.c.h.bf16 %v7533_v7  ;;  %v7929_v15 = vunpack.c.l.bf16 %v7538_v53 }
 0x42b   :  { %v7930_v48 = vunpack.c.h.bf16 %v7538_v53  ;;  %v12941_v63 = vmul.f32 %v17910_v59, %v17964_v31  ;;  %v12945_v55 = vmul.f32 %v17910_v59, %v17965_v35  ;;  %v8005_v37 = vunpack.c.l.bf16 %v7638_v28  ;;  %8225 = vst [vmem:[#allocation2 + $0x218] sm:$0xff] %v7753_v58  }
 0x42c   :  { %v8085_v38 = vunpack.c.l.bf16 %v7743_v57  ;;  %v8086_v41 = vunpack.c.h.bf16 %v7743_v57  ;;  %v8089_v10 = vunpack.c.l.bf16 %v7748_v43  ;;  %v8090_v60 = vunpack.c.h.bf16 %v7748_v43 }
 0x42d   :  { %v8093_v9 = vunpack.c.l.bf16 %v7753_v58  ;;  %v12947_v56 = vrot.slane %v7925_v3, 2  ;;  %v2931_v4 = vrot.slane %v7926_v46, 2  ;;  %v2933_v19 = vrot.slane %v7929_v15, 2 }
 0x42e   :  { %v12949_v11 = vrot.slane %v7930_v48, 2  ;;  %v12951_v6 = vrot.slane %v8085_v38, 2  ;;  %v3145_v18 = vrot.slane %v8086_v41, 2  ;;  %v3147_v8 = vrot.slane %v8089_v10, 2 }
 0x42f   :  { %v8006_v42 = vunpack.c.h.bf16 %v7638_v28  ;;  %v8009_v59 = vunpack.c.l.bf16 %v7643_v5  ;;  %v3149_v7 = vrot.slane %v8090_v60, 2  ;;  %v12953_v53 = vrot.slane %v8093_v9, 2  ;;  %v17969_v9 = vld [vmem:[#allocation150_spill] sm:$0xff] }
 0x430   :  { %17966 = vst [vmem:[#allocation15_spill] sm:$0xff] %v12949_v11  ;;  %v8010_v40 = vunpack.c.h.bf16 %v7643_v5  ;;  %v2932_v57 = vsel %vm2921_vm3, %v12947_v56, %v2931_v4  ;;  %v2934_v43 = vsel %vm2921_vm3, %v2931_v4, %v2933_v19  ;;  %v3146_v27 = vsel %vm2921_vm3, %v12951_v6, %v3145_v18 }
 0x431   :  { %17967 = vst [vmem:[#allocation17_spill] sm:$0xff] %v12953_v53  ;;  %v2936_v45 = vsel %vm2921_vm3, %v2933_v19, %v12949_v11  ;;  %v3148_v3 = vsel %vm2921_vm3, %v3145_v18, %v3147_v8  ;;  %v3150_v28 = vsel %vm2921_vm3, %v3147_v8, %v3149_v7  ;;  %v3152_v44 = vsel %vm2921_vm3, %v3149_v7, %v12953_v53  ;;  %v17994_v11 = vld [vmem:[#allocation64_spill] sm:$0xff]  ;;  %v17996_v53 = vld [vmem:[#allocation65_spill] sm:$0xff] }
 0x432   :  { %v12966_v58 = vmax.f32 %v8005_v37, %v3146_v27  ;;  %v3269_v5 = vmax.f32 %v8006_v42, %v3148_v3  ;;  %v3270_v46 = vmax.f32 %v8009_v59, %v3150_v28  ;;  %v12968_v15 = vmax.f32 %v8010_v40, %v3152_v44  ;;  %v12978_v37 = vld [vmem:[%s16790_s3] ss:$0 sm:$0xff]  ;;  %v17971_v40 = vld [vmem:[#allocation152_spill] sm:$0xff]  ;;  %s9287_s3 = smov 8  }
 0x433   :  { %v7845_v48 = vunpack.c.l.bf16 %v12918_v16  ;;  %v7846_v31 = vunpack.c.h.bf16 %v12918_v16  ;;  %v7849_v35 = vunpack.c.l.bf16 %v12920_v32  ;;  %v12982_v4 = vmul.f32 %v12978_v37, %v17969_v9  ;;  %v17970_v32 = vld [vmem:[#allocation151_spill] sm:$0xff]  ;;  %v17973_v44 = vld [vmem:[#allocation44_spill] sm:$0xff] }
 0x434   :  { %17968 = vst [vmem:[#allocation19_spill] sm:$0xff] %v12968_v15  ;;  %v17081_v38 = vrot.slane %v12966_v58, 4  ;;  %v3360_v41 = vrot.slane %v3269_v5, 4  ;;  %v3362_v10 = vrot.slane %v3270_v46, 4  ;;  %v17080_v60 = vrot.slane %v12968_v15, 4  ;;  %v17972_v3 = vld [vmem:[#allocation43_spill] sm:$0xff] }
 0x435   :  { %v3054_v19 = vmax.f32 %v7845_v48, %v2932_v57  ;;  %v3055_v16 = vmax.f32 %v7846_v31, %v2934_v43  ;;  %v3056_v18 = vmax.f32 %v7849_v35, %v2936_v45  ;;  %v12986_v8 = vmul.f32 %v12978_v37, %v17970_v32  ;;  %v17974_v46 = vld [vmem:[#allocation45_spill] sm:$0xff]  ;;  %v17975_v31 = vld [vmem:[#allocation46_spill] sm:$0xff]  ;;  %v17977_v9 = vld [vmem:[#allocation48_spill] sm:$0xff] }
 0x436   :  { %v3361_v42 = vsel %vm3350_vm4, %v17081_v38, %v3360_v41  ;;  %v3363_v59 = vsel %vm3350_vm4, %v3360_v41, %v3362_v10  ;;  %v3365_v7 = vsel %vm3350_vm4, %v3362_v10, %v17080_v60  ;;  %v12997_v27 = vmul.f32 %v12978_v37, %v17971_v40  ;;  %v17976_v41 = vld [vmem:[#allocation47_spill] sm:$0xff]  ;;  %v17979_v32 = vld [vmem:[#allocation50_spill] sm:$0xff]  ;;  %v17981_v40 = vld [vmem:[#allocation52_spill] sm:$0xff] }
 0x437   :  { %v3483_v57 = vmax.f32 %v3054_v19, %v3361_v42  ;;  %v3484_v43 = vmax.f32 %v3055_v16, %v3363_v59  ;;  %v3485_v45 = vmax.f32 %v3056_v18, %v3365_v7  ;;  %v13001_v28 = vmul.f32 %v12978_v37, %v17972_v3  ;;  %v17978_v16 = vld [vmem:[#allocation49_spill] sm:$0xff]  ;;  %v17980_v59 = vld [vmem:[#allocation51_spill] sm:$0xff]  ;;  %v17987_v60 = vld [vmem:[#allocation60_spill] sm:$0xff] }
 0x438   :  { %v13005_v5 = vmul.f32 %v12978_v37, %v17973_v44  ;;  %v13009_v48 = vmul.f32 %v12978_v37, %v17974_v46  ;;  %v13013_v35 = vmul.f32 %v12978_v37, %v17975_v31  ;;  %v13017_v10 = vmul.f32 %v12978_v37, %v17976_v41  ;;  %v17982_v44 = vld [vmem:[#allocation53_spill] sm:$0xff]  ;;  %v17983_v31 = vld [vmem:[#allocation56_spill] sm:$0xff]  ;;  %v17990_v38 = vld [vmem:[#allocation62_spill] sm:$0xff] }
 0x439   :  { %v13021_v19 = vmul.f32 %v12978_v37, %v17977_v9  ;;  %v13025_v18 = vmul.f32 %v12978_v37, %v17978_v16  ;;  %v13029_v42 = vmul.f32 %v12978_v37, %v17979_v32  ;;  %3526 = vst [vmem:[#allocation3 + $0x20] sm:$0xff] %v3483_v57  ;;  %v13033_v7 = vmul.f32 %v12978_v37, %v17980_v59  ;;  %v17984_v9 = vld [vmem:[#allocation57_spill] sm:$0xff]  ;;  %v17985_v16 = vld [vmem:[#allocation58_spill] sm:$0xff]  ;;  %v17986_v59 = vld [vmem:[#allocation59_spill] sm:$0xff] }
 0x43a   :  { %v13037_v3 = vmul.f32 %v12978_v37, %v17981_v40  ;;  %v13041_v46 = vmul.f32 %v12978_v37, %v17982_v44  ;;  %v13045_v41 = vmul.f32 %v12978_v37, %v17983_v31  ;;  %3527 = vst [vmem:[#allocation3 + $0x28] sm:$0xff] %v3484_v43  ;;  %v13049_v57 = vmul.f32 %v12978_v37, %v17984_v9  ;;  %v17988_v31 = vld [vmem:[#allocation61_spill] sm:$0xff]  ;;  %v17992_v15 = vld [vmem:[#allocation63_spill] sm:$0xff] }
 0x43b   :  { %v13053_v32 = vmul.f32 %v12978_v37, %v17985_v16  ;;  %v13057_v40 = vmul.f32 %v12978_v37, %v17986_v59  ;;  %v13061_v44 = vmul.f32 %v12978_v37, %v17987_v60  ;;  %3528 = vst [vmem:[#allocation3 + $0x30] sm:$0xff] %v3485_v45  ;;  %v13065_v43 = vmul.f32 %v12978_v37, %v17988_v31  ;;  %v17998_v45 = vld [vmem:[#allocation66_spill] sm:$0xff] }
 0x43c   :  { %v13069_v9 = vmul.f32 %v12978_v37, %v17990_v38  ;;  %v13073_v16 = vmul.f32 %v12978_v37, %v17992_v15  ;;  %v13077_v59 = vmul.f32 %v12978_v37, %v17994_v11  ;;  %v13081_v60 = vmul.f32 %v12978_v37, %v17996_v53 }
 0x43d   :  { %17989 = vst [vmem:[#allocation21_spill] sm:$0xff] %v13065_v43  ;;  %v13085_v31 = vmul.f32 %v12978_v37, %v17998_v45  ;;  %v18000_v43 = vld [vmem:[#allocation67_spill] sm:$0xff] }
 0x43e   :  { %17991 = vst [vmem:[#allocation23_spill] sm:$0xff] %v13069_v9  ;;  %v13089_v38 = vmul.f32 %v12978_v37, %v18000_v43  ;;  %v18002_v9 = vld [vmem:[#allocation68_spill] sm:$0xff] }
 0x43f   :  { %17993 = vst [vmem:[#allocation25_spill] sm:$0xff] %v13073_v16  ;;  %v13093_v15 = vmul.f32 %v12978_v37, %v18002_v9  ;;  %v18004_v16 = vld [vmem:[#allocation69_spill] sm:$0xff] }
 0x440   :  { %17995 = vst [vmem:[#allocation27_spill] sm:$0xff] %v13077_v59  ;;  %v13097_v11 = vmul.f32 %v12978_v37, %v18004_v16  ;;  %v18006_v59 = vld [vmem:[#allocation70_spill] sm:$0xff] }
 0x441   :  { %17997 = vst [vmem:[#allocation31_spill] sm:$0xff] %v13081_v60  ;;  %v13101_v53 = vmul.f32 %v12978_v37, %v18006_v59  ;;  %v18008_v60 = vld [vmem:[#allocation71_spill] sm:$0xff] }
 0x442   :  { %17999 = vst [vmem:[#allocation113_spill] sm:$0xff] %v13085_v31  ;;  %v13105_v45 = vmul.f32 %v12978_v37, %v18008_v60  ;;  %v18010_v31 = vld [vmem:[#allocation72_spill] sm:$0xff] }
 0x443   :  { %18001 = vst [vmem:[#allocation114_spill] sm:$0xff] %v13089_v38  ;;  %v13109_v43 = vmul.f32 %v12978_v37, %v18010_v31  ;;  %v18012_v38 = vld [vmem:[#allocation73_spill] sm:$0xff] }
 0x444   :  { %18003 = vst [vmem:[#allocation132_spill] sm:$0xff] %v13093_v15  ;;  %v13113_v9 = vmul.f32 %v12978_v37, %v18012_v38  ;;  %v18014_v15 = vld [vmem:[#allocation74_spill] sm:$0xff] }
 0x445   :  { %18005 = vst [vmem:[#allocation16_spill] sm:$0xff] %v13097_v11  ;;  %v13117_v16 = vmul.f32 %v12978_v37, %v18014_v15  ;;  %v18016_v11 = vld [vmem:[#allocation75_spill] sm:$0xff] }
 0x446   :  { %18007 = vst [vmem:[#allocation18_spill] sm:$0xff] %v13101_v53  ;;  %v13121_v59 = vmul.f32 %v12978_v37, %v18016_v11  ;;  %v18018_v53 = vld [vmem:[#allocation76_spill] sm:$0xff] }
 0x447   :  { %18009 = vst [vmem:[#allocation22_spill] sm:$0xff] %v13105_v45  ;;  %v13125_v60 = vmul.f32 %v12978_v37, %v18018_v53  ;;  %v18020_v45 = vld [vmem:[#allocation77_spill] sm:$0xff] }
 0x448   :  { %18011 = vst [vmem:[#allocation24_spill] sm:$0xff] %v13109_v43  ;;  %v13129_v31 = vmul.f32 %v12978_v37, %v18020_v45  ;;  %v18022_v43 = vld [vmem:[#allocation78_spill] sm:$0xff] }
 0x449   :  { %18013 = vst [vmem:[#allocation26_spill] sm:$0xff] %v13113_v9  ;;  %v13133_v38 = vmul.f32 %v12978_v37, %v18022_v43  ;;  %v18024_v9 = vld [vmem:[#allocation79_spill] sm:$0xff] }
 0x44a   :  { %18015 = vst [vmem:[#allocation30_spill] sm:$0xff] %v13117_v16  ;;  %v13137_v15 = vmul.f32 %v12978_v37, %v18024_v9  ;;  %v18026_v16 = vld [vmem:[#allocation80_spill] sm:$0xff] }
 0x44b   :  { %18017 = vst [vmem:[#allocation34_spill] sm:$0xff] %v13121_v59  ;;  %v13141_v11 = vmul.f32 %v12978_v37, %v18026_v16  ;;  %v18027_v59 = vld [vmem:[#allocation81_spill] sm:$0xff]  ;;  %v13161_v16 = vmul.f32 %v12978_v37, %v12252_v51  ;;  %v13181_v51 = vmul.f32 %v12978_v37, %v12282_v29  ;;  %v13201_v29 = vmul.f32 %v12978_v37, %v12336_v49 }
 0x44c   :  { %18019 = vst [vmem:[#allocation54_spill] sm:$0xff] %v13125_v60  ;;  %v13145_v53 = vmul.f32 %v12978_v37, %v18027_v59  ;;  %v18028_v60 = vld [vmem:[#allocation82_spill] sm:$0xff]  ;;  %v13165_v59 = vmul.f32 %v12978_v37, %v12258_v13  ;;  %v18044_v49 = vld [vmem:[#allocation89_spill] sm:$0xff] }
 0x44d   :  { %18021 = vst [vmem:[#allocation55_spill] sm:$0xff] %v13129_v31  ;;  %v13149_v45 = vmul.f32 %v12978_v37, %v18028_v60  ;;  %v18029_v31 = vld [vmem:[#allocation83_spill] sm:$0xff]  ;;  %v13169_v60 = vmul.f32 %v12978_v37, %v12264_v12  ;;  %v18038_v12 = vld [vmem:[#allocation86_spill] sm:$0xff] }
 0x44e   :  { %18023 = vst [vmem:[#allocation155_spill] sm:$0xff] %v13133_v38  ;;  %v13153_v43 = vmul.f32 %v12978_v37, %v18029_v31  ;;  %v18031_v38 = vld [vmem:[#allocation84_spill] sm:$0xff]  ;;  %v13173_v31 = vmul.f32 %v12978_v37, %v12270_v47  ;;  %v18039_v47 = vld [vmem:[#allocation87_spill] sm:$0xff] }
 0x44f   :  { %18025 = vst [vmem:[#allocation133_spill] sm:$0xff] %v13137_v15  ;;  %v13157_v9 = vmul.f32 %v12978_v37, %v18031_v38  ;;  %v3612_v15 = vld [vmem:[#allocation3 + $0x21] sm:$0xff]  ;;  %v13177_v38 = vmul.f32 %v12978_v37, %v12276_v22 }
 0x450   :  { %18030 = vst [vmem:[#allocation136_spill] sm:$0xff] %v13153_v43  ;;  %v3613_v43 = vld [vmem:[#allocation3 + $0x29] sm:$0xff] }
 0x451   :  { %18032 = vst [vmem:[#allocation146_spill] sm:$0xff] %v13157_v9  ;;  %v18040_v9 = vld [vmem:[#allocation88_spill] sm:$0xff] }
 0x452   :  { %18033 = vst [vmem:[#allocation147_spill] sm:$0xff] %v13161_v16  ;;  %v18037_v16 = vld [vmem:[#allocation85_spill] sm:$0xff]  ;;  %v13197_v22 = vmul.f32 %v12978_v37, %v18040_v9  ;;  %v13217_v9 = vmul.f32 %v12978_v37, %v12360_v23  ;;  %v18052_v23 = vld [vmem:[#allocation94_spill] sm:$0xff] }
 0x453   :  { %18034 = vst [vmem:[#allocation148_spill] sm:$0xff] %v13165_v59  ;;  %v13185_v13 = vmul.f32 %v12978_v37, %v18037_v16  ;;  %v8403_v59 = vpack.i.bf16 %v3613_v43, %v3612_v15  ;;  %v13205_v16 = vmul.f32 %v12978_v37, %v12342_v54  ;;  %v13209_v15 = vmul.f32 %v12978_v37, %v12348_v20  ;;  %v18046_v54 = vld [vmem:[#allocation90_spill] sm:$0xff]  ;;  %v18048_v20 = vld [vmem:[#allocation91_spill] sm:$0xff] }
 0x454   :  { %18035 = vst [vmem:[#allocation149_spill] sm:$0xff] %v13169_v60  ;;  %v13189_v60 = vmul.f32 %v12978_v37, %v18038_v12  ;;  %v13213_v43 = vmul.f32 %v12978_v37, %v12354_v30  ;;  %v13222_v12 = vmul.f32 %v12978_v37, %v18044_v49  ;;  %v18050_v30 = vld [vmem:[#allocation92_spill] sm:$0xff] }
 0x455   :  { %18036 = vst [vmem:[#allocation150_spill] sm:$0xff] %v13173_v31  ;;  %v13193_v31 = vmul.f32 %v12978_v37, %v18039_v47  ;;  %8404 = vrot.lane.b32.xlu1 %v8403_v59, %s9287_s3  ;;  %v13226_v47 = vmul.f32 %v12978_v37, %v18046_v54  ;;  %v18054_v59 = vld [vmem:[#allocation93_spill] sm:$0xff] }
 0x456   :  { %18041 = vst [vmem:[#allocation151_spill] sm:$0xff] %v13209_v15  ;;  %v13230_v15 = vmul.f32 %v12978_v37, %v18048_v20  ;;  %v13242_v49 = vmul.f32 %v12978_v37, %v18054_v59 }
 0x457   :  { %18042 = vst [vmem:[#allocation152_spill] sm:$0xff] %v13213_v43  ;;  %v13234_v43 = vmul.f32 %v12978_v37, %v18050_v30 }
 0x458   :  { %18043 = vst [vmem:[#allocation43_spill] sm:$0xff] %v13217_v9  ;;  %v13238_v9 = vmul.f32 %v12978_v37, %v18052_v23 }
 0x459   :  { %18045 = vst [vmem:[#allocation44_spill] sm:$0xff] %v13222_v12  ;;  %v18056_v12 = vld [vmem:[#allocation95_spill] sm:$0xff] }
 0x45a   :  { %18047 = vst [vmem:[#allocation45_spill] sm:$0xff] %v13226_v47  ;;  %v13246_v54 = vmul.f32 %v12978_v37, %v18056_v12  ;;  %v18058_v47 = vld [vmem:[#allocation96_spill] sm:$0xff] }
 0x45b   :  { %18049 = vst [vmem:[#allocation46_spill] sm:$0xff] %v13230_v15  ;;  %v13250_v20 = vmul.f32 %v12978_v37, %v18058_v47  ;;  %v18060_v15 = vld [vmem:[#allocation97_spill] sm:$0xff] }
 0x45c   :  { %18051 = vst [vmem:[#allocation47_spill] sm:$0xff] %v13234_v43  ;;  %v13254_v30 = vmul.f32 %v12978_v37, %v18060_v15  ;;  %v18062_v43 = vld [vmem:[#allocation98_spill] sm:$0xff] }
 0x45d   :  { %18053 = vst [vmem:[#allocation48_spill] sm:$0xff] %v13238_v9  ;;  %v13258_v23 = vmul.f32 %v12978_v37, %v18062_v43  ;;  %v18064_v9 = vld [vmem:[#allocation99_spill] sm:$0xff] }
 0x45e   :  { %18055 = vst [vmem:[#allocation49_spill] sm:$0xff] %v13242_v49  ;;  %v13262_v59 = vmul.f32 %v12978_v37, %v18064_v9  ;;  %v18066_v49 = vld [vmem:[#allocation100_spill] sm:$0xff] }
 0x45f   :  { %18057 = vst [vmem:[#allocation50_spill] sm:$0xff] %v13246_v54  ;;  %v13266_v12 = vmul.f32 %v12978_v37, %v18066_v49  ;;  %v18068_v54 = vld [vmem:[#allocation101_spill] sm:$0xff] }
 0x460   :  { %18059 = vst [vmem:[#allocation51_spill] sm:$0xff] %v13250_v20  ;;  %v13270_v47 = vmul.f32 %v12978_v37, %v18068_v54  ;;  %v18070_v20 = vld [vmem:[#allocation102_spill] sm:$0xff]  ;;  %v13290_v54 = vmul.f32 %v12978_v37, %v12468_v2  ;;  %v13310_v2 = vmul.f32 %v12978_v37, %v12498_v62  ;;  %v13330_v62 = vmul.f32 %v12978_v37, %v12528_v39 }
 0x461   :  { %18061 = vst [vmem:[#allocation52_spill] sm:$0xff] %v13254_v30  ;;  %v13274_v15 = vmul.f32 %v12978_v37, %v18070_v20  ;;  %v18072_v30 = vld [vmem:[#allocation103_spill] sm:$0xff]  ;;  %v13294_v20 = vmul.f32 %v12978_v37, %v12474_v1  ;;  %v13314_v1 = vmul.f32 %v12978_v37, %v12504_v17  ;;  %v13350_v39 = vmul.f32 %v12978_v37, %v12600_v21 }
 0x462   :  { %18063 = vst [vmem:[#allocation53_spill] sm:$0xff] %v13258_v23  ;;  %v13278_v43 = vmul.f32 %v12978_v37, %v18072_v30  ;;  %v18074_v23 = vld [vmem:[#allocation104_spill] sm:$0xff]  ;;  %v13298_v30 = vmul.f32 %v12978_v37, %v12480_v25 }
 0x463   :  { %18065 = vst [vmem:[#allocation56_spill] sm:$0xff] %v13262_v59  ;;  %v13282_v9 = vmul.f32 %v12978_v37, %v18074_v23  ;;  %v18076_v59 = vld [vmem:[#allocation105_spill] sm:$0xff] }
 0x464   :  { %18067 = vst [vmem:[#allocation57_spill] sm:$0xff] %v13266_v12  ;;  %v13286_v49 = vmul.f32 %v12978_v37, %v18076_v59  ;;  %v13306_v59 = vmul.f32 %v12978_v37, %v12492_v34  ;;  %v13326_v34 = vmul.f32 %v12978_v37, %v12522_v26  ;;  %v13346_v26 = vmul.f32 %v12978_v37, %v12594_v14 }
 0x465   :  { %18069 = vst [vmem:[#allocation58_spill] sm:$0xff] %v13270_v47 }
 0x466   :  { %18071 = vst [vmem:[#allocation59_spill] sm:$0xff] %v13274_v15 }
 0x467   :  { %18073 = vst [vmem:[#allocation60_spill] sm:$0xff] %v13278_v43  ;;  %v18081_v43 = vld [vmem:[#allocation106_spill] sm:$0xff] }
 0x468   :  { %18075 = vst [vmem:[#allocation61_spill] sm:$0xff] %v13282_v9  ;;  %v13302_v23 = vmul.f32 %v12978_v37, %v18081_v43  ;;  %v13322_v43 = vmul.f32 %v12978_v37, %v12516_v0  ;;  %v13342_v0 = vmul.f32 %v12978_v37, %v12588_v52 }
 0x469   :  { %18077 = vst [vmem:[#allocation62_spill] sm:$0xff] %v13286_v49 }
 0x46a   :  { %18078 = vst [vmem:[#allocation63_spill] sm:$0xff] %v13290_v54 }
 0x46b   :  { %18079 = vst [vmem:[#allocation64_spill] sm:$0xff] %v13294_v20  ;;  %v18086_v20 = vld [vmem:[#allocation107_spill] sm:$0xff] }
 0x46c   :  { %18080 = vst [vmem:[#allocation65_spill] sm:$0xff] %v13298_v30  ;;  %v13318_v25 = vmul.f32 %v12978_v37, %v18086_v20  ;;  %v13338_v20 = vmul.f32 %v12978_v37, %v12582_v61 }
 0x46d   :  { %18082 = vst [vmem:[#allocation66_spill] sm:$0xff] %v13302_v23 }
 0x46e   :  { %18083 = vst [vmem:[#allocation67_spill] sm:$0xff] %v13306_v59 }
 0x46f   :  { %18084 = vst [vmem:[#allocation68_spill] sm:$0xff] %v13310_v2  ;;  %v18091_v2 = vld [vmem:[#allocation108_spill] sm:$0xff] }
 0x470   :  { %18085 = vst [vmem:[#allocation69_spill] sm:$0xff] %v13314_v1  ;;  %v1766_v17 = vmul.f32 %v12978_v37, %v18091_v2  ;;  %v18092_v1 = vld [vmem:[#allocation109_spill] sm:$0xff]  ;;  %v18097_v2 = vld [vmem:[#allocation110_spill] sm:$0xff] }
 0x471   :  { %18087 = vst [vmem:[#allocation70_spill] sm:$0xff] %v13318_v25  ;;  %v1767_v59 = vmul.f32 %v12978_v37, %v18092_v1  ;;  %v18099_v1 = vld [vmem:[#allocation111_spill] sm:$0xff] }
 0x472   :  { %18088 = vst [vmem:[#allocation71_spill] sm:$0xff] %v13322_v43  ;;  %v13358_v61 = vmul.f32 %v12978_v37, %v18099_v1  ;;  %v18164_v43 = vld [vmem:[#allocation138_spill] sm:$0xff]  ;;  %v18166_v25 = vld [vmem:[#allocation139_spill] sm:$0xff] }
 0x473   :  { %18089 = vst [vmem:[#allocation72_spill] sm:$0xff] %v13326_v34 }
 0x474   :  { %18090 = vst [vmem:[#allocation73_spill] sm:$0xff] %v13330_v62  ;;  %v13354_v62 = vmul.f32 %v12978_v37, %v18097_v2 }
 0x475   :  { %18093 = vst [vmem:[#allocation74_spill] sm:$0xff] %v13338_v20  ;;  %v18101_v20 = vld [vmem:[#allocation9_spill] sm:$0xff] }
 0x476   :  { %18094 = vst [vmem:[#allocation75_spill] sm:$0xff] %v13342_v0  ;;  %v13362_v52 = vmul.f32 %v12978_v37, %v18101_v20  ;;  %v18103_v0 = vld [vmem:[#allocation10_spill] sm:$0xff] }
 0x477   :  { %18095 = vst [vmem:[#allocation76_spill] sm:$0xff] %v13346_v26  ;;  %v13366_v14 = vmul.f32 %v12978_v37, %v18103_v0  ;;  %v18105_v26 = vld [vmem:[#allocation11_spill] sm:$0xff] }
 0x478   :  { %18096 = vst [vmem:[#allocation77_spill] sm:$0xff] %v13350_v39  ;;  %v13370_v21 = vmul.f32 %v12978_v37, %v18105_v26  ;;  %v18107_v39 = vld [vmem:[#allocation12_spill] sm:$0xff] }
 0x479   :  { %18098 = vst [vmem:[#allocation78_spill] sm:$0xff] %v13354_v62  ;;  %v13374_v2 = vmul.f32 %v12978_v37, %v18107_v39  ;;  %v18109_v62 = vld [vmem:[#allocation13_spill] sm:$0xff] }
 0x47a   :  { %18100 = vst [vmem:[#allocation79_spill] sm:$0xff] %v13358_v61  ;;  %v13378_v1 = vmul.f32 %v12978_v37, %v18109_v62  ;;  %v18111_v61 = vld [vmem:[#allocation14_spill] sm:$0xff] }
 0x47b   :  { %18102 = vst [vmem:[#allocation80_spill] sm:$0xff] %v13362_v52  ;;  %v13382_v20 = vmul.f32 %v12978_v37, %v18111_v61  ;;  %v18113_v52 = vld [vmem:[#allocation29_spill] sm:$0xff] }
 0x47c   :  { %18104 = vst [vmem:[#allocation81_spill] sm:$0xff] %v13366_v14  ;;  %v13386_v0 = vmul.f32 %v12978_v37, %v18113_v52  ;;  %v18115_v14 = vld [vmem:[#allocation33_spill] sm:$0xff] }
 0x47d   :  { %18106 = vst [vmem:[#allocation82_spill] sm:$0xff] %v13370_v21  ;;  %v13390_v26 = vmul.f32 %v12978_v37, %v18115_v14  ;;  %v18117_v21 = vld [vmem:[#allocation35_spill] sm:$0xff] }
 0x47e   :  { %18108 = vst [vmem:[#allocation83_spill] sm:$0xff] %v13374_v2  ;;  %v13394_v39 = vmul.f32 %v12978_v37, %v18117_v21  ;;  %v18119_v2 = vld [vmem:[#allocation112_spill] sm:$0xff] }
 0x47f   :  { %18110 = vst [vmem:[#allocation84_spill] sm:$0xff] %v13378_v1  ;;  %v13398_v62 = vmul.f32 %v12978_v37, %v18119_v2  ;;  %v18121_v1 = vld [vmem:[#allocation115_spill] sm:$0xff] }
 0x480   :  { %18112 = vst [vmem:[#allocation85_spill] sm:$0xff] %v13382_v20  ;;  %v13402_v61 = vmul.f32 %v12978_v37, %v18121_v1  ;;  %v18123_v20 = vld [vmem:[#allocation116_spill] sm:$0xff] }
 0x481   :  { %18114 = vst [vmem:[#allocation86_spill] sm:$0xff] %v13386_v0  ;;  %v13406_v52 = vmul.f32 %v12978_v37, %v18123_v20  ;;  %v18125_v0 = vld [vmem:[#allocation117_spill] sm:$0xff] }
 0x482   :  { %18116 = vst [vmem:[#allocation87_spill] sm:$0xff] %v13390_v26  ;;  %v13410_v14 = vmul.f32 %v12978_v37, %v18125_v0  ;;  %v18127_v26 = vld [vmem:[#allocation120_spill] sm:$0xff] }
 0x483   :  { %18118 = vst [vmem:[#allocation88_spill] sm:$0xff] %v13394_v39  ;;  %v13414_v21 = vmul.f32 %v12978_v37, %v18127_v26  ;;  %v18129_v39 = vld [vmem:[#allocation121_spill] sm:$0xff] }
 0x484   :  { %18120 = vst [vmem:[#allocation89_spill] sm:$0xff] %v13398_v62  ;;  %v13418_v2 = vmul.f32 %v12978_v37, %v18129_v39  ;;  %v18131_v62 = vld [vmem:[#allocation122_spill] sm:$0xff] }
 0x485   :  { %18122 = vst [vmem:[#allocation90_spill] sm:$0xff] %v13402_v61  ;;  %v13422_v1 = vmul.f32 %v12978_v37, %v18131_v62  ;;  %v18133_v61 = vld [vmem:[#allocation123_spill] sm:$0xff] }
 0x486   :  { %18124 = vst [vmem:[#allocation91_spill] sm:$0xff] %v13406_v52  ;;  %v13426_v20 = vmul.f32 %v12978_v37, %v18133_v61  ;;  %v18135_v52 = vld [vmem:[#allocation124_spill] sm:$0xff] }
 0x487   :  { %18126 = vst [vmem:[#allocation92_spill] sm:$0xff] %v13410_v14  ;;  %v13430_v0 = vmul.f32 %v12978_v37, %v18135_v52  ;;  %v18137_v14 = vld [vmem:[#allocation125_spill] sm:$0xff] }
 0x488   :  { %18128 = vst [vmem:[#allocation94_spill] sm:$0xff] %v13414_v21  ;;  %v13434_v26 = vmul.f32 %v12978_v37, %v18137_v14  ;;  %v18139_v21 = vld [vmem:[#allocation126_spill] sm:$0xff] }
 0x489   :  { %18130 = vst [vmem:[#allocation93_spill] sm:$0xff] %v13418_v2  ;;  %v13438_v39 = vmul.f32 %v12978_v37, %v18139_v21  ;;  %v18141_v2 = vld [vmem:[#allocation127_spill] sm:$0xff] }
 0x48a   :  { %18132 = vst [vmem:[#allocation95_spill] sm:$0xff] %v13422_v1  ;;  %v13442_v62 = vmul.f32 %v12978_v37, %v18141_v2  ;;  %v18143_v1 = vld [vmem:[#allocation128_spill] sm:$0xff] }
 0x48b   :  { %18134 = vst [vmem:[#allocation96_spill] sm:$0xff] %v13426_v20  ;;  %v13446_v61 = vmul.f32 %v12978_v37, %v18143_v1  ;;  %v18145_v20 = vld [vmem:[#allocation129_spill] sm:$0xff] }
 0x48c   :  { %18136 = vst [vmem:[#allocation97_spill] sm:$0xff] %v13430_v0  ;;  %v13450_v52 = vmul.f32 %v12978_v37, %v18145_v20  ;;  %v18147_v0 = vld [vmem:[#allocation130_spill] sm:$0xff]  ;;  %v13471_v20 = vld [vmem:[%s16791_s4] ss:$0 sm:$0xff]  ;;  %s9288_s4 = smov 24  }
 0x48d   :  { %18138 = vst [vmem:[#allocation98_spill] sm:$0xff] %v13434_v26  ;;  %v13454_v14 = vmul.f32 %v12978_v37, %v18147_v0  ;;  %v18149_v26 = vld [vmem:[#allocation131_spill] sm:$0xff] }
 0x48e   :  { %18140 = vst [vmem:[#allocation99_spill] sm:$0xff] %v13438_v39  ;;  %v13458_v21 = vmul.f32 %v12978_v37, %v18149_v26  ;;  %v18151_v39 = vld [vmem:[#allocation20_spill] sm:$0xff] }
 0x48f   :  { %18142 = vst [vmem:[#allocation100_spill] sm:$0xff] %v13442_v62  ;;  %v13462_v2 = vmul.f32 %v12978_v37, %v18151_v39  ;;  %v18153_v62 = vld [vmem:[#allocation118_spill] sm:$0xff] }
 0x490   :  { %18144 = vst [vmem:[#allocation101_spill] sm:$0xff] %v13446_v61  ;;  %v18154_v34 = vunpack.c.l.bf16 %v18153_v62  ;;  %v18159_v37 = vld [vmem:[#allocation134_spill] sm:$0xff]  ;;  %v18160_v62 = vld [vmem:[#allocation135_spill] sm:$0xff] }
 0x491   :  { %18146 = vst [vmem:[#allocation102_spill] sm:$0xff] %v13450_v52  ;;  %v18156_v52 = vld [vmem:[#allocation28_spill] sm:$0xff]  ;;  %v1814_v39 = vadd.f32 %v13471_v20, %v18159_v37  ;;  %v18170_v37 = vld [vmem:[#allocation141_spill] sm:$0xff] }
 0x492   :  { %18148 = vst [vmem:[#allocation103_spill] sm:$0xff] %v13454_v14  ;;  %v13466_v1 = vrot.slane %v18154_v34, 2  ;;  %v1811_v0 = vadd.f32 %v13471_v20, %v18156_v52  ;;  %v18157_v14 = vld [vmem:[#allocation32_spill] sm:$0xff]  ;;  %v13483_v34 = vadd.f32 %v13471_v20, %v18160_v62  ;;  %v13491_v52 = vadd.f32 %v13471_v20, %v18164_v43 }
 0x493   :  { %18150 = vst [vmem:[#allocation104_spill] sm:$0xff] %v13458_v21  ;;  %v1812_v26 = vadd.f32 %v13471_v20, %v18157_v14  ;;  %v18158_v21 = vld [vmem:[#allocation37_spill] sm:$0xff]  ;;  %v13495_v14 = vadd.f32 %v13471_v20, %v18166_v25  ;;  %v13503_v62 = vadd.f32 %v13471_v20, %v18170_v37  ;;  %v1855_v43 = vadd.f32 %v13471_v20, %v13037_v3 }
 0x494   :  { %18152 = vst [vmem:[#allocation105_spill] sm:$0xff] %v13462_v2  ;;  %v1813_v61 = vadd.f32 %v13471_v20, %v18158_v21  ;;  %v18162_v2 = vld [vmem:[#allocation137_spill] sm:$0xff]  ;;  %v18168_v21 = vld [vmem:[#allocation140_spill] sm:$0xff]  ;;  %v1856_v25 = vadd.f32 %v13471_v20, %v13041_v46  ;;  %v1897_v37 = vadd.f32 %v13471_v20, %v13189_v60  ;;  %v1939_v3 = vadd.f32 %v13471_v20, %v1766_v17 }
 0x495   :  { %18155 = vst [vmem:[#allocation106_spill] sm:$0xff] %v13466_v1  ;;  %v13487_v1 = vadd.f32 %v13471_v20, %v18162_v2  ;;  %v13499_v23 = vadd.f32 %v13471_v20, %v18168_v21  ;;  %v1853_v2 = vadd.f32 %v13471_v20, %v13029_v42  ;;  %v1895_v21 = vadd.f32 %v13471_v20, %v13181_v51 }
 0x496   :  { %18161 = vst [vmem:[#allocation107_spill] sm:$0xff] %v13483_v34  ;;  %v1940_v46 = vadd.f32 %v13471_v20, %v1767_v59  ;;  %v1982_v34 = vmax.f32 %v1813_v61, 0.0  ;;  %v1983_v30 = vmax.f32 %v1814_v39, 0.0  ;;  %v2024_v49 = vmax.f32 %v1855_v43, 0.0  ;;  %v18175_v59 = vld [vmem:[#allocation144_spill] sm:$0xff]  ;;  %v18176_v39 = vld [vmem:[#allocation145_spill] sm:$0xff] }
 0x497   :  { %18163 = vst [vmem:[#allocation108_spill] sm:$0xff] %v13487_v1  ;;  %v1854_v1 = vadd.f32 %v13471_v20, %v13033_v7  ;;  %v1898_v7 = vadd.f32 %v13471_v20, %v13193_v31  ;;  %v2022_v60 = vmax.f32 %v1853_v2, 0.0  ;;  %v2066_v15 = vmax.f32 %v1897_v37, 0.0  ;;  %v18177_v2 = vld [vmem:[#allocation153_spill] sm:$0xff] }
 0x498   :  { %18165 = vst [vmem:[#allocation109_spill] sm:$0xff] %v13491_v52  ;;  %v1980_v52 = vmax.f32 %v1811_v0, 0.0  ;;  %v2108_v47 = vmax.f32 %v1939_v3, 0.0  ;;  %v2109_v17 = vmax.f32 %v1940_v46, 0.0  ;;  %v7423_v0 = vpack.c.bf16 %v1983_v30, %v1982_v34  ;;  %v18179_v30 = vld [vmem:[#allocation38_spill] sm:$0xff] }
 0x499   :  { %18167 = vst [vmem:[#allocation110_spill] sm:$0xff] %v13495_v14  ;;  %v18174_v14 = vld [vmem:[#allocation143_spill] sm:$0xff]  ;;  %v2023_v54 = vmax.f32 %v1854_v1, 0.0  ;;  %v2067_v31 = vmax.f32 %v1898_v7, 0.0  ;;  %v13539_v1 = vadd.f32 %v13471_v20, %v18176_v39 }
 0x49a   :  { %18169 = vst [vmem:[#allocation111_spill] sm:$0xff] %v13499_v23  ;;  %v1896_v23 = vadd.f32 %v13471_v20, %v13185_v13  ;;  %v13529_v51 = vadd.f32 %v13471_v20, %v18174_v14  ;;  %v1981_v13 = vmax.f32 %v1812_v26, 0.0  ;;  %v13535_v14 = vadd.f32 %v13471_v20, %v18175_v59 }
 0x49b   :  { %18171 = vst [vmem:[#allocation9_spill] sm:$0xff] %v13503_v62  ;;  %v18172_v62 = vld [vmem:[#allocation142_spill] sm:$0xff]  ;;  %v7523_v26 = vpack.c.bf16 %v2023_v54, %v2022_v60  ;;  %v7633_v37 = vpack.c.bf16 %v2067_v31, %v2066_v15  ;;  %v18180_v54 = vld [vmem:[#allocation36_spill] sm:$0xff]  ;;  %v18183_v60 = vld [vmem:[#allocation41_spill] sm:$0xff] }
 0x49c   :  { %v13521_v42 = vadd.f32 %v13471_v20, %v18172_v62  ;;  %v2025_v62 = vmax.f32 %v1856_v25, 0.0  ;;  %v2065_v9 = vmax.f32 %v1896_v23, 0.0  ;;  %v13531_v12 = vpack.c.bf16 %v1981_v13, %v1980_v52  ;;  %v18184_v31 = vld [vmem:[#allocation42_spill] sm:$0xff] }
 0x49d   :  { %v13543_v23 = vadd.f32 %v13471_v20, %v18177_v2  ;;  %v7738_v25 = vpack.c.bf16 %v2109_v17, %v2108_v47  ;;  %v13555_v34 = vadd.f32 %v13471_v20, %v18180_v54  ;;  %8179 = vst [vmem:[#allocation2 + $0xa8] sm:$0xff] %v7523_v26   ;;  %v13571_v17 = vadd.f32 %v13471_v20, %v18184_v31  ;;  %v18185_v54 = vld [vmem:[#allocation119_spill] sm:$0xff] }
 0x49e   :  { %18173 = vst [vmem:[#allocation10_spill] sm:$0xff] %v13521_v42  ;;  %v2064_v42 = vmax.f32 %v1895_v21, 0.0  ;;  %v7528_v61 = vpack.c.bf16 %v2025_v62, %v2024_v49  ;;  %v18178_v21 = vld [vmem:[#allocation154_spill] sm:$0xff]  ;;  %v13551_v49 = vadd.f32 %v13471_v20, %v18179_v30  ;;  %v13567_v62 = vadd.f32 %v13471_v20, %v18183_v60 }
 0x49f   :  { %v13547_v52 = vadd.f32 %v13471_v20, %v18178_v21  ;;  %v8081_v46 = vunpack.c.l.bf16 %v7738_v25  ;;  %v8082_v13 = vunpack.c.h.bf16 %v7738_v25  ;;  %v13575_v2 = vadd.f32 %v13471_v20, %v12924_v36 }
 0x4a0   :  { %v7628_v43 = vpack.c.bf16 %v2065_v9, %v2064_v42  ;;  %v7921_v7 = vunpack.c.l.bf16 %v7528_v61  ;;  %v7922_v3 = vunpack.c.h.bf16 %v7528_v61  ;;  %v18181_v9 = vld [vmem:[#allocation39_spill] sm:$0xff]  ;;  %v18182_v42 = vld [vmem:[#allocation40_spill] sm:$0xff]  ;;  %v13579_v25 = vadd.f32 %v13471_v20, %v12928_v33 }
 0x4a1   :  { %v13559_v47 = vadd.f32 %v13471_v20, %v18181_v9  ;;  %v13563_v15 = vadd.f32 %v13471_v20, %v18182_v42  ;;  %v3139_v61 = vrot.slane %v8081_v46, 2  ;;  %v3141_v39 = vrot.slane %v8082_v13, 2 }
 0x4a2   :  { %8200 = vst [vmem:[#allocation2 + $0x150] sm:$0xff] %v7628_v43   ;;  %v2925_v59 = vrot.slane %v7921_v7, 2  ;;  %v2927_v26 = vrot.slane %v7922_v3, 2  ;;  %v13583_v21 = vadd.f32 %v13471_v20, %v12932_v50  ;;  %v8001_v30 = vunpack.c.l.bf16 %v7633_v37 }
 0x4a3   :  { %v13587_v43 = vadd.f32 %v13471_v20, %v12937_v24  ;;  %v13591_v7 = vadd.f32 %v13471_v20, %v12941_v63  ;;  %v8002_v3 = vunpack.c.h.bf16 %v7633_v37  ;;  %v3142_v36 = vsel %vm2921_vm3, %v3139_v61, %v3141_v39 }
 0x4a4   :  { %v13596_v33 = vadd.f32 %v13471_v20, %v12945_v55  ;;  %v18186_v46 = vunpack.c.l.bf16 %v18185_v54  ;;  %v3144_v13 = vsel %vm2921_vm3, %v3141_v39, %v12951_v6  ;;  %v3266_v24 = vmax.f32 %v8001_v30, %v3142_v36  ;;  %v2621_v54 = vld [vmem:[#allocation2 + $0xac] sm:$0xf] }
 0x4a5   :  { %v13606_v9 = vadd.f32 %v13471_v20, %v12982_v4  ;;  %v2928_v63 = vsel %vm2921_vm3, %v2925_v59, %v2927_v26  ;;  %v2930_v37 = vsel %vm2921_vm3, %v2927_v26, %v12947_v56  ;;  %v3267_v42 = vmax.f32 %v8002_v3, %v3144_v13 }
 0x4a6   :  { %v13600_v50 = vrot.slane %v18186_v46, 2  ;;  %v13613_v55 = vadd.f32 %v13471_v20, %v12986_v8  ;;  %v7841_v60 = vunpack.c.l.bf16 %v7423_v0  ;;  %v7842_v31 = vunpack.c.h.bf16 %v7423_v0 }
 0x4a7   :  { %v3354_v46 = vrot.slane %v3266_v24, 4  ;;  %v13617_v6 = vadd.f32 %v13471_v20, %v12997_v27  ;;  %v13621_v4 = vadd.f32 %v13471_v20, %v13001_v28  ;;  %v2664_v39 = vunpack.c.l.bf16 %v2621_v54 }
 0x4a8   :  { %v3356_v30 = vrot.slane %v3267_v42, 4  ;;  %v13625_v56 = vadd.f32 %v13471_v20, %v13005_v5  ;;  %v3052_v26 = vmax.f32 %v7841_v60, %v2928_v63  ;;  %v3053_v3 = vmax.f32 %v7842_v31, %v2930_v37 }
 0x4a9   :  { %v2707_v8 = vld [vmem:[#allocation2 + $0x154] sm:$0xf]  ;;  %v3140_v0 = vsel %vm2921_vm3, %v13600_v50, %v3139_v61  ;;  %v13629_v13 = vrot.slane %v2664_v39, 2  ;;  %v18187_v28 = vrot.slane %v12966_v58, 4  ;;  %v13637_v42 = vadd.f32 %v13471_v20, %v13009_v48 }
 0x4aa   :  { %v2750_v36 = vunpack.c.l.bf16 %v2707_v8  ;;  %v3357_v27 = vsel %vm3350_vm4, %v3354_v46, %v3356_v30  ;;  %v13641_v5 = vadd.f32 %v13471_v20, %v13013_v35  ;;  %v13645_v61 = vadd.f32 %v13471_v20, %v13017_v10 }
 0x4ab   :  { %v3359_v24 = vsel %vm3350_vm4, %v3356_v30, %v18187_v28  ;;  %v3481_v63 = vmax.f32 %v3052_v26, %v3357_v27  ;;  %v13649_v60 = vadd.f32 %v13471_v20, %v13021_v19  ;;  %v2926_v58 = vsel %vm2921_vm3, %v13629_v13, %v2925_v59  ;;  %v18189_v30 = vld [vmem:[#allocation23_spill] sm:$0xff]  ;;  %v18193_v27 = vld [vmem:[#allocation113_spill] sm:$0xff] }
 0x4ac   :  { %v3482_v37 = vmax.f32 %v3053_v3, %v3359_v24  ;;  %v13653_v31 = vmax.f32 %v2750_v36, %v3140_v0  ;;  %v13657_v48 = vadd.f32 %v13471_v20, %v13025_v18  ;;  %v13661_v35 = vadd.f32 %v13471_v20, %v13045_v41  ;;  %v18191_v3 = vld [vmem:[#allocation27_spill] sm:$0xff] }
 0x4ad   :  { %v13665_v10 = vadd.f32 %v13471_v20, %v13049_v57  ;;  %v7838_v19 = vunpack.c.h.bf16 %v13531_v12  ;;  %3524 = vst [vmem:[#allocation3 + $0x10] sm:$0xff] %v3481_v63  ;;  %v13670_v59 = vadd.f32 %v13471_v20, %v13053_v32  ;;  %v13674_v54 = vadd.f32 %v13471_v20, %v13057_v40  ;;  %v18188_v57 = vld [vmem:[#allocation21_spill] sm:$0xff]  ;;  %v18192_v0 = vld [vmem:[#allocation31_spill] sm:$0xff]  ;;  %v18195_v63 = vld [vmem:[#allocation114_spill] sm:$0xff] }
 0x4ae   :  { %v13678_v18 = vadd.f32 %v13471_v20, %v13061_v44  ;;  %v17085_v41 = vrot.slane %v13653_v31, 4  ;;  %3525 = vst [vmem:[#allocation3 + $0x18] sm:$0xff] %v3482_v37  ;;  %v13683_v39 = vadd.f32 %v13471_v20, %v18188_v57  ;;  %v13687_v8 = vadd.f32 %v13471_v20, %v18189_v30  ;;  %v18190_v32 = vld [vmem:[#allocation25_spill] sm:$0xff]  ;;  %v18199_v57 = vld [vmem:[#allocation16_spill] sm:$0xff] }
 0x4af   :  { %v13691_v26 = vadd.f32 %v13471_v20, %v18190_v32  ;;  %v3051_v40 = vmax.f32 %v7838_v19, %v2926_v58  ;;  %v13695_v44 = vadd.f32 %v13471_v20, %v18191_v3  ;;  %v13699_v36 = vadd.f32 %v13471_v20, %v18192_v0  ;;  %v18197_v58 = vld [vmem:[#allocation132_spill] sm:$0xff]  ;;  %v18201_v3 = vld [vmem:[#allocation18_spill] sm:$0xff] }
 0x4b0   :  { %v13703_v28 = vadd.f32 %v13471_v20, %v18193_v27  ;;  %v3355_v24 = vsel %vm3350_vm4, %v17085_v41, %v3354_v46  ;;  %v13710_v37 = vadd.f32 %v13471_v20, %v18195_v63  ;;  %v13714_v19 = vadd.f32 %v13471_v20, %v18197_v58  ;;  %v18203_v27 = vld [vmem:[#allocation22_spill] sm:$0xff]  ;;  %v18205_v41 = vld [vmem:[#allocation24_spill] sm:$0xff] }
 0x4b1   :  { %v13718_v30 = vadd.f32 %v13471_v20, %v18199_v57  ;;  %v3480_v32 = vmax.f32 %v3051_v40, %v3355_v24  ;;  %v13722_v0 = vadd.f32 %v13471_v20, %v18201_v3  ;;  %v13726_v46 = vadd.f32 %v13471_v20, %v18203_v27  ;;  %v18211_v40 = vld [vmem:[#allocation34_spill] sm:$0xff] }
 0x4b2   :  { %18194 = vst [vmem:[#allocation11_spill] sm:$0xff] %v13703_v28  ;;  %v13730_v63 = vadd.f32 %v13471_v20, %v18205_v41  ;;  %v13742_v24 = vadd.f32 %v13471_v20, %v18211_v40  ;;  %v18213_v3 = vld [vmem:[#allocation54_spill] sm:$0xff]  ;;  %v13762_v40 = vadd.f32 %v13471_v20, %v13141_v11 }
 0x4b3   :  { %18196 = vst [vmem:[#allocation12_spill] sm:$0xff] %v13710_v37  ;;  %v18207_v37 = vld [vmem:[#allocation26_spill] sm:$0xff]  ;;  %v13746_v27 = vadd.f32 %v13471_v20, %v18213_v3  ;;  %v13766_v3 = vadd.f32 %v13471_v20, %v13145_v53 }
 0x4b4   :  { %18198 = vst [vmem:[#allocation13_spill] sm:$0xff] %v13714_v19  ;;  %v13734_v58 = vadd.f32 %v13471_v20, %v18207_v37  ;;  %v18209_v19 = vld [vmem:[#allocation30_spill] sm:$0xff] }
 0x4b5   :  { %18200 = vst [vmem:[#allocation14_spill] sm:$0xff] %v13718_v30  ;;  %v13738_v57 = vadd.f32 %v13471_v20, %v18209_v19  ;;  %v18367_v30 = vld [vmem:[#allocation106_spill] sm:$0xff] }
 0x4b6   :  { %18202 = vst [vmem:[#allocation29_spill] sm:$0xff] %v13722_v0  ;;  %v1999_v0 = vmax.f32 %v13547_v52, 0.0  ;;  %v2002_v52 = vmax.f32 %v13559_v47, 0.0  ;;  %v2007_v47 = vmax.f32 %v13579_v25, 0.0 }
 0x4b7   :  { %18204 = vst [vmem:[#allocation33_spill] sm:$0xff] %v13726_v46  ;;  %v18215_v46 = vld [vmem:[#allocation55_spill] sm:$0xff] }
 0x4b8   :  { %18206 = vst [vmem:[#allocation35_spill] sm:$0xff] %v13730_v63  ;;  %v13750_v41 = vadd.f32 %v13471_v20, %v18215_v46  ;;  %v18217_v63 = vld [vmem:[#allocation155_spill] sm:$0xff]  ;;  %v13770_v46 = vadd.f32 %v13471_v20, %v13149_v45 }
 0x4b9   :  { %18208 = vst [vmem:[#allocation112_spill] sm:$0xff] %v13734_v58  ;;  %v13754_v37 = vadd.f32 %v13471_v20, %v18217_v63  ;;  %v18219_v58 = vld [vmem:[#allocation133_spill] sm:$0xff] }
 0x4ba   :  { %18210 = vst [vmem:[#allocation115_spill] sm:$0xff] %v13738_v57  ;;  %v13758_v19 = vadd.f32 %v13471_v20, %v18219_v58  ;;  %v1995_v57 = vmax.f32 %v13529_v51, 0.0 }
 0x4bb   :  { %18212 = vst [vmem:[#allocation116_spill] sm:$0xff] %v13742_v24  ;;  %v18362_v24 = vld [vmem:[#allocation101_spill] sm:$0xff] }
 0x4bc   :  { %18214 = vst [vmem:[#allocation117_spill] sm:$0xff] %v13746_v27  ;;  %v2620_v27 = vld [vmem:[#allocation2 + $0xa8] sm:$0xe] }
 0x4bd   :  { %18216 = vst [vmem:[#allocation120_spill] sm:$0xff] %v13750_v41 }
 0x4be   :  { %3523 = vst [vmem:[#allocation3 + $0x8] sm:$0xff] %v3480_v32  ;;  %v18224_v32 = vld [vmem:[#allocation136_spill] sm:$0xff] }
 0x4bf   :  { %18218 = vst [vmem:[#allocation121_spill] sm:$0xff] %v13754_v37  ;;  %v13774_v63 = vadd.f32 %v13471_v20, %v18224_v32  ;;  %v18226_v37 = vld [vmem:[#allocation146_spill] sm:$0xff] }
 0x4c0   :  { %18220 = vst [vmem:[#allocation122_spill] sm:$0xff] %v13758_v19  ;;  %v13778_v58 = vadd.f32 %v13471_v20, %v18226_v37  ;;  %v18228_v19 = vld [vmem:[#allocation147_spill] sm:$0xff]  ;;  %v13798_v37 = vadd.f32 %v13471_v20, %v13177_v38 }
 0x4c1   :  { %18221 = vst [vmem:[#allocation123_spill] sm:$0xff] %v13762_v40  ;;  %v13782_v11 = vadd.f32 %v13471_v20, %v18228_v19  ;;  %v18230_v40 = vld [vmem:[#allocation148_spill] sm:$0xff]  ;;  %v13802_v19 = vadd.f32 %v13471_v20, %v13197_v22 }
 0x4c2   :  { %18222 = vst [vmem:[#allocation124_spill] sm:$0xff] %v13766_v3  ;;  %v13786_v53 = vadd.f32 %v13471_v20, %v18230_v40  ;;  %v18232_v3 = vld [vmem:[#allocation149_spill] sm:$0xff]  ;;  %v13806_v40 = vadd.f32 %v13471_v20, %v13201_v29 }
 0x4c3   :  { %18223 = vst [vmem:[#allocation125_spill] sm:$0xff] %v13770_v46  ;;  %v13790_v45 = vadd.f32 %v13471_v20, %v18232_v3  ;;  %v18234_v46 = vld [vmem:[#allocation150_spill] sm:$0xff]  ;;  %v13810_v3 = vadd.f32 %v13471_v20, %v13205_v16 }
 0x4c4   :  { %18225 = vst [vmem:[#allocation126_spill] sm:$0xff] %v13774_v63  ;;  %v13794_v32 = vadd.f32 %v13471_v20, %v18234_v46  ;;  %v18356_v63 = vld [vmem:[#allocation99_spill] sm:$0xff] }
 0x4c5   :  { %18227 = vst [vmem:[#allocation127_spill] sm:$0xff] %v13778_v58  ;;  %v18276_v58 = vld [vmem:[#allocation61_spill] sm:$0xff] }
 0x4c6   :  { %18229 = vst [vmem:[#allocation128_spill] sm:$0xff] %v13782_v11 }
 0x4c7   :  { %18231 = vst [vmem:[#allocation129_spill] sm:$0xff] %v13786_v53  ;;  %v3953_v53 = vld [vmem:[#allocation3 + $0x15] sm:$0xff] }
 0x4c8   :  { %18233 = vst [vmem:[#allocation130_spill] sm:$0xff] %v13790_v45  ;;  %v18240_v45 = vld [vmem:[#allocation151_spill] sm:$0xff] }
 0x4c9   :  { %18235 = vst [vmem:[#allocation131_spill] sm:$0xff] %v13794_v32  ;;  %v13814_v46 = vadd.f32 %v13471_v20, %v18240_v45  ;;  %v18242_v32 = vld [vmem:[#allocation152_spill] sm:$0xff] }
 0x4ca   :  { %18236 = vst [vmem:[#allocation20_spill] sm:$0xff] %v13798_v37  ;;  %v13818_v38 = vadd.f32 %v13471_v20, %v18242_v32  ;;  %v18244_v37 = vld [vmem:[#allocation43_spill] sm:$0xff] }
 0x4cb   :  { %18237 = vst [vmem:[#allocation118_spill] sm:$0xff] %v13802_v19  ;;  %v13822_v22 = vadd.f32 %v13471_v20, %v18244_v37  ;;  %v18246_v19 = vld [vmem:[#allocation44_spill] sm:$0xff] }
 0x4cc   :  { %18238 = vst [vmem:[#allocation28_spill] sm:$0xff] %v13806_v40  ;;  %v13826_v29 = vadd.f32 %v13471_v20, %v18246_v19  ;;  %v18248_v40 = vld [vmem:[#allocation45_spill] sm:$0xff] }
 0x4cd   :  { %18239 = vst [vmem:[#allocation32_spill] sm:$0xff] %v13810_v3  ;;  %v13830_v16 = vadd.f32 %v13471_v20, %v18248_v40  ;;  %v18250_v3 = vld [vmem:[#allocation46_spill] sm:$0xff] }
 0x4ce   :  { %18241 = vst [vmem:[#allocation37_spill] sm:$0xff] %v13814_v46  ;;  %v13834_v45 = vadd.f32 %v13471_v20, %v18250_v3  ;;  %v18252_v46 = vld [vmem:[#allocation47_spill] sm:$0xff] }
 0x4cf   :  { %18243 = vst [vmem:[#allocation134_spill] sm:$0xff] %v13818_v38  ;;  %v13838_v32 = vadd.f32 %v13471_v20, %v18252_v46  ;;  %v18254_v38 = vld [vmem:[#allocation48_spill] sm:$0xff] }
 0x4d0   :  { %18245 = vst [vmem:[#allocation135_spill] sm:$0xff] %v13822_v22  ;;  %v13842_v37 = vadd.f32 %v13471_v20, %v18254_v38  ;;  %v18256_v22 = vld [vmem:[#allocation49_spill] sm:$0xff] }
 0x4d1   :  { %18247 = vst [vmem:[#allocation137_spill] sm:$0xff] %v13826_v29  ;;  %v13846_v19 = vadd.f32 %v13471_v20, %v18256_v22  ;;  %v18258_v29 = vld [vmem:[#allocation50_spill] sm:$0xff]  ;;  %v18266_v22 = vld [vmem:[#allocation56_spill] sm:$0xff] }
 0x4d2   :  { %18249 = vst [vmem:[#allocation138_spill] sm:$0xff] %v13830_v16  ;;  %v13850_v40 = vadd.f32 %v13471_v20, %v18258_v29  ;;  %v18260_v16 = vld [vmem:[#allocation51_spill] sm:$0xff]  ;;  %v18268_v29 = vld [vmem:[#allocation57_spill] sm:$0xff] }
 0x4d3   :  { %18251 = vst [vmem:[#allocation139_spill] sm:$0xff] %v13834_v45  ;;  %v13854_v3 = vadd.f32 %v13471_v20, %v18260_v16  ;;  %v18262_v45 = vld [vmem:[#allocation52_spill] sm:$0xff]  ;;  %v18270_v16 = vld [vmem:[#allocation58_spill] sm:$0xff] }
 0x4d4   :  { %18253 = vst [vmem:[#allocation140_spill] sm:$0xff] %v13838_v32  ;;  %v13858_v46 = vadd.f32 %v13471_v20, %v18262_v45  ;;  %v18264_v32 = vld [vmem:[#allocation53_spill] sm:$0xff] }
 0x4d5   :  { %18255 = vst [vmem:[#allocation141_spill] sm:$0xff] %v13842_v37  ;;  %v13862_v38 = vadd.f32 %v13471_v20, %v18264_v32  ;;  %v3952_v37 = vld [vmem:[#allocation3 + $0xd] sm:$0xff]  ;;  %v18274_v32 = vld [vmem:[#allocation60_spill] sm:$0xff] }
 0x4d6   :  { %18257 = vst [vmem:[#allocation142_spill] sm:$0xff] %v13846_v19  ;;  %v13866_v19 = vadd.f32 %v13471_v20, %v18266_v22  ;;  %v8413_v45 = vpack.i.bf16 %v3953_v53, %v3952_v37  ;;  %v13886_v22 = vadd.f32 %v13471_v20, %v18276_v58  ;;  %v18282_v53 = vld [vmem:[#allocation64_spill] sm:$0xff] }
 0x4d7   :  { %18259 = vst [vmem:[#allocation143_spill] sm:$0xff] %v13850_v40  ;;  %v13870_v40 = vadd.f32 %v13471_v20, %v18268_v29  ;;  %v13898_v37 = vadd.f32 %v13471_v20, %v18282_v53  ;;  %v18292_v53 = vld [vmem:[#allocation69_spill] sm:$0xff] }
 0x4d8   :  { %18261 = vst [vmem:[#allocation144_spill] sm:$0xff] %v13854_v3  ;;  %v13874_v3 = vadd.f32 %v13471_v20, %v18270_v16  ;;  %8414 = vrot.lane.b32.xlu2 %v8413_v45, %s9288_s4  ;;  %v18298_v45 = vld [vmem:[#allocation72_spill] sm:$0xff] }
 0x4d9   :  { %18263 = vst [vmem:[#allocation145_spill] sm:$0xff] %v13858_v46  ;;  %v18272_v46 = vld [vmem:[#allocation59_spill] sm:$0xff] }
 0x4da   :  { %18265 = vst [vmem:[#allocation153_spill] sm:$0xff] %v13862_v38  ;;  %v13878_v11 = vadd.f32 %v13471_v20, %v18272_v46  ;;  %v13882_v38 = vadd.f32 %v13471_v20, %v18274_v32  ;;  %v18284_v46 = vld [vmem:[#allocation65_spill] sm:$0xff] }
 0x4db   :  { %18267 = vst [vmem:[#allocation154_spill] sm:$0xff] %v13866_v19  ;;  %v18278_v19 = vld [vmem:[#allocation62_spill] sm:$0xff]  ;;  %v13902_v32 = vadd.f32 %v13471_v20, %v18284_v46 }
 0x4dc   :  { %18269 = vst [vmem:[#allocation38_spill] sm:$0xff] %v13870_v40  ;;  %v13890_v29 = vadd.f32 %v13471_v20, %v18278_v19  ;;  %v18280_v40 = vld [vmem:[#allocation63_spill] sm:$0xff]  ;;  %v18294_v46 = vld [vmem:[#allocation70_spill] sm:$0xff] }
 0x4dd   :  { %18271 = vst [vmem:[#allocation36_spill] sm:$0xff] %v13874_v3  ;;  %v13894_v16 = vadd.f32 %v13471_v20, %v18280_v40  ;;  %v18288_v19 = vld [vmem:[#allocation67_spill] sm:$0xff]  ;;  %v18290_v40 = vld [vmem:[#allocation68_spill] sm:$0xff] }
 0x4de   :  { %18273 = vst [vmem:[#allocation39_spill] sm:$0xff] %v13878_v11  ;;  %v18354_v11 = vld [vmem:[#allocation109_spill] sm:$0xff] }
 0x4df   :  { %18275 = vst [vmem:[#allocation40_spill] sm:$0xff] %v13882_v38  ;;  %v18286_v38 = vld [vmem:[#allocation66_spill] sm:$0xff]  ;;  %v1990_v3 = vmax.f32 %v18354_v11, 0.0 }
 0x4e0   :  { %18277 = vst [vmem:[#allocation41_spill] sm:$0xff] %v13886_v22  ;;  %v13906_v58 = vadd.f32 %v13471_v20, %v18286_v38  ;;  %v18296_v38 = vld [vmem:[#allocation71_spill] sm:$0xff]  ;;  %v18364_v11 = vld [vmem:[#allocation102_spill] sm:$0xff] }
 0x4e1   :  { %18279 = vst [vmem:[#allocation42_spill] sm:$0xff] %v13890_v29  ;;  %v13911_v29 = vadd.f32 %v13471_v20, %v18288_v19  ;;  %v13931_v19 = vadd.f32 %v13471_v20, %v18298_v45 }
 0x4e2   :  { %18281 = vst [vmem:[#allocation119_spill] sm:$0xff] %v13894_v16  ;;  %v13915_v16 = vadd.f32 %v13471_v20, %v18290_v40 }
 0x4e3   :  { %18283 = vst [vmem:[#allocation21_spill] sm:$0xff] %v13898_v37  ;;  %v13919_v37 = vadd.f32 %v13471_v20, %v18292_v53 }
 0x4e4   :  { %18285 = vst [vmem:[#allocation23_spill] sm:$0xff] %v13902_v32  ;;  %v13923_v32 = vadd.f32 %v13471_v20, %v18294_v46 }
 0x4e5   :  { %18287 = vst [vmem:[#allocation25_spill] sm:$0xff] %v13906_v58  ;;  %v13927_v58 = vadd.f32 %v13471_v20, %v18296_v38 }
 0x4e6   :  { %18289 = vst [vmem:[#allocation27_spill] sm:$0xff] %v13911_v29  ;;  %v18300_v29 = vld [vmem:[#allocation73_spill] sm:$0xff] }
 0x4e7   :  { %18291 = vst [vmem:[#allocation31_spill] sm:$0xff] %v13915_v16  ;;  %v13935_v40 = vadd.f32 %v13471_v20, %v18300_v29  ;;  %v18302_v16 = vld [vmem:[#allocation74_spill] sm:$0xff] }
 0x4e8   :  { %18293 = vst [vmem:[#allocation113_spill] sm:$0xff] %v13919_v37  ;;  %v13939_v53 = vadd.f32 %v13471_v20, %v18302_v16  ;;  %v18304_v37 = vld [vmem:[#allocation75_spill] sm:$0xff] }
 0x4e9   :  { %18295 = vst [vmem:[#allocation114_spill] sm:$0xff] %v13923_v32  ;;  %v13943_v46 = vadd.f32 %v13471_v20, %v18304_v37  ;;  %v18306_v32 = vld [vmem:[#allocation76_spill] sm:$0xff] }
 0x4ea   :  { %18297 = vst [vmem:[#allocation132_spill] sm:$0xff] %v13927_v58  ;;  %v13947_v38 = vadd.f32 %v13471_v20, %v18306_v32  ;;  %v18308_v58 = vld [vmem:[#allocation77_spill] sm:$0xff] }
 0x4eb   :  { %18299 = vst [vmem:[#allocation16_spill] sm:$0xff] %v13931_v19  ;;  %v13951_v45 = vadd.f32 %v13471_v20, %v18308_v58  ;;  %v18310_v19 = vld [vmem:[#allocation78_spill] sm:$0xff] }
 0x4ec   :  { %18301 = vst [vmem:[#allocation18_spill] sm:$0xff] %v13935_v40  ;;  %v13955_v29 = vadd.f32 %v13471_v20, %v18310_v19  ;;  %v18312_v40 = vld [vmem:[#allocation79_spill] sm:$0xff] }
 0x4ed   :  { %18303 = vst [vmem:[#allocation22_spill] sm:$0xff] %v13939_v53  ;;  %v13959_v16 = vadd.f32 %v13471_v20, %v18312_v40  ;;  %v18314_v53 = vld [vmem:[#allocation80_spill] sm:$0xff] }
 0x4ee   :  { %18305 = vst [vmem:[#allocation24_spill] sm:$0xff] %v13943_v46  ;;  %v13963_v37 = vadd.f32 %v13471_v20, %v18314_v53  ;;  %v18316_v46 = vld [vmem:[#allocation81_spill] sm:$0xff] }
 0x4ef   :  { %18307 = vst [vmem:[#allocation26_spill] sm:$0xff] %v13947_v38  ;;  %v13967_v32 = vadd.f32 %v13471_v20, %v18316_v46  ;;  %v18318_v38 = vld [vmem:[#allocation82_spill] sm:$0xff] }
 0x4f0   :  { %18309 = vst [vmem:[#allocation30_spill] sm:$0xff] %v13951_v45  ;;  %v13971_v58 = vadd.f32 %v13471_v20, %v18318_v38  ;;  %v18320_v45 = vld [vmem:[#allocation83_spill] sm:$0xff] }
 0x4f1   :  { %18311 = vst [vmem:[#allocation34_spill] sm:$0xff] %v13955_v29  ;;  %v13975_v19 = vadd.f32 %v13471_v20, %v18320_v45  ;;  %v18322_v29 = vld [vmem:[#allocation84_spill] sm:$0xff] }
 0x4f2   :  { %18313 = vst [vmem:[#allocation54_spill] sm:$0xff] %v13959_v16  ;;  %v13979_v40 = vadd.f32 %v13471_v20, %v18322_v29  ;;  %v18324_v16 = vld [vmem:[#allocation85_spill] sm:$0xff] }
 0x4f3   :  { %18315 = vst [vmem:[#allocation55_spill] sm:$0xff] %v13963_v37  ;;  %v13983_v53 = vadd.f32 %v13471_v20, %v18324_v16  ;;  %v18326_v37 = vld [vmem:[#allocation86_spill] sm:$0xff] }
 0x4f4   :  { %18317 = vst [vmem:[#allocation155_spill] sm:$0xff] %v13967_v32  ;;  %v13987_v46 = vadd.f32 %v13471_v20, %v18326_v37  ;;  %v18328_v32 = vld [vmem:[#allocation87_spill] sm:$0xff] }
 0x4f5   :  { %18319 = vst [vmem:[#allocation133_spill] sm:$0xff] %v13971_v58  ;;  %v13991_v38 = vadd.f32 %v13471_v20, %v18328_v32  ;;  %v18330_v58 = vld [vmem:[#allocation88_spill] sm:$0xff] }
 0x4f6   :  { %18321 = vst [vmem:[#allocation136_spill] sm:$0xff] %v13975_v19  ;;  %v13995_v45 = vadd.f32 %v13471_v20, %v18330_v58  ;;  %v18332_v19 = vld [vmem:[#allocation89_spill] sm:$0xff] }
 0x4f7   :  { %18323 = vst [vmem:[#allocation146_spill] sm:$0xff] %v13979_v40  ;;  %v13999_v29 = vadd.f32 %v13471_v20, %v18332_v19  ;;  %v18334_v40 = vld [vmem:[#allocation90_spill] sm:$0xff] }
 0x4f8   :  { %18325 = vst [vmem:[#allocation147_spill] sm:$0xff] %v13983_v53  ;;  %v14003_v16 = vadd.f32 %v13471_v20, %v18334_v40  ;;  %v18336_v53 = vld [vmem:[#allocation91_spill] sm:$0xff] }
 0x4f9   :  { %18327 = vst [vmem:[#allocation148_spill] sm:$0xff] %v13987_v46  ;;  %v14007_v37 = vadd.f32 %v13471_v20, %v18336_v53  ;;  %v18338_v46 = vld [vmem:[#allocation92_spill] sm:$0xff] }
 0x4fa   :  { %18329 = vst [vmem:[#allocation149_spill] sm:$0xff] %v13991_v38  ;;  %v14011_v32 = vadd.f32 %v13471_v20, %v18338_v46  ;;  %v18340_v38 = vld [vmem:[#allocation94_spill] sm:$0xff] }
 0x4fb   :  { %18331 = vst [vmem:[#allocation150_spill] sm:$0xff] %v13995_v45  ;;  %v14015_v58 = vadd.f32 %v13471_v20, %v18340_v38  ;;  %v18342_v45 = vld [vmem:[#allocation93_spill] sm:$0xff] }
 0x4fc   :  { %18333 = vst [vmem:[#allocation151_spill] sm:$0xff] %v13999_v29  ;;  %v14019_v19 = vadd.f32 %v13471_v20, %v18342_v45  ;;  %v18344_v29 = vld [vmem:[#allocation95_spill] sm:$0xff]  ;;  %v18353_v45 = vld [vmem:[#allocation108_spill] sm:$0xff] }
 0x4fd   :  { %18335 = vst [vmem:[#allocation152_spill] sm:$0xff] %v14003_v16  ;;  %v14023_v40 = vadd.f32 %v13471_v20, %v18344_v29  ;;  %v18346_v16 = vld [vmem:[#allocation96_spill] sm:$0xff]  ;;  %v18355_v29 = vld [vmem:[#allocation110_spill] sm:$0xff] }
 0x4fe   :  { %18337 = vst [vmem:[#allocation43_spill] sm:$0xff] %v14007_v37  ;;  %v14027_v53 = vadd.f32 %v13471_v20, %v18346_v16  ;;  %v18348_v37 = vld [vmem:[#allocation97_spill] sm:$0xff]  ;;  %v14043_v16 = vadd.f32 %v13471_v20, %v18356_v63  ;;  %v18366_v63 = vld [vmem:[#allocation10_spill] sm:$0xff] }
 0x4ff   :  { %18339 = vst [vmem:[#allocation44_spill] sm:$0xff] %v14011_v32  ;;  %v14031_v46 = vadd.f32 %v13471_v20, %v18348_v37  ;;  %v18350_v32 = vld [vmem:[#allocation98_spill] sm:$0xff] }
 0x500   :  { %18341 = vst [vmem:[#allocation45_spill] sm:$0xff] %v14015_v58  ;;  %v14035_v38 = vadd.f32 %v13471_v20, %v18350_v32  ;;  %v18352_v58 = vld [vmem:[#allocation107_spill] sm:$0xff]  ;;  %v18361_v32 = vld [vmem:[#allocation9_spill] sm:$0xff] }
 0x501   :  { %18343 = vst [vmem:[#allocation46_spill] sm:$0xff] %v14019_v19  ;;  %v1988_v22 = vmax.f32 %v18352_v58, 0.0  ;;  %v1989_v19 = vmax.f32 %v18353_v45, 0.0  ;;  %v2706_v58 = vld [vmem:[#allocation2 + $0x150] sm:$0xc]  ;;  %v14053_v45 = vadd.f32 %v13471_v20, %v18362_v24  ;;  %v2663_v24 = vunpack.c.l.bf16 %v2620_v27 }
 0x502   :  { %18345 = vst [vmem:[#allocation47_spill] sm:$0xff] %v14023_v40  ;;  %v1991_v40 = vmax.f32 %v18355_v29, 0.0  ;;  %v14057_v29 = vadd.f32 %v13471_v20, %v18364_v11  ;;  %v3138_v11 = vsel %vm2921_vm3, %v18367_v30, %v13600_v50  ;;  %v2003_v27 = vmax.f32 %v13563_v15, 0.0 }
 0x503   :  { %18347 = vst [vmem:[#allocation48_spill] sm:$0xff] %v14027_v53  ;;  %v18358_v53 = vld [vmem:[#allocation100_spill] sm:$0xff]  ;;  %v2004_v50 = vmax.f32 %v13567_v62, 0.0  ;;  %v2008_v15 = vmax.f32 %v13583_v21, 0.0  ;;  %v2009_v62 = vmax.f32 %v13587_v43, 0.0  ;;  %v2012_v21 = vmax.f32 %v13606_v9, 0.0 }
 0x504   :  { %18349 = vst [vmem:[#allocation49_spill] sm:$0xff] %v14031_v46  ;;  %v14047_v37 = vadd.f32 %v13471_v20, %v18358_v53  ;;  %v18360_v46 = vld [vmem:[#allocation111_spill] sm:$0xff]  ;;  %v7837_v53 = vunpack.c.l.bf16 %v13531_v12  ;;  %v14072_v51 = vpack.c.bf16 %v1991_v40, %v1990_v3  ;;  %v2013_v43 = vmax.f32 %v13613_v55, 0.0 }
 0x505   :  { %18351 = vst [vmem:[#allocation50_spill] sm:$0xff] %v14035_v38  ;;  %v1992_v41 = vmax.f32 %v18360_v46, 0.0  ;;  %v1993_v38 = vmax.f32 %v18361_v32, 0.0  ;;  %v1996_v46 = vmax.f32 %v13535_v14, 0.0  ;;  %v1997_v32 = vmax.f32 %v13539_v1, 0.0 }
 0x506   :  { %18357 = vst [vmem:[#allocation51_spill] sm:$0xff] %v14043_v16  ;;  %v1994_v16 = vmax.f32 %v18366_v63, 0.0  ;;  %v2000_v63 = vmax.f32 %v13551_v49, 0.0  ;;  %v2001_v14 = vmax.f32 %v13555_v34, 0.0  ;;  %v2922_v1 = vrot.slane %v2663_v24, 2 }
 0x507   :  { %18359 = vst [vmem:[#allocation52_spill] sm:$0xff] %v14047_v37  ;;  %v1998_v37 = vmax.f32 %v13543_v23, 0.0  ;;  %v14074_v12 = vpack.c.bf16 %v1993_v38, %v1992_v41  ;;  %v7458_v30 = vpack.c.bf16 %v1997_v32, %v1996_v46  ;;  %v2005_v49 = vmax.f32 %v13571_v17, 0.0 }
 0x508   :  { %18363 = vst [vmem:[#allocation53_spill] sm:$0xff] %v14053_v45  ;;  %v2749_v45 = vunpack.c.l.bf16 %v2706_v58  ;;  %v14077_v28 = vpack.c.bf16 %v1995_v57, %v1994_v16  ;;  %v2924_v3 = vsel %vm2921_vm3, %v2922_v1, %v13629_v13  ;;  %v2006_v57 = vmax.f32 %v13575_v2, 0.0  ;;  %v18373_v2 = vld [vmem:[#allocation104_spill] sm:$0xff] }
 0x509   :  { %18365 = vst [vmem:[#allocation56_spill] sm:$0xff] %v14057_v29  ;;  %v14070_v29 = vpack.c.bf16 %v1989_v19, %v1988_v22  ;;  %v7463_v22 = vpack.c.bf16 %v1999_v0, %v1998_v37  ;;  %v18371_v19 = vld [vmem:[#allocation103_spill] sm:$0xff]  ;;  %v3050_v40 = vmax.f32 %v7837_v53, %v2924_v3  ;;  %v18372_v17 = vrot.slane %v13653_v31, 4  ;;  %v18374_v31 = vld [vmem:[#allocation105_spill] sm:$0xff]  ;;  %v18378_v3 = vld [vmem:[#allocation14_spill] sm:$0xff] }
 0x50a   :  { %18368 = vst [vmem:[#allocation57_spill] sm:$0xff] %v14072_v51  ;;  %v3264_v23 = vmax.f32 %v2749_v45, %v3138_v11  ;;  %v14087_v34 = vadd.f32 %v13471_v20, %v18371_v19  ;;  %v7468_v13 = vpack.c.bf16 %v2001_v14, %v2000_v63  ;;  %v2010_v0 = vmax.f32 %v13591_v7, 0.0  ;;  %v18463_v51 = vld [vmem:[#allocation152_spill] sm:$0xff] }
 0x50b   :  { %18369 = vst [vmem:[#allocation58_spill] sm:$0xff] %v14074_v12  ;;  %v2011_v16 = vmax.f32 %v13596_v33, 0.0  ;;  %v7473_v58 = vpack.c.bf16 %v2003_v27, %v2002_v52  ;;  %v14100_v25 = vadd.f32 %v13471_v20, %v18373_v2  ;;  %v7478_v45 = vpack.c.bf16 %v2005_v49, %v2004_v50  ;;  %v3609_v52 = vld [vmem:[#allocation3 + $0x9] sm:$0xff]  ;;  %v18375_v27 = vld [vmem:[#allocation11_spill] sm:$0xff] }
 0x50c   :  { %18370 = vst [vmem:[#allocation59_spill] sm:$0xff] %v14077_v28  ;;  %v3351_v41 = vrot.slane %v3264_v23, 4  ;;  %v14106_v53 = vadd.f32 %v13471_v20, %v18374_v31  ;;  %v2014_v7 = vmax.f32 %v13617_v6, 0.0  ;;  %v2015_v33 = vmax.f32 %v13621_v4, 0.0  ;;  %v18385_v2 = vld [vmem:[#allocation117_spill] sm:$0xff]  ;;  %v18457_v12 = vld [vmem:[#allocation147_spill] sm:$0xff] }
 0x50d   :  { %8166 = vst [vmem:[#allocation2 + $0x40] sm:$0xff] %v7458_v30   ;;  %v7483_v46 = vpack.c.bf16 %v2007_v47, %v2006_v57  ;;  %v2016_v32 = vmax.f32 %v13625_v56, 0.0  ;;  %v2017_v24 = vmax.f32 %v13637_v42, 0.0  ;;  %v2018_v9 = vmax.f32 %v13641_v5, 0.0  ;;  %v18381_v47 = vld [vmem:[#allocation35_spill] sm:$0xff]  ;;  %v18387_v31 = vld [vmem:[#allocation121_spill] sm:$0xff] }
 0x50e   :  { %v3353_v38 = vsel %vm3350_vm4, %v3351_v41, %v18372_v17  ;;  %8167 = vst [vmem:[#allocation2 + $0x48] sm:$0xff] %v7463_v22   ;;  %v7488_v11 = vpack.c.bf16 %v2009_v62, %v2008_v15  ;;  %v2019_v55 = vmax.f32 %v13645_v61, 0.0  ;;  %v2020_v63 = vmax.f32 %v13649_v60, 0.0  ;;  %v4124_v62 = vld [vmem:[#allocation3 + $0xe] sm:$0xff]  ;;  %v18382_v17 = vld [vmem:[#allocation112_spill] sm:$0xff] }
 0x50f   :  { %v3479_v37 = vmax.f32 %v3050_v40, %v3353_v38  ;;  %8168 = vst [vmem:[#allocation2 + $0x50] sm:$0xff] %v7468_v13   ;;  %v2021_v20 = vmax.f32 %v13657_v48, 0.0  ;;  %v7493_v14 = vpack.c.bf16 %v2011_v16, %v2010_v0  ;;  %v2030_v6 = vmax.f32 %v13661_v35, 0.0  ;;  %v18383_v13 = vld [vmem:[#allocation115_spill] sm:$0xff]  ;;  %v18384_v16 = vld [vmem:[#allocation116_spill] sm:$0xff] }
 0x510   :  { %8169 = vst [vmem:[#allocation2 + $0x58] sm:$0xff] %v7473_v58   ;;  %v2031_v4 = vmax.f32 %v13665_v10, 0.0  ;;  %v2032_v56 = vmax.f32 %v13670_v59, 0.0  ;;  %v7498_v1 = vpack.c.bf16 %v2013_v43, %v2012_v21  ;;  %v2033_v42 = vmax.f32 %v13674_v54, 0.0  ;;  %v18376_v54 = vld [vmem:[#allocation12_spill] sm:$0xff] }
 0x511   :  { %3522 = vst [vmem:[#allocation3] sm:$0xff] %v3479_v37  ;;  %v2034_v5 = vmax.f32 %v13678_v18, 0.0  ;;  %v2035_v61 = vmax.f32 %v13683_v39, 0.0  ;;  %v7503_v23 = vpack.c.bf16 %v2015_v33, %v2014_v7  ;;  %v2036_v60 = vmax.f32 %v13687_v8, 0.0  ;;  %v18377_v39 = vld [vmem:[#allocation13_spill] sm:$0xff]  ;;  %v18386_v43 = vld [vmem:[#allocation120_spill] sm:$0xff] }
 0x512   :  { %8170 = vst [vmem:[#allocation2 + $0x60] sm:$0xff] %v7478_v45   ;;  %v2037_v48 = vmax.f32 %v13691_v26, 0.0  ;;  %v2038_v35 = vmax.f32 %v13695_v44, 0.0  ;;  %v7508_v10 = vpack.c.bf16 %v2017_v24, %v2016_v32  ;;  %v2039_v59 = vmax.f32 %v13699_v36, 0.0  ;;  %v18379_v8 = vld [vmem:[#allocation29_spill] sm:$0xff]  ;;  %v18389_v32 = vld [vmem:[#allocation122_spill] sm:$0xff] }
 0x513   :  { %8171 = vst [vmem:[#allocation2 + $0x68] sm:$0xff] %v7483_v46   ;;  %v2040_v50 = vmax.f32 %v18375_v27, 0.0  ;;  %v2041_v30 = vmax.f32 %v18376_v54, 0.0  ;;  %v7513_v18 = vpack.c.bf16 %v2019_v55, %v2018_v9  ;;  %v2042_v49 = vmax.f32 %v18377_v39, 0.0  ;;  %v18380_v44 = vld [vmem:[#allocation33_spill] sm:$0xff]  ;;  %v4125_v46 = vld [vmem:[#allocation3 + $0x16] sm:$0xff] }
 0x514   :  { %8172 = vst [vmem:[#allocation2 + $0x70] sm:$0xff] %v7488_v11   ;;  %v2043_v41 = vmax.f32 %v18378_v3, 0.0  ;;  %v2044_v22 = vmax.f32 %v18379_v8, 0.0  ;;  %v7518_v19 = vpack.c.bf16 %v2021_v20, %v2020_v63  ;;  %v2045_v57 = vmax.f32 %v18380_v44, 0.0  ;;  %v18390_v9 = vld [vmem:[#allocation123_spill] sm:$0xff]  ;;  %v18392_v20 = vld [vmem:[#allocation124_spill] sm:$0xff] }
 0x515   :  { %8173 = vst [vmem:[#allocation2 + $0x78] sm:$0xff] %v7493_v14   ;;  %v2046_v40 = vmax.f32 %v18381_v47, 0.0  ;;  %v14133_v15 = vpack.c.bf16 %v2031_v4, %v2030_v6  ;;  %v2047_v38 = vmax.f32 %v18382_v17, 0.0  ;;  %v2048_v0 = vmax.f32 %v18383_v13, 0.0  ;;  %v18393_v6 = vld [vmem:[#allocation125_spill] sm:$0xff]  ;;  %v18402_v3 = vld [vmem:[#allocation20_spill] sm:$0xff] }
 0x516   :  { %8174 = vst [vmem:[#allocation2 + $0x80] sm:$0xff] %v7498_v1   ;;  %v2049_v37 = vmax.f32 %v18384_v16, 0.0  ;;  %v14138_v58 = vpack.c.bf16 %v2033_v42, %v2032_v56  ;;  %v2050_v21 = vmax.f32 %v18385_v2, 0.0  ;;  %v2051_v45 = vmax.f32 %v18386_v43, 0.0  ;;  %v18394_v56 = vld [vmem:[#allocation126_spill] sm:$0xff]  ;;  %v18406_v47 = vld [vmem:[#allocation32_spill] sm:$0xff] }
 0x517   :  { %8175 = vst [vmem:[#allocation2 + $0x88] sm:$0xff] %v7503_v23   ;;  %v2052_v7 = vmax.f32 %v18387_v31, 0.0  ;;  %v14144_v33 = vpack.c.bf16 %v2035_v61, %v2034_v5  ;;  %v2053_v24 = vmax.f32 %v18389_v32, 0.0  ;;  %v2054_v11 = vmax.f32 %v18390_v9, 0.0  ;;  %v18396_v5 = vld [vmem:[#allocation127_spill] sm:$0xff]  ;;  %v18397_v23 = vld [vmem:[#allocation128_spill] sm:$0xff] }
 0x518   :  { %v3608_v26 = vld [vmem:[#allocation3 + $0x1] sm:$0xff]  ;;  %8176 = vst [vmem:[#allocation2 + $0x90] sm:$0xff] %v7508_v10   ;;  %v14148_v55 = vpack.c.bf16 %v2037_v48, %v2036_v60  ;;  %v8418_v63 = vpack.i.bf16 %v4125_v46, %v4124_v62  ;;  %v2055_v14 = vmax.f32 %v18392_v20, 0.0  ;;  %v2056_v4 = vmax.f32 %v18393_v6, 0.0  ;;  %v18398_v10 = vld [vmem:[#allocation129_spill] sm:$0xff]  ;;  %v18400_v60 = vld [vmem:[#allocation130_spill] sm:$0xff] }
 0x519   :  { %v8393_v36 = vpack.i.bf16 %v3609_v52, %v3608_v26  ;;  %18388 = vst [vmem:[#allocation60_spill] sm:$0xff] %v14144_v33  ;;  %v2057_v1 = vmax.f32 %v18394_v56, 0.0  ;;  %v14153_v42 = vpack.c.bf16 %v2039_v59, %v2038_v35  ;;  %v2058_v61 = vmax.f32 %v18396_v5, 0.0  ;;  %v18404_v35 = vld [vmem:[#allocation118_spill] sm:$0xff]  ;;  %v18410_v16 = vld [vmem:[#allocation135_spill] sm:$0xff]  ;;  %v18412_v31 = vld [vmem:[#allocation137_spill] sm:$0xff] }
 0x51a   :  { %8177 = vst [vmem:[#allocation2 + $0x98] sm:$0xff] %v7513_v18   ;;  %v2059_v52 = vmax.f32 %v18397_v23, 0.0  ;;  %v2060_v27 = vmax.f32 %v18398_v10, 0.0  ;;  %v14158_v54 = vpack.c.bf16 %v2041_v30, %v2040_v50  ;;  %8419 = vrot.lane.b32.xlu2 %v8418_v63, %s9289_s18  ;;  %v2061_v48 = vmax.f32 %v18400_v60, 0.0  ;;  %v18401_v18 = vld [vmem:[#allocation131_spill] sm:$0xff]  ;;  %v18408_v50 = vld [vmem:[#allocation37_spill] sm:$0xff] }
 0x51b   :  { %8394 = vrot.lane.b32.xlu0 %v8393_v36, %s9287_s3  ;;  %18391 = vst [vmem:[#allocation61_spill] sm:$0xff] %v14148_v55  ;;  %v2062_v39 = vmax.f32 %v18401_v18, 0.0  ;;  %v2063_v8 = vmax.f32 %v18402_v3, 0.0  ;;  %v14164_v26 = vpack.c.bf16 %v2043_v41, %v2042_v49  ;;  %v2072_v59 = vmax.f32 %v18404_v35, 0.0  ;;  %v18409_v17 = vld [vmem:[#allocation134_spill] sm:$0xff]  ;;  %v18414_v32 = vld [vmem:[#allocation139_spill] sm:$0xff] }
 0x51c   :  { %8178 = vst [vmem:[#allocation2 + $0xa0] sm:$0xff] %v7518_v19   ;;  %v18405_v19 = vld [vmem:[#allocation28_spill] sm:$0xff]  ;;  %v2074_v36 = vmax.f32 %v18406_v47, 0.0  ;;  %v14169_v62 = vpack.c.bf16 %v2045_v57, %v2044_v22  ;;  %v2075_v30 = vmax.f32 %v18408_v50, 0.0  ;;  %v2076_v13 = vmax.f32 %v18409_v17, 0.0  ;;  %v18413_v49 = vld [vmem:[#allocation138_spill] sm:$0xff] }
 0x51d   :  { %18395 = vst [vmem:[#allocation62_spill] sm:$0xff] %v14153_v42  ;;  %v2073_v44 = vmax.f32 %v18405_v19, 0.0  ;;  %v2077_v2 = vmax.f32 %v18410_v16, 0.0  ;;  %v14174_v43 = vpack.c.bf16 %v2047_v38, %v2046_v40  ;;  %v2078_v46 = vmax.f32 %v18412_v31, 0.0  ;;  %v18416_v20 = vld [vmem:[#allocation140_spill] sm:$0xff]  ;;  %v18417_v22 = vld [vmem:[#allocation141_spill] sm:$0xff] }
 0x51e   :  { %18399 = vst [vmem:[#allocation63_spill] sm:$0xff] %v14158_v54  ;;  %v2079_v41 = vmax.f32 %v18413_v49, 0.0  ;;  %v2080_v9 = vmax.f32 %v18414_v32, 0.0  ;;  %v14179_v63 = vpack.c.bf16 %v2049_v37, %v2048_v0  ;;  %v2081_v6 = vmax.f32 %v18416_v20, 0.0  ;;  %v18418_v56 = vld [vmem:[#allocation142_spill] sm:$0xff]  ;;  %v18420_v10 = vld [vmem:[#allocation143_spill] sm:$0xff] }
 0x51f   :  { %18403 = vst [vmem:[#allocation64_spill] sm:$0xff] %v14164_v26  ;;  %v2082_v57 = vmax.f32 %v18417_v22, 0.0  ;;  %v2083_v5 = vmax.f32 %v18418_v56, 0.0  ;;  %v14184_v23 = vpack.c.bf16 %v2051_v45, %v2050_v21  ;;  %v2084_v60 = vmax.f32 %v18420_v10, 0.0  ;;  %v18421_v40 = vld [vmem:[#allocation144_spill] sm:$0xff]  ;;  %v18422_v18 = vld [vmem:[#allocation145_spill] sm:$0xff] }
 0x520   :  { %18407 = vst [vmem:[#allocation65_spill] sm:$0xff] %v14169_v62  ;;  %v2085_v38 = vmax.f32 %v18421_v40, 0.0  ;;  %v7598_v35 = vpack.c.bf16 %v2053_v24, %v2052_v7  ;;  %v18423_v19 = vld [vmem:[#allocation153_spill] sm:$0xff]  ;;  %v18424_v50 = vld [vmem:[#allocation154_spill] sm:$0xff]  ;;  %v7603_v16 = vpack.c.bf16 %v2055_v14, %v2054_v11  ;;  %v18426_v31 = vld [vmem:[#allocation36_spill] sm:$0xff]  ;;  %v7608_v22 = vpack.c.bf16 %v2057_v1, %v2056_v4 }
 0x521   :  { %18411 = vst [vmem:[#allocation66_spill] sm:$0xff] %v14174_v43  ;;  %v18425_v37 = vld [vmem:[#allocation38_spill] sm:$0xff]  ;;  %v18427_v32 = vld [vmem:[#allocation39_spill] sm:$0xff]  ;;  %v18428_v21 = vld [vmem:[#allocation40_spill] sm:$0xff]  ;;  %v7613_v24 = vpack.c.bf16 %v2059_v52, %v2058_v61  ;;  %v7618_v43 = vpack.c.bf16 %v2061_v48, %v2060_v27  ;;  %v14208_v54 = vpack.c.bf16 %v2073_v44, %v2072_v59  ;;  %v14213_v1 = vpack.c.bf16 %v2075_v30, %v2074_v36 }
 0x522   :  { %18415 = vst [vmem:[#allocation67_spill] sm:$0xff] %v14179_v63  ;;  %v18429_v56 = vld [vmem:[#allocation41_spill] sm:$0xff]  ;;  %v18430_v40 = vld [vmem:[#allocation42_spill] sm:$0xff]  ;;  %v18431_v3 = vld [vmem:[#allocation119_spill] sm:$0xff]  ;;  %v7623_v63 = vpack.c.bf16 %v2063_v8, %v2062_v39  ;;  %v14218_v28 = vpack.c.bf16 %v2077_v2, %v2076_v13  ;;  %v14223_v42 = vpack.c.bf16 %v2079_v41, %v2078_v46  ;;  %v14227_v55 = vpack.c.bf16 %v2081_v6, %v2080_v9 }
 0x523   :  { %18419 = vst [vmem:[#allocation68_spill] sm:$0xff] %v14184_v23  ;;  %v18432_v0 = vld [vmem:[#allocation21_spill] sm:$0xff]  ;;  %v18433_v17 = vld [vmem:[#allocation23_spill] sm:$0xff]  ;;  %v18438_v7 = vld [vmem:[#allocation114_spill] sm:$0xff] }
 0x524   :  { %8193 = vst [vmem:[#allocation2 + $0x118] sm:$0xff] %v14184_v23   ;;  %v18434_v14 = vld [vmem:[#allocation25_spill] sm:$0xff]  ;;  %v18435_v20 = vld [vmem:[#allocation27_spill] sm:$0xff]  ;;  %v18439_v52 = vld [vmem:[#allocation132_spill] sm:$0xff] }
 0x525   :  { %8194 = vst [vmem:[#allocation2 + $0x120] sm:$0xff] %v7598_v35   ;;  %v18436_v4 = vld [vmem:[#allocation31_spill] sm:$0xff]  ;;  %v18437_v10 = vld [vmem:[#allocation113_spill] sm:$0xff]  ;;  %v18440_v26 = vld [vmem:[#allocation16_spill] sm:$0xff] }
 0x526   :  { %8195 = vst [vmem:[#allocation2 + $0x128] sm:$0xff] %v7603_v16   ;;  %v18441_v49 = vld [vmem:[#allocation18_spill] sm:$0xff]  ;;  %v18443_v45 = vld [vmem:[#allocation24_spill] sm:$0xff]  ;;  %v18451_v47 = vld [vmem:[#allocation155_spill] sm:$0xff] }
 0x527   :  { %8196 = vst [vmem:[#allocation2 + $0x130] sm:$0xff] %v7608_v22   ;;  %v18442_v48 = vld [vmem:[#allocation22_spill] sm:$0xff]  ;;  %v2117_v11 = vmax.f32 %v18443_v45, 0.0  ;;  %v18450_v22 = vld [vmem:[#allocation55_spill] sm:$0xff]  ;;  %v18453_v45 = vld [vmem:[#allocation133_spill] sm:$0xff] }
 0x528   :  { %v2116_v35 = vmax.f32 %v18442_v48, 0.0  ;;  %18444 = vst [vmem:[#allocation69_spill] sm:$0xff] %v14213_v1  ;;  %v18445_v39 = vld [vmem:[#allocation26_spill] sm:$0xff]  ;;  %v2122_v27 = vmax.f32 %v18450_v22, 0.0  ;;  %v2123_v48 = vmax.f32 %v18451_v47, 0.0  ;;  %v3781_v13 = vld [vmem:[#allocation3 + $0xa] sm:$0xff] }
 0x529   :  { %8197 = vst [vmem:[#allocation2 + $0x138] sm:$0xff] %v7613_v24   ;;  %v2118_v8 = vmax.f32 %v18445_v39, 0.0  ;;  %v18446_v16 = vld [vmem:[#allocation30_spill] sm:$0xff]  ;;  %v2124_v24 = vmax.f32 %v18453_v45, 0.0  ;;  %v18454_v39 = vld [vmem:[#allocation136_spill] sm:$0xff]  ;;  %v2127_v22 = vmax.f32 %v18457_v12, 0.0  ;;  %v14235_v45 = vpack.c.bf16 %v2085_v38, %v2084_v60 }
 0x52a   :  { %v2119_v61 = vmax.f32 %v18446_v16, 0.0  ;;  %v18447_v62 = vld [vmem:[#allocation34_spill] sm:$0xff]  ;;  %18448 = vst [vmem:[#allocation70_spill] sm:$0xff] %v14218_v28  ;;  %v2125_v16 = vmax.f32 %v18454_v39, 0.0  ;;  %v14231_v28 = vpack.c.bf16 %v2083_v5, %v2082_v57  ;;  %v2132_v1 = vmax.f32 %v18463_v51, 0.0  ;;  %v18467_v5 = vld [vmem:[#allocation43_spill] sm:$0xff] }
 0x52b   :  { %v2120_v23 = vmax.f32 %v18447_v62, 0.0  ;;  %8198 = vst [vmem:[#allocation2 + $0x140] sm:$0xff] %v7618_v43   ;;  %v18449_v59 = vld [vmem:[#allocation54_spill] sm:$0xff]  ;;  %v3780_v62 = vld [vmem:[#allocation3 + $0x2] sm:$0xff]  ;;  %v18465_v12 = vmax.f32 %v18423_v19, 0.0 }
 0x52c   :  { %v2121_v44 = vmax.f32 %v18449_v59, 0.0  ;;  %18452 = vst [vmem:[#allocation71_spill] sm:$0xff] %v14223_v42  ;;  %v9239_v36 = vld [vmem:[#allocation2 + $0x218] sm:$0xff]  ;;  %v8408_v46 = vpack.i.bf16 %v3781_v13, %v3780_v62  ;;  %v2133_v62 = vmax.f32 %v18467_v5, 0.0  ;;  %v18468_v60 = vld [vmem:[#allocation44_spill] sm:$0xff]  ;;  %v18469_v13 = vld [vmem:[#allocation45_spill] sm:$0xff] }
 0x52d   :  { %8199 = vst [vmem:[#allocation2 + $0x148] sm:$0xff] %v7623_v63   ;;  %v8094_v30 = vunpack.c.h.bf16 %v9239_v36  ;;  %v3610_v2 = vld [vmem:[#allocation3 + $0x11] sm:$0xff]  ;;  %v3611_v41 = vld [vmem:[#allocation3 + $0x19] sm:$0xff]  ;;  %v18458_v63 = vld [vmem:[#allocation148_spill] sm:$0xff]  ;;  %v2134_v38 = vmax.f32 %v18468_v60, 0.0 }
 0x52e   :  { %18455 = vst [vmem:[#allocation72_spill] sm:$0xff] %v14227_v55  ;;  %v18456_v43 = vld [vmem:[#allocation146_spill] sm:$0xff]  ;;  %v2128_v47 = vmax.f32 %v18458_v63, 0.0  ;;  %v18459_v36 = vld [vmem:[#allocation149_spill] sm:$0xff]  ;;  %v8398_v39 = vpack.i.bf16 %v3611_v41, %v3610_v2  ;;  %v18462_v55 = vld [vmem:[#allocation151_spill] sm:$0xff]  ;;  %8409 = vrot.lane.b32.xlu1 %v8408_v46, %s9290_s19  ;;  %v2135_v2 = vmax.f32 %v18469_v13, 0.0 }
 0x52f   :  { %v2126_v59 = vmax.f32 %v18456_v43, 0.0  ;;  %v2129_v42 = vmax.f32 %v18459_v36, 0.0  ;;  %18460 = vst [vmem:[#allocation73_spill] sm:$0xff] %v14235_v45  ;;  %v18461_v9 = vld [vmem:[#allocation150_spill] sm:$0xff]  ;;  %v2131_v33 = vmax.f32 %v18462_v55, 0.0  ;;  %v18464_v43 = vmax.f32 %v18422_v18, 0.0 }
 0x530   :  { %v2130_v6 = vmax.f32 %v18461_v9, 0.0  ;;  %v18470_v41 = vmax.f32 %v18424_v50, 0.0  ;;  %v18471_v55 = vmax.f32 %v18425_v37, 0.0  ;;  %8399 = vrot.lane.b32.xlu0 %v8398_v39, %s9287_s3  ;;  %v18473_v18 = vld [vmem:[#allocation46_spill] sm:$0xff]  ;;  %v18474_v63 = vld [vmem:[#allocation47_spill] sm:$0xff]  ;;  %v18475_v9 = vld [vmem:[#allocation48_spill] sm:$0xff] }
 0x531   :  { %v14244_v57 = vpack.c.bf16 %v18465_v12, %v18464_v43  ;;  %v2136_v19 = vmax.f32 %v18473_v18, 0.0  ;;  %v2137_v36 = vmax.f32 %v18474_v63, 0.0  ;;  %v2138_v46 = vmax.f32 %v18475_v9, 0.0  ;;  %v18479_v60 = vld [vmem:[#allocation49_spill] sm:$0xff]  ;;  %v18480_v13 = vld [vmem:[#allocation50_spill] sm:$0xff]  ;;  %v4601_v63 = vld [vmem:[#allocation3 + $0x1b] sm:$0xff] }
 0x532   :  { %v14254_v51 = vpack.c.bf16 %v18471_v55, %v18470_v41  ;;  %v18476_v43 = vmax.f32 %v18426_v31, 0.0  ;;  %v18477_v12 = vmax.f32 %v18427_v32, 0.0  ;;  %v2139_v50 = vmax.f32 %v18479_v60, 0.0  ;;  %v18481_v41 = vld [vmem:[#allocation51_spill] sm:$0xff]  ;;  %v4602_v9 = vld [vmem:[#allocation3 + $0x23] sm:$0xff] }
 0x533   :  { %18466 = vst [vmem:[#allocation74_spill] sm:$0xff] %v14244_v57  ;;  %v2140_v37 = vmax.f32 %v18480_v13, 0.0  ;;  %v2141_v55 = vmax.f32 %v18481_v41, 0.0  ;;  %v18482_v39 = vmax.f32 %v18428_v21, 0.0  ;;  %v18483_v18 = vmax.f32 %v18429_v56, 0.0  ;;  %v18485_v57 = vld [vmem:[#allocation52_spill] sm:$0xff] }
 0x534   :  { %18472 = vst [vmem:[#allocation75_spill] sm:$0xff] %v14254_v51  ;;  %v14264_v5 = vpack.c.bf16 %v18477_v12, %v18476_v43  ;;  %v2142_v31 = vmax.f32 %v18485_v57, 0.0  ;;  %v18486_v45 = vld [vmem:[#allocation53_spill] sm:$0xff]  ;;  %v18487_v43 = vld [vmem:[#allocation56_spill] sm:$0xff]  ;;  %v18488_v60 = vmax.f32 %v18430_v40, 0.0  ;;  %v18489_v13 = vmax.f32 %v18431_v3, 0.0 }
 0x535   :  { %v14273_v51 = vpack.c.bf16 %v18483_v18, %v18482_v39  ;;  %v2143_v32 = vmax.f32 %v18486_v45, 0.0  ;;  %v2144_v12 = vmax.f32 %v18487_v43, 0.0  ;;  %v2145_v21 = vmax.f32 %v14087_v34, 0.0 }
 0x536   :  { %18478 = vst [vmem:[#allocation76_spill] sm:$0xff] %v14264_v5  ;;  %v14282_v5 = vpack.c.bf16 %v18489_v13, %v18488_v60  ;;  %v2146_v56 = vmax.f32 %v14100_v25, 0.0  ;;  %v18490_v41 = vmax.f32 %v18432_v0, 0.0  ;;  %v18491_v39 = vmax.f32 %v18433_v17, 0.0 }
 0x537   :  { %18484 = vst [vmem:[#allocation77_spill] sm:$0xff] %v14273_v51  ;;  %v7758_v57 = vpack.c.bf16 %v2117_v11, %v2116_v35  ;;  %v2147_v45 = vmax.f32 %v14106_v53, 0.0  ;;  %v18492_v43 = vmax.f32 %v18434_v14, 0.0  ;;  %v18493_v40 = vmax.f32 %v18435_v20, 0.0 }
 0x538   :  { %v7708_v18 = vpack.c.bf16 %v18491_v39, %v18490_v41  ;;  %v7763_v3 = vpack.c.bf16 %v2119_v61, %v2118_v8  ;;  %v8433_v60 = vpack.i.bf16 %v4602_v9, %v4601_v63  ;;  %v18494_v13 = vmax.f32 %v18436_v4, 0.0  ;;  %8215 = vst [vmem:[#allocation2 + $0x1c8] sm:$0xff] %v14282_v5   ;;  %v4773_v63 = vld [vmem:[#allocation3 + $0x1c] sm:$0xff]  ;;  %v14353_v39 = vld [vmem:[#allocation3 + $0x26] sm:$0xff] }
 0x539   :  { %v7713_v51 = vpack.c.bf16 %v18493_v40, %v18492_v43  ;;  %v18495_v34 = vmax.f32 %v18437_v10, 0.0  ;;  %v18496_v0 = vmax.f32 %v18438_v7, 0.0  ;;  %v18497_v17 = vmax.f32 %v18439_v52, 0.0 }
 0x53a   :  { %v18498_v11 = vmax.f32 %v18440_v26, 0.0  ;;  %v18499_v53 = vmax.f32 %v18441_v49, 0.0  ;;  %v7768_v35 = vpack.c.bf16 %v2121_v44, %v2120_v23  ;;  %v14307_v20 = vrot.slane %v8094_v30, 2  ;;  %8434 = vrot.lane.b32.xlu2 %v8433_v60, %s9285_s27  ;;  %8216 = vst [vmem:[#allocation2 + $0x1d0] sm:$0xff] %v7708_v18  }
 0x53b   :  { %v7718_v25 = vpack.c.bf16 %v18495_v34, %v18494_v13  ;;  %v7723_v41 = vpack.c.bf16 %v18497_v17, %v18496_v0  ;;  %v14309_v61 = vpack.c.bf16 %v2123_v48, %v2122_v27  ;;  %v14311_v8 = vpack.c.bf16 %v2125_v16, %v2124_v24  ;;  %8217 = vst [vmem:[#allocation2 + $0x1d8] sm:$0xff] %v7713_v51   ;;  %v14325_v48 = vld [vmem:[#allocation3 + $0x1a] sm:$0xff]  ;;  %v14331_v16 = vld [vmem:[#allocation3 + $0x22] sm:$0xff]  ;;  %v3782_v51 = vld [vmem:[#allocation3 + $0x12] sm:$0xff] }
 0x53c   :  { %v7728_v14 = vpack.c.bf16 %v18499_v53, %v18498_v11  ;;  %v14313_v4 = vpack.c.bf16 %v2127_v22, %v2126_v59  ;;  %v14317_v10 = vpack.c.bf16 %v2129_v42, %v2128_v47  ;;  %v14319_v7 = vpack.c.bf16 %v2131_v33, %v2130_v6  ;;  %v4296_v59 = vld [vmem:[#allocation3 + $0xf] sm:$0xff]  ;;  %v4297_v22 = vld [vmem:[#allocation3 + $0x17] sm:$0xff] }
 0x53d   :  { %v8097_v26 = vunpack.c.l.bf16 %v7758_v57  ;;  %v8098_v49 = vunpack.c.h.bf16 %v7758_v57  ;;  %v14321_v23 = vpack.c.bf16 %v2133_v62, %v2132_v1  ;;  %v14323_v52 = vpack.c.bf16 %v2135_v2, %v2134_v38  ;;  %8218 = vst [vmem:[#allocation2 + $0x1e0] sm:$0xff] %v7718_v25   ;;  %v3954_v38 = vld [vmem:[#allocation3 + $0x1d] sm:$0xff]  ;;  %v3955_v2 = vld [vmem:[#allocation3 + $0x25] sm:$0xff]  ;;  %v9240_v25 = vld [vmem:[#allocation2 + $0x18] sm:$0xff] }
 0x53e   :  { %v8101_v27 = vunpack.c.l.bf16 %v7763_v3  ;;  %v8102_v44 = vunpack.c.h.bf16 %v7763_v3  ;;  %v14327_v30 = vpack.c.bf16 %v2137_v36, %v2136_v19  ;;  %v14329_v24 = vpack.c.bf16 %v2139_v50, %v2138_v46  ;;  %8219 = vst [vmem:[#allocation2 + $0x1e8] sm:$0xff] %v7723_v41   ;;  %v18500_v13 = vld [vmem:[#allocation17_spill] sm:$0xff] }
 0x53f   :  { %v8105_v42 = vunpack.c.l.bf16 %v7768_v35  ;;  %v8106_v33 = vunpack.c.h.bf16 %v7768_v35  ;;  %v14333_v1 = vpack.c.bf16 %v2141_v55, %v2140_v37  ;;  %v14335_v47 = vpack.c.bf16 %v2143_v32, %v2142_v31  ;;  %8220 = vst [vmem:[#allocation2 + $0x1f0] sm:$0xff] %v7728_v14   ;;  %v4774_v37 = vld [vmem:[#allocation3 + $0x24] sm:$0xff] }
 0x540   :  { %v14337_v6 = vpack.c.bf16 %v2145_v21, %v2144_v12  ;;  %v14339_v62 = vpack.c.bf16 %v2147_v45, %v2146_v56  ;;  %v8109_v19 = vunpack.c.l.bf16 %v14309_v61  ;;  %v8110_v36 = vunpack.c.h.bf16 %v14309_v61  ;;  %v14343_v55 = vld [vmem:[#allocation3 + $0x1f] sm:$0xff]  ;;  %v14349_v21 = vld [vmem:[#allocation3 + $0x27] sm:$0xff] }
 0x541   :  { %v3155_v46 = vrot.slane %v8097_v26, 2  ;;  %v3157_v50 = vrot.slane %v8098_v49, 2  ;;  %v3159_v9 = vrot.slane %v8101_v27, 2  ;;  %v14345_v31 = vrot.slane %v8102_v44, 2  ;;  %v14351_v56 = vld [vmem:[#allocation3 + $0x1e] sm:$0xff]  ;;  %v18501_v27 = vld [vmem:[#allocation69_spill] sm:$0xff] }
 0x542   :  { %v8428_v32 = vpack.i.bf16 %v14331_v16, %v14325_v48  ;;  %v8423_v12 = vpack.i.bf16 %v4297_v22, %v4296_v59  ;;  %v14355_v18 = vrot.slane %v8105_v42, 2  ;;  %v14357_v57 = vrot.slane %v8106_v33, 2  ;;  %v18502_v33 = vld [vmem:[#allocation15_spill] sm:$0xff] }
 0x543   :  { %v8448_v45 = vpack.i.bf16 %v3955_v2, %v3954_v38  ;;  %v8443_v43 = vpack.i.bf16 %v14325_v48, %v3782_v51  ;;  %v8438_v40 = vpack.i.bf16 %v4774_v37, %v4773_v63  ;;  %v7933_v3 = vunpack.c.l.bf16 %v14133_v15 }
 0x544   :  { %8429 = vrot.lane.b32.xlu1 %v8428_v32, %s9286_s28  ;;  %8424 = vrot.lane.b32.xlu0 %v8423_v12, %s9291_s20  ;;  %v8013_v60 = vunpack.c.l.bf16 %v14208_v54  ;;  %v3154_v34 = vsel %vm2921_vm3, %v18500_v13, %v14307_v20  ;;  %v7850_v0 = vunpack.c.h.bf16 %v9240_v25  ;;  %v8458_v17 = vpack.i.bf16 %v14349_v21, %v14343_v55  ;;  %v18503_v32 = vld [vmem:[#allocation19_spill] sm:$0xff] }
 0x545   :  { %8449 = vrot.lane.b32.xlu2 %v8448_v45, %s9288_s4  ;;  %v8453_v41 = vpack.i.bf16 %v14353_v39, %v14351_v56  ;;  %v7853_v11 = vunpack.c.l.bf16 %v14070_v29  ;;  %v2937_v53 = vrot.slane %v7933_v3, 2  ;;  %v7934_v35 = vunpack.c.h.bf16 %v14133_v15  ;;  %v14431_v56 = vld [vmem:[#allocation3 + $0x2a] sm:$0xff] }
 0x546   :  { %v3272_v14 = vmax.f32 %v8013_v60, %v3154_v34  ;;  %v7937_v26 = vunpack.c.l.bf16 %v14138_v58  ;;  %v8014_v49 = vunpack.c.h.bf16 %v14208_v54  ;;  %v8017_v44 = vunpack.c.l.bf16 %v18501_v27  ;;  %v4775_v39 = vld [vmem:[#allocation3 + $0x2c] sm:$0xff] }
 0x547   :  { %v3156_v48 = vsel %vm2921_vm3, %v14307_v20, %v3155_v46  ;;  %v3158_v42 = vsel %vm2921_vm3, %v3155_v46, %v3157_v50  ;;  %v2938_v59 = vsel %vm2921_vm3, %v18502_v33, %v2937_v53  ;;  %v2939_v38 = vrot.slane %v7934_v35, 2  ;;  %v18505_v46 = vld [vmem:[#allocation57_spill] sm:$0xff] }
 0x548   :  { %v3366_v22 = vrot.slane %v3272_v14, 4  ;;  %v2941_v2 = vrot.slane %v7937_v26, 2  ;;  %v3057_v51 = vmax.f32 %v7850_v0, %v2938_v59  ;;  %v7854_v15 = vunpack.c.h.bf16 %v14070_v29  ;;  %v18506_v14 = vld [vmem:[#allocation60_spill] sm:$0xff] }
 0x549   :  { %v3273_v63 = vmax.f32 %v8014_v49, %v3156_v48  ;;  %v3274_v37 = vmax.f32 %v8017_v44, %v3158_v42  ;;  %v18504_v54 = vrot.slane %v18503_v32, 4  ;;  %v2940_v45 = vsel %vm2921_vm3, %v2937_v53, %v2939_v38  ;;  %v18507_v49 = vld [vmem:[#allocation70_spill] sm:$0xff] }
 0x54a   :  { %v2942_v20 = vsel %vm2921_vm3, %v2939_v38, %v2941_v2  ;;  %v7857_v3 = vunpack.c.l.bf16 %v18505_v46  ;;  %v3058_v13 = vmax.f32 %v7853_v11, %v2940_v45  ;;  %v7938_v0 = vunpack.c.h.bf16 %v14138_v58 }
 0x54b   :  { %v3367_v12 = vsel %vm3350_vm4, %v18504_v54, %v3366_v22  ;;  %v3059_v34 = vmax.f32 %v7854_v15, %v2942_v20  ;;  %v3368_v25 = vrot.slane %v3273_v63, 4  ;;  %v3370_v29 = vrot.slane %v3274_v37, 4  ;;  %v18508_v15 = vld [vmem:[#allocation58_spill] sm:$0xff] }
 0x54c   :  { %v3486_v60 = vmax.f32 %v3057_v51, %v3367_v12  ;;  %8444 = vrot.lane.b32.xlu1 %v8443_v43, %s9290_s19  ;;  %8439 = vrot.lane.b32.xlu0 %v8438_v40, %s9292_s21  ;;  %v7941_v35 = vunpack.c.l.bf16 %v18506_v14  ;;  %v8018_v53 = vunpack.c.h.bf16 %v18501_v27  ;;  %v8021_v44 = vunpack.c.l.bf16 %v18507_v49  ;;  %v18509_v12 = vld [vmem:[#allocation61_spill] sm:$0xff] }
 0x54d   :  { %v3369_v26 = vsel %vm3350_vm4, %v3366_v22, %v3368_v25  ;;  %v3160_v11 = vsel %vm2921_vm3, %v3157_v50, %v3159_v9  ;;  %v3162_v48 = vsel %vm2921_vm3, %v3159_v9, %v14345_v31  ;;  %v3371_v43 = vsel %vm3350_vm4, %v3368_v25, %v3370_v29 }
 0x54e   :  { %v3487_v42 = vmax.f32 %v3058_v13, %v3369_v26  ;;  %v2943_v40 = vrot.slane %v7938_v0, 2  ;;  %v2945_v33 = vrot.slane %v7941_v35, 2  ;;  %v3488_v59 = vmax.f32 %v3059_v34, %v3371_v43  ;;  %3529 = vst [vmem:[#allocation3 + $0x38] sm:$0xff] %v3486_v60 }
 0x54f   :  { %v7858_v58 = vunpack.c.h.bf16 %v18505_v46  ;;  %v3275_v38 = vmax.f32 %v8018_v53, %v3160_v11  ;;  %v3276_v51 = vmax.f32 %v8021_v44, %v3162_v48  ;;  %v7861_v63 = vunpack.c.l.bf16 %v18508_v15  ;;  %v18510_v46 = vld [vmem:[#allocation71_spill] sm:$0xff]  ;;  %v18511_v44 = vld [vmem:[#allocation62_spill] sm:$0xff] }
 0x550   :  { %v2944_v27 = vsel %vm2921_vm3, %v2941_v2, %v2943_v40  ;;  %v2946_v22 = vsel %vm2921_vm3, %v2943_v40, %v2945_v33  ;;  %v7942_v50 = vunpack.c.h.bf16 %v18506_v14  ;;  %v7945_v45 = vunpack.c.l.bf16 %v18509_v12  ;;  %3530 = vst [vmem:[#allocation3 + $0x40] sm:$0xff] %v3487_v42 }
 0x551   :  { %v3060_v37 = vmax.f32 %v7857_v3, %v2944_v27  ;;  %v3061_v9 = vmax.f32 %v7858_v58, %v2946_v22  ;;  %v3372_v32 = vrot.slane %v3275_v38, 4  ;;  %v3374_v54 = vrot.slane %v3276_v51, 4  ;;  %3531 = vst [vmem:[#allocation3 + $0x48] sm:$0xff] %v3488_v59 }
 0x552   :  { %v8022_v20 = vunpack.c.h.bf16 %v18507_v49  ;;  %v8025_v13 = vunpack.c.l.bf16 %v18510_v46  ;;  %v2947_v34 = vrot.slane %v7942_v50, 2  ;;  %v3164_v3 = vsel %vm2921_vm3, %v14345_v31, %v14355_v18 }
 0x553   :  { %v3373_v2 = vsel %vm3350_vm4, %v3370_v29, %v3372_v32  ;;  %v3375_v25 = vsel %vm3350_vm4, %v3372_v32, %v3374_v54  ;;  %v3166_v60 = vsel %vm2921_vm3, %v14355_v18, %v14357_v57  ;;  %v2949_v31 = vrot.slane %v7945_v45, 2  ;;  %v18512_v32 = vld [vmem:[#allocation72_spill] sm:$0xff] }
 0x554   :  { %8459 = vrot.lane.b32.xlu1 %v8458_v17, %s9291_s20  ;;  %8454 = vrot.lane.b32.xlu0 %v8453_v41, %s9289_s18  ;;  %v3489_v29 = vmax.f32 %v3060_v37, %v3373_v2  ;;  %v3490_v0 = vmax.f32 %v3061_v9, %v3375_v25  ;;  %v2948_v14 = vsel %vm2921_vm3, %v2945_v33, %v2947_v34  ;;  %v3167_v18 = vrot.slane %v8109_v19, 2  ;;  %v4603_v19 = vld [vmem:[#allocation3 + $0x2b] sm:$0xff]  ;;  %v18513_v2 = vld [vmem:[#allocation59_spill] sm:$0xff] }
 0x555   :  { %v3062_v35 = vmax.f32 %v7861_v63, %v2948_v14  ;;  %v3277_v53 = vmax.f32 %v8022_v20, %v3164_v3  ;;  %v14425_v26 = vmax.f32 %v8025_v13, %v3166_v60  ;;  %v7862_v55 = vunpack.c.h.bf16 %v18508_v15  ;;  %v14440_v42 = vld [vmem:[#allocation3 + $0x32] sm:$0xff] }
 0x556   :  { %3532 = vst [vmem:[#allocation3 + $0x50] sm:$0xff] %v3489_v29  ;;  %v7946_v21 = vunpack.c.h.bf16 %v18509_v12  ;;  %v2950_v17 = vsel %vm2921_vm3, %v2947_v34, %v2949_v31  ;;  %v7949_v11 = vunpack.c.l.bf16 %v18511_v44  ;;  %v14438_v48 = vrot.slane %v8110_v36, 2  ;;  %v4776_v40 = vld [vmem:[#allocation3 + $0x34] sm:$0xff] }
 0x557   :  { %3533 = vst [vmem:[#allocation3 + $0x58] sm:$0xff] %v3490_v0  ;;  %v3376_v41 = vrot.slane %v3277_v53, 4  ;;  %v3378_v49 = vrot.slane %v14425_v26, 4  ;;  %v3063_v43 = vmax.f32 %v7862_v55, %v2950_v17  ;;  %v4604_v33 = vld [vmem:[#allocation3 + $0x33] sm:$0xff]  ;;  %v8463_v38 = vpack.i.bf16 %v14440_v42, %v14431_v56 }
 0x558   :  { %v8473_v51 = vpack.i.bf16 %v4776_v40, %v4775_v39  ;;  %v2951_v22 = vrot.slane %v7946_v21, 2  ;;  %v8468_v15 = vpack.i.bf16 %v4604_v33, %v4603_v19  ;;  %v14446_v36 = vrot.slane %v7949_v11, 2  ;;  %v4129_v34 = vld [vmem:[#allocation3 + $0x36] sm:$0xff]  ;;  %v3956_v0 = vld [vmem:[#allocation3 + $0x2d] sm:$0xff] }
 0x559   :  { %v3377_v59 = vsel %vm3350_vm4, %v3374_v54, %v3376_v41  ;;  %v3379_v58 = vsel %vm3350_vm4, %v3376_v41, %v3378_v49  ;;  %v3168_v63 = vsel %vm2921_vm3, %v14357_v57, %v3167_v18  ;;  %8464 = vrot.lane.b32.xlu2 %v8463_v38, %s9286_s28  ;;  %v8026_v50 = vunpack.c.h.bf16 %v18510_v46  ;;  %v4128_v46 = vld [vmem:[#allocation3 + $0x2e] sm:$0xff]  ;;  %v18514_v55 = vld [vmem:[#allocation63_spill] sm:$0xff]  ;;  %v14476_v38 = vld [vmem:[#allocation2 + $0x48] sm:$0xff]  }
 0x55a   :  { %v3491_v27 = vmax.f32 %v3062_v35, %v3377_v59  ;;  %v3492_v61 = vmax.f32 %v3063_v43, %v3379_v58  ;;  %v3170_v37 = vsel %vm2921_vm3, %v3167_v18, %v14438_v48  ;;  %v8113_v9 = vunpack.c.l.bf16 %v14311_v8  ;;  %v8249_v18 = vld [vmem:[#allocation2 + $0x40] sm:$0xff]   ;;  %v4300_v17 = vld [vmem:[#allocation3 + $0x2f] sm:$0xff] }
 0x55b   :  { %v8029_v54 = vunpack.c.l.bf16 %v18512_v32  ;;  %v8114_v12 = vunpack.c.h.bf16 %v14311_v8  ;;  %v8117_v57 = vunpack.c.l.bf16 %v14313_v4  ;;  %v2952_v45 = vsel %vm2921_vm3, %v2949_v31, %v2951_v22  ;;  %v3957_v8 = vld [vmem:[#allocation3 + $0x35] sm:$0xff] }
 0x55c   :  { %8474 = vrot.lane.b32.xlu1 %v8473_v51, %s9292_s21  ;;  %3534 = vst [vmem:[#allocation3 + $0x60] sm:$0xff] %v3491_v27  ;;  %8469 = vrot.lane.b32.xlu0 %v8468_v15, %s9285_s27  ;;  %v3279_v20 = vmax.f32 %v8026_v50, %v3168_v63  ;;  %v8118_v13 = vunpack.c.h.bf16 %v14313_v4  ;;  %v7865_v25 = vunpack.c.l.bf16 %v18513_v2  ;;  %v2954_v3 = vsel %vm2921_vm3, %v2951_v22, %v14446_v36  ;;  %v4301_v40 = vld [vmem:[#allocation3 + $0x37] sm:$0xff]  ;;  %v4606_v51 = vld [vmem:[#allocation3 + $0x43] sm:$0xff] }
 0x55d   :  { %3535 = vst [vmem:[#allocation3 + $0x68] sm:$0xff] %v3492_v61  ;;  %v14465_v60 = vmax.f32 %v8029_v54, %v3170_v37  ;;  %v8121_v29 = vunpack.c.l.bf16 %v14317_v10  ;;  %v7866_v14 = vunpack.c.h.bf16 %v18513_v2  ;;  %v7950_v31 = vunpack.c.h.bf16 %v18511_v44  ;;  %v4605_v59 = vld [vmem:[#allocation3 + $0x3b] sm:$0xff] }
 0x55e   :  { %v3380_v35 = vrot.slane %v3279_v20, 4  ;;  %v3171_v53 = vrot.slane %v8113_v9, 2  ;;  %v3064_v4 = vmax.f32 %v7865_v25, %v2952_v45  ;;  %v7953_v21 = vunpack.c.l.bf16 %v18514_v55 }
 0x55f   :  { %v3382_v26 = vrot.slane %v14465_v60, 4  ;;  %v8478_v39 = vpack.i.bf16 %v14431_v56, %v14331_v16  ;;  %v8488_v41 = vpack.i.bf16 %v4129_v34, %v4128_v46  ;;  %v3065_v11 = vmax.f32 %v7866_v14, %v2954_v3  ;;  %v14480_v16 = vld [vmem:[#allocation3 + $0x3a] sm:$0xff]  ;;  %v14482_v56 = vld [vmem:[#allocation3 + $0x42] sm:$0xff] }
 0x560   :  { %v3381_v19 = vsel %vm3350_vm4, %v3378_v49, %v3380_v35  ;;  %v3173_v43 = vrot.slane %v8114_v12, 2  ;;  %v8483_v33 = vpack.i.bf16 %v3957_v8, %v3956_v0  ;;  %v7869_v49 = vunpack.c.l.bf16 %v8249_v18  ;;  %v18515_v8 = vld [vmem:[#allocation64_spill] sm:$0xff] }
 0x561   :  { %v3383_v44 = vsel %vm3350_vm4, %v3380_v35, %v3382_v26  ;;  %v3493_v58 = vmax.f32 %v3064_v4, %v3381_v19  ;;  %8479 = vrot.lane.b32.xlu2 %v8478_v39, %s9290_s19  ;;  %v2955_v22 = vrot.slane %v7950_v31, 2  ;;  %v2957_v15 = vrot.slane %v7953_v21, 2  ;;  %v18516_v31 = vld [vmem:[#allocation73_spill] sm:$0xff] }
 0x562   :  { %v3494_v27 = vmax.f32 %v3065_v11, %v3383_v44  ;;  %v8122_v61 = vunpack.c.h.bf16 %v14317_v10  ;;  %v3175_v63 = vrot.slane %v8117_v57, 2  ;;  %v14485_v50 = vrot.slane %v8118_v13, 2  ;;  %v4778_v19 = vld [vmem:[#allocation3 + $0x44] sm:$0xff]  ;;  %v3615_v44 = vld [vmem:[#allocation3 + $0x39] sm:$0xff] }
 0x563   :  { %3536 = vst [vmem:[#allocation3 + $0x70] sm:$0xff] %v3493_v58  ;;  %v7870_v37 = vunpack.c.h.bf16 %v8249_v18  ;;  %v8493_v9 = vpack.i.bf16 %v4301_v40, %v4300_v17  ;;  %v8030_v54 = vunpack.c.h.bf16 %v18512_v32  ;;  %v2956_v12 = vsel %vm2921_vm3, %v14446_v36, %v2955_v22 }
 0x564   :  { %8489 = vrot.lane.b32.xlu1 %v8488_v41, %s9289_s18  ;;  %8484 = vrot.lane.b32.xlu0 %v8483_v33, %s9288_s4  ;;  %3537 = vst [vmem:[#allocation3 + $0x78] sm:$0xff] %v3494_v27  ;;  %v3172_v45 = vsel %vm2921_vm3, %v14438_v48, %v3171_v53  ;;  %v8503_v20 = vpack.i.bf16 %v4606_v51, %v4605_v59  ;;  %v8033_v13 = vunpack.c.l.bf16 %v14231_v28  ;;  %v7873_v46 = vunpack.c.l.bf16 %v14476_v38  ;;  %v3614_v59 = vld [vmem:[#allocation3 + $0x31] sm:$0xff] }
 0x565   :  { %v8498_v57 = vpack.i.bf16 %v14482_v56, %v14480_v16  ;;  %v2958_v34 = vsel %vm2921_vm3, %v2955_v22, %v2957_v15  ;;  %v3066_v2 = vmax.f32 %v7869_v49, %v2956_v12  ;;  %v3174_v25 = vsel %vm2921_vm3, %v3171_v53, %v3173_v43  ;;  %v8251_v51 = vld [vmem:[#allocation2 + $0x50] sm:$0xff]  }
 0x566   :  { %v3281_v32 = vmax.f32 %v8030_v54, %v3172_v45  ;;  %v3067_v3 = vmax.f32 %v7870_v37, %v2958_v34  ;;  %v3282_v60 = vmax.f32 %v8033_v13, %v3174_v25  ;;  %v7874_v36 = vunpack.c.h.bf16 %v14476_v38 }
 0x567   :  { %v7954_v48 = vunpack.c.h.bf16 %v18514_v55  ;;  %v7957_v14 = vunpack.c.l.bf16 %v18515_v8  ;;  %v8034_v35 = vunpack.c.h.bf16 %v14231_v28  ;;  %v8037_v4 = vunpack.c.l.bf16 %v18516_v31  ;;  %v4777_v28 = vld [vmem:[#allocation3 + $0x3c] sm:$0xff] }
 0x568   :  { %v3384_v0 = vrot.slane %v3281_v32, 4  ;;  %v3386_v18 = vrot.slane %v3282_v60, 4  ;;  %v3176_v39 = vsel %vm2921_vm3, %v3173_v43, %v3175_v63  ;;  %v3178_v53 = vsel %vm2921_vm3, %v3175_v63, %v14485_v50 }
 0x569   :  { %v2959_v21 = vrot.slane %v7954_v48, 2  ;;  %8494 = vrot.lane.b32.xlu2 %v8493_v9, %s9291_s20  ;;  %v2961_v17 = vrot.slane %v7957_v14, 2  ;;  %v3283_v41 = vmax.f32 %v8034_v35, %v3176_v39  ;;  %v14510_v11 = vmax.f32 %v8037_v4, %v3178_v53  ;;  %v3959_v14 = vld [vmem:[#allocation3 + $0x45] sm:$0xff] }
 0x56a   :  { %v3385_v55 = vsel %vm3350_vm4, %v3382_v26, %v3384_v0  ;;  %v3387_v40 = vsel %vm3350_vm4, %v3384_v0, %v3386_v18  ;;  %v8125_v33 = vunpack.c.l.bf16 %v14319_v7  ;;  %v3179_v26 = vrot.slane %v8121_v29, 2 }
 0x56b   :  { %v3495_v43 = vmax.f32 %v3066_v2, %v3385_v55  ;;  %v3496_v58 = vmax.f32 %v3067_v3, %v3387_v40  ;;  %v2960_v38 = vsel %vm2921_vm3, %v2957_v15, %v2959_v21  ;;  %v14518_v27 = vrot.slane %v8122_v61, 2  ;;  %v4130_v55 = vld [vmem:[#allocation3 + $0x3e] sm:$0xff] }
 0x56c   :  { %8504 = vrot.lane.b32.xlu1 %v8503_v20, %s9285_s27  ;;  %8499 = vrot.lane.b32.xlu0 %v8498_v57, %s9286_s28  ;;  %v2962_v49 = vsel %vm2921_vm3, %v2959_v21, %v2961_v17  ;;  %v3068_v22 = vmax.f32 %v7873_v46, %v2960_v38  ;;  %v8508_v63 = vpack.i.bf16 %v4778_v19, %v4777_v28  ;;  %v3388_v9 = vrot.slane %v3283_v41, 4  ;;  %v18517_v57 = vld [vmem:[#allocation65_spill] sm:$0xff] }
 0x56d   :  { %3538 = vst [vmem:[#allocation3 + $0x80] sm:$0xff] %v3495_v43  ;;  %v3069_v37 = vmax.f32 %v7874_v36, %v2962_v49  ;;  %v3390_v54 = vrot.slane %v14510_v11, 4  ;;  %v8518_v12 = vpack.i.bf16 %v14480_v16, %v14440_v42  ;;  %v8513_v15 = vpack.i.bf16 %v3615_v44, %v3614_v59  ;;  %v18518_v42 = vld [vmem:[#allocation74_spill] sm:$0xff]  ;;  %v4131_v41 = vld [vmem:[#allocation3 + $0x46] sm:$0xff] }
 0x56e   :  { %3539 = vst [vmem:[#allocation3 + $0x88] sm:$0xff] %v3496_v58  ;;  %v7877_v45 = vunpack.c.l.bf16 %v8251_v51  ;;  %v7958_v10 = vunpack.c.h.bf16 %v18515_v8  ;;  %v3389_v29 = vsel %vm3350_vm4, %v3386_v18, %v3388_v9  ;;  %v7878_v20 = vunpack.c.h.bf16 %v8251_v51  ;;  %v3958_v8 = vld [vmem:[#allocation3 + $0x3d] sm:$0xff]  ;;  %v4303_v18 = vld [vmem:[#allocation3 + $0x47] sm:$0xff]  ;;  %v18519_v58 = vld [vmem:[#allocation66_spill] sm:$0xff] }
 0x56f   :  { %v3391_v61 = vsel %vm3350_vm4, %v3388_v9, %v3390_v54  ;;  %v7961_v13 = vunpack.c.l.bf16 %v18517_v57  ;;  %v3497_v46 = vmax.f32 %v3068_v22, %v3389_v29  ;;  %v8038_v2 = vunpack.c.h.bf16 %v18516_v31  ;;  %v8252_v22 = vld [vmem:[#allocation2 + $0x58] sm:$0xff]  }
 0x570   :  { %v3498_v34 = vmax.f32 %v3069_v37, %v3391_v61  ;;  %v2963_v25 = vrot.slane %v7958_v10, 2  ;;  %v8041_v16 = vunpack.c.l.bf16 %v18518_v42  ;;  %v3180_v3 = vsel %vm2921_vm3, %v14485_v50, %v3179_v26  ;;  %v4302_v50 = vld [vmem:[#allocation3 + $0x3f] sm:$0xff]  ;;  %v14559_v37 = vld [vmem:[#allocation3 + $0x52] sm:$0xff] }
 0x571   :  { %8509 = vrot.lane.b32.xlu2 %v8508_v63, %s9292_s21  ;;  %v14532_v32 = vrot.slane %v7961_v13, 2  ;;  %v3182_v60 = vsel %vm2921_vm3, %v3179_v26, %v14518_v27  ;;  %v8126_v36 = vunpack.c.h.bf16 %v14319_v7  ;;  %3540 = vst [vmem:[#allocation3 + $0x90] sm:$0xff] %v3497_v46  ;;  %v3285_v0 = vmax.f32 %v8038_v2, %v3180_v3  ;;  %v14557_v63 = vld [vmem:[#allocation3 + $0x4a] sm:$0xff]  ;;  %v18520_v29 = vld [vmem:[#allocation75_spill] sm:$0xff] }
 0x572   :  { %v2964_v48 = vsel %vm2921_vm3, %v2961_v17, %v2963_v25  ;;  %3541 = vst [vmem:[#allocation3 + $0x98] sm:$0xff] %v3498_v34  ;;  %v14543_v4 = vmax.f32 %v8041_v16, %v3182_v60  ;;  %v8129_v7 = vunpack.c.l.bf16 %v14321_v23  ;;  %v3183_v53 = vrot.slane %v8125_v33, 2  ;;  %v4608_v16 = vld [vmem:[#allocation3 + $0x53] sm:$0xff] }
 0x573   :  { %v2966_v35 = vsel %vm2921_vm3, %v2963_v25, %v14532_v32  ;;  %v3070_v31 = vmax.f32 %v7877_v45, %v2964_v48  ;;  %v3392_v39 = vrot.slane %v3285_v0, 4  ;;  %v3185_v11 = vrot.slane %v8126_v36, 2  ;;  %v4780_v45 = vld [vmem:[#allocation3 + $0x54] sm:$0xff] }
 0x574   :  { %8519 = vrot.lane.b32.xlu1 %v8518_v12, %s9290_s19  ;;  %8514 = vrot.lane.b32.xlu0 %v8513_v15, %s9287_s3  ;;  %v3071_v21 = vmax.f32 %v7878_v20, %v2966_v35  ;;  %v3394_v17 = vrot.slane %v14543_v4, 4  ;;  %v8523_v28 = vpack.i.bf16 %v3959_v14, %v3958_v8  ;;  %v7962_v40 = vunpack.c.h.bf16 %v18517_v57  ;;  %v4779_v15 = vld [vmem:[#allocation3 + $0x4c] sm:$0xff]  ;;  %v18521_v0 = vld [vmem:[#allocation67_spill] sm:$0xff] }
 0x575   :  { %v3393_v19 = vsel %vm3350_vm4, %v3390_v54, %v3392_v39  ;;  %v8533_v43 = vpack.i.bf16 %v4303_v18, %v4302_v50  ;;  %v7965_v38 = vunpack.c.l.bf16 %v18519_v58  ;;  %v8130_v33 = vunpack.c.h.bf16 %v14321_v23  ;;  %v3616_v18 = vld [vmem:[#allocation3 + $0x41] sm:$0xff] }
 0x576   :  { %v3395_v59 = vsel %vm3350_vm4, %v3392_v39, %v3394_v17  ;;  %v3499_v44 = vmax.f32 %v3070_v31, %v3393_v19  ;;  %v8528_v51 = vpack.i.bf16 %v4131_v41, %v4130_v55  ;;  %v8133_v49 = vunpack.c.l.bf16 %v14323_v52  ;;  %v8253_v31 = vld [vmem:[#allocation2 + $0x60] sm:$0xff]   ;;  %v3960_v41 = vld [vmem:[#allocation3 + $0x4d] sm:$0xff] }
 0x577   :  { %v3500_v26 = vmax.f32 %v3071_v21, %v3395_v59  ;;  %v2967_v9 = vrot.slane %v7962_v40, 2  ;;  %v3184_v23 = vsel %vm2921_vm3, %v14518_v27, %v3183_v53  ;;  %v3186_v54 = vsel %vm2921_vm3, %v3183_v53, %v3185_v11  ;;  %v4607_v27 = vld [vmem:[#allocation3 + $0x4b] sm:$0xff] }
 0x578   :  { %3542 = vst [vmem:[#allocation3 + $0xa0] sm:$0xff] %v3499_v44  ;;  %v3187_v12 = vrot.slane %v8129_v7, 2  ;;  %v8042_v10 = vunpack.c.h.bf16 %v18518_v42  ;;  %v8045_v61 = vunpack.c.l.bf16 %v18520_v29  ;;  %v2969_v20 = vrot.slane %v7965_v38, 2 }
 0x579   :  { %8524 = vrot.lane.b32.xlu2 %v8523_v28, %s9288_s4  ;;  %3543 = vst [vmem:[#allocation3 + $0xa8] sm:$0xff] %v3500_v26  ;;  %v8134_v57 = vunpack.c.h.bf16 %v14323_v52  ;;  %v3189_v13 = vrot.slane %v8130_v33, 2  ;;  %v7881_v46 = vunpack.c.l.bf16 %v8252_v22  ;;  %v7882_v34 = vunpack.c.h.bf16 %v8252_v22  ;;  %v3961_v28 = vld [vmem:[#allocation3 + $0x55] sm:$0xff]  ;;  %v18522_v26 = vld [vmem:[#allocation76_spill] sm:$0xff] }
 0x57a   :  { %v3191_v2 = vrot.slane %v8133_v49, 2  ;;  %v8538_v25 = vpack.i.bf16 %v14559_v37, %v14557_v63  ;;  %v3287_v3 = vmax.f32 %v8042_v10, %v3184_v23  ;;  %v3288_v60 = vmax.f32 %v8045_v61, %v3186_v54 }
 0x57b   :  { %v8548_v36 = vpack.i.bf16 %v4780_v45, %v4779_v15  ;;  %v2968_v42 = vsel %vm2921_vm3, %v14532_v32, %v2967_v9  ;;  %v7966_v48 = vunpack.c.h.bf16 %v18519_v58  ;;  %v7969_v8 = vunpack.c.l.bf16 %v18521_v0  ;;  %v3617_v32 = vld [vmem:[#allocation3 + $0x49] sm:$0xff] }
 0x57c   :  { %8534 = vrot.lane.b32.xlu1 %v8533_v43, %s9291_s20  ;;  %8529 = vrot.lane.b32.xlu0 %v8528_v51, %s9289_s18  ;;  %v2970_v52 = vsel %vm2921_vm3, %v2967_v9, %v2969_v20  ;;  %v3396_v14 = vrot.slane %v3287_v3, 4  ;;  %v3398_v35 = vrot.slane %v3288_v60, 4  ;;  %v3188_v50 = vsel %vm2921_vm3, %v3185_v11, %v3187_v12  ;;  %v8254_v58 = vld [vmem:[#allocation2 + $0x68] sm:$0xff]   ;;  %v7366_v60 = vld [vmem:[%s16792_s5 + $0x38] sm:$0xff] }
 0x57d   :  { %v8543_v21 = vpack.i.bf16 %v4608_v16, %v4607_v27  ;;  %v3072_v39 = vmax.f32 %v7881_v46, %v2968_v42  ;;  %v3073_v7 = vmax.f32 %v7882_v34, %v2970_v52  ;;  %v8046_v53 = vunpack.c.h.bf16 %v18520_v29  ;;  %v2834_v52 = vld [vmem:[#allocation2 + $0x2a0] sm:$0xf]  ;;  %5035 = vmatpush.bf16.msrb.mxu1 %v7366_v60 }
 0x57e   :  { %v14577_v55 = vrot.slane %v8134_v57, 2  ;;  %v2971_v19 = vrot.slane %v7966_v48, 2  ;;  %v2973_v40 = vrot.slane %v7969_v8, 2  ;;  %v7885_v11 = vunpack.c.l.bf16 %v8253_v31  ;;  %v18523_v57 = vld [vmem:[#allocation68_spill] sm:$0xff] }
 0x57f   :  { %v7886_v43 = vunpack.c.h.bf16 %v8253_v31  ;;  %v3190_v59 = vsel %vm2921_vm3, %v3187_v12, %v3189_v13  ;;  %v3289_v44 = vmax.f32 %v8046_v53, %v3188_v50  ;;  %v8558_v38 = vpack.i.bf16 %v14557_v63, %v14482_v56  ;;  %v7365_v31 = vld [vmem:[%s16792_s5 + $0x30] sm:$0xff] }
 0x580   :  { %v3397_v33 = vsel %vm3350_vm4, %v3394_v17, %v3396_v14  ;;  %v3399_v51 = vsel %vm3350_vm4, %v3396_v14, %v3398_v35  ;;  %v8049_v49 = vunpack.c.l.bf16 %v18522_v26  ;;  %v8553_v22 = vpack.i.bf16 %v3617_v32, %v3616_v18  ;;  %v4132_v14 = vld [vmem:[#allocation3 + $0x4e] sm:$0xff] }
 0x581   :  { %8539 = vrot.lane.b32.xlu2 %v8538_v25, %s9286_s28  ;;  %v8563_v9 = vpack.i.bf16 %v3961_v28, %v3960_v41  ;;  %v3501_v23 = vmax.f32 %v3072_v39, %v3397_v33  ;;  %v3502_v54 = vmax.f32 %v3073_v7, %v3399_v51  ;;  %v2972_v15 = vsel %vm2921_vm3, %v2969_v20, %v2971_v19  ;;  %v18524_v20 = vld [vmem:[#allocation77_spill] sm:$0xff]  ;;  %v14618_v39 = vld [vmem:[#allocation3 + $0x5a] sm:$0xff]  ;;  %v14620_v7 = vld [vmem:[#allocation3 + $0x62] sm:$0xff] }
 0x582   :  { %v2974_v12 = vsel %vm2921_vm3, %v2971_v19, %v2973_v40  ;;  %v3290_v45 = vmax.f32 %v8049_v49, %v3190_v59  ;;  %v7889_v10 = vunpack.c.l.bf16 %v8254_v58  ;;  %v3074_v56 = vmax.f32 %v7885_v11, %v2972_v15  ;;  %v4304_v41 = vld [vmem:[#allocation3 + $0x4f] sm:$0xff]  ;;  %v4305_v28 = vld [vmem:[#allocation3 + $0x57] sm:$0xff]  ;;  %5036 = vmatpush.bf16.msrb.mxu1 %v7365_v31 }
 0x583   :  { %3544 = vst [vmem:[#allocation3 + $0xb0] sm:$0xff] %v3501_v23  ;;  %v3075_v63 = vmax.f32 %v7886_v43, %v2974_v12  ;;  %v3400_v4 = vrot.slane %v3289_v44, 4  ;;  %v7890_v29 = vunpack.c.h.bf16 %v8254_v58  ;;  %v7970_v61 = vunpack.c.h.bf16 %v18521_v0  ;;  %v9241_v58 = vld [vmem:[#allocation2 + $0x118] sm:$0xff]  ;;  %v14638_v12 = vpop.permute.xlu1 %8389 }
 0x584   :  { %8549 = vrot.lane.b32.xlu1 %v8548_v36, %s9292_s21  ;;  %8544 = vrot.lane.b32.xlu0 %v8543_v21, %s9285_s27  ;;  %3545 = vst [vmem:[#allocation3 + $0xb8] sm:$0xff] %v3502_v54  ;;  %v3402_v17 = vrot.slane %v3290_v45, 4  ;;  %v7973_v46 = vunpack.c.l.bf16 %v18523_v57  ;;  %v8050_v34 = vunpack.c.h.bf16 %v18522_v26  ;;  %v8053_v27 = vunpack.c.l.bf16 %v18524_v20  ;;  %v4133_v21 = vld [vmem:[#allocation3 + $0x56] sm:$0xff]  ;;  %v8255_v54 = vld [vmem:[#allocation2 + $0x70] sm:$0xff]   ;;  %v7364_v45 = vld [vmem:[%s16792_s5 + $0x28] sm:$0xff]  ;;  %v14645_v57 = vpop.permute.xlu0 %8384 }
 0x585   :  { %v3401_v25 = vsel %vm3350_vm4, %v3398_v35, %v3400_v4  ;;  %v3192_v16 = vsel %vm2921_vm3, %v3189_v13, %v3191_v2  ;;  %v3194_v3 = vsel %vm2921_vm3, %v3191_v2, %v14577_v55  ;;  %v2975_v48 = vrot.slane %v7970_v61, 2  ;;  %v14610_v35 = vpop.permute.xlu2 %8414  ;;  %v14626_v33 = vld [vmem:[#allocation2 + $0x1f8] sm:$0x7] }
 0x586   :  { %v3403_v36 = vsel %vm3350_vm4, %v3400_v4, %v3402_v17  ;;  %v3503_v42 = vmax.f32 %v3074_v56, %v3401_v25  ;;  %v14606_v0 = vrot.slane %v7973_v46, 2  ;;  %v8137_v8 = vunpack.c.l.bf16 %v14327_v30  ;;  %v3618_v61 = vld [vmem:[#allocation3 + $0x51] sm:$0xff]  ;;  %v3619_v25 = vld [vmem:[#allocation3 + $0x59] sm:$0xff]  ;;  %5037 = vmatpush.bf16.msrb.mxu1 %v7364_v45 }
 0x587   :  { %v3504_v13 = vmax.f32 %v3075_v63, %v3403_v36  ;;  %v3291_v2 = vmax.f32 %v8050_v34, %v3192_v16  ;;  %v14615_v50 = vmax.f32 %v8053_v27, %v3194_v3  ;;  %v8138_v18 = vunpack.c.h.bf16 %v14327_v30  ;;  %v9242_v63 = vld [vmem:[#allocation2 + $0x120] sm:$0xff]  ;;  %v4782_v16 = vld [vmem:[#allocation3 + $0x64] sm:$0xff] }
 0x588   :  { %3546 = vst [vmem:[#allocation3 + $0xc0] sm:$0xff] %v3503_v42  ;;  %v2976_v53 = vsel %vm2921_vm3, %v2973_v40, %v2975_v48  ;;  %v2978_v32 = vsel %vm2921_vm3, %v2975_v48, %v14606_v0  ;;  %v2877_v44 = vunpack.c.l.bf16 %v2834_v52  ;;  %v3195_v30 = vrot.slane %v8137_v8, 2  ;;  %v4781_v27 = vld [vmem:[#allocation3 + $0x5c] sm:$0xff] }
 0x589   :  { %8554 = vrot.lane.b32.xlu2 %v8553_v22, %s9287_s3  ;;  %3547 = vst [vmem:[#allocation3 + $0xc8] sm:$0xff] %v3504_v13  ;;  %v3076_v19 = vmax.f32 %v7889_v10, %v2976_v53  ;;  %v3077_v11 = vmax.f32 %v7890_v29, %v2978_v32  ;;  %v3404_v43 = vrot.slane %v3291_v2, 4  ;;  %v3406_v59 = vrot.slane %v14615_v50, 4  ;;  %v7363_v13 = vld [vmem:[%s16792_s5 + $0x20] sm:$0xff] }
 0x58a   :  { %v8568_v51 = vpack.i.bf16 %v4133_v21, %v4132_v14  ;;  %v8578_v40 = vpack.i.bf16 %v14620_v7, %v14618_v39  ;;  %v8141_v22 = vunpack.c.l.bf16 %v14329_v24  ;;  %v8573_v23 = vpack.i.bf16 %v4305_v28, %v4304_v41  ;;  %v8256_v21 = vld [vmem:[#allocation2 + $0x78] sm:$0xff]   ;;  %5038 = vmatpush.bf16.msrb.mxu1 %v7363_v13 }
 0x58b   :  { %v3405_v26 = vsel %vm3350_vm4, %v3402_v17, %v3404_v43  ;;  %v3407_v49 = vsel %vm3350_vm4, %v3404_v43, %v3406_v59  ;;  %v3197_v15 = vrot.slane %v8138_v18, 2  ;;  %v7977_v4 = vunpack.c.l.bf16 %v9242_v63  ;;  %v4610_v17 = vld [vmem:[#allocation3 + $0x63] sm:$0xff] }
 0x58c   :  { %8564 = vrot.lane.b32.xlu1 %v8563_v9, %s9288_s4  ;;  %8559 = vrot.lane.b32.xlu0 %v8558_v38, %s9290_s19  ;;  %v7974_v38 = vunpack.c.h.bf16 %v9241_v58  ;;  %v8142_v9 = vunpack.c.h.bf16 %v14329_v24  ;;  %v3505_v10 = vmax.f32 %v3076_v19, %v3405_v26  ;;  %v3506_v56 = vmax.f32 %v3077_v11, %v3407_v49  ;;  %v4609_v24 = vld [vmem:[#allocation3 + $0x5b] sm:$0xff]  ;;  %v14671_v58 = vld [vmem:[#allocation2 + $0x128] sm:$0xff] }
 0x58d   :  { %v2791_v29 = vunpack.c.l.bf16 %v14626_v33  ;;  %v14647_v34 = vrot.slane %v2877_v44, 2  ;;  %v7893_v3 = vunpack.c.l.bf16 %v8255_v54  ;;  %v14649_v60 = vrot.slane %v7977_v4, 2  ;;  %v14660_v14 = vpop.permute.xlu2 %8419  ;;  %v9244_v26 = vld [vmem:[#allocation2 + $0x1c8] sm:$0xff]  ;;  %v7361_v33 = vld [vmem:[%s16792_s5 + $0x10] sm:$0xff] }
 0x58e   :  { %v2979_v46 = vrot.slane %v7974_v38, 2  ;;  %3548 = vst [vmem:[#allocation3 + $0xd0] sm:$0xff] %v3505_v10  ;;  %v3196_v36 = vsel %vm2921_vm3, %v14577_v55, %v3195_v30  ;;  %v8145_v42 = vunpack.c.l.bf16 %v14333_v1  ;;  %v8146_v48 = vunpack.c.h.bf16 %v14333_v1  ;;  %v14674_v38 = vld [vmem:[#allocation2 + $0x150] sm:$0x3]  ;;  %v3962_v4 = vld [vmem:[#allocation3 + $0x5d] sm:$0xff] }
 0x58f   :  { %v3199_v8 = vrot.slane %v8141_v22, 2  ;;  %3549 = vst [vmem:[#allocation3 + $0xd8] sm:$0xff] %v3506_v56  ;;  %v7894_v2 = vunpack.c.h.bf16 %v8255_v54  ;;  %v14658_v52 = vrot.slane %v8142_v9, 2  ;;  %v8054_v31 = vunpack.c.h.bf16 %v18524_v20  ;;  %v4134_v9 = vld [vmem:[#allocation3 + $0x5e] sm:$0xff]  ;;  %v9245_v54 = vld [vmem:[#allocation2 + $0x1d0] sm:$0xff] }
 0x590   :  { %v8057_v18 = vunpack.c.l.bf16 %v14282_v5  ;;  %v3198_v55 = vsel %vm2921_vm3, %v3195_v30, %v3197_v15  ;;  %v8583_v53 = vpack.i.bf16 %v4610_v17, %v4609_v24  ;;  %v8593_v1 = vpack.i.bf16 %v3619_v25, %v3618_v61  ;;  %v3963_v24 = vld [vmem:[#allocation3 + $0x65] sm:$0xff]  ;;  %v14688_v17 = vpop.permute.xlu1 %8404 }
 0x591   :  { %8569 = vrot.lane.b32.xlu2 %v8568_v51, %s9289_s18  ;;  %v8588_v32 = vpack.i.bf16 %v4782_v16, %v4781_v27  ;;  %v2980_v41 = vsel %vm2921_vm3, %v14606_v0, %v2979_v46  ;;  %v2982_v28 = vsel %vm2921_vm3, %v2979_v46, %v14649_v60  ;;  %v3293_v11 = vmax.f32 %v8054_v31, %v3196_v36  ;;  %v7362_v0 = vld [vmem:[%s16792_s5 + $0x18] sm:$0xff]  ;;  %v14708_v31 = vld [vmem:[#allocation2 + $0x80] sm:$0xff]  }
 0x592   :  { %v3078_v19 = vmax.f32 %v7893_v3, %v2980_v41  ;;  %v14669_v43 = vmax.f32 %v8057_v18, %v3198_v55  ;;  %v3079_v20 = vmax.f32 %v7894_v2, %v2982_v28  ;;  %v7897_v44 = vunpack.c.l.bf16 %v8256_v21  ;;  %5039 = vmatpush.bf16.msrb.mxu1 %v7362_v0  ;;  %v14700_v3 = vpop.permute.xlu0 %8394  ;;  %v7360_v28 = vld [vmem:[%s16792_s5 + $0x8] sm:$0xff] }
 0x593   :  { %v7978_v5 = vunpack.c.h.bf16 %v9242_v63  ;;  %v7981_v30 = vunpack.c.l.bf16 %v14671_v58  ;;  %v3408_v51 = vrot.slane %v3293_v11, 4  ;;  %v8058_v49 = vunpack.c.h.bf16 %v9244_v26  ;;  %v14730_v11 = vld [vmem:[#allocation2 + $0x130] sm:$0xff] }
 0x594   :  { %8579 = vrot.lane.b32.xlu1 %v8578_v40, %s9286_s28  ;;  %8574 = vrot.lane.b32.xlu0 %v8573_v23, %s9291_s20  ;;  %v3410_v40 = vrot.slane %v14669_v43, 4  ;;  %v3200_v22 = vsel %vm2921_vm3, %v3197_v15, %v3199_v8  ;;  %v4135_v23 = vld [vmem:[#allocation3 + $0x66] sm:$0xff]  ;;  %v8061_v45 = vunpack.c.l.bf16 %v9245_v54  ;;  %v3202_v63 = vsel %vm2921_vm3, %v3199_v8, %v14658_v52 }
 0x595   :  { %v2983_v10 = vrot.slane %v7978_v5, 2  ;;  %v14684_v56 = vrot.slane %v7981_v30, 2  ;;  %v3409_v15 = vsel %vm3350_vm4, %v3406_v59, %v3408_v51  ;;  %v7898_v46 = vunpack.c.h.bf16 %v8256_v21  ;;  %v3566_v26 = vld [vmem:[#allocation3 + $0x8] sm:$0xff] }
 0x596   :  { %v3411_v61 = vsel %vm3350_vm4, %v3408_v51, %v3410_v40  ;;  %v3295_v25 = vmax.f32 %v8058_v49, %v3200_v22  ;;  %v14697_v27 = vmax.f32 %v2791_v29, %v14647_v34  ;;  %v2705_v16 = vunpack.c.l.bf16 %v14674_v38  ;;  %5040 = vmatpush.bf16.msrb.mxu1 %v7361_v33  ;;  %v4306_v51 = vld [vmem:[#allocation3 + $0x5f] sm:$0xff] }
 0x597   :  { %v3507_v36 = vmax.f32 %v3078_v19, %v3409_v15  ;;  %v14702_v8 = vmax.f32 %v8061_v45, %v3202_v63  ;;  %v3203_v13 = vrot.slane %v8145_v42, 2  ;;  %v14704_v50 = vrot.slane %v8146_v48, 2  ;;  %v14717_v48 = vpop.permute.xlu2 %8434  ;;  %v4612_v63 = vld [vmem:[#allocation3 + $0x73] sm:$0xff] }
 0x598   :  { %v8598_v59 = vpack.i.bf16 %v14618_v39, %v14559_v37  ;;  %v8608_v2 = vpack.i.bf16 %v4135_v23, %v4134_v9  ;;  %v8603_v18 = vpack.i.bf16 %v3963_v24, %v3962_v4  ;;  %v3508_v29 = vmax.f32 %v3079_v20, %v3411_v61 }
 0x599   :  { %8584 = vrot.lane.b32.xlu2 %v8583_v53, %s9285_s27  ;;  %3550 = vst [vmem:[#allocation3 + $0xe0] sm:$0xff] %v3507_v36  ;;  %v2984_v55 = vsel %vm2921_vm3, %v14649_v60, %v2983_v10  ;;  %v2986_v42 = vsel %vm2921_vm3, %v2983_v10, %v14684_v56  ;;  %v8397_v37 = vunpack.i.h.bf16 %v14700_v3  ;;  %v3412_v53 = vrot.slane %v3295_v25, 4  ;;  %v4611_v10 = vld [vmem:[#allocation3 + $0x6b] sm:$0xff] }
 0x59a   :  { %v3080_v39 = vmax.f32 %v7897_v44, %v2984_v55  ;;  %v3081_v21 = vmax.f32 %v7898_v46, %v2986_v42  ;;  %3551 = vst [vmem:[#allocation3 + $0xe8] sm:$0xff] %v3508_v29  ;;  %v7901_v41 = vunpack.c.l.bf16 %v14708_v31  ;;  %v7982_v60 = vunpack.c.h.bf16 %v14671_v58  ;;  %v14733_v44 = vld [vmem:[#allocation2 + $0x1d8] sm:$0xff]  ;;  %5041 = vmatpush.bf16.msrb.mxu1 %v7360_v28  ;;  %v3565_v46 = vld [vmem:[#allocation3] sm:$0xff]  ;;  %v14756_v25 = vld [vmem:[#allocation3 + $0x6a] sm:$0xff] }
 0x59b   :  { %v3413_v19 = vsel %vm3350_vm4, %v3410_v40, %v3412_v53  ;;  %v7985_v43 = vunpack.c.l.bf16 %v14730_v11  ;;  %v8062_v20 = vunpack.c.h.bf16 %v9245_v54  ;;  %v8065_v5 = vunpack.c.l.bf16 %v14733_v44  ;;  %v4307_v40 = vld [vmem:[#allocation3 + $0x67] sm:$0xff] }
 0x59c   :  { %8594 = vrot.lane.b32.xlu1 %v8593_v1, %s9287_s3  ;;  %8589 = vrot.lane.b32.xlu0 %v8588_v32, %s9292_s21  ;;  %v8396_v1 = vunpack.i.l.bf16 %v14700_v3  ;;  %v3414_v32 = vrot.slane %v14702_v8, 4  ;;  %v3509_v30 = vmax.f32 %v3080_v39, %v3413_v19  ;;  %v2987_v38 = vrot.slane %v7982_v60, 2  ;;  %v4783_v19 = vld [vmem:[#allocation3 + $0x6c] sm:$0xff] }
 0x59d   :  { %v3204_v0 = vsel %vm2921_vm3, %v14658_v52, %v3203_v13  ;;  %v14742_v22 = vrot.slane %v7985_v43, 2  ;;  %v3206_v9 = vsel %vm2921_vm3, %v3203_v13, %v14704_v50  ;;  %v3434_v54 = vrot.slane %v14697_v27, 4  ;;  %v7359_v52 = vld [vmem:[%s16792_s5] sm:$0xff]  ;;  %v4784_v43 = vld [vmem:[#allocation3 + $0x74] sm:$0xff] }
 0x59e   :  { %v3415_v58 = vsel %vm3350_vm4, %v3412_v53, %v3414_v32  ;;  %v3297_v23 = vmax.f32 %v8062_v20, %v3204_v0  ;;  %v14747_v45 = vrot.slane %v2705_v16, 2  ;;  %3552 = vst [vmem:[#allocation3 + $0xf0] sm:$0xff] %v3509_v30  ;;  %v7902_v4 = vunpack.c.h.bf16 %v14708_v31  ;;  %v14758_v16 = vld [vmem:[#allocation3 + $0x72] sm:$0xff]  ;;  %5042 = vmatpush.bf16.msrb.mxu1 %v7359_v52  ;;  %v8258_v52 = vld [vmem:[#allocation2 + $0x88] sm:$0xff]  }
 0x59f   :  { %v3510_v49 = vmax.f32 %v3081_v21, %v3415_v58  ;;  %v8149_v24 = vunpack.c.l.bf16 %v14335_v47  ;;  %v8150_v15 = vunpack.c.h.bf16 %v14335_v47  ;;  %v8153_v61 = vunpack.c.l.bf16 %v14337_v6  ;;  %v3621_v58 = vld [vmem:[#allocation3 + $0x69] sm:$0xff] }
 0x5a0   :  { %v8410_v3 = vpop.permute.xlu1 %8409  ;;  %v14760_v36 = vmax.f32 %v8065_v5, %v3206_v9  ;;  %v8613_v13 = vpack.i.bf16 %v4307_v40, %v4306_v51  ;;  %v2988_v31 = vsel %vm2921_vm3, %v14684_v56, %v2987_v38  ;;  %v2990_v47 = vsel %vm2921_vm3, %v2987_v38, %v14742_v22  ;;  %v14772_v56 = vpop.permute.xlu2 %8449 }
 0x5a1   :  { %8599 = vrot.lane.b32.xlu2 %v8598_v59, %s9290_s19  ;;  %3553 = vst [vmem:[#allocation3 + $0xf8] sm:$0xff] %v3510_v49  ;;  %v3738_v59 = vadd.f32 %v8397_v37, %v3566_v26  ;;  %v3082_v33 = vmax.f32 %v7901_v41, %v2988_v31  ;;  %v3416_v29 = vrot.slane %v3297_v23, 4  ;;  %v8618_v55 = vpack.i.bf16 %v14758_v16, %v14756_v25  ;;  %v3620_v41 = vld [vmem:[#allocation3 + $0x61] sm:$0xff] }
 0x5a2   :  { %v8412_v42 = vunpack.i.h.bf16 %v8410_v3  ;;  %v8411_v39 = vunpack.i.l.bf16 %v8410_v3  ;;  %v3083_v21 = vmax.f32 %v7902_v4, %v2990_v47  ;;  %v8154_v53 = vunpack.c.h.bf16 %v14337_v6  ;;  %v14777_v5 = vpop.permute.xlu0 %8399  ;;  %v14794_v4 = vld [vmem:[#allocation2 + $0x138] sm:$0xff] }
 0x5a3   :  { %v8157_v37 = vunpack.c.l.bf16 %v14339_v62  ;;  %v3418_v60 = vrot.slane %v14760_v36, 4  ;;  %v3207_v28 = vrot.slane %v8149_v24, 2  ;;  %v3417_v30 = vsel %vm3350_vm4, %v3414_v32, %v3416_v29  ;;  %v4309_v3 = vld [vmem:[#allocation3 + $0x77] sm:$0xff] }
 0x5a4   :  { %8609 = vrot.lane.b32.xlu1 %v8608_v2, %s9289_s18  ;;  %8604 = vrot.lane.b32.xlu0 %v8603_v18, %s9288_s4  ;;  %v3737_v2 = vadd.f32 %v8396_v1, %v3565_v46  ;;  %v8623_v18 = vpack.i.bf16 %v4612_v63, %v4611_v10  ;;  %v8158_v1 = vunpack.c.h.bf16 %v14339_v62  ;;  %v3910_v6 = vadd.f32 %v8412_v42, %v3738_v59  ;;  %v14790_v63 = vld [vmem:[#allocation3 + $0x6d] sm:$0xff]  ;;  %v3965_v46 = vld [vmem:[#allocation3 + $0x75] sm:$0xff] }
 0x5a5   :  { %v3209_v38 = vrot.slane %v8150_v15, 2  ;;  %v14782_v0 = vrot.slane %v8153_v61, 2  ;;  %v3419_v51 = vsel %vm3350_vm4, %v3416_v29, %v3418_v60  ;;  %v3511_v40 = vmax.f32 %v3082_v33, %v3417_v30  ;;  %v4137_v59 = vld [vmem:[#allocation3 + $0x76] sm:$0xff]  ;;  %v14824_v30 = vld [vmem:[#allocation3 + $0x82] sm:$0xff] }
 0x5a6   :  { %v3909_v20 = vadd.f32 %v8411_v39, %v3737_v2  ;;  %v8417_v26 = vunpack.i.h.bf16 %v14610_v35  ;;  %v8416_v49 = vunpack.i.l.bf16 %v14610_v35  ;;  %v3512_v9 = vmax.f32 %v3083_v21, %v3419_v51  ;;  %v14797_v35 = vld [vmem:[#allocation3 + $0x6f] sm:$0xff]  ;;  %v14897_v62 = vld [vmem:[#allocation3 + $0x86] sm:$0xff] }
 0x5a7   :  { %v7986_v23 = vunpack.c.h.bf16 %v14730_v11  ;;  %v8628_v10 = vpack.i.bf16 %v4784_v43, %v4783_v19  ;;  %v8638_v8 = vpack.i.bf16 %v14756_v25, %v14620_v7  ;;  %v8633_v32 = vpack.i.bf16 %v3621_v58, %v3620_v41  ;;  %3554 = vst [vmem:[#allocation3 + $0x100] sm:$0xff] %v3511_v40  ;;  %v4136_v25 = vld [vmem:[#allocation3 + $0x6e] sm:$0xff]  ;;  %v14822_v58 = vld [vmem:[#allocation3 + $0x7a] sm:$0xff] }
 0x5a8   :  { %v7989_v24 = vunpack.c.l.bf16 %v14794_v4  ;;  %v4081_v15 = vadd.f32 %v8416_v49, %v3909_v20  ;;  %v4082_v61 = vadd.f32 %v8417_v26, %v3910_v6  ;;  %3555 = vst [vmem:[#allocation3 + $0x108] sm:$0xff] %v3512_v9  ;;  %v8066_v11 = vunpack.c.h.bf16 %v14733_v44 }
 0x5a9   :  { %8614 = vrot.lane.b32.xlu2 %v8613_v13, %s9291_s20  ;;  %v14800_v13 = vld [vmem:[#allocation2 + $0x1e0] sm:$0xff]  ;;  %v2991_v2 = vrot.slane %v7986_v23, 2  ;;  %v3210_v47 = vsel %vm2921_vm3, %v3207_v28, %v3209_v38  ;;  %v7905_v33 = vunpack.c.l.bf16 %v8258_v52  ;;  %v7906_v29 = vunpack.c.h.bf16 %v8258_v52 }
 0x5aa   :  { %v8069_v7 = vunpack.c.l.bf16 %v14800_v13  ;;  %v14803_v31 = vrot.slane %v7989_v24, 2  ;;  %v14810_v44 = vrot.slane %v8154_v53, 2  ;;  %v8421_v39 = vunpack.i.l.bf16 %v14660_v14  ;;  %v14836_v52 = vld [vmem:[#allocation2 + $0x140] sm:$0xff] }
 0x5ab   :  { %v8643_v21 = vpack.i.bf16 %v3965_v46, %v14790_v63  ;;  %v8653_v41 = vpack.i.bf16 %v4309_v3, %v14797_v35  ;;  %v2992_v51 = vsel %vm2921_vm3, %v14742_v22, %v2991_v2  ;;  %v3212_v40 = vsel %vm2921_vm3, %v3209_v38, %v14782_v0 }
 0x5ac   :  { %8624 = vrot.lane.b32.xlu1 %v8623_v18, %s9285_s27  ;;  %8619 = vrot.lane.b32.xlu0 %v8618_v55, %s9286_s28  ;;  %v3208_v18 = vsel %vm2921_vm3, %v14704_v50, %v3207_v28  ;;  %v14808_v42 = vmax.f32 %v8069_v7, %v3210_v47  ;;  %v8422_v50 = vunpack.i.h.bf16 %v14660_v14  ;;  %v8648_v28 = vpack.i.bf16 %v4137_v59, %v4136_v25  ;;  %v4786_v7 = vld [vmem:[#allocation3 + $0x84] sm:$0xff] }
 0x5ad   :  { %v3299_v55 = vmax.f32 %v8066_v11, %v3208_v18  ;;  %v4253_v6 = vadd.f32 %v8421_v39, %v4081_v15  ;;  %v2994_v14 = vsel %vm2921_vm3, %v2991_v2, %v14803_v31  ;;  %v3084_v9 = vmax.f32 %v7905_v33, %v2992_v51  ;;  %v4785_v11 = vld [vmem:[#allocation3 + $0x7c] sm:$0xff] }
 0x5ae   :  { %v3422_v43 = vrot.slane %v14808_v42, 4  ;;  %v4254_v49 = vadd.f32 %v8422_v50, %v4082_v61  ;;  %v3085_v23 = vmax.f32 %v7906_v29, %v2994_v14  ;;  %v7993_v22 = vunpack.c.l.bf16 %v14836_v52 }
 0x5af   :  { %v3420_v19 = vrot.slane %v3299_v55, 4  ;;  %v8437_v24 = vunpack.i.h.bf16 %v14717_v48  ;;  %v8436_v38 = vunpack.i.l.bf16 %v14717_v48  ;;  %v8658_v15 = vpack.i.bf16 %v14824_v30, %v14822_v58 }
 0x5b0   :  { %v8402_v3 = vunpack.i.h.bf16 %v14777_v5  ;;  %v8070_v47 = vunpack.c.h.bf16 %v14800_v13  ;;  %v14850_v33 = vrot.slane %v7993_v22, 2  ;;  %v8401_v29 = vunpack.i.l.bf16 %v14777_v5 }
 0x5b1   :  { %8629 = vrot.lane.b32.xlu2 %v8628_v10, %s9292_s21  ;;  %v7990_v10 = vunpack.c.h.bf16 %v14794_v4  ;;  %v3423_v4 = vsel %vm3350_vm4, %v3420_v19, %v3422_v43  ;;  %v3214_v50 = vsel %vm2921_vm3, %v14782_v0, %v14810_v44  ;;  %v3568_v0 = vld [vmem:[#allocation3 + $0x18] sm:$0xff]  ;;  %v3215_v42 = vrot.slane %v8157_v37, 2 }
 0x5b2   :  { %v3514_v59 = vmax.f32 %v3085_v23, %v3423_v4  ;;  %v3740_v4 = vadd.f32 %v8402_v3, %v3568_v0  ;;  %v14895_v37 = vld [vmem:[#allocation3 + $0x7e] sm:$0xff]  ;;  %v14900_v0 = vld [vmem:[#allocation2 + $0x1f0] sm:$0xff] }
 0x5b3   :  { %v14820_v53 = vpop.permute.xlu2 %8464  ;;  %v2995_v2 = vrot.slane %v7990_v10, 2 }
 0x5b4   :  { %8639 = vrot.lane.b32.xlu1 %v8638_v8, %s9290_s19  ;;  %8634 = vrot.lane.b32.xlu0 %v8633_v32, %s9287_s3  ;;  %v3421_v32 = vsel %vm3350_vm4, %v3418_v60, %v3420_v19  ;;  %v8259_v60 = vld [vmem:[#allocation2 + $0x90] sm:$0xff]   ;;  %3557 = vst [vmem:[#allocation3 + $0x118] sm:$0xff] %v3514_v59  ;;  %v8451_v59 = vunpack.i.l.bf16 %v14772_v56 }
 0x5b5   :  { %v3513_v25 = vmax.f32 %v3084_v9, %v3421_v32  ;;  %v7909_v55 = vunpack.c.l.bf16 %v8259_v60  ;;  %v7910_v39 = vunpack.c.h.bf16 %v8259_v60  ;;  %v2996_v5 = vsel %vm2921_vm3, %v14803_v31, %v2995_v2 }
 0x5b6   :  { %v8430_v20 = vpop.permute.xlu1 %8429  ;;  %v8425_v26 = vpop.permute.xlu0 %8424  ;;  %v2998_v32 = vsel %vm2921_vm3, %v2995_v2, %v14850_v33  ;;  %v3966_v2 = vld [vmem:[#allocation3 + $0x7d] sm:$0xff] }
 0x5b7   :  { %v8427_v63 = vunpack.i.h.bf16 %v8425_v26  ;;  %v8426_v8 = vunpack.i.l.bf16 %v8425_v26  ;;  %v8432_v61 = vunpack.i.h.bf16 %v8430_v20  ;;  %v8431_v46 = vunpack.i.l.bf16 %v8430_v20  ;;  %3556 = vst [vmem:[#allocation3 + $0x110] sm:$0xff] %v3513_v25 }
 0x5b8   :  { %v8668_v20 = vpack.i.bf16 %v4786_v7, %v4785_v11  ;;  %v3086_v31 = vmax.f32 %v7909_v55, %v2996_v5  ;;  %v3623_v7 = vld [vmem:[#allocation3 + $0x79] sm:$0xff] }
 0x5b9   :  { %v4425_v36 = vadd.f32 %v8426_v8, %v4253_v6  ;;  %v4426_v35 = vadd.f32 %v8427_v63, %v4254_v49  ;;  %8644 = vrot.lane.b32.xlu2 %v8643_v21, %s9288_s4  ;;  %v3567_v6 = vld [vmem:[#allocation3 + $0x10] sm:$0xff]  ;;  %v4613_v63 = vld [vmem:[#allocation3 + $0x7b] sm:$0xff]  ;;  %v4614_v8 = vld [vmem:[#allocation3 + $0x83] sm:$0xff] }
 0x5ba   :  { %v8663_v25 = vpack.i.bf16 %v4614_v8, %v4613_v63  ;;  %v14903_v8 = vld [vmem:[#allocation3 + $0x7f] sm:$0xff] }
 0x5bb   :  { %v4558_v48 = vadd.f32 %v8431_v46, %v4425_v36  ;;  %v4559_v18 = vadd.f32 %v8432_v61, %v4426_v35  ;;  %v14857_v21 = vpop.permute.xlu2 %8479  ;;  %v3739_v61 = vadd.f32 %v8401_v29, %v3567_v6  ;;  %v3622_v29 = vld [vmem:[#allocation3 + $0x71] sm:$0xff] }
 0x5bc   :  { %8654 = vrot.lane.b32.xlu1 %v8653_v41, %s9291_s20  ;;  %8649 = vrot.lane.b32.xlu0 %v8648_v28, %s9289_s18  ;;  %v14859_v41 = vld [vmem:[#allocation2 + $0x1e8] sm:$0xff]  ;;  %v3301_v28 = vmax.f32 %v8070_v47, %v3212_v40  ;;  %v3087_v40 = vmax.f32 %v7910_v39, %v2998_v32 }
 0x5bd   :  { %v8073_v13 = vunpack.c.l.bf16 %v14859_v41  ;;  %v4730_v49 = vadd.f32 %v8436_v38, %v4558_v48  ;;  %v4731_v9 = vadd.f32 %v8437_v24, %v4559_v18  ;;  %v8452_v24 = vunpack.i.h.bf16 %v14772_v56  ;;  %v3967_v48 = vld [vmem:[#allocation3 + $0x85] sm:$0xff] }
 0x5be   :  { %v8445_v19 = vpop.permute.xlu1 %8444  ;;  %v8440_v26 = vpop.permute.xlu0 %8439  ;;  %v3424_v35 = vrot.slane %v3301_v28, 4  ;;  %v14881_v39 = vld [vmem:[#allocation2 + $0x148] sm:$0xff] }
 0x5bf   :  { %v8447_v51 = vunpack.i.h.bf16 %v8445_v19  ;;  %v8446_v14 = vunpack.i.l.bf16 %v8445_v19  ;;  %v8442_v23 = vunpack.i.h.bf16 %v8440_v26  ;;  %v8441_v10 = vunpack.i.l.bf16 %v8440_v26 }
 0x5c0   :  { %v14866_v22 = vmax.f32 %v8073_v13, %v3214_v50  ;;  %v3425_v18 = vsel %vm3350_vm4, %v3422_v43, %v3424_v35  ;;  %v7997_v50 = vunpack.c.l.bf16 %v14881_v39  ;;  %v7998_v19 = vunpack.c.h.bf16 %v14881_v39 }
 0x5c1   :  { %v4902_v46 = vadd.f32 %v8441_v10, %v4730_v49  ;;  %v4903_v36 = vadd.f32 %v8442_v23, %v4731_v9  ;;  %v3911_v60 = vadd.f32 %v8446_v14, %v3739_v61  ;;  %v3912_v11 = vadd.f32 %v8447_v51, %v3740_v4  ;;  %8659 = vrot.lane.b32.xlu2 %v8658_v15, %s9286_s28 }
 0x5c2   :  { %v3426_v38 = vrot.slane %v14866_v22, 4  ;;  %v3515_v55 = vmax.f32 %v3086_v31, %v3425_v18  ;;  %v7994_v15 = vunpack.c.h.bf16 %v14836_v52  ;;  %v14889_v43 = vrot.slane %v8158_v1, 2  ;;  %v8260_v1 = vld [vmem:[#allocation2 + $0x98] sm:$0xff]  }
 0x5c3   :  { %v4945_v3 = vpack.c.bf16 %v4903_v36, %v4902_v46  ;;  %v8673_v13 = vpack.i.bf16 %v3623_v7, %v3622_v29  ;;  %v4083_v52 = vadd.f32 %v8451_v59, %v3911_v60  ;;  %v4084_v6 = vadd.f32 %v8452_v24, %v3912_v11  ;;  %v14915_v46 = vld [vmem:[#allocation3 + $0x89] sm:$0xff] }
 0x5c4   :  { %8669 = vrot.lane.b32.xlu1 %v8668_v20, %s9292_s21  ;;  %v3427_v47 = vsel %vm3350_vm4, %v3424_v35, %v3426_v38  ;;  %8664 = vrot.lane.b32.xlu0 %v8663_v25, %s9285_s27  ;;  %v14891_v20 = vpop.permute.xlu2 %8494  ;;  %v8683_v51 = vpack.i.bf16 %v3967_v48, %v3966_v2  ;;  %v8678_v14 = vpack.i.bf16 %v14822_v58, %v14758_v16  ;;  %v8074_v9 = vunpack.c.h.bf16 %v14859_v41  ;;  %v14905_v16 = vld [vmem:[#allocation3 + $0x87] sm:$0xff]  ;;  %v14913_v41 = vld [vmem:[#allocation3 + $0x92] sm:$0xff] }
 0x5c5   :  { %v3516_v56 = vmax.f32 %v3087_v40, %v3427_v47  ;;  %5043 = vmatmul.bf16.vlgmr.msrb.gmra.mxu1 %v4945_v3  ;;  %3558 = vst [vmem:[#allocation3 + $0x120] sm:$0xff] %v3515_v55  ;;  %v8077_v23 = vunpack.c.l.bf16 %v14900_v0  ;;  %v14907_v58 = vld [vmem:[#allocation3 + $0x81] sm:$0xff]  ;;  %v2999_v32 = vrot.slane %v7994_v15, 2  ;;  %v14909_v4 = vrot.slane %v7997_v50, 2  ;;  %v14911_v40 = vld [vmem:[#allocation3 + $0x8a] sm:$0xff] }
 0x5c6   :  { %v8460_v5 = vpop.permute.xlu1 %8459  ;;  %v8455_v28 = vpop.permute.xlu0 %8454  ;;  %v3216_v36 = vsel %vm2921_vm3, %v14810_v44, %v3215_v42  ;;  %v3218_v35 = vsel %vm2921_vm3, %v3215_v42, %v14889_v43  ;;  %v7913_v24 = vunpack.c.l.bf16 %v8260_v1  ;;  %v7914_v60 = vunpack.c.h.bf16 %v8260_v1 }
 0x5c7   :  { %v8457_v26 = vunpack.i.h.bf16 %v8455_v28  ;;  %v8456_v49 = vunpack.i.l.bf16 %v8455_v28  ;;  %3559 = vst [vmem:[#allocation3 + $0x128] sm:$0xff] %v3516_v56  ;;  %v8462_v10 = vunpack.i.h.bf16 %v8460_v5  ;;  %v8461_v63 = vunpack.i.l.bf16 %v8460_v5 }
 0x5c8   :  { %v3303_v11 = vmax.f32 %v8074_v9, %v3216_v36  ;;  %v14921_v7 = vmax.f32 %v8077_v23, %v3218_v35  ;;  %v8078_v25 = vunpack.c.h.bf16 %v14900_v0  ;;  %v8688_v2 = vpack.i.bf16 %v14897_v62, %v14895_v37 }
 0x5c9   :  { %v4255_v61 = vadd.f32 %v8456_v49, %v4083_v52  ;;  %v4256_v31 = vadd.f32 %v8457_v26, %v4084_v6  ;;  %8674 = vrot.lane.b32.xlu2 %v8673_v13, %s9287_s3  ;;  %v8467_v44 = vunpack.i.h.bf16 %v14820_v53  ;;  %v8698_v48 = vpack.i.bf16 %v14913_v41, %v14911_v40  ;;  %v2576_v49 = vld [vmem:[#allocation2 + $0xa8] sm:$0x1] }
 0x5ca   :  { %v8693_v18 = vpack.i.bf16 %v14905_v16, %v14903_v8  ;;  %v8713_v47 = vpack.i.bf16 %v14915_v46, %v14907_v58  ;;  %v8466_v29 = vunpack.i.l.bf16 %v14820_v53  ;;  %v3000_v15 = vsel %vm2921_vm3, %v14850_v33, %v2999_v32  ;;  %v4615_v16 = vld [vmem:[#allocation3 + $0x8b] sm:$0xff]  ;;  %v3969_v46 = vld [vmem:[#allocation3 + $0x95] sm:$0xff] }
 0x5cb   :  { %v4427_v59 = vadd.f32 %v8461_v63, %v4255_v61  ;;  %v4428_v3 = vadd.f32 %v8462_v10, %v4256_v31  ;;  %v3002_v50 = vsel %vm2921_vm3, %v2999_v32, %v14909_v4  ;;  %v3428_v42 = vrot.slane %v3303_v11, 4  ;;  %v8261_v63 = vld [vmem:[#allocation2 + $0xa0] sm:$0xff]   ;;  %v4616_v32 = vld [vmem:[#allocation3 + $0x93] sm:$0xff] }
 0x5cc   :  { %8684 = vrot.lane.b32.xlu1 %v8683_v51, %s9288_s4  ;;  %8679 = vrot.lane.b32.xlu0 %v8678_v14, %s9290_s19  ;;  %v14937_v55 = vpop.permute.xlu2 %8509  ;;  %v8407_v13 = vunpack.i.h.bf16 %v14688_v17  ;;  %v3088_v28 = vmax.f32 %v7913_v24, %v3000_v15  ;;  %v3089_v52 = vmax.f32 %v7914_v60, %v3002_v50  ;;  %v3430_v6 = vrot.slane %v14921_v7, 4  ;;  %v4787_v50 = vld [vmem:[#allocation3 + $0x8c] sm:$0xff] }
 0x5cd   :  { %v4560_v53 = vadd.f32 %v8466_v29, %v4427_v59  ;;  %v4561_v26 = vadd.f32 %v8467_v44, %v4428_v3  ;;  %v8406_v37 = vunpack.i.l.bf16 %v14688_v17  ;;  %v8482_v33 = vunpack.i.h.bf16 %v14857_v21  ;;  %v3968_v58 = vld [vmem:[#allocation3 + $0x8d] sm:$0xff] }
 0x5ce   :  { %v8475_v56 = vpop.permute.xlu1 %8474  ;;  %v8470_v5 = vpop.permute.xlu0 %8469  ;;  %v3220_v1 = vsel %vm2921_vm3, %v14889_v43, %v14647_v34  ;;  %v3429_v10 = vsel %vm3350_vm4, %v3426_v38, %v3428_v42  ;;  %v8481_v8 = vunpack.i.l.bf16 %v14857_v21  ;;  %v3431_v17 = vsel %vm3350_vm4, %v3428_v42, %v3430_v6  ;;  %v3570_v34 = vld [vmem:[#allocation3 + $0x28] sm:$0xff]  ;;  %v3569_v43 = vld [vmem:[#allocation3 + $0x20] sm:$0xff]  ;;  %v4788_v42 = vld [vmem:[#allocation3 + $0x94] sm:$0xff] }
 0x5cf   :  { %v8472_v51 = vunpack.i.h.bf16 %v8470_v5  ;;  %v8471_v14 = vunpack.i.l.bf16 %v8470_v5  ;;  %v8477_v62 = vunpack.i.h.bf16 %v8475_v56  ;;  %v8476_v9 = vunpack.i.l.bf16 %v8475_v56 }
 0x5d0   :  { %v3517_v61 = vmax.f32 %v3088_v28, %v3429_v10  ;;  %v3003_v31 = vrot.slane %v7998_v19, 2  ;;  %v2619_v36 = vunpack.c.l.bf16 %v2576_v49  ;;  %v3518_v35 = vmax.f32 %v3089_v52, %v3431_v17 }
 0x5d1   :  { %v4732_v0 = vadd.f32 %v8471_v14, %v4560_v53  ;;  %v4733_v23 = vadd.f32 %v8472_v51, %v4561_v26  ;;  %8689 = vrot.lane.b32.xlu2 %v8688_v2, %s9289_s18  ;;  %v3742_v24 = vadd.f32 %v8407_v13, %v3570_v34  ;;  %v3741_v21 = vadd.f32 %v8406_v37, %v3569_v43 }
 0x5d2   :  { %3560 = vst [vmem:[#allocation3 + $0x130] sm:$0xff] %v3517_v61  ;;  %v7917_v60 = vunpack.c.l.bf16 %v8261_v63  ;;  %v3305_v11 = vmax.f32 %v8078_v25, %v3220_v1  ;;  %v8703_v39 = vpack.i.bf16 %v4616_v32, %v4615_v16  ;;  %v3006_v3 = vsel %vm2921_vm3, %v3003_v31, %v14747_v45 }
 0x5d3   :  { %v4904_v22 = vadd.f32 %v8476_v9, %v4732_v0  ;;  %v4905_v38 = vadd.f32 %v8477_v62, %v4733_v23  ;;  %3561 = vst [vmem:[#allocation3 + $0x138] sm:$0xff] %v3518_v35  ;;  %v3092_v2 = vmax.f32 %v2619_v36, %v14747_v45  ;;  %v3914_v44 = vadd.f32 %v8482_v33, %v3742_v24  ;;  %v4140_v0 = vld [vmem:[#allocation3 + $0x8e] sm:$0xff]  ;;  %v4141_v23 = vld [vmem:[#allocation3 + $0x96] sm:$0xff] }
 0x5d4   :  { %8699 = vrot.lane.b32.xlu1 %v8698_v48, %s9286_s28  ;;  %8694 = vrot.lane.b32.xlu0 %v8693_v18, %s9291_s20  ;;  %v14960_v7 = vpop.permute.xlu2 %8524  ;;  %v3913_v48 = vadd.f32 %v8481_v8, %v3741_v21  ;;  %v3004_v18 = vsel %vm2921_vm3, %v14909_v4, %v3003_v31  ;;  %v7918_v56 = vunpack.c.h.bf16 %v8261_v63  ;;  %v3432_v13 = vrot.slane %v3305_v11, 4  ;;  %v4312_v24 = vld [vmem:[#allocation3 + $0x8f] sm:$0xff] }
 0x5d5   :  { %v4946_v59 = vpack.c.bf16 %v4905_v38, %v4904_v22  ;;  %v3521_v5 = vmax.f32 %v3092_v2, %v3434_v54  ;;  %v3090_v51 = vmax.f32 %v7917_v60, %v3004_v18  ;;  %v8708_v49 = vpack.i.bf16 %v4788_v42, %v4787_v50  ;;  %v3571_v18 = vld [vmem:[#allocation3 + $0x30] sm:$0xff] }
 0x5d6   :  { %v8490_v19 = vpop.permute.xlu1 %8489  ;;  %v8485_v29 = vpop.permute.xlu0 %8484  ;;  %v3091_v45 = vmax.f32 %v7918_v56, %v3006_v3  ;;  %v3433_v26 = vsel %vm3350_vm4, %v3430_v6, %v3432_v13  ;;  %v3435_v4 = vsel %vm3350_vm4, %v3432_v13, %v3434_v54  ;;  %v8497_v27 = vunpack.i.h.bf16 %v14891_v20  ;;  %v3572_v56 = vld [vmem:[#allocation3 + $0x38] sm:$0xff] }
 0x5d7   :  { %v8487_v15 = vunpack.i.h.bf16 %v8485_v29  ;;  %v8486_v25 = vunpack.i.l.bf16 %v8485_v29  ;;  %5048 = vmatmul.bf16.gmra.mxu1 %v4946_v59  ;;  %v8492_v28 = vunpack.i.h.bf16 %v8490_v19  ;;  %v8491_v52 = vunpack.i.l.bf16 %v8490_v19  ;;  %3564 = vst [vmem:[#allocation3 + $0x150] sm:$0x3] %v3521_v5  ;;  %v4618_v19 = vld [vmem:[#allocation3 + $0xa3] sm:$0xff] }
 0x5d8   :  { %v3519_v37 = vmax.f32 %v3090_v51, %v3433_v26  ;;  %v3520_v33 = vmax.f32 %v3091_v45, %v3435_v4  ;;  %v8496_v54 = vunpack.i.l.bf16 %v14891_v20  ;;  %v8728_v17 = vpack.i.bf16 %v4141_v23, %v4140_v0  ;;  %v4790_v26 = vld [vmem:[#allocation3 + $0xa4] sm:$0xff] }
 0x5d9   :  { %v4086_v14 = vadd.f32 %v8487_v15, %v3914_v44  ;;  %v4085_v53 = vadd.f32 %v8486_v25, %v3913_v48  ;;  %8704 = vrot.lane.b32.xlu2 %v8703_v39, %s9285_s27  ;;  %v8723_v34 = vpack.i.bf16 %v3969_v46, %v3968_v58  ;;  %v8512_v43 = vunpack.i.h.bf16 %v14937_v55  ;;  %v4617_v39 = vld [vmem:[#allocation3 + $0x9b] sm:$0xff] }
 0x5da   :  { %3562 = vst [vmem:[#allocation3 + $0x140] sm:$0xff] %v3519_v37  ;;  %v8511_v22 = vunpack.i.l.bf16 %v14937_v55  ;;  %v3799_v44 = vld [vmem:[#allocation3 + $0x9a] sm:$0xff]  ;;  %v14992_v48 = vld [vmem:[#allocation3 + $0xa2] sm:$0xff]  ;;  %v8743_v15 = vpack.i.bf16 %v4618_v19, %v4617_v39  ;;  %v8527_v51 = vunpack.i.h.bf16 %v14960_v7  ;;  %v8526_v45 = vunpack.i.l.bf16 %v14960_v7 }
 0x5db   :  { %v4258_v62 = vadd.f32 %v8492_v28, %v4086_v14  ;;  %v4257_v1 = vadd.f32 %v8491_v52, %v4085_v53  ;;  %3563 = vst [vmem:[#allocation3 + $0x148] sm:$0xff] %v3520_v33  ;;  %v8738_v5 = vpack.i.bf16 %v14992_v48, %v3799_v44  ;;  %v4789_v53 = vld [vmem:[#allocation3 + $0x9c] sm:$0xff]  ;;  %v8758_v0 = vpack.i.bf16 %v3799_v44, %v14913_v41  ;;  %v3971_v41 = vld [vmem:[#allocation3 + $0xa5] sm:$0xff] }
 0x5dc   :  { %8714 = vrot.lane.b32.xlu1 %v8713_v47, %s9287_s3  ;;  %8709 = vrot.lane.b32.xlu0 %v8708_v49, %s9292_s21  ;;  %v14981_v6 = vpop.permute.xlu2 %8539  ;;  %v8718_v47 = vpack.i.bf16 %v14911_v40, %v14824_v30  ;;  %v4313_v40 = vld [vmem:[#allocation3 + $0x97] sm:$0xff]  ;;  %v3801_v44 = vld [vmem:[#allocation3 + $0xaa] sm:$0xff] }
 0x5dd   :  { %v4429_v16 = vadd.f32 %v8496_v54, %v4257_v1  ;;  %v4430_v32 = vadd.f32 %v8497_v27, %v4258_v62  ;;  %v8733_v29 = vpack.i.bf16 %v4313_v40, %v4312_v24  ;;  %v3626_v27 = vld [vmem:[#allocation3 + $0x91] sm:$0xff]  ;;  %v3627_v54 = vld [vmem:[#allocation3 + $0x99] sm:$0xff]  ;;  %v8542_v46 = vunpack.i.h.bf16 %v14981_v6 }
 0x5de   :  { %v8505_v9 = vpop.permute.xlu1 %8504  ;;  %v8500_v10 = vpop.permute.xlu0 %8499  ;;  %v8753_v7 = vpack.i.bf16 %v3627_v54, %v3626_v27  ;;  %v3970_v58 = vld [vmem:[#allocation3 + $0x9d] sm:$0xff] }
 0x5df   :  { %v8502_v63 = vunpack.i.h.bf16 %v8500_v10  ;;  %v8501_v8 = vunpack.i.l.bf16 %v8500_v10  ;;  %v8507_v61 = vunpack.i.h.bf16 %v8505_v9  ;;  %v8506_v31 = vunpack.i.l.bf16 %v8505_v9 }
 0x5e0   :  { %v8748_v9 = vpack.i.bf16 %v4790_v26, %v4789_v53  ;;  %v8763_v40 = vpack.i.bf16 %v3971_v41, %v3970_v58  ;;  %v4620_v53 = vld [vmem:[#allocation3 + $0xb3] sm:$0xff] }
 0x5e1   :  { %v4562_v20 = vadd.f32 %v8501_v8, %v4429_v16  ;;  %v4563_v36 = vadd.f32 %v8502_v63, %v4430_v32  ;;  %8719 = vrot.lane.b32.xlu2 %v8718_v47, %s9290_s19  ;;  %v8541_v47 = vunpack.i.l.bf16 %v14981_v6 }
 0x5e3   :  { %v4734_v38 = vadd.f32 %v8506_v31, %v4562_v20  ;;  %v4735_v35 = vadd.f32 %v8507_v61, %v4563_v36  ;;  %v4314_v31 = vld [vmem:[#allocation3 + $0x9f] sm:$0xff]  ;;  %v4315_v20 = vld [vmem:[#allocation3 + $0xa7] sm:$0xff] }
 0x5e4   :  { %8729 = vrot.lane.b32.xlu1 %v8728_v17, %s9289_s18  ;;  %8724 = vrot.lane.b32.xlu0 %v8723_v34, %s9288_s4  ;;  %v14990_v30 = vpop.permute.xlu2 %8554 }
 0x5e5   :  { %v4906_v60 = vadd.f32 %v8511_v22, %v4734_v38  ;;  %v4907_v11 = vadd.f32 %v8512_v43, %v4735_v35  ;;  %v4142_v22 = vld [vmem:[#allocation3 + $0x9e] sm:$0xff]  ;;  %v4143_v38 = vld [vmem:[#allocation3 + $0xa6] sm:$0xff] }
 0x5e6   :  { %v8520_v21 = vpop.permute.xlu1 %8519  ;;  %v8515_v59 = vpop.permute.xlu0 %8514  ;;  %v8768_v6 = vpack.i.bf16 %v4143_v38, %v4142_v22  ;;  %v8798_v22 = vpack.i.bf16 %v3801_v44, %v14992_v48  ;;  %v15037_v48 = vld [vmem:[#allocation3 + $0xc2] sm:$0xff] }
 0x5e7   :  { %v8517_v3 = vunpack.i.h.bf16 %v8515_v59  ;;  %v8516_v55 = vunpack.i.l.bf16 %v8515_v59  ;;  %v4947_v2 = vpack.c.bf16 %v4907_v11, %v4906_v60  ;;  %v8522_v25 = vunpack.i.h.bf16 %v8520_v21 }
 0x5e8   :  { %v8521_v50 = vunpack.i.l.bf16 %v8520_v21  ;;  %v8773_v21 = vpack.i.bf16 %v4315_v20, %v4314_v31  ;;  %v8557_v59 = vunpack.i.h.bf16 %v14990_v30 }
 0x5e9   :  { %v3744_v42 = vadd.f32 %v8517_v3, %v3572_v56  ;;  %v3743_v13 = vadd.f32 %v8516_v55, %v3571_v18  ;;  %5053 = vmatmul.bf16.gmra.mxu1 %v4947_v2  ;;  %8734 = vrot.lane.b32.xlu2 %v8733_v29, %s9291_s20  ;;  %v8556_v3 = vunpack.i.l.bf16 %v14990_v30  ;;  %v15017_v18 = vld [vmem:[#allocation3 + $0xb2] sm:$0xff] }
 0x5ea   :  { %v8778_v26 = vpack.i.bf16 %v15017_v18, %v3801_v44 }
 0x5eb   :  { %v3916_v28 = vadd.f32 %v8522_v25, %v3744_v42  ;;  %v3915_v52 = vadd.f32 %v8521_v50, %v3743_v13  ;;  %v4791_v25 = vld [vmem:[#allocation3 + $0xac] sm:$0xff]  ;;  %v4792_v50 = vld [vmem:[#allocation3 + $0xb4] sm:$0xff] }
 0x5ec   :  { %8744 = vrot.lane.b32.xlu1 %v8743_v15, %s9285_s27  ;;  %8739 = vrot.lane.b32.xlu0 %v8738_v5, %s9286_s28  ;;  %v15000_v14 = vpop.permute.xlu2 %8569  ;;  %v9254_v13 = vld [vmem:[#allocation3 + $0x48] sm:$0xff]  ;;  %v9255_v5 = vld [vmem:[#allocation3 + $0x40] sm:$0xff] }
 0x5ed   :  { %v4087_v62 = vadd.f32 %v8526_v45, %v3915_v52  ;;  %v4088_v1 = vadd.f32 %v8527_v51, %v3916_v28  ;;  %v3746_v30 = vadd.f32 %v9254_v13, %v8557_v59  ;;  %v3745_v28 = vadd.f32 %v9255_v5, %v8556_v3  ;;  %v4619_v45 = vld [vmem:[#allocation3 + $0xab] sm:$0xff] }
 0x5ee   :  { %v8535_v4 = vpop.permute.xlu1 %8534  ;;  %v8530_v49 = vpop.permute.xlu0 %8529  ;;  %v3575_v13 = vld [vmem:[#allocation3 + $0x50] sm:$0xff] }
 0x5ef   :  { %v8532_v37 = vunpack.i.h.bf16 %v8530_v49  ;;  %v8531_v33 = vunpack.i.l.bf16 %v8530_v49  ;;  %v8537_v23 = vunpack.i.h.bf16 %v8535_v4  ;;  %v8536_v10 = vunpack.i.l.bf16 %v8535_v4 }
 0x5f0   :  { %v8788_v4 = vpack.i.bf16 %v4792_v50, %v4791_v25 }
 0x5f1   :  { %v4259_v63 = vadd.f32 %v8531_v33, %v4087_v62  ;;  %v4260_v8 = vadd.f32 %v8532_v37, %v4088_v1  ;;  %8749 = vrot.lane.b32.xlu2 %v8748_v9, %s9292_s21  ;;  %v8783_v1 = vpack.i.bf16 %v4620_v53, %v4619_v45  ;;  %v3628_v9 = vld [vmem:[#allocation3 + $0xa1] sm:$0xff]  ;;  %v3630_v45 = vld [vmem:[#allocation3 + $0xb1] sm:$0xff] }
 0x5f3   :  { %v4431_v16 = vadd.f32 %v8536_v10, %v4259_v63  ;;  %v4432_v32 = vadd.f32 %v8537_v23, %v4260_v8  ;;  %v8571_v23 = vunpack.i.l.bf16 %v15000_v14  ;;  %v3629_v63 = vld [vmem:[#allocation3 + $0xa9] sm:$0xff] }
 0x5f4   :  { %8759 = vrot.lane.b32.xlu1 %v8758_v0, %s9290_s19  ;;  %8754 = vrot.lane.b32.xlu0 %v8753_v7, %s9287_s3  ;;  %v15008_v17 = vpop.permute.xlu2 %8584  ;;  %v8572_v0 = vunpack.i.h.bf16 %v15000_v14  ;;  %v3972_v7 = vld [vmem:[#allocation3 + $0xad] sm:$0xff] }
 0x5f5   :  { %v4564_v35 = vadd.f32 %v8541_v47, %v4431_v16  ;;  %v4565_v24 = vadd.f32 %v8542_v46, %v4432_v32  ;;  %v3973_v16 = vld [vmem:[#allocation3 + $0xb5] sm:$0xff] }
 0x5f6   :  { %v8550_v61 = vpop.permute.xlu1 %8549  ;;  %v8545_v36 = vpop.permute.xlu0 %8544  ;;  %v8803_v31 = vpack.i.bf16 %v3973_v16, %v3972_v7 }
 0x5f7   :  { %v8547_v34 = vunpack.i.h.bf16 %v8545_v36  ;;  %v8546_v43 = vunpack.i.l.bf16 %v8545_v36  ;;  %v8552_v60 = vunpack.i.h.bf16 %v8550_v61  ;;  %v8551_v11 = vunpack.i.l.bf16 %v8550_v61 }
 0x5f8   :  { %v8793_v61 = vpack.i.bf16 %v3629_v63, %v3628_v9  ;;  %v4794_v63 = vld [vmem:[#allocation3 + $0xc4] sm:$0xff] }
 0x5f9   :  { %v4736_v39 = vadd.f32 %v8546_v43, %v4564_v35  ;;  %v4737_v19 = vadd.f32 %v8547_v34, %v4565_v24  ;;  %8764 = vrot.lane.b32.xlu2 %v8763_v40, %s9288_s4  ;;  %v8587_v35 = vunpack.i.h.bf16 %v15008_v17  ;;  %v8586_v24 = vunpack.i.l.bf16 %v15008_v17  ;;  %v4317_v17 = vld [vmem:[#allocation3 + $0xb7] sm:$0xff] }
 0x5fb   :  { %v4908_v55 = vadd.f32 %v8551_v11, %v4736_v39  ;;  %v4909_v2 = vadd.f32 %v8552_v60, %v4737_v19  ;;  %v4145_v11 = vld [vmem:[#allocation3 + $0xb6] sm:$0xff] }
 0x5fc   :  { %8774 = vrot.lane.b32.xlu1 %v8773_v21, %s9291_s20  ;;  %8769 = vrot.lane.b32.xlu0 %v8768_v6, %s9289_s18  ;;  %v15015_v29 = vpop.permute.xlu2 %8599  ;;  %v4144_v21 = vld [vmem:[#allocation3 + $0xae] sm:$0xff]  ;;  %v15035_v19 = vld [vmem:[#allocation3 + $0xba] sm:$0xff] }
 0x5fd   :  { %v4948_v15 = vpack.c.bf16 %v4909_v2, %v4908_v55  ;;  %v8818_v25 = vpack.i.bf16 %v15037_v48, %v15035_v19  ;;  %v8602_v53 = vunpack.i.h.bf16 %v15015_v29 }
 0x5fe   :  { %v8565_v56 = vpop.permute.xlu1 %8564  ;;  %v8560_v42 = vpop.permute.xlu0 %8559 }
 0x5ff   :  { %v8562_v52 = vunpack.i.h.bf16 %v8560_v42  ;;  %v8561_v51 = vunpack.i.l.bf16 %v8560_v42  ;;  %5058 = vmatmul.bf16.gmra.mxu1 %v4948_v15  ;;  %v8567_v49 = vunpack.i.h.bf16 %v8565_v56  ;;  %v8566_v37 = vunpack.i.l.bf16 %v8565_v56  ;;  %v4316_v56 = vld [vmem:[#allocation3 + $0xaf] sm:$0xff] }
 0x600   :  { %v8808_v15 = vpack.i.bf16 %v4145_v11, %v4144_v21  ;;  %v8813_v5 = vpack.i.bf16 %v4317_v17, %v4316_v56  ;;  %v3974_v21 = vld [vmem:[#allocation3 + $0xbd] sm:$0xff]  ;;  %v8838_v11 = vpack.i.bf16 %v15035_v19, %v15017_v18  ;;  %v4319_v19 = vld [vmem:[#allocation3 + $0xc7] sm:$0xff] }
 0x601   :  { %v3918_v33 = vadd.f32 %v8562_v52, %v3746_v30  ;;  %v3917_v62 = vadd.f32 %v8561_v51, %v3745_v28  ;;  %8779 = vrot.lane.b32.xlu2 %v8778_v26, %s9286_s28  ;;  %v3576_v30 = vld [vmem:[#allocation3 + $0x58] sm:$0xff]  ;;  %v8601_v26 = vunpack.i.l.bf16 %v15015_v29 }
 0x603   :  { %v4090_v27 = vadd.f32 %v8567_v49, %v3918_v33  ;;  %v4089_v54 = vadd.f32 %v8566_v37, %v3917_v62  ;;  %v4621_v49 = vld [vmem:[#allocation3 + $0xbb] sm:$0xff]  ;;  %v4622_v37 = vld [vmem:[#allocation3 + $0xc3] sm:$0xff] }
 0x604   :  { %8789 = vrot.lane.b32.xlu1 %v8788_v4, %s9292_s21  ;;  %8784 = vrot.lane.b32.xlu0 %v8783_v1, %s9285_s27  ;;  %v15025_v10 = vpop.permute.xlu2 %8614  ;;  %v3631_v62 = vld [vmem:[#allocation3 + $0xb9] sm:$0xff] }
 0x605   :  { %v4261_v47 = vadd.f32 %v8571_v23, %v4089_v54  ;;  %v4262_v41 = vadd.f32 %v8572_v0, %v4090_v27  ;;  %v4793_v23 = vld [vmem:[#allocation3 + $0xbc] sm:$0xff]  ;;  %v8833_v7 = vpack.i.bf16 %v3631_v62, %v3630_v45  ;;  %v15064_v45 = vld [vmem:[#allocation3 + $0xd2] sm:$0xff] }
 0x606   :  { %v8580_v8 = vpop.permute.xlu1 %8579  ;;  %v8575_v32 = vpop.permute.xlu0 %8574 }
 0x607   :  { %v8577_v58 = vunpack.i.h.bf16 %v8575_v32  ;;  %v8576_v46 = vunpack.i.l.bf16 %v8575_v32  ;;  %v8582_v20 = vunpack.i.h.bf16 %v8580_v8  ;;  %v8581_v36 = vunpack.i.l.bf16 %v8580_v8 }
 0x608   :  { %v8823_v8 = vpack.i.bf16 %v4622_v37, %v4621_v49  ;;  %v3578_v49 = vld [vmem:[#allocation3 + $0x68] sm:$0xff] }
 0x609   :  { %v4433_v34 = vadd.f32 %v8576_v46, %v4261_v47  ;;  %v4434_v43 = vadd.f32 %v8577_v58, %v4262_v41  ;;  %8794 = vrot.lane.b32.xlu2 %v8793_v61, %s9287_s3  ;;  %v8828_v46 = vpack.i.bf16 %v4794_v63, %v4793_v23  ;;  %v8617_v61 = vunpack.i.h.bf16 %v15025_v10 }
 0x60b   :  { %v4566_v14 = vadd.f32 %v8581_v36, %v4433_v34  ;;  %v4567_v38 = vadd.f32 %v8582_v20, %v4434_v43  ;;  %v4146_v34 = vld [vmem:[#allocation3 + $0xbe] sm:$0xff]  ;;  %v4147_v43 = vld [vmem:[#allocation3 + $0xc6] sm:$0xff] }
 0x60c   :  { %8804 = vrot.lane.b32.xlu1 %v8803_v31, %s9288_s4  ;;  %8799 = vrot.lane.b32.xlu0 %v8798_v22, %s9290_s19  ;;  %v15033_v40 = vpop.permute.xlu2 %8629  ;;  %v8616_v31 = vunpack.i.l.bf16 %v15025_v10 }
 0x60d   :  { %v4738_v6 = vadd.f32 %v8586_v24, %v4566_v14  ;;  %v4739_v59 = vadd.f32 %v8587_v35, %v4567_v38 }
 0x60e   :  { %v8595_v60 = vpop.permute.xlu1 %8594  ;;  %v8590_v39 = vpop.permute.xlu0 %8589 }
 0x60f   :  { %v8597_v3 = vunpack.i.h.bf16 %v8595_v60  ;;  %v8596_v55 = vunpack.i.l.bf16 %v8595_v60  ;;  %v8592_v2 = vunpack.i.h.bf16 %v8590_v39  ;;  %v8591_v44 = vunpack.i.l.bf16 %v8590_v39  ;;  %v3975_v60 = vld [vmem:[#allocation3 + $0xc5] sm:$0xff] }
 0x610   :  { %v8848_v39 = vpack.i.bf16 %v4147_v43, %v4146_v34 }
 0x611   :  { %v4910_v50 = vadd.f32 %v8591_v44, %v4738_v6  ;;  %v4911_v42 = vadd.f32 %v8592_v2, %v4739_v59  ;;  %8809 = vrot.lane.b32.xlu2 %v8808_v15, %s9289_s18  ;;  %v3748_v28 = vadd.f32 %v8597_v3, %v3576_v30  ;;  %v3747_v52 = vadd.f32 %v8596_v55, %v3575_v13  ;;  %v4318_v15 = vld [vmem:[#allocation3 + $0xbf] sm:$0xff]  ;;  %v4623_v13 = vld [vmem:[#allocation3 + $0xcb] sm:$0xff]  ;;  %v4624_v30 = vld [vmem:[#allocation3 + $0xd3] sm:$0xff] }
 0x612   :  { %v8843_v55 = vpack.i.bf16 %v3975_v60, %v3974_v21  ;;  %v8632_v2 = vunpack.i.h.bf16 %v15033_v40  ;;  %v8631_v44 = vunpack.i.l.bf16 %v15033_v40  ;;  %v8863_v37 = vpack.i.bf16 %v4624_v30, %v4623_v13  ;;  %v3976_v21 = vld [vmem:[#allocation3 + $0xcd] sm:$0xff] }
 0x613   :  { %v4949_v51 = vpack.c.bf16 %v4911_v42, %v4910_v50  ;;  %v3919_v27 = vadd.f32 %v8601_v26, %v3747_v52  ;;  %v3920_v54 = vadd.f32 %v8602_v53, %v3748_v28  ;;  %v8853_v53 = vpack.i.bf16 %v4319_v19, %v4318_v15  ;;  %v3577_v26 = vld [vmem:[#allocation3 + $0x60] sm:$0xff]  ;;  %v4149_v15 = vld [vmem:[#allocation3 + $0xd6] sm:$0xff] }
 0x614   :  { %8819 = vrot.lane.b32.xlu1 %v8818_v25, %s9286_s28  ;;  %8814 = vrot.lane.b32.xlu0 %v8813_v5, %s9291_s20  ;;  %v15046_v4 = vpop.permute.xlu2 %8644 }
 0x615   :  { %5063 = vmatmul.bf16.gmra.mxu1 %v4949_v51  ;;  %v3805_v51 = vld [vmem:[#allocation3 + $0xca] sm:$0xff]  ;;  %v8647_v23 = vunpack.i.h.bf16 %v15046_v4  ;;  %v8646_v63 = vunpack.i.l.bf16 %v15046_v4 }
 0x616   :  { %v8610_v33 = vpop.permute.xlu1 %8609  ;;  %v8605_v1 = vpop.permute.xlu0 %8604  ;;  %v8878_v34 = vpack.i.bf16 %v3805_v51, %v15037_v48  ;;  %v3977_v48 = vld [vmem:[#allocation3 + $0xd5] sm:$0xff] }
 0x617   :  { %v8607_v9 = vunpack.i.h.bf16 %v8605_v1  ;;  %v8606_v0 = vunpack.i.l.bf16 %v8605_v1  ;;  %v8612_v16 = vunpack.i.h.bf16 %v8610_v33  ;;  %v8611_v32 = vunpack.i.l.bf16 %v8610_v33 }
 0x618   :  { %v8883_v19 = vpack.i.bf16 %v3977_v48, %v3976_v21 }
 0x619   :  { %v4092_v58 = vadd.f32 %v8607_v9, %v3920_v54  ;;  %v4091_v29 = vadd.f32 %v8606_v0, %v3919_v27  ;;  %8824 = vrot.lane.b32.xlu2 %v8823_v8, %s9285_s27  ;;  %v8858_v54 = vpack.i.bf16 %v15064_v45, %v3805_v51  ;;  %v3807_v51 = vld [vmem:[#allocation3 + $0xda] sm:$0xff] }
 0x61b   :  { %v4264_v47 = vadd.f32 %v8612_v16, %v4092_v58  ;;  %v4263_v41 = vadd.f32 %v8611_v32, %v4091_v29  ;;  %v4796_v16 = vld [vmem:[#allocation3 + $0xd4] sm:$0xff] }
 0x61c   :  { %8834 = vrot.lane.b32.xlu1 %v8833_v7, %s9287_s3  ;;  %8829 = vrot.lane.b32.xlu0 %v8828_v46, %s9292_s21  ;;  %v15053_v20 = vpop.permute.xlu2 %8659  ;;  %v4795_v7 = vld [vmem:[#allocation3 + $0xcc] sm:$0xff] }
 0x61d   :  { %v4435_v35 = vadd.f32 %v8616_v31, %v4263_v41  ;;  %v4436_v24 = vadd.f32 %v8617_v61, %v4264_v47  ;;  %v3632_v61 = vld [vmem:[#allocation3 + $0xc1] sm:$0xff]  ;;  %v3633_v31 = vld [vmem:[#allocation3 + $0xc9] sm:$0xff]  ;;  %v8662_v60 = vunpack.i.h.bf16 %v15053_v20 }
 0x61e   :  { %v8625_v36 = vpop.permute.xlu1 %8624  ;;  %v8620_v22 = vpop.permute.xlu0 %8619  ;;  %v8873_v4 = vpack.i.bf16 %v3633_v31, %v3632_v61 }
 0x61f   :  { %v8622_v14 = vunpack.i.h.bf16 %v8620_v22  ;;  %v8621_v38 = vunpack.i.l.bf16 %v8620_v22  ;;  %v8627_v6 = vunpack.i.h.bf16 %v8625_v36  ;;  %v8626_v59 = vunpack.i.l.bf16 %v8625_v36 }
 0x620   :  { %v8868_v36 = vpack.i.bf16 %v4796_v16, %v4795_v7  ;;  %v4626_v7 = vld [vmem:[#allocation3 + $0xe3] sm:$0xff] }
 0x621   :  { %v4568_v3 = vadd.f32 %v8621_v38, %v4435_v35  ;;  %v4569_v10 = vadd.f32 %v8622_v14, %v4436_v24  ;;  %8839 = vrot.lane.b32.xlu2 %v8838_v11, %s9290_s19  ;;  %v8661_v11 = vunpack.i.l.bf16 %v15053_v20 }
 0x623   :  { %v4740_v56 = vadd.f32 %v8626_v59, %v4568_v3  ;;  %v4741_v17 = vadd.f32 %v8627_v6, %v4569_v10  ;;  %v4320_v59 = vld [vmem:[#allocation3 + $0xcf] sm:$0xff]  ;;  %v4321_v3 = vld [vmem:[#allocation3 + $0xd7] sm:$0xff] }
 0x624   :  { %8849 = vrot.lane.b32.xlu1 %v8848_v39, %s9289_s18  ;;  %8844 = vrot.lane.b32.xlu0 %v8843_v55, %s9288_s4  ;;  %v15062_v18 = vpop.permute.xlu2 %8674 }
 0x625   :  { %v4912_v50 = vadd.f32 %v8631_v44, %v4740_v56  ;;  %v4913_v42 = vadd.f32 %v8632_v2, %v4741_v17  ;;  %v4148_v17 = vld [vmem:[#allocation3 + $0xce] sm:$0xff] }
 0x626   :  { %v8640_v25 = vpop.permute.xlu1 %8639  ;;  %v8635_v5 = vpop.permute.xlu0 %8634  ;;  %v8888_v20 = vpack.i.bf16 %v4149_v15, %v4148_v17 }
 0x627   :  { %v8637_v28 = vunpack.i.h.bf16 %v8635_v5  ;;  %v8636_v40 = vunpack.i.l.bf16 %v8635_v5  ;;  %v4950_v52 = vpack.c.bf16 %v4913_v42, %v4912_v50  ;;  %v8642_v33 = vunpack.i.h.bf16 %v8640_v25 }
 0x628   :  { %v8641_v62 = vunpack.i.l.bf16 %v8640_v25  ;;  %v8893_v25 = vpack.i.bf16 %v4321_v3, %v4320_v59  ;;  %v8677_v5 = vunpack.i.h.bf16 %v15062_v18 }
 0x629   :  { %v3750_v1 = vadd.f32 %v8637_v28, %v3578_v49  ;;  %v3749_v27 = vadd.f32 %v8636_v40, %v3577_v26  ;;  %5068 = vmatmul.bf16.gmra.mxu1 %v4950_v52  ;;  %8854 = vrot.lane.b32.xlu2 %v8853_v53, %s9291_s20  ;;  %v8676_v28 = vunpack.i.l.bf16 %v15062_v18  ;;  %v15089_v26 = vld [vmem:[#allocation3 + $0xe2] sm:$0xff] }
 0x62a   :  { %v8898_v16 = vpack.i.bf16 %v15089_v26, %v3807_v51 }
 0x62b   :  { %v3922_v9 = vadd.f32 %v8642_v33, %v3750_v1  ;;  %v3921_v0 = vadd.f32 %v8641_v62, %v3749_v27  ;;  %v4797_v33 = vld [vmem:[#allocation3 + $0xdc] sm:$0xff]  ;;  %v4798_v62 = vld [vmem:[#allocation3 + $0xe4] sm:$0xff]  ;;  %v3579_v1 = vld [vmem:[#allocation3 + $0x70] sm:$0xff] }
 0x62c   :  { %8864 = vrot.lane.b32.xlu1 %v8863_v37, %s9285_s27  ;;  %8859 = vrot.lane.b32.xlu0 %v8858_v54, %s9286_s28  ;;  %v15072_v8 = vpop.permute.xlu2 %8689  ;;  %v3580_v27 = vld [vmem:[#allocation3 + $0x78] sm:$0xff] }
 0x62d   :  { %v4093_v47 = vadd.f32 %v8646_v63, %v3921_v0  ;;  %v4094_v41 = vadd.f32 %v8647_v23, %v3922_v9  ;;  %v3752_v54 = vadd.f32 %v8677_v5, %v3580_v27  ;;  %v3751_v9 = vadd.f32 %v8676_v28, %v3579_v1  ;;  %v4625_v63 = vld [vmem:[#allocation3 + $0xdb] sm:$0xff]  ;;  %v15109_v5 = vld [vmem:[#allocation3 + $0xf2] sm:$0xff] }
 0x62e   :  { %v8655_v32 = vpop.permute.xlu1 %8654  ;;  %v8650_v58 = vpop.permute.xlu0 %8649  ;;  %v3581_v27 = vld [vmem:[#allocation3 + $0x80] sm:$0xff] }
 0x62f   :  { %v8652_v29 = vunpack.i.h.bf16 %v8650_v58  ;;  %v8651_v46 = vunpack.i.l.bf16 %v8650_v58  ;;  %v8657_v43 = vunpack.i.h.bf16 %v8655_v32  ;;  %v8656_v22 = vunpack.i.l.bf16 %v8655_v32 }
 0x630   :  { %v8908_v32 = vpack.i.bf16 %v4798_v62, %v4797_v33 }
 0x631   :  { %v4265_v14 = vadd.f32 %v8651_v46, %v4093_v47  ;;  %v4266_v38 = vadd.f32 %v8652_v29, %v4094_v41  ;;  %8869 = vrot.lane.b32.xlu2 %v8868_v36, %s9292_s21  ;;  %v8903_v41 = vpack.i.bf16 %v4626_v7, %v4625_v63  ;;  %v3634_v36 = vld [vmem:[#allocation3 + $0xd1] sm:$0xff]  ;;  %v3636_v63 = vld [vmem:[#allocation3 + $0xe1] sm:$0xff] }
 0x633   :  { %v4437_v35 = vadd.f32 %v8656_v22, %v4265_v14  ;;  %v4438_v24 = vadd.f32 %v8657_v43, %v4266_v38  ;;  %v8691_v43 = vunpack.i.l.bf16 %v15072_v8  ;;  %v3635_v14 = vld [vmem:[#allocation3 + $0xd9] sm:$0xff] }
 0x634   :  { %8879 = vrot.lane.b32.xlu1 %v8878_v34, %s9290_s19  ;;  %8874 = vrot.lane.b32.xlu0 %v8873_v4, %s9287_s3  ;;  %v15080_v39 = vpop.permute.xlu2 %8704  ;;  %v8692_v34 = vunpack.i.h.bf16 %v15072_v8  ;;  %v3978_v4 = vld [vmem:[#allocation3 + $0xdd] sm:$0xff] }
 0x635   :  { %v4570_v44 = vadd.f32 %v8661_v11, %v4437_v35  ;;  %v4571_v56 = vadd.f32 %v8662_v60, %v4438_v24  ;;  %v3979_v35 = vld [vmem:[#allocation3 + $0xe5] sm:$0xff]  ;;  %v8707_v17 = vunpack.i.h.bf16 %v15080_v39  ;;  %v8706_v15 = vunpack.i.l.bf16 %v15080_v39 }
 0x636   :  { %v8670_v6 = vpop.permute.xlu1 %8669  ;;  %v8665_v10 = vpop.permute.xlu0 %8664  ;;  %v8923_v59 = vpack.i.bf16 %v3979_v35, %v3978_v4  ;;  %v4323_v39 = vld [vmem:[#allocation3 + $0xe7] sm:$0xff] }
 0x637   :  { %v8667_v55 = vunpack.i.h.bf16 %v8665_v10  ;;  %v8666_v2 = vunpack.i.l.bf16 %v8665_v10  ;;  %v8672_v50 = vunpack.i.h.bf16 %v8670_v6  ;;  %v8671_v42 = vunpack.i.l.bf16 %v8670_v6 }
 0x638   :  { %v8913_v6 = vpack.i.bf16 %v3635_v14, %v3634_v36  ;;  %v4800_v14 = vld [vmem:[#allocation3 + $0xf4] sm:$0xff] }
 0x639   :  { %v4742_v13 = vadd.f32 %v8666_v2, %v4570_v44  ;;  %v4743_v30 = vadd.f32 %v8667_v55, %v4571_v56  ;;  %8884 = vrot.lane.b32.xlu2 %v8883_v19, %s9288_s4  ;;  %v8918_v44 = vpack.i.bf16 %v3807_v51, %v15064_v45 }
 0x63b   :  { %v4914_v40 = vadd.f32 %v8671_v42, %v4742_v13  ;;  %v4915_v52 = vadd.f32 %v8672_v50, %v4743_v30  ;;  %v4151_v42 = vld [vmem:[#allocation3 + $0xe6] sm:$0xff] }
 0x63c   :  { %8894 = vrot.lane.b32.xlu1 %v8893_v25, %s9291_s20  ;;  %8889 = vrot.lane.b32.xlu0 %v8888_v20, %s9289_s18  ;;  %v15087_v53 = vpop.permute.xlu2 %8719  ;;  %v4150_v25 = vld [vmem:[#allocation3 + $0xde] sm:$0xff]  ;;  %v15107_v20 = vld [vmem:[#allocation3 + $0xea] sm:$0xff] }
 0x63d   :  { %v4951_v37 = vpack.c.bf16 %v4915_v52, %v4914_v40  ;;  %v8938_v1 = vpack.i.bf16 %v15109_v5, %v15107_v20  ;;  %v8722_v7 = vunpack.i.h.bf16 %v15087_v53 }
 0x63e   :  { %v8685_v49 = vpop.permute.xlu1 %8684  ;;  %v8680_v18 = vpop.permute.xlu0 %8679 }
 0x63f   :  { %v8682_v0 = vunpack.i.h.bf16 %v8680_v18  ;;  %v8681_v23 = vunpack.i.l.bf16 %v8680_v18  ;;  %5073 = vmatmul.bf16.gmra.mxu1 %v4951_v37  ;;  %v8687_v58 = vunpack.i.h.bf16 %v8685_v49  ;;  %v8686_v29 = vunpack.i.l.bf16 %v8685_v49  ;;  %v4322_v49 = vld [vmem:[#allocation3 + $0xdf] sm:$0xff]  ;;  %v3582_v18 = vld [vmem:[#allocation3 + $0x88] sm:$0xff] }
 0x640   :  { %v8928_v37 = vpack.i.bf16 %v4151_v42, %v4150_v25  ;;  %v3980_v25 = vld [vmem:[#allocation3 + $0xed] sm:$0xff]  ;;  %v8958_v42 = vpack.i.bf16 %v15107_v20, %v15089_v26  ;;  %v4325_v20 = vld [vmem:[#allocation3 + $0xf7] sm:$0xff] }
 0x641   :  { %v3924_v46 = vadd.f32 %v8682_v0, %v3752_v54  ;;  %v3923_v47 = vadd.f32 %v8681_v23, %v3751_v9  ;;  %8899 = vrot.lane.b32.xlu2 %v8898_v16, %s9286_s28  ;;  %v8933_v54 = vpack.i.bf16 %v4323_v39, %v4322_v49  ;;  %v8721_v16 = vunpack.i.l.bf16 %v15087_v53 }
 0x643   :  { %v4096_v61 = vadd.f32 %v8687_v58, %v3924_v46  ;;  %v4095_v31 = vadd.f32 %v8686_v29, %v3923_v47  ;;  %v4627_v58 = vld [vmem:[#allocation3 + $0xeb] sm:$0xff]  ;;  %v4628_v29 = vld [vmem:[#allocation3 + $0xf3] sm:$0xff] }
 0x644   :  { %8909 = vrot.lane.b32.xlu1 %v8908_v32, %s9292_s21  ;;  %8904 = vrot.lane.b32.xlu0 %v8903_v41, %s9285_s27  ;;  %v15097_v22 = vpop.permute.xlu2 %8734  ;;  %v3637_v47 = vld [vmem:[#allocation3 + $0xe9] sm:$0xff] }
 0x645   :  { %v4267_v11 = vadd.f32 %v8691_v43, %v4095_v31  ;;  %v4268_v48 = vadd.f32 %v8692_v34, %v4096_v61  ;;  %v4799_v43 = vld [vmem:[#allocation3 + $0xec] sm:$0xff]  ;;  %v8953_v4 = vpack.i.bf16 %v3637_v47, %v3636_v63 }
 0x646   :  { %v8700_v38 = vpop.permute.xlu1 %8699  ;;  %v8695_v24 = vpop.permute.xlu0 %8694 }
 0x647   :  { %v8697_v21 = vunpack.i.h.bf16 %v8695_v24  ;;  %v8696_v60 = vunpack.i.l.bf16 %v8695_v24  ;;  %v8702_v3 = vunpack.i.h.bf16 %v8700_v38  ;;  %v8701_v10 = vunpack.i.l.bf16 %v8700_v38 }
 0x648   :  { %v8943_v38 = vpack.i.bf16 %v4628_v29, %v4627_v58 }
 0x649   :  { %v4439_v55 = vadd.f32 %v8696_v60, %v4267_v11  ;;  %v4440_v2 = vadd.f32 %v8697_v21, %v4268_v48  ;;  %8914 = vrot.lane.b32.xlu2 %v8913_v6, %s9287_s3  ;;  %v8948_v60 = vpack.i.bf16 %v4800_v14, %v4799_v43  ;;  %v8737_v6 = vunpack.i.h.bf16 %v15097_v22 }
 0x64b   :  { %v4572_v8 = vadd.f32 %v8701_v10, %v4439_v55  ;;  %v4573_v56 = vadd.f32 %v8702_v3, %v4440_v2  ;;  %v4152_v55 = vld [vmem:[#allocation3 + $0xee] sm:$0xff]  ;;  %v4153_v2 = vld [vmem:[#allocation3 + $0xf6] sm:$0xff] }
 0x64c   :  { %8924 = vrot.lane.b32.xlu1 %v8923_v59, %s9288_s4  ;;  %8919 = vrot.lane.b32.xlu0 %v8918_v44, %s9290_s19  ;;  %v15105_v19 = vpop.permute.xlu2 %8749  ;;  %v8736_v59 = vunpack.i.l.bf16 %v15097_v22 }
 0x64d   :  { %v4744_v30 = vadd.f32 %v8706_v15, %v4572_v8  ;;  %v4745_v45 = vadd.f32 %v8707_v17, %v4573_v56 }
 0x64e   :  { %v8715_v50 = vpop.permute.xlu1 %8714  ;;  %v8710_v13 = vpop.permute.xlu0 %8709 }
 0x64f   :  { %v8717_v28 = vunpack.i.h.bf16 %v8715_v50  ;;  %v8716_v40 = vunpack.i.l.bf16 %v8715_v50  ;;  %v8712_v52 = vunpack.i.h.bf16 %v8710_v13  ;;  %v8711_v51 = vunpack.i.l.bf16 %v8710_v13  ;;  %v3981_v50 = vld [vmem:[#allocation3 + $0xf5] sm:$0xff] }
 0x650   :  { %v8968_v13 = vpack.i.bf16 %v4153_v2, %v4152_v55 }
 0x651   :  { %v4916_v33 = vadd.f32 %v8711_v51, %v4744_v30  ;;  %v4917_v62 = vadd.f32 %v8712_v52, %v4745_v45  ;;  %8929 = vrot.lane.b32.xlu2 %v8928_v37, %s9289_s18  ;;  %v3754_v9 = vadd.f32 %v8717_v28, %v3582_v18  ;;  %v3753_v0 = vadd.f32 %v8716_v40, %v3581_v27  ;;  %v4324_v37 = vld [vmem:[#allocation3 + $0xef] sm:$0xff]  ;;  %v4629_v27 = vld [vmem:[#allocation3 + $0xfb] sm:$0xff]  ;;  %v4630_v18 = vld [vmem:[#allocation3 + $0x103] sm:$0xff] }
 0x652   :  { %v8963_v40 = vpack.i.bf16 %v3981_v50, %v3980_v25  ;;  %v8752_v52 = vunpack.i.h.bf16 %v15105_v19  ;;  %v8751_v51 = vunpack.i.l.bf16 %v15105_v19  ;;  %v8973_v63 = vpack.i.bf16 %v4325_v20, %v4324_v37 }
 0x653   :  { %v4952_v23 = vpack.c.bf16 %v4917_v62, %v4916_v33  ;;  %v3925_v61 = vadd.f32 %v8721_v16, %v3753_v0  ;;  %v3926_v31 = vadd.f32 %v8722_v7, %v3754_v9  ;;  %v3811_v0 = vld [vmem:[#allocation3 + $0xfa] sm:$0xff]  ;;  %v3583_v7 = vld [vmem:[#allocation3 + $0x90] sm:$0xff]  ;;  %v8983_v29 = vpack.i.bf16 %v4630_v18, %v4629_v27  ;;  %v15154_v27 = vpop.f32.mrf.mxu1 }
 0x654   :  { %8939 = vrot.lane.b32.xlu1 %v8938_v1, %s9286_s28  ;;  %8934 = vrot.lane.b32.xlu0 %v8933_v54, %s9291_s20  ;;  %v15118_v32 = vpop.permute.xlu2 %8764  ;;  %v3584_v16 = vld [vmem:[#allocation3 + $0x98] sm:$0xff] }
 0x655   :  { %5078 = vmatmul.bf16.gmra.mxu1 %v4952_v23  ;;  %v15136_v23 = vld [vmem:[#allocation3 + $0x102] sm:$0xff]  ;;  %v8767_v43 = vunpack.i.h.bf16 %v15118_v32  ;;  %v8766_v14 = vunpack.i.l.bf16 %v15118_v32 }
 0x656   :  { %v8730_v46 = vpop.permute.xlu1 %8729  ;;  %v8725_v41 = vpop.permute.xlu0 %8724 }
 0x657   :  { %v8727_v36 = vunpack.i.h.bf16 %v8725_v41  ;;  %v8726_v34 = vunpack.i.l.bf16 %v8725_v41  ;;  %v8732_v35 = vunpack.i.h.bf16 %v8730_v46  ;;  %v8731_v24 = vunpack.i.l.bf16 %v8730_v46 }
 0x659   :  { %v4098_v21 = vadd.f32 %v8727_v36, %v3926_v31  ;;  %v4097_v53 = vadd.f32 %v8726_v34, %v3925_v61  ;;  %8944 = vrot.lane.b32.xlu2 %v8943_v38, %s9285_s27  ;;  %v8978_v31 = vpack.i.bf16 %v15136_v23, %v3811_v0 }
 0x65b   :  { %v4270_v11 = vadd.f32 %v8732_v35, %v4098_v21  ;;  %v4269_v48 = vadd.f32 %v8731_v24, %v4097_v53  ;;  %v4801_v35 = vld [vmem:[#allocation3 + $0xfc] sm:$0xff]  ;;  %v4802_v24 = vld [vmem:[#allocation3 + $0x104] sm:$0xff] }
 0x65c   :  { %8954 = vrot.lane.b32.xlu1 %v8953_v4, %s9287_s3  ;;  %8949 = vrot.lane.b32.xlu0 %v8948_v60, %s9292_s21  ;;  %v15125_v3 = vpop.permute.xlu2 %8779  ;;  %v8988_v55 = vpack.i.bf16 %v4802_v24, %v4801_v35  ;;  %v4632_v35 = vld [vmem:[#allocation3 + $0x113] sm:$0xff] }
 0x65d   :  { %v4441_v17 = vadd.f32 %v8736_v59, %v4269_v48  ;;  %v4442_v15 = vadd.f32 %v8737_v6, %v4270_v11  ;;  %v3638_v6 = vld [vmem:[#allocation3 + $0xf1] sm:$0xff]  ;;  %v3639_v59 = vld [vmem:[#allocation3 + $0xf9] sm:$0xff]  ;;  %v8782_v25 = vunpack.i.h.bf16 %v15125_v3 }
 0x65e   :  { %v8745_v10 = vpop.permute.xlu1 %8744  ;;  %v8740_v44 = vpop.permute.xlu0 %8739  ;;  %v8993_v32 = vpack.i.bf16 %v3639_v59, %v3638_v6 }
 0x65f   :  { %v8742_v8 = vunpack.i.h.bf16 %v8740_v44  ;;  %v8741_v56 = vunpack.i.l.bf16 %v8740_v44  ;;  %v8747_v30 = vunpack.i.h.bf16 %v8745_v10  ;;  %v8746_v45 = vunpack.i.l.bf16 %v8745_v10 }
 0x660   :  { %v8998_v10 = vpack.i.bf16 %v3811_v0, %v15109_v5 }
 0x661   :  { %v4574_v28 = vadd.f32 %v8741_v56, %v4441_v17  ;;  %v4575_v22 = vadd.f32 %v8742_v8, %v4442_v15  ;;  %8959 = vrot.lane.b32.xlu2 %v8958_v42, %s9290_s19  ;;  %v3982_v42 = vld [vmem:[#allocation3 + $0xfd] sm:$0xff] }
 0x663   :  { %v4746_v49 = vadd.f32 %v8746_v45, %v4574_v28  ;;  %v4747_v39 = vadd.f32 %v8747_v30, %v4575_v22  ;;  %v3983_v30 = vld [vmem:[#allocation3 + $0x105] sm:$0xff] }
 0x664   :  { %8969 = vrot.lane.b32.xlu1 %v8968_v13, %s9289_s18  ;;  %8964 = vrot.lane.b32.xlu0 %v8963_v40, %s9288_s4  ;;  %v15134_v26 = vpop.permute.xlu2 %8794  ;;  %v8781_v13 = vunpack.i.l.bf16 %v15125_v3  ;;  %v4326_v28 = vld [vmem:[#allocation3 + $0xff] sm:$0xff]  ;;  %v4327_v22 = vld [vmem:[#allocation3 + $0x107] sm:$0xff]  ;;  %v9003_v20 = vpack.i.bf16 %v3983_v30, %v3982_v42 }
 0x665   :  { %v4918_v62 = vadd.f32 %v8751_v51, %v4746_v49  ;;  %v4919_v1 = vadd.f32 %v8752_v52, %v4747_v39  ;;  %v4154_v51 = vld [vmem:[#allocation3 + $0xfe] sm:$0xff]  ;;  %v4155_v49 = vld [vmem:[#allocation3 + $0x106] sm:$0xff]  ;;  %v8797_v18 = vunpack.i.h.bf16 %v15134_v26 }
 0x666   :  { %v8760_v33 = vpop.permute.xlu1 %8759  ;;  %v8755_v54 = vpop.permute.xlu0 %8754 }
 0x667   :  { %v8757_v9 = vunpack.i.h.bf16 %v8755_v54  ;;  %v8756_v19 = vunpack.i.l.bf16 %v8755_v54  ;;  %v4953_v58 = vpack.c.bf16 %v4919_v1, %v4918_v62  ;;  %v8762_v46 = vunpack.i.h.bf16 %v8760_v33 }
 0x668   :  { %v8761_v47 = vunpack.i.l.bf16 %v8760_v33  ;;  %v9013_v1 = vpack.i.bf16 %v4327_v22, %v4326_v28 }
 0x669   :  { %v3756_v41 = vadd.f32 %v8757_v9, %v3584_v16  ;;  %v3755_v61 = vadd.f32 %v8756_v19, %v3583_v7  ;;  %5083 = vmatmul.bf16.gmra.mxu1 %v4953_v58  ;;  %8974 = vrot.lane.b32.xlu2 %v8973_v63, %s9291_s20  ;;  %v9008_v9 = vpack.i.bf16 %v4155_v49, %v4154_v51  ;;  %v8796_v19 = vunpack.i.l.bf16 %v15134_v26  ;;  %v3586_v63 = vld [vmem:[#allocation3 + $0xa8] sm:$0xff] }
 0x66a   :  { %v3813_v16 = vld [vmem:[#allocation3 + $0x10a] sm:$0xff] }
 0x66b   :  { %v3928_v36 = vadd.f32 %v8762_v46, %v3756_v41  ;;  %v3927_v34 = vadd.f32 %v8761_v47, %v3755_v61  ;;  %v4803_v47 = vld [vmem:[#allocation3 + $0x10c] sm:$0xff]  ;;  %v4804_v41 = vld [vmem:[#allocation3 + $0x114] sm:$0xff]  ;;  %v3585_v61 = vld [vmem:[#allocation3 + $0xa0] sm:$0xff] }
 0x66c   :  { %8984 = vrot.lane.b32.xlu1 %v8983_v29, %s9285_s27  ;;  %8979 = vrot.lane.b32.xlu0 %v8978_v31, %s9286_s28  ;;  %v15144_v38 = vpop.permute.xlu2 %8809  ;;  %v15163_v29 = vld [vmem:[#allocation3 + $0x112] sm:$0xff]  ;;  %v3758_v31 = vadd.f32 %v8797_v18, %v3586_v63  ;;  %v15187_v63 = vld [vmem:[#allocation3 + $0x122] sm:$0xff] }
 0x66d   :  { %v4099_v11 = vadd.f32 %v8766_v14, %v3927_v34  ;;  %v4100_v48 = vadd.f32 %v8767_v43, %v3928_v36  ;;  %v3757_v36 = vadd.f32 %v8796_v19, %v3585_v61  ;;  %v9018_v24 = vpack.i.bf16 %v15163_v29, %v3813_v16  ;;  %v4156_v18 = vld [vmem:[#allocation3 + $0x10e] sm:$0xff] }
 0x66e   :  { %v8775_v4 = vpop.permute.xlu1 %8774  ;;  %v8770_v21 = vpop.permute.xlu0 %8769 }
 0x66f   :  { %v8772_v53 = vunpack.i.h.bf16 %v8770_v21  ;;  %v8771_v60 = vunpack.i.l.bf16 %v8770_v21  ;;  %v8777_v2 = vunpack.i.h.bf16 %v8775_v4  ;;  %v8776_v56 = vunpack.i.l.bf16 %v8775_v4  ;;  %v4631_v4 = vld [vmem:[#allocation3 + $0x10b] sm:$0xff] }
 0x670   :  { %v9028_v21 = vpack.i.bf16 %v4804_v41, %v4803_v47  ;;  %v9023_v6 = vpack.i.bf16 %v4632_v35, %v4631_v4  ;;  %v4328_v41 = vld [vmem:[#allocation3 + $0x10f] sm:$0xff] }
 0x671   :  { %v4271_v44 = vadd.f32 %v8771_v60, %v4099_v11  ;;  %v4272_v8 = vadd.f32 %v8772_v53, %v4100_v48  ;;  %8989 = vrot.lane.b32.xlu2 %v8988_v55, %s9292_s21  ;;  %v15168_v55 = vpop.f32.mrf.mxu1 }
 0x673   :  { %v4444_v17 = vadd.f32 %v8777_v2, %v4272_v8  ;;  %v4443_v15 = vadd.f32 %v8776_v56, %v4271_v44  ;;  %v3640_v2 = vld [vmem:[#allocation3 + $0x101] sm:$0xff]  ;;  %v8812_v44 = vunpack.i.h.bf16 %v15144_v38  ;;  %v8811_v8 = vunpack.i.l.bf16 %v15144_v38 }
 0x674   :  { %8999 = vrot.lane.b32.xlu1 %v8998_v10, %s9290_s19  ;;  %8994 = vrot.lane.b32.xlu0 %v8993_v32, %s9287_s3  ;;  %v15151_v50 = vpop.permute.xlu2 %8824  ;;  %v3641_v32 = vld [vmem:[#allocation3 + $0x109] sm:$0xff] }
 0x675   :  { %v4577_v52 = vadd.f32 %v8782_v25, %v4444_v17  ;;  %v4576_v37 = vadd.f32 %v8781_v13, %v4443_v15  ;;  %v3984_v15 = vld [vmem:[#allocation3 + $0x10d] sm:$0xff]  ;;  %v3985_v25 = vld [vmem:[#allocation3 + $0x115] sm:$0xff]  ;;  %v9033_v28 = vpack.i.bf16 %v3641_v32, %v3640_v2 }
 0x676   :  { %v8790_v5 = vpop.permute.xlu1 %8789  ;;  %v8785_v45 = vpop.permute.xlu0 %8784  ;;  %v9043_v22 = vpack.i.bf16 %v3985_v25, %v3984_v15  ;;  %v3642_v2 = vld [vmem:[#allocation3 + $0x111] sm:$0xff]  ;;  %v4805_v25 = vld [vmem:[#allocation3 + $0x11c] sm:$0xff] }
 0x677   :  { %v8787_v40 = vunpack.i.h.bf16 %v8785_v45  ;;  %v8786_v39 = vunpack.i.l.bf16 %v8785_v45  ;;  %v8792_v33 = vunpack.i.h.bf16 %v8790_v5  ;;  %v8791_v54 = vunpack.i.l.bf16 %v8790_v5 }
 0x679   :  { %v4749_v62 = vadd.f32 %v8787_v40, %v4577_v52  ;;  %v4748_v3 = vadd.f32 %v8786_v39, %v4576_v37  ;;  %9004 = vrot.lane.b32.xlu2 %v9003_v20, %s9288_s4  ;;  %v9038_v39 = vpack.i.bf16 %v3813_v16, %v15136_v23  ;;  %v15178_v20 = vpop.f32.mrf.mxu1 }
 0x67b   :  { %v4921_v0 = vadd.f32 %v8792_v33, %v4749_v62  ;;  %v4920_v7 = vadd.f32 %v8791_v54, %v4748_v3  ;;  %v8827_v33 = vunpack.i.h.bf16 %v15151_v50  ;;  %v8826_v62 = vunpack.i.l.bf16 %v15151_v50  ;;  %v4157_v3 = vld [vmem:[#allocation3 + $0x116] sm:$0xff] }
 0x67c   :  { %9014 = vrot.lane.b32.xlu1 %v9013_v1, %s9291_s20  ;;  %9009 = vrot.lane.b32.xlu0 %v9008_v9, %s9289_s18  ;;  %v15161_v58 = vpop.permute.xlu2 %8839  ;;  %v4329_v50 = vld [vmem:[#allocation3 + $0x117] sm:$0xff]  ;;  %v9048_v61 = vpack.i.bf16 %v4157_v3, %v4156_v18  ;;  %v4159_v18 = vld [vmem:[#allocation3 + $0x126] sm:$0xff] }
 0x67d   :  { %v4954_v14 = vpack.c.bf16 %v4921_v0, %v4920_v7  ;;  %v15185_v0 = vld [vmem:[#allocation3 + $0x11a] sm:$0xff] }
 0x67e   :  { %v8805_v46 = vpop.permute.xlu1 %8804  ;;  %v8800_v26 = vpop.permute.xlu0 %8799 }
 0x67f   :  { %v8802_v34 = vunpack.i.h.bf16 %v8800_v26  ;;  %v8801_v43 = vunpack.i.l.bf16 %v8800_v26  ;;  %v8807_v53 = vunpack.i.h.bf16 %v8805_v46  ;;  %v8806_v60 = vunpack.i.l.bf16 %v8805_v46  ;;  %5088 = vmatmul.bf16.gmra.mxu1 %v4954_v14 }
 0x680   :  { %v9053_v14 = vpack.i.bf16 %v4329_v50, %v4328_v41 }
 0x681   :  { %v3930_v11 = vadd.f32 %v8802_v34, %v3758_v31  ;;  %v3929_v48 = vadd.f32 %v8801_v43, %v3757_v36  ;;  %9019 = vrot.lane.b32.xlu2 %v9018_v24, %s9286_s28  ;;  %v9058_v36 = vpack.i.bf16 %v15187_v63, %v15185_v0  ;;  %v3587_v34 = vld [vmem:[#allocation3 + $0xb0] sm:$0xff]  ;;  %v3588_v43 = vld [vmem:[#allocation3 + $0xb8] sm:$0xff] }
 0x683   :  { %v4102_v59 = vadd.f32 %v8807_v53, %v3930_v11  ;;  %v4101_v10 = vadd.f32 %v8806_v60, %v3929_v48  ;;  %v8841_v53 = vunpack.i.l.bf16 %v15161_v58  ;;  %v4633_v11 = vld [vmem:[#allocation3 + $0x11b] sm:$0xff]  ;;  %v4634_v48 = vld [vmem:[#allocation3 + $0x123] sm:$0xff] }
 0x684   :  { %9029 = vrot.lane.b32.xlu1 %v9028_v21, %s9292_s21  ;;  %9024 = vrot.lane.b32.xlu0 %v9023_v6, %s9285_s27  ;;  %v15173_v56 = vpop.permute.xlu2 %8854  ;;  %v8842_v21 = vunpack.i.h.bf16 %v15161_v58 }
 0x685   :  { %v4273_v30 = vadd.f32 %v8811_v8, %v4101_v10  ;;  %v4274_v45 = vadd.f32 %v8812_v44, %v4102_v59  ;;  %v15198_v59 = vpop.f32.mrf.mxu1  ;;  %v3643_v44 = vld [vmem:[#allocation3 + $0x119] sm:$0xff] }
 0x686   :  { %v8820_v17 = vpop.permute.xlu1 %8819  ;;  %v8815_v42 = vpop.permute.xlu0 %8814 }
 0x687   :  { %v8817_v5 = vunpack.i.h.bf16 %v8815_v42  ;;  %v8816_v13 = vunpack.i.l.bf16 %v8815_v42  ;;  %v8822_v40 = vunpack.i.h.bf16 %v8820_v17  ;;  %v8821_v52 = vunpack.i.l.bf16 %v8820_v17  ;;  %v4806_v42 = vld [vmem:[#allocation3 + $0x124] sm:$0xff] }
 0x689   :  { %v4445_v51 = vadd.f32 %v8816_v13, %v4273_v30  ;;  %v4446_v49 = vadd.f32 %v8817_v5, %v4274_v45  ;;  %9034 = vrot.lane.b32.xlu2 %v9033_v28, %s9287_s3  ;;  %v9063_v5 = vpack.i.bf16 %v4634_v48, %v4633_v11  ;;  %v9073_v45 = vpack.i.bf16 %v3643_v44, %v3642_v2  ;;  %v15218_v48 = vld [vmem:[#allocation3 + $0x132] sm:$0xff]  ;;  %v3589_v44 = vld [vmem:[#allocation3 + $0xc0] sm:$0xff] }
 0x68b   :  { %v4578_v38 = vadd.f32 %v8821_v52, %v4445_v51  ;;  %v4579_v37 = vadd.f32 %v8822_v40, %v4446_v49  ;;  %v8857_v51 = vunpack.i.h.bf16 %v15173_v56 }
 0x68c   :  { %9044 = vrot.lane.b32.xlu1 %v9043_v22, %s9288_s4  ;;  %9039 = vrot.lane.b32.xlu0 %v9038_v39, %s9290_s19  ;;  %v15183_v1 = vpop.permute.xlu2 %8869  ;;  %v9068_v22 = vpack.i.bf16 %v4806_v42, %v4805_v25 }
 0x68d   :  { %v4750_v9 = vadd.f32 %v8826_v62, %v4578_v38  ;;  %v4751_v19 = vadd.f32 %v8827_v33, %v4579_v37  ;;  %v15206_v38 = vpop.f32.mrf.mxu1  ;;  %v8856_v37 = vunpack.i.l.bf16 %v15173_v56  ;;  %v4158_v62 = vld [vmem:[#allocation3 + $0x11e] sm:$0xff] }
 0x68e   :  { %v8835_v54 = vpop.permute.xlu1 %8834  ;;  %v8830_v23 = vpop.permute.xlu0 %8829  ;;  %v9088_v41 = vpack.i.bf16 %v4159_v18, %v4158_v62 }
 0x68f   :  { %v8837_v7 = vunpack.i.h.bf16 %v8835_v54  ;;  %v8836_v16 = vunpack.i.l.bf16 %v8835_v54  ;;  %v8832_v46 = vunpack.i.h.bf16 %v8830_v23  ;;  %v8831_v47 = vunpack.i.l.bf16 %v8830_v23  ;;  %v3986_v23 = vld [vmem:[#allocation3 + $0x11d] sm:$0xff] }
 0x691   :  { %v4922_v31 = vadd.f32 %v8831_v47, %v4750_v9  ;;  %v4923_v26 = vadd.f32 %v8832_v46, %v4751_v19  ;;  %9049 = vrot.lane.b32.xlu2 %v9048_v61, %s9289_s18  ;;  %v3760_v4 = vadd.f32 %v8837_v7, %v3588_v43  ;;  %v3759_v35 = vadd.f32 %v8836_v16, %v3587_v34  ;;  %v3987_v9 = vld [vmem:[#allocation3 + $0x125] sm:$0xff] }
 0x692   :  { %v9078_v16 = vpack.i.bf16 %v15185_v0, %v15163_v29  ;;  %v4330_v34 = vld [vmem:[#allocation3 + $0x11f] sm:$0xff]  ;;  %v4331_v29 = vld [vmem:[#allocation3 + $0x127] sm:$0xff] }
 0x693   :  { %v4955_v24 = vpack.c.bf16 %v4923_v26, %v4922_v31  ;;  %v3931_v8 = vadd.f32 %v8841_v53, %v3759_v35  ;;  %v3932_v32 = vadd.f32 %v8842_v21, %v3760_v4  ;;  %v9083_v31 = vpack.i.bf16 %v3987_v9, %v3986_v23  ;;  %v4636_v4 = vld [vmem:[#allocation3 + $0x133] sm:$0xff] }
 0x694   :  { %9059 = vrot.lane.b32.xlu1 %v9058_v36, %s9286_s28  ;;  %9054 = vrot.lane.b32.xlu0 %v9053_v14, %s9291_s20  ;;  %v15196_v60 = vpop.permute.xlu2 %8884  ;;  %v8872_v26 = vunpack.i.h.bf16 %v15183_v1  ;;  %v4635_v14 = vld [vmem:[#allocation3 + $0x12b] sm:$0xff]  ;;  %v8871_v35 = vunpack.i.l.bf16 %v15183_v1  ;;  %v9093_v2 = vpack.i.bf16 %v4331_v29, %v4330_v34  ;;  %v4333_v29 = vld [vmem:[#allocation3 + $0x137] sm:$0xff] }
 0x695   :  { %5093 = vmatmul.bf16.gmra.mxu1 %v4955_v24  ;;  %v4332_v34 = vld [vmem:[#allocation3 + $0x12f] sm:$0xff] }
 0x696   :  { %v8850_v6 = vpop.permute.xlu1 %8849  ;;  %v8845_v10 = vpop.permute.xlu0 %8844 }
 0x697   :  { %v8847_v17 = vunpack.i.h.bf16 %v8845_v10  ;;  %v8846_v15 = vunpack.i.l.bf16 %v8845_v10  ;;  %v8852_v13 = vunpack.i.h.bf16 %v8850_v6  ;;  %v8851_v28 = vunpack.i.l.bf16 %v8850_v6  ;;  %v3817_v6 = vld [vmem:[#allocation3 + $0x12a] sm:$0xff]  ;;  %v15220_v10 = vpop.f32.mrf.mxu1 }
 0x698   :  { %v9098_v1 = vpack.i.bf16 %v15218_v48, %v3817_v6 }
 0x699   :  { %v4104_v58 = vadd.f32 %v8847_v17, %v3932_v32  ;;  %v4103_v30 = vadd.f32 %v8846_v15, %v3931_v8  ;;  %9064 = vrot.lane.b32.xlu2 %v9063_v5, %s9285_s27  ;;  %v3590_v8 = vld [vmem:[#allocation3 + $0xc8] sm:$0xff]  ;;  %v9103_v17 = vpack.i.bf16 %v4636_v4, %v4635_v14 }
 0x69b   :  { %v4276_v40 = vadd.f32 %v8852_v13, %v4104_v58  ;;  %v4275_v52 = vadd.f32 %v8851_v28, %v4103_v30  ;;  %v8886_v28 = vunpack.i.l.bf16 %v15196_v60 }
 0x69c   :  { %9074 = vrot.lane.b32.xlu1 %v9073_v45, %s9287_s3  ;;  %9069 = vrot.lane.b32.xlu0 %v9068_v22, %s9292_s21  ;;  %v15204_v49 = vpop.permute.xlu2 %8899  ;;  %v8887_v45 = vunpack.i.h.bf16 %v15196_v60 }
 0x69d   :  { %v4448_v3 = vadd.f32 %v8857_v51, %v4276_v40  ;;  %v4447_v7 = vadd.f32 %v8856_v37, %v4275_v52  ;;  %v4807_v40 = vld [vmem:[#allocation3 + $0x12c] sm:$0xff]  ;;  %v4808_v52 = vld [vmem:[#allocation3 + $0x134] sm:$0xff] }
 0x69e   :  { %v8865_v39 = vpop.permute.xlu1 %8864  ;;  %v8860_v33 = vpop.permute.xlu0 %8859  ;;  %v9108_v9 = vpack.i.bf16 %v4808_v52, %v4807_v40  ;;  %v4810_v40 = vld [vmem:[#allocation3 + $0x144] sm:$0xff]  ;;  %v3591_v52 = vld [vmem:[#allocation3 + $0xd0] sm:$0xff] }
 0x69f   :  { %v8862_v54 = vunpack.i.h.bf16 %v8860_v33  ;;  %v8861_v19 = vunpack.i.l.bf16 %v8860_v33  ;;  %v8867_v46 = vunpack.i.h.bf16 %v8865_v39  ;;  %v8866_v50 = vunpack.i.l.bf16 %v8865_v39  ;;  %v15230_v23 = vpop.f32.mrf.mxu1 }
 0x6a1   :  { %v4581_v47 = vadd.f32 %v8862_v54, %v4448_v3  ;;  %v4580_v61 = vadd.f32 %v8861_v19, %v4447_v7  ;;  %9079 = vrot.lane.b32.xlu2 %v9078_v16, %s9290_s19  ;;  %v3644_v54 = vld [vmem:[#allocation3 + $0x121] sm:$0xff]  ;;  %v3645_v3 = vld [vmem:[#allocation3 + $0x129] sm:$0xff]  ;;  %v9118_v19 = vpack.i.bf16 %v3817_v6, %v15187_v63  ;;  %v3989_v63 = vld [vmem:[#allocation3 + $0x135] sm:$0xff]  ;;  %v9133_v6 = vpack.i.bf16 %v4333_v29, %v4332_v34 }
 0x6a2   :  { %v3990_v34 = vld [vmem:[#allocation3 + $0x13d] sm:$0xff]  ;;  %v3991_v29 = vld [vmem:[#allocation3 + $0x145] sm:$0xff] }
 0x6a3   :  { %v4753_v56 = vadd.f32 %v8867_v46, %v4581_v47  ;;  %v4752_v36 = vadd.f32 %v8866_v50, %v4580_v61  ;;  %v9113_v47 = vpack.i.bf16 %v3645_v3, %v3644_v54  ;;  %v3988_v61 = vld [vmem:[#allocation3 + $0x12d] sm:$0xff]  ;;  %v4638_v54 = vld [vmem:[#allocation3 + $0x143] sm:$0xff] }
 0x6a4   :  { %9089 = vrot.lane.b32.xlu1 %v9088_v41, %s9289_s18  ;;  %9084 = vrot.lane.b32.xlu0 %v9083_v31, %s9288_s4  ;;  %v15215_v43 = vpop.permute.xlu2 %8914  ;;  %v8902_v31 = vunpack.i.h.bf16 %v15204_v49 }
 0x6a5   :  { %v4925_v21 = vadd.f32 %v8872_v26, %v4753_v56  ;;  %v4924_v32 = vadd.f32 %v8871_v35, %v4752_v36  ;;  %v8901_v56 = vunpack.i.l.bf16 %v15204_v49 }
 0x6a6   :  { %v8880_v0 = vpop.permute.xlu1 %8879  ;;  %v8875_v24 = vpop.permute.xlu0 %8874 }
 0x6a7   :  { %v8877_v53 = vunpack.i.h.bf16 %v8875_v24  ;;  %v8876_v11 = vunpack.i.l.bf16 %v8875_v24  ;;  %v8882_v15 = vunpack.i.h.bf16 %v8880_v0  ;;  %v8881_v25 = vunpack.i.l.bf16 %v8880_v0  ;;  %v15240_v49 = vpop.f32.mrf.mxu1 }
 0x6a8   :  { %v4956_v13 = vpack.c.bf16 %v4925_v21, %v4924_v32  ;;  %v4160_v21 = vld [vmem:[#allocation3 + $0x12e] sm:$0xff] }
 0x6a9   :  { %v3762_v42 = vadd.f32 %v8877_v53, %v3590_v8  ;;  %v3761_v5 = vadd.f32 %v8876_v11, %v3589_v44  ;;  %9094 = vrot.lane.b32.xlu2 %v9093_v2, %s9291_s20  ;;  %v4161_v53 = vld [vmem:[#allocation3 + $0x136] sm:$0xff]  ;;  %v9123_v11 = vpack.i.bf16 %v3989_v63, %v3988_v61 }
 0x6aa   :  { %5098 = vmatmul.bf16.gmra.mxu1 %v4956_v13  ;;  %v3819_v13 = vld [vmem:[#allocation3 + $0x13a] sm:$0xff] }
 0x6ab   :  { %v3934_v58 = vadd.f32 %v8882_v15, %v3762_v42  ;;  %v3933_v30 = vadd.f32 %v8881_v25, %v3761_v5  ;;  %v8917_v15 = vunpack.i.h.bf16 %v15215_v43  ;;  %v8916_v25 = vunpack.i.l.bf16 %v15215_v43  ;;  %v3647_v63 = vld [vmem:[#allocation3 + $0x139] sm:$0xff] }
 0x6ac   :  { %9104 = vrot.lane.b32.xlu1 %v9103_v17, %s9285_s27  ;;  %9099 = vrot.lane.b32.xlu0 %v9098_v1, %s9286_s28  ;;  %v15228_v22 = vpop.permute.xlu2 %8929  ;;  %v9128_v17 = vpack.i.bf16 %v4161_v53, %v4160_v21 }
 0x6ad   :  { %v4105_v62 = vadd.f32 %v8886_v28, %v3933_v30  ;;  %v4106_v18 = vadd.f32 %v8887_v45, %v3934_v58  ;;  %v15249_v58 = vld [vmem:[#allocation3 + $0x142] sm:$0xff]  ;;  %v8932_v61 = vunpack.i.h.bf16 %v15228_v22 }
 0x6ae   :  { %v8895_v51 = vpop.permute.xlu1 %8894  ;;  %v8890_v39 = vpop.permute.xlu0 %8889  ;;  %v4809_v28 = vld [vmem:[#allocation3 + $0x13c] sm:$0xff]  ;;  %v9138_v3 = vpack.i.bf16 %v15249_v58, %v3819_v13 }
 0x6af   :  { %v8892_v37 = vunpack.i.h.bf16 %v8890_v39  ;;  %v8891_v33 = vunpack.i.l.bf16 %v8890_v39  ;;  %v8897_v7 = vunpack.i.h.bf16 %v8895_v51  ;;  %v8896_v16 = vunpack.i.l.bf16 %v8895_v51  ;;  %v3592_v51 = vld [vmem:[#allocation3 + $0xd8] sm:$0xff] }
 0x6b0   :  { %v3764_v39 = vadd.f32 %v8917_v15, %v3592_v51  ;;  %v15271_v51 = vld [vmem:[#allocation3 + $0x14a] sm:$0xff] }
 0x6b1   :  { %v4277_v60 = vadd.f32 %v8891_v33, %v4105_v62  ;;  %v4278_v46 = vadd.f32 %v8892_v37, %v4106_v18  ;;  %9109 = vrot.lane.b32.xlu2 %v9108_v9, %s9292_s21  ;;  %v3763_v37 = vadd.f32 %v8916_v25, %v3591_v52  ;;  %v4637_v18 = vld [vmem:[#allocation3 + $0x13b] sm:$0xff]  ;;  %v9148_v9 = vpack.i.bf16 %v4810_v40, %v4809_v28 }
 0x6b2   :  { %v4162_v28 = vld [vmem:[#allocation3 + $0x13e] sm:$0xff] }
 0x6b3   :  { %v4449_v41 = vadd.f32 %v8896_v16, %v4277_v60  ;;  %v4450_v50 = vadd.f32 %v8897_v7, %v4278_v46  ;;  %v15252_v46 = vpop.f32.mrf.mxu1 }
 0x6b4   :  { %9119 = vrot.lane.b32.xlu1 %v9118_v19, %s9290_s19  ;;  %9114 = vrot.lane.b32.xlu0 %v9113_v47, %s9287_s3  ;;  %v15238_v26 = vpop.permute.xlu2 %8944  ;;  %v9143_v47 = vpack.i.bf16 %v4638_v54, %v4637_v18  ;;  %v4335_v18 = vld [vmem:[#allocation3 + $0x147] sm:$0xff] }
 0x6b5   :  { %v4582_v35 = vadd.f32 %v8901_v56, %v4449_v41  ;;  %v4583_v24 = vadd.f32 %v8902_v31, %v4450_v50  ;;  %v8931_v31 = vunpack.i.l.bf16 %v15228_v22  ;;  %v9158_v22 = vpack.i.bf16 %v3819_v13, %v15218_v48  ;;  %v4163_v48 = vld [vmem:[#allocation3 + $0x146] sm:$0xff] }
 0x6b6   :  { %v8910_v36 = vpop.permute.xlu1 %8909  ;;  %v8905_v0 = vpop.permute.xlu0 %8904  ;;  %v8947_v25 = vunpack.i.h.bf16 %v15238_v26 }
 0x6b7   :  { %v8907_v14 = vunpack.i.h.bf16 %v8905_v0  ;;  %v8906_v4 = vunpack.i.l.bf16 %v8905_v0  ;;  %v8912_v2 = vunpack.i.h.bf16 %v8910_v36  ;;  %v8911_v44 = vunpack.i.l.bf16 %v8910_v36 }
 0x6b9   :  { %v4754_v8 = vadd.f32 %v8906_v4, %v4582_v35  ;;  %v4755_v32 = vadd.f32 %v8907_v14, %v4583_v24  ;;  %9124 = vrot.lane.b32.xlu2 %v9123_v11, %s9288_s4  ;;  %v3646_v14 = vld [vmem:[#allocation3 + $0x131] sm:$0xff]  ;;  %v9163_v11 = vpack.i.bf16 %v3991_v29, %v3990_v34 }
 0x6ba   :  { %v9153_v53 = vpack.i.bf16 %v3647_v63, %v3646_v14  ;;  %v4640_v34 = vld [vmem:[#allocation3 + $0x153] sm:$0xff]  ;;  %v3648_v14 = vld [vmem:[#allocation3 + $0x141] sm:$0xff] }
 0x6bb   :  { %v4926_v42 = vadd.f32 %v8911_v44, %v4754_v8  ;;  %v4927_v5 = vadd.f32 %v8912_v2, %v4755_v32  ;;  %v15264_v15 = vpop.f32.mrf.mxu1 }
 0x6bc   :  { %9134 = vrot.lane.b32.xlu1 %v9133_v6, %s9291_s20  ;;  %9129 = vrot.lane.b32.xlu0 %v9128_v17, %s9289_s18  ;;  %v15247_v1 = vpop.permute.xlu2 %8959 }
 0x6bd   :  { %v4957_v45 = vpack.c.bf16 %v4927_v5, %v4926_v42  ;;  %v8946_v42 = vunpack.i.l.bf16 %v15238_v26  ;;  %v9168_v26 = vpack.i.bf16 %v4163_v48, %v4162_v28  ;;  %v5153_v48 = vlaneseq }
 0x6be   :  { %v8925_v30 = vpop.permute.xlu1 %8924  ;;  %v8920_v43 = vpop.permute.xlu0 %8919 }
 0x6bf   :  { %v8922_v33 = vunpack.i.h.bf16 %v8920_v43  ;;  %v8921_v62 = vunpack.i.l.bf16 %v8920_v43  ;;  %5103 = vmatmul.bf16.gmra.mxu1 %v4957_v45  ;;  %v8927_v19 = vunpack.i.h.bf16 %v8925_v30  ;;  %v8926_v7 = vunpack.i.l.bf16 %v8925_v30  ;;  %v4468_v45 = vld [vmem:[#allocation3 + $0x152] sm:$0xff] }
 0x6c1   :  { %v3936_v16 = vadd.f32 %v8922_v33, %v3764_v39  ;;  %v3935_v60 = vadd.f32 %v8921_v62, %v3763_v37  ;;  %9139 = vrot.lane.b32.xlu2 %v9138_v3, %s9286_s28  ;;  %v4334_v62 = vld [vmem:[#allocation3 + $0x13f] sm:$0xff] }
 0x6c3   :  { %v4108_v41 = vadd.f32 %v8927_v19, %v3936_v16  ;;  %v4107_v50 = vadd.f32 %v8926_v7, %v3935_v60  ;;  %v3593_v19 = vld [vmem:[#allocation3 + $0xe0] sm:$0xff]  ;;  %v3594_v7 = vld [vmem:[#allocation3 + $0xe8] sm:$0xff]  ;;  %v9173_v16 = vpack.i.bf16 %v4335_v18, %v4334_v62  ;;  %v3993_v18 = vld [vmem:[#allocation3 + $0x155] sm:$0xff] }
 0x6c4   :  { %9149 = vrot.lane.b32.xlu1 %v9148_v9, %s9292_s21  ;;  %9144 = vrot.lane.b32.xlu0 %v9143_v47, %s9285_s27  ;;  %v15259_v56 = vpop.permute.xlu2 %8974  ;;  %v9178_v9 = vpack.i.bf16 %v4468_v45, %v15271_v51  ;;  %v3992_v62 = vld [vmem:[#allocation3 + $0x14d] sm:$0xff] }
 0x6c5   :  { %v4279_v24 = vadd.f32 %v8931_v31, %v4107_v50  ;;  %v4280_v21 = vadd.f32 %v8932_v61, %v4108_v41  ;;  %v15276_v50 = vpop.f32.mrf.mxu1  ;;  %v8962_v61 = vunpack.i.h.bf16 %v15247_v1  ;;  %v8961_v31 = vunpack.i.l.bf16 %v15247_v1 }
 0x6c6   :  { %v8940_v36 = vpop.permute.xlu1 %8939  ;;  %v8935_v0 = vpop.permute.xlu0 %8934 }
 0x6c7   :  { %v8937_v4 = vunpack.i.h.bf16 %v8935_v0  ;;  %v8936_v35 = vunpack.i.l.bf16 %v8935_v0  ;;  %v8942_v6 = vunpack.i.h.bf16 %v8940_v36  ;;  %v8941_v2 = vunpack.i.l.bf16 %v8940_v36  ;;  %v4639_v36 = vld [vmem:[#allocation3 + $0x14b] sm:$0xff] }
 0x6c9   :  { %v4451_v44 = vadd.f32 %v8936_v35, %v4279_v24  ;;  %v4452_v8 = vadd.f32 %v8937_v4, %v4280_v21  ;;  %9154 = vrot.lane.b32.xlu2 %v9153_v53, %s9287_s3  ;;  %v3649_v4 = vld [vmem:[#allocation3 + $0x149] sm:$0xff] }
 0x6ca   :  { %v9193_v1 = vpack.i.bf16 %v3649_v4, %v3648_v14 }
 0x6cb   :  { %v4584_v32 = vadd.f32 %v8941_v2, %v4451_v44  ;;  %v4585_v17 = vadd.f32 %v8942_v6, %v4452_v8  ;;  %v4812_v6 = vld [vmem:[#allocation3 + $0x154] sm:$0xff]  ;;  %v9183_v2 = vpack.i.bf16 %v4640_v34, %v4639_v36 }
 0x6cc   :  { %9164 = vrot.lane.b32.xlu1 %v9163_v11, %s9288_s4  ;;  %9159 = vrot.lane.b32.xlu0 %v9158_v22, %s9290_s19  ;;  %v15269_v5 = vpop.permute.xlu2 %8989  ;;  %v4811_v11 = vld [vmem:[#allocation3 + $0x14c] sm:$0xff] }
 0x6cd   :  { %v4756_v40 = vadd.f32 %v8946_v42, %v4584_v32  ;;  %v4757_v52 = vadd.f32 %v8947_v25, %v4585_v17  ;;  %v9188_v17 = vpack.i.bf16 %v4812_v6, %v4811_v11  ;;  %v4336_v34 = vld [vmem:[#allocation3 + $0x14f] sm:$0xff] }
 0x6ce   :  { %v8955_v30 = vpop.permute.xlu1 %8954  ;;  %v8950_v13 = vpop.permute.xlu0 %8949 }
 0x6cf   :  { %v8957_v43 = vunpack.i.h.bf16 %v8955_v30  ;;  %v8956_v39 = vunpack.i.l.bf16 %v8955_v30  ;;  %v8952_v37 = vunpack.i.h.bf16 %v8950_v13  ;;  %v8951_v33 = vunpack.i.l.bf16 %v8950_v13  ;;  %v15289_v13 = vpop.f32.mrf.mxu1 }
 0x6d0   :  { %v8977_v30 = vunpack.i.h.bf16 %v15259_v56 }
 0x6d1   :  { %v4928_v54 = vadd.f32 %v8951_v33, %v4756_v40  ;;  %v4929_v3 = vadd.f32 %v8952_v37, %v4757_v52  ;;  %9169 = vrot.lane.b32.xlu2 %v9168_v26, %s9289_s18  ;;  %v3766_v60 = vadd.f32 %v8957_v43, %v3594_v7  ;;  %v3765_v47 = vadd.f32 %v8956_v39, %v3593_v19  ;;  %v4164_v43 = vld [vmem:[#allocation3 + $0x14e] sm:$0xff]  ;;  %v4165_v39 = vld [vmem:[#allocation3 + $0x156] sm:$0xff] }
 0x6d2   :  { %v8976_v40 = vunpack.i.l.bf16 %v15259_v56  ;;  %v9208_v7 = vpack.i.bf16 %v4165_v39, %v4164_v43  ;;  %v9203_v56 = vpack.i.bf16 %v3993_v18, %v3992_v62 }
 0x6d3   :  { %v4958_v41 = vpack.c.bf16 %v4929_v3, %v4928_v54  ;;  %v3937_v35 = vadd.f32 %v8961_v31, %v3765_v47  ;;  %v3938_v24 = vadd.f32 %v8962_v61, %v3766_v60  ;;  %v9198_v3 = vpack.i.bf16 %v15271_v51, %v15249_v58 }
 0x6d4   :  { %9179 = vrot.lane.b32.xlu1 %v9178_v9, %s9286_s28  ;;  %9174 = vrot.lane.b32.xlu0 %v9173_v16, %s9291_s20  ;;  %v15281_v63 = vpop.permute.xlu2 %9004  ;;  %v15294_v16 = vshrl.u32 %v5153_v48, 7  ;;  %v8991_v58 = vunpack.i.l.bf16 %v15269_v5  ;;  %v3650_v48 = vld [vmem:[#allocation3 + $0x151] sm:$0x3] }
 0x6d5   :  { %5108 = vmatmul.bf16.gmra.mxu1 %v4958_v41  ;;  %v8992_v41 = vunpack.i.h.bf16 %v15269_v5  ;;  %v3596_v5 = vld [vmem:[#allocation3 + $0xf8] sm:$0xff]  ;;  %v9007_v39 = vunpack.i.h.bf16 %v15281_v63 }
 0x6d6   :  { %v8970_v29 = vpop.permute.xlu1 %8969  ;;  %v8965_v0 = vpop.permute.xlu0 %8964  ;;  %v15300_v31 = vadd.s32 8, %v15294_v16  ;;  %v5197_v4 = vcvt.s32.f32 %v15294_v16 }
 0x6d7   :  { %v8967_v21 = vunpack.i.h.bf16 %v8965_v0  ;;  %v8966_v53 = vunpack.i.l.bf16 %v8965_v0  ;;  %v8972_v44 = vunpack.i.h.bf16 %v8970_v29  ;;  %v8971_v32 = vunpack.i.l.bf16 %v8970_v29  ;;  %v4337_v29 = vld [vmem:[#allocation3 + $0x157] sm:$0xff] }
 0x6d8   :  { %v5198_v6 = vcvt.s32.f32 %v15300_v31  ;;  %v15391_v31 = vld [vmem:[%s16793_s6] ss:$0 sm:$0xff] }
 0x6d9   :  { %v4110_v8 = vadd.f32 %v8967_v21, %v3938_v24  ;;  %v4109_v22 = vadd.f32 %v8966_v53, %v3937_v35  ;;  %9184 = vrot.lane.b32.xlu2 %v9183_v2, %s9285_s27  ;;  %v15307_v35 = vpop.f32.mrf.mxu1  ;;  %v9213_v2 = vpack.i.bf16 %v4337_v29, %v4336_v34  ;;  %v4338_v34 = vld [vmem:[#allocation3 + $0x15f] sm:$0x3] }
 0x6da   :  { %v5241_v43 = vadd.f32 0.5, %v5198_v6 }
 0x6db   :  { %v4282_v25 = vadd.f32 %v8972_v44, %v4110_v8  ;;  %v4281_v42 = vadd.f32 %v8971_v32, %v4109_v22  ;;  %v3595_v8 = vld [vmem:[#allocation3 + $0xf0] sm:$0xff] }
 0x6dc   :  { %9194 = vrot.lane.b32.xlu1 %v9193_v1, %s9287_s3  ;;  %9189 = vrot.lane.b32.xlu0 %v9188_v17, %s9292_s21  ;;  %v15287_v45 = vpop.permute.xlu2 %9019 }
 0x6dd   :  { %v4454_v33 = vadd.f32 %v8977_v30, %v4282_v25  ;;  %v4453_v54 = vadd.f32 %v8976_v40, %v4281_v42  ;;  %v3822_v25 = vld [vmem:[#allocation3 + $0x152] sm:$0x3]  ;;  %v5240_v42 = vadd.f32 0.5, %v5197_v4  ;;  %v4813_v40 = vld [vmem:[#allocation3 + $0x15c] sm:$0xff] }
 0x6de   :  { %v8985_v28 = vpop.permute.xlu1 %8984  ;;  %v8980_v52 = vpop.permute.xlu0 %8979 }
 0x6df   :  { %v8982_v37 = vunpack.i.h.bf16 %v8980_v52  ;;  %v8981_v26 = vunpack.i.l.bf16 %v8980_v52  ;;  %v8987_v9 = vunpack.i.h.bf16 %v8985_v28  ;;  %v8986_v60 = vunpack.i.l.bf16 %v8985_v28  ;;  %v4814_v52 = vld [vmem:[#allocation3 + $0x164] sm:$0xff] }
 0x6e0   :  { %v5283_v18 = vmul.f32 0.07692308, %v5240_v42 }
 0x6e1   :  { %v4587_v19 = vadd.f32 %v8982_v37, %v4454_v33  ;;  %v4586_v47 = vadd.f32 %v8981_v26, %v4453_v54  ;;  %9199 = vrot.lane.b32.xlu2 %v9198_v3, %s9290_s19  ;;  %v9006_v37 = vunpack.i.l.bf16 %v15281_v63  ;;  %v15322_v26 = vadd.s32 16, %v15294_v16 }
 0x6e2   :  { %v9218_v3 = vpack.i.bf16 %v4814_v52, %v4813_v40  ;;  %v15326_v29 = vfloor.f32 %v5283_v18  ;;  %v15345_v18 = vadd.s32 24, %v15294_v16 }
 0x6e3   :  { %v4759_v61 = vadd.f32 %v8987_v9, %v4587_v19  ;;  %v4758_v36 = vadd.f32 %v8986_v60, %v4586_v47  ;;  %v5284_v47 = vmul.f32 0.07692308, %v5241_v43  ;;  %v4643_v43 = vld [vmem:[#allocation3 + $0x16b] sm:$0x3] }
 0x6e4   :  { %9209 = vrot.lane.b32.xlu1 %v9208_v7, %s9289_s18  ;;  %9204 = vrot.lane.b32.xlu0 %v9203_v56, %s9288_s4  ;;  %v15304_v51 = vpop.permute.xlu2 %9034  ;;  %v15324_v56 = vpop.f32.mrf.mxu1 }
 0x6e5   :  { %v4931_v14 = vadd.f32 %v8992_v41, %v4759_v61  ;;  %v4930_v11 = vadd.f32 %v8991_v58, %v4758_v36  ;;  %v4166_v58 = vld [vmem:[#allocation3 + $0x15e] sm:$0x3] }
 0x6e6   :  { %v9000_v0 = vpop.permute.xlu1 %8999  ;;  %v8995_v24 = vpop.permute.xlu0 %8994 }
 0x6e7   :  { %v8997_v21 = vunpack.i.h.bf16 %v8995_v24  ;;  %v8996_v53 = vunpack.i.l.bf16 %v8995_v24  ;;  %v9002_v44 = vunpack.i.h.bf16 %v9000_v0  ;;  %v9001_v22 = vunpack.i.l.bf16 %v9000_v0 }
 0x6e8   :  { %v4959_v17 = vpack.c.bf16 %v4931_v14, %v4930_v11  ;;  %v5199_v0 = vcvt.s32.f32 %v15322_v26  ;;  %v9021_v11 = vunpack.i.l.bf16 %v15287_v45 }
 0x6e9   :  { %v3768_v1 = vadd.f32 %v8997_v21, %v3596_v5  ;;  %v3767_v32 = vadd.f32 %v8996_v53, %v3595_v8  ;;  %9214 = vrot.lane.b32.xlu2 %v9213_v2, %s9291_s20  ;;  %v15330_v21 = vfloor.f32 %v5284_v47  ;;  %v9022_v53 = vunpack.i.h.bf16 %v15287_v45 }
 0x6ea   :  { %5113 = vmatmul.bf16.gmra.mxu1 %v4959_v17  ;;  %v5455_v8 = vadd.f32 0.5, %v15326_v29  ;;  %v5242_v5 = vadd.f32 0.5, %v5199_v0 }
 0x6eb   :  { %v3940_v30 = vadd.f32 %v9002_v44, %v3768_v1  ;;  %v3939_v28 = vadd.f32 %v9001_v22, %v3767_v32  ;;  %v5456_v42 = vadd.f32 0.5, %v15330_v21 }
 0x6ec   :  { %3735 = vrot.lane.b32.xlu0 %v3650_v48, %s9287_s3  ;;  %3907 = vrot.lane.b32.xlu1 %v3822_v25, %s9290_s19  ;;  %v15319_v33 = vpop.permute.xlu2 %9049  ;;  %s9294_s3 = smov 96  }
 0x6ed   :  { %v4111_v7 = vadd.f32 %v9006_v37, %v3939_v28  ;;  %v4112_v60 = vadd.f32 %v9007_v39, %v3940_v30  ;;  %v15342_v30 = vpop.f32.mrf.mxu1  ;;  %v3994_v28 = vld [vmem:[#allocation3 + $0x15d] sm:$0x3]  ;;  %v4815_v39 = vld [vmem:[#allocation3 + $0x16c] sm:$0x3]  ;;  %v5498_v37 = vmul.f32 0.07692308, %v5455_v8 }
 0x6ee   :  { %v9015_v62 = vpop.permute.xlu1 %9014  ;;  %v9010_v54 = vpop.permute.xlu0 %9009 }
 0x6ef   :  { %v9012_v9 = vunpack.i.h.bf16 %v9010_v54  ;;  %v9011_v19 = vunpack.i.l.bf16 %v9010_v54  ;;  %v9017_v41 = vunpack.i.h.bf16 %v9015_v62  ;;  %v9016_v61 = vunpack.i.l.bf16 %v9015_v62 }
 0x6f0   :  { %v5285_v62 = vmul.f32 0.07692308, %v5242_v5  ;;  %v9037_v54 = vunpack.i.h.bf16 %v15304_v51  ;;  %v4471_v5 = vld [vmem:[#allocation3 + $0x16a] sm:$0x3] }
 0x6f1   :  { %v4283_v36 = vadd.f32 %v9011_v19, %v4111_v7  ;;  %v4284_v63 = vadd.f32 %v9012_v9, %v4112_v60  ;;  %9219 = vrot.lane.b32.xlu2 %v9218_v3, %s9292_s21  ;;  %v9036_v3 = vunpack.i.l.bf16 %v15304_v51  ;;  %v5499_v7 = vmul.f32 0.07692308, %v5456_v42  ;;  %v3598_v51 = vld [vmem:[#allocation3 + $0x108] sm:$0xff] }
 0x6f3   :  { %v4455_v14 = vadd.f32 %v9016_v61, %v4283_v36  ;;  %v4456_v24 = vadd.f32 %v9017_v41, %v4284_v63  ;;  %v5541_v61 = vfloor.f32 %v5498_v37  ;;  %v15354_v36 = vfloor.f32 %v5285_v62 }
 0x6f4   :  { %4251 = vrot.lane.b32.xlu0 %v4166_v58, %s9289_s18  ;;  %4423 = vrot.lane.b32.xlu1 %v4338_v34, %s9291_s20  ;;  %v15336_v2 = vpop.permute.xlu2 %9064  ;;  %v5200_v63 = vcvt.s32.f32 %v15345_v18  ;;  %v3597_v58 = vld [vmem:[#allocation3 + $0x100] sm:$0xff]  ;;  %v5542_v8 = vfloor.f32 %v5499_v7  ;;  %v9052_v62 = vunpack.i.h.bf16 %v15319_v33 }
 0x6f5   :  { %v4588_v17 = vadd.f32 %v9021_v11, %v4455_v14  ;;  %v4589_v25 = vadd.f32 %v9022_v53, %v4456_v24  ;;  %v3770_v14 = vadd.f32 %v9037_v54, %v3598_v51  ;;  %v3769_v24 = vadd.f32 %v9036_v3, %v3597_v58 }
 0x6f6   :  { %v9030_v44 = vpop.permute.xlu1 %9029  ;;  %v9025_v22 = vpop.permute.xlu0 %9024  ;;  %v5457_v42 = vadd.f32 0.5, %v15354_v36  ;;  %v9051_v54 = vunpack.i.l.bf16 %v15319_v33  ;;  %v15380_v33 = vadd.s32 40, %v15294_v16 }
 0x6f7   :  { %v9027_v1 = vunpack.i.h.bf16 %v9025_v22  ;;  %v9026_v32 = vunpack.i.l.bf16 %v9025_v22  ;;  %v9032_v48 = vunpack.i.h.bf16 %v9030_v44  ;;  %v9031_v45 = vunpack.i.l.bf16 %v9030_v44 }
 0x6f8   :  { %v5369_v44 = vmul.f32 13.0, %v15326_v29  ;;  %v5500_v7 = vmul.f32 0.07692308, %v5457_v42  ;;  %v9067_v42 = vunpack.i.h.bf16 %v15336_v2 }
 0x6f9   :  { %v4760_v40 = vadd.f32 %v9026_v32, %v4588_v17  ;;  %v4761_v52 = vadd.f32 %v9027_v1, %v4589_v25  ;;  %4079 = vrot.lane.b32.xlu2 %v3994_v28, %s9288_s4  ;;  %v5584_v25 = vmul.f32 13.0, %v5541_v61  ;;  %v5243_v28 = vadd.f32 0.5, %v5200_v63  ;;  %s9295_s4 = smov 112  }
 0x6fa   :  { %v5412_v37 = vsub.f32 %v5197_v4, %v5369_v44 }
 0x6fb   :  { %v4932_v9 = vadd.f32 %v9031_v45, %v4760_v40  ;;  %v4933_v19 = vadd.f32 %v9032_v48, %v4761_v52  ;;  %v15362_v48 = vadd.s32 32, %v15294_v16  ;;  %v15364_v45 = vpop.f32.mrf.mxu1 }
 0x6fc   :  { %4728 = vrot.lane.b32.xlu0 %v4643_v43, %s9285_s27  ;;  %4900 = vrot.lane.b32.xlu1 %v4815_v39, %s9292_s21  ;;  %v15352_v60 = vpop.permute.xlu2 %9079  ;;  %v5370_v43 = vmul.f32 13.0, %v15330_v21  ;;  %v5585_v39 = vmul.f32 13.0, %v5542_v8  ;;  %vm5670_vm5 = vcmp.lt.f32.partialorder %v5412_v37, 10.5 }
 0x6fd   :  { %v4960_v41 = vpack.c.bf16 %v4933_v19, %v4932_v9  ;;  %v5627_v19 = vsub.f32 %v15326_v29, %v5584_v25  ;;  %v15399_v25 = vadd.s32 48, %v15294_v16 }
 0x6fe   :  { %v9045_v47 = vpop.permute.xlu1 %9044  ;;  %v9040_v34 = vpop.permute.xlu0 %9039  ;;  %v5413_v4 = vsub.f32 %v5198_v6, %v5370_v43 }
 0x6ff   :  { %v9042_v53 = vunpack.i.h.bf16 %v9040_v34  ;;  %v9041_v11 = vunpack.i.l.bf16 %v9040_v34  ;;  %5118 = vmatmul.bf16.gmra.mxu1 %v4960_v41  ;;  %v9047_v22 = vunpack.i.h.bf16 %v9045_v47  ;;  %v9046_v1 = vunpack.i.l.bf16 %v9045_v47 }
 0x700   :  { %v5286_v47 = vmul.f32 0.07692308, %v5243_v28  ;;  %v17130_v41 = vcvt.s32.f32 %v15362_v48  ;;  %vm15393_vm6 = vcmp.lt.f32.partialorder %v5627_v19, 10.5  ;;  %v9066_v28 = vunpack.i.l.bf16 %v15336_v2 }
 0x701   :  { %v3942_v32 = vadd.f32 %v9042_v53, %v3770_v14  ;;  %v3941_v17 = vadd.f32 %v9041_v11, %v3769_v24  ;;  %4556 = vrot.lane.b32.xlu2 %v4471_v5, %s9286_s28  ;;  %v5628_v24 = vsub.f32 %v15330_v21, %v5585_v39  ;;  %v5543_v21 = vfloor.f32 %v5500_v7  ;;  %vm5756_vm10 = vmand %vm5670_vm5, %vm15393_vm6 }
 0x702   :  { %v15382_v8 = vfloor.f32 %v5286_v47  ;;  %v5244_v5 = vadd.f32 0.5, %v17130_v41  ;;  %vm5671_vm7 = vcmp.lt.f32.partialorder %v5413_v4, 10.5 }
 0x703   :  { %v4114_v40 = vadd.f32 %v9047_v22, %v3942_v32  ;;  %v4113_v52 = vadd.f32 %v9046_v1, %v3941_v17  ;;  %v15386_v22 = vpop.f32.mrf.mxu1  ;;  %v17128_v17 = vcvt.s32.f32 %v15380_v33  ;;  %vm5714_vm8 = vcmp.lt.f32.partialorder %v5628_v24, 10.5 }
 0x704   :  { %v15372_v3 = vpop.permute.xlu2 %9094  ;;  %vm5757_vm9 = vmand %vm5671_vm7, %vm5714_vm8 }
 0x705   :  { %v4285_v34 = vadd.f32 %v9051_v54, %v4113_v52  ;;  %v4286_v14 = vadd.f32 %v9052_v62, %v4114_v40  ;;  %v15405_v40 = vadd.f32 %v15391_v31, %v15168_v55  ;;  %v5371_v52 = vmul.f32 13.0, %v15354_v36 }
 0x706   :  { %v9060_v9 = vpop.permute.xlu1 %9059  ;;  %v9055_v61 = vpop.permute.xlu0 %9054  ;;  %v5458_v62 = vadd.f32 0.5, %v15382_v8  ;;  %v5287_v54 = vmul.f32 0.07692308, %v5244_v5  ;;  %v5586_v55 = vmul.f32 13.0, %v5543_v21  ;;  %v3599_v5 = vld [vmem:[#allocation3 + $0x110] sm:$0xff]  ;;  %v3600_v21 = vld [vmem:[#allocation3 + $0x118] sm:$0xff] }
 0x707   :  { %v9057_v58 = vunpack.i.h.bf16 %v9055_v61  ;;  %v9056_v51 = vunpack.i.l.bf16 %v9055_v61  ;;  %v9062_v53 = vunpack.i.h.bf16 %v9060_v9  ;;  %v9061_v11 = vunpack.i.l.bf16 %v9060_v9 }
 0x708   :  { %v5414_v4 = vsub.f32 %v5199_v0, %v5371_v52 }
 0x709   :  { %v4457_v29 = vadd.f32 %v9056_v51, %v4285_v34  ;;  %v4458_v44 = vadd.f32 %v9057_v58, %v4286_v14  ;;  %v5245_v51 = vadd.f32 0.5, %v17128_v17  ;;  %v17127_v34 = vcvt.s32.f32 %v15399_v25 }
 0x70a   :  { %v15416_v14 = vadd.f32 %v15391_v31, %v15154_v27  ;;  %v5886_v27 = vsel %vm5757_vm9, %v15405_v40, 0.0  ;;  %vm5672_vm11 = vcmp.lt.f32.partialorder %v5414_v4, 10.5  ;;  %v9097_v4 = vunpack.i.h.bf16 %v15372_v3 }
 0x70b   :  { %v4590_v1 = vadd.f32 %v9061_v11, %v4457_v29  ;;  %v4591_v32 = vadd.f32 %v9062_v53, %v4458_v44  ;;  %v5501_v11 = vmul.f32 0.07692308, %v5458_v62  ;;  %v15423_v29 = vfloor.f32 %v5287_v54 }
 0x70c   :  { %v15408_v43 = vpop.permute.xlu2 %9109  ;;  %v15426_v44 = vadd.s32 56, %v15294_v16  ;;  %v5288_v6 = vmul.f32 0.07692308, %v5245_v51  ;;  %v5246_v37 = vadd.f32 0.5, %v17127_v34  ;;  %v5885_v52 = vsel %vm5756_vm10, %v15416_v14, 0.0 }
 0x70d   :  { %v4762_v19 = vadd.f32 %v9066_v28, %v4590_v1  ;;  %v4763_v7 = vadd.f32 %v9067_v42, %v4591_v32  ;;  %v5629_v42 = vsub.f32 %v15354_v36, %v5586_v55  ;;  %v15433_v28 = vpop.f32.mrf.mxu1  ;;  %v9081_v62 = vunpack.i.l.bf16 %v15352_v60 }
 0x70e   :  { %v9075_v39 = vpop.permute.xlu1 %9074  ;;  %v9070_v9 = vpop.permute.xlu0 %9069  ;;  %v5459_v36 = vadd.f32 0.5, %v15423_v29 }
 0x70f   :  { %v9077_v47 = vunpack.i.h.bf16 %v9075_v39  ;;  %v9076_v61 = vunpack.i.l.bf16 %v9075_v39  ;;  %v9072_v2 = vunpack.i.h.bf16 %v9070_v9  ;;  %v9071_v58 = vunpack.i.l.bf16 %v9070_v9 }
 0x710   :  { %v9082_v39 = vunpack.i.h.bf16 %v15352_v60  ;;  %vm5715_vm12 = vcmp.lt.f32.partialorder %v5629_v42, 10.5  ;;  %v5289_v60 = vmul.f32 0.07692308, %v5246_v37  ;;  %v5502_v17 = vmul.f32 0.07692308, %v5459_v36 }
 0x711   :  { %v4934_v24 = vadd.f32 %v9071_v58, %v4762_v19  ;;  %v4935_v53 = vadd.f32 %v9072_v2, %v4763_v7  ;;  %v3772_v1 = vadd.f32 %v9077_v47, %v3600_v21  ;;  %v3771_v32 = vadd.f32 %v9076_v61, %v3599_v5  ;;  %vm5758_vm13 = vmand %vm5672_vm11, %vm5715_vm12 }
 0x712   :  { %v5980_v19 = vmul.f32 %v5886_v27, %v5886_v27  ;;  %v5544_v7 = vfloor.f32 %v5501_v11  ;;  %v17129_v47 = vcvt.s32.f32 %v15426_v44  ;;  %v15447_v11 = vadd.f32 %v15391_v31, %v15178_v20 }
 0x713   :  { %v4961_v26 = vpack.c.bf16 %v4935_v53, %v4934_v24  ;;  %v3943_v2 = vadd.f32 %v9081_v62, %v3771_v32  ;;  %v3944_v58 = vadd.f32 %v9082_v39, %v3772_v1  ;;  %v5372_v24 = vmul.f32 13.0, %v15382_v8 }
 0x714   :  { %v15438_v54 = vpop.permute.xlu2 %9124  ;;  %v15443_v53 = vfloor.f32 %v5288_v6  ;;  %18527 = vst [vmem:[#allocation78_spill] sm:$0xff] %v15447_v11  ;;  %v5587_v34 = vmul.f32 13.0, %v5544_v7  ;;  %v5247_v1 = vadd.f32 0.5, %v17129_v47  ;;  %v5979_v42 = vmul.f32 %v5885_v52, %v5885_v52 }
 0x715   :  { %5123 = vmatmul.bf16.gmra.mxu1 %v4961_v26  ;;  %v5415_v39 = vsub.f32 %v5200_v63, %v5372_v24  ;;  %v15459_v20 = vadd.s32 64, %v15294_v16  ;;  %v15461_v7 = vpop.f32.mrf.mxu1  ;;  %v5928_v36 = vadd.f32 %v5886_v27, %v5885_v52  ;;  %v5887_v63 = vsel %vm5758_vm13, %v15447_v11, 0.0 }
 0x716   :  { %v9090_v9 = vpop.permute.xlu1 %9089  ;;  %v9085_v61 = vpop.permute.xlu0 %9084  ;;  %v5460_v62 = vadd.f32 0.5, %v15443_v53 }
 0x717   :  { %v9087_v55 = vunpack.i.h.bf16 %v9085_v61  ;;  %v9086_v51 = vunpack.i.l.bf16 %v9085_v61  ;;  %v9092_v5 = vunpack.i.h.bf16 %v9090_v9  ;;  %v9091_v21 = vunpack.i.l.bf16 %v9090_v9 }
 0x718   :  { %v15456_v9 = vfloor.f32 %v5289_v60  ;;  %v15463_v61 = vadd.f32 %v5980_v19, %v5979_v42  ;;  %vm5673_vm14 = vcmp.lt.f32.partialorder %v5415_v39, 10.5  ;;  %v5503_v52 = vmul.f32 0.07692308, %v5460_v62 }
 0x719   :  { %v4116_v26 = vadd.f32 %v9087_v55, %v3944_v58  ;;  %v4115_v0 = vadd.f32 %v9086_v51, %v3943_v2  ;;  %v9096_v2 = vunpack.i.l.bf16 %v15372_v3  ;;  %v5630_v58 = vsub.f32 %v15382_v8, %v5587_v34 }
 0x71a   :  { %v5545_v55 = vfloor.f32 %v5502_v17  ;;  %v5290_v51 = vmul.f32 0.07692308, %v5247_v1  ;;  %v5461_v19 = vadd.f32 0.5, %v15456_v9  ;;  %v17131_v3 = vcvt.s32.f32 %v15459_v20 }
 0x71b   :  { %v4288_v6 = vadd.f32 %v9092_v5, %v4116_v26  ;;  %v4287_v37 = vadd.f32 %v9091_v21, %v4115_v0  ;;  %vm15473_vm15 = vcmp.lt.f32.partialorder %v5630_v58, 10.5  ;;  %v5373_v8 = vmul.f32 13.0, %v15423_v29 }
 0x71c   :  { %v15467_v0 = vpop.permute.xlu2 %9139  ;;  %v5588_v17 = vmul.f32 13.0, %v5545_v55  ;;  %v15478_v34 = vfloor.f32 %v5290_v51  ;;  %v9112_v1 = vunpack.i.h.bf16 %v15408_v43  ;;  %v15485_v58 = vadd.s32 72, %v15294_v16  ;;  %vm15502_vm0 = vmand %vm5673_vm14, %vm15473_vm15 }
 0x71d   :  { %v4459_v21 = vadd.f32 %v9096_v2, %v4287_v37  ;;  %v4460_v27 = vadd.f32 %v9097_v4, %v4288_v6  ;;  %v9111_v6 = vunpack.i.l.bf16 %v15408_v43  ;;  %v5546_v4 = vfloor.f32 %v5503_v52 }
 0x71e   :  { %v9105_v18 = vpop.permute.xlu1 %9104  ;;  %v9100_v24 = vpop.permute.xlu0 %9099  ;;  %v5504_v2 = vmul.f32 0.07692308, %v5461_v19  ;;  %v15493_v43 = vadd.f32 %v15391_v31, %v15198_v59  ;;  %v5462_v52 = vadd.f32 0.5, %v15478_v34 }
 0x71f   :  { %v9102_v60 = vunpack.i.h.bf16 %v9100_v24  ;;  %v9101_v5 = vunpack.i.l.bf16 %v9100_v24  ;;  %v9107_v26 = vunpack.i.h.bf16 %v9105_v18  ;;  %v9106_v42 = vunpack.i.l.bf16 %v9105_v18 }
 0x720   :  { %v5248_v18 = vadd.f32 0.5, %v17131_v3  ;;  %v15487_v24 = vadd.f32 %v5928_v36, %v5887_v63  ;;  %18530 = vst [vmem:[#allocation79_spill] sm:$0xff] %v15493_v43 }
 0x721   :  { %v4592_v32 = vadd.f32 %v9101_v5, %v4459_v21  ;;  %v4593_v47 = vadd.f32 %v9102_v60, %v4460_v27  ;;  %v5981_v60 = vmul.f32 %v5887_v63, %v5887_v63  ;;  %v5374_v27 = vmul.f32 13.0, %v15443_v53 }
 0x722   :  { %v5631_v63 = vsub.f32 %v15423_v29, %v5588_v17  ;;  %v5888_v29 = vsel %vm15502_vm0, %v15493_v43, 0.0  ;;  %v18534_v17 = vcvt.s32.f32 %v15380_v33  ;;  %v3607_v43 = vld [vmem:[#allocation3 + $0x150] sm:$0x3] }
 0x723   :  { %v4764_v37 = vadd.f32 %v9106_v42, %v4592_v32  ;;  %v4765_v62 = vadd.f32 %v9107_v26, %v4593_v47  ;;  %v18531_v47 = vcvt.s32.f32 %v15362_v48  ;;  %v15507_v26 = vpop.f32.mrf.mxu1 }
 0x724   :  { %v15489_v55 = vpop.permute.xlu2 %9154  ;;  %vm15516_vm2 = vcmp.lt.f32.partialorder %v5631_v63, 10.5  ;;  %v9127_v63 = vunpack.i.h.bf16 %v15438_v54 }
 0x725   :  { %v4936_v5 = vadd.f32 %v9111_v6, %v4764_v37  ;;  %v4937_v21 = vadd.f32 %v9112_v1, %v4765_v62  ;;  %v5416_v32 = vsub.f32 %v18531_v47, %v5373_v8  ;;  %v5589_v8 = vmul.f32 13.0, %v5546_v4  ;;  %v3601_v62 = vld [vmem:[#allocation3 + $0x120] sm:$0xff]  ;;  %v3602_v47 = vld [vmem:[#allocation3 + $0x128] sm:$0xff] }
 0x726   :  { %v9120_v51 = vpop.permute.xlu1 %9119  ;;  %v9115_v19 = vpop.permute.xlu0 %9114  ;;  %v5547_v1 = vfloor.f32 %v5504_v2  ;;  %v5291_v6 = vmul.f32 0.07692308, %v5248_v18  ;;  %v17133_v37 = vcvt.s32.f32 %v15485_v58  ;;  %v5375_v4 = vmul.f32 13.0, %v15456_v9 }
 0x727   :  { %v9117_v59 = vunpack.i.h.bf16 %v9115_v19  ;;  %v9116_v42 = vunpack.i.l.bf16 %v9115_v19  ;;  %v4962_v48 = vpack.c.bf16 %v4937_v21, %v4936_v5  ;;  %v9122_v41 = vunpack.i.h.bf16 %v9120_v51  ;;  %v7382_v21 = vld [vmem:[%s16796_s9 + $0x78] sm:$0xff] }
 0x728   :  { %v9121_v39 = vunpack.i.l.bf16 %v9120_v51  ;;  %v5417_v19 = vsub.f32 %v18534_v17, %v5374_v27  ;;  %v5505_v2 = vmul.f32 0.07692308, %v5462_v52  ;;  %vm5674_vm1 = vcmp.lt.f32.partialorder %v5416_v32, 10.5  ;;  %6626 = vmatpush.bf16.msrb.mxu2 %v7382_v21  ;;  %v7374_v21 = vld [vmem:[%s16796_s9 + $0x38] sm:$0xff] }
 0x729   :  { %v3774_v3 = vadd.f32 %v9117_v59, %v3602_v47  ;;  %v3773_v11 = vadd.f32 %v9116_v42, %v3601_v62  ;;  %5128 = vmatmul.bf16.gmra.mxu1 %v4962_v48  ;;  %v5632_v36 = vsub.f32 %v15443_v53, %v5589_v8  ;;  %v5590_v59 = vmul.f32 13.0, %v5547_v1  ;;  %vm15540_vm4 = vmand %vm5674_vm1, %vm15516_vm2  ;;  %6687 = vmatpush.bf16.msrb.mxu3 %v7374_v21 }
 0x72a   :  { %v15524_v42 = vfloor.f32 %v5291_v6  ;;  %v5249_v33 = vadd.f32 0.5, %v17133_v37  ;;  %v6023_v27 = vadd.f32 %v15463_v61, %v5981_v60  ;;  %v5982_v52 = vmul.f32 %v5888_v29, %v5888_v29 }
 0x72b   :  { %v3946_v5 = vadd.f32 %v9122_v41, %v3774_v3  ;;  %v3945_v51 = vadd.f32 %v9121_v39, %v3773_v11  ;;  %v9126_v3 = vunpack.i.l.bf16 %v15438_v54  ;;  %v15533_v48 = vadd.f32 %v15391_v31, %v15206_v38  ;;  %v15544_v54 = vpop.f32.mrf.mxu1 }
 0x72c   :  { %vm5675_vm3 = vcmp.lt.f32.partialorder %v5417_v19, 10.5  ;;  %v18538_v53 = vcvt.s32.f32 %v15399_v25  ;;  %v5548_v1 = vfloor.f32 %v5505_v2  ;;  %v15546_v60 = vpop.permute.xlu2 %9169  ;;  %vm5718_vm5 = vcmp.lt.f32.partialorder %v5632_v36, 10.5 }
 0x72d   :  { %18537 = vst [vmem:[#allocation80_spill] sm:$0xff] %v15533_v48  ;;  %v4117_v47 = vadd.f32 %v9126_v3, %v3945_v51  ;;  %v4118_v41 = vadd.f32 %v9127_v63, %v3946_v5  ;;  %v5633_v25 = vsub.f32 %v15456_v9, %v5590_v59  ;;  %v5463_v39 = vadd.f32 0.5, %v15524_v42  ;;  %vm5761_vm6 = vmand %vm5675_vm3, %vm5718_vm5 }
 0x72e   :  { %v9135_v11 = vpop.permute.xlu1 %9134  ;;  %v5418_v8 = vsub.f32 %v18538_v53, %v5375_v4  ;;  %v9130_v6 = vpop.permute.xlu0 %9129  ;;  %v5292_v17 = vmul.f32 0.07692308, %v5249_v33  ;;  %v5889_v53 = vsel %vm15540_vm4, %v15533_v48, 0.0  ;;  %v15558_v5 = vadd.f32 %v15391_v31, %v15220_v10 }
 0x72f   :  { %v9132_v62 = vunpack.i.h.bf16 %v9130_v6  ;;  %v9131_v38 = vunpack.i.l.bf16 %v9130_v6  ;;  %v9137_v4 = vunpack.i.h.bf16 %v9135_v11  ;;  %v9136_v32 = vunpack.i.l.bf16 %v9135_v11 }
 0x730   :  { %18541 = vst [vmem:[#allocation81_spill] sm:$0xff] %v15558_v5  ;;  %v5376_v9 = vmul.f32 13.0, %v15478_v34  ;;  %v5591_v51 = vmul.f32 13.0, %v5548_v1  ;;  %v5930_v36 = vadd.f32 %v15487_v24, %v5888_v29  ;;  %vm5676_vm7 = vcmp.lt.f32.partialorder %v5418_v8, 10.5 }
 0x731   :  { %v4289_v2 = vadd.f32 %v9131_v38, %v4117_v47  ;;  %v4290_v18 = vadd.f32 %v9132_v62, %v4118_v41  ;;  %vm5719_vm8 = vcmp.lt.f32.partialorder %v5633_v25, 10.5  ;;  %v5506_v63 = vmul.f32 0.07692308, %v5463_v39 }
 0x732   :  { %v15563_v3 = vfloor.f32 %v5292_v17  ;;  %v15566_v11 = vadd.s32 80, %v15294_v16  ;;  %v6024_v10 = vadd.f32 %v6023_v27, %v5982_v52  ;;  %v5983_v6 = vmul.f32 %v5889_v53, %v5889_v53  ;;  %vm5762_vm9 = vmand %vm5676_vm7, %vm5719_vm8 }
 0x733   :  { %v4461_v59 = vadd.f32 %v9136_v32, %v4289_v2  ;;  %v4462_v33 = vadd.f32 %v9137_v4, %v4290_v18  ;;  %v9142_v61 = vunpack.i.h.bf16 %v15467_v0  ;;  %v9141_v1 = vunpack.i.l.bf16 %v15467_v0  ;;  %v15584_v32 = vpop.f32.mrf.mxu1 }
 0x734   :  { %v5890_v29 = vsel %vm5761_vm6, %v15558_v5, 0.0  ;;  %v15573_v19 = vadd.f32 %v15391_v31, %v15230_v23  ;;  %v18543_v62 = vcvt.s32.f32 %v15426_v44  ;;  %v5634_v47 = vsub.f32 %v15478_v34, %v5591_v51  ;;  %v15586_v44 = vpop.permute.xlu2 %9184 }
 0x735   :  { %v4594_v25 = vadd.f32 %v9141_v1, %v4461_v59  ;;  %v4595_v39 = vadd.f32 %v9142_v61, %v4462_v33  ;;  %v5549_v0 = vfloor.f32 %v5506_v63  ;;  %v5464_v17 = vadd.f32 0.5, %v15563_v3 }
 0x736   :  { %v9150_v24 = vpop.permute.xlu1 %9149  ;;  %18542 = vst [vmem:[#allocation82_spill] sm:$0xff] %v15573_v19  ;;  %v5419_v38 = vsub.f32 %v18543_v62, %v5376_v9  ;;  %v9145_v41 = vpop.permute.xlu0 %9144  ;;  %v17135_v4 = vcvt.s32.f32 %v15566_v11  ;;  %v15582_v23 = vadd.s32 88, %v15294_v16  ;;  %v5891_v21 = vsel %vm5762_vm9, %v15573_v19, 0.0 }
 0x737   :  { %v9147_v27 = vunpack.i.h.bf16 %v9145_v41  ;;  %v9146_v52 = vunpack.i.l.bf16 %v9145_v41  ;;  %v9152_v34 = vunpack.i.h.bf16 %v9150_v24  ;;  %v9151_v2 = vunpack.i.l.bf16 %v9150_v24 }
 0x738   :  { %vm5677_vm10 = vcmp.lt.f32.partialorder %v5419_v38, 10.5  ;;  %vm15589_vm11 = vcmp.lt.f32.partialorder %v5634_v47, 10.5  ;;  %v5377_v51 = vmul.f32 13.0, %v15524_v42  ;;  %v9157_v59 = vunpack.i.h.bf16 %v15489_v55 }
 0x739   :  { %v4766_v8 = vadd.f32 %v9146_v52, %v4594_v25  ;;  %v4767_v18 = vadd.f32 %v9147_v27, %v4595_v39  ;;  %v9156_v33 = vunpack.i.l.bf16 %v15489_v55  ;;  %v5592_v1 = vmul.f32 13.0, %v5549_v0  ;;  %vm15611_vm12 = vmand %vm5677_vm10, %vm15589_vm11 }
 0x73a   :  { %v5507_v62 = vmul.f32 0.07692308, %v5464_v17  ;;  %v5250_v24 = vadd.f32 0.5, %v17135_v4  ;;  %v17140_v41 = vcvt.s32.f32 %v15582_v23  ;;  %v5931_v27 = vadd.f32 %v5930_v36, %v5889_v53  ;;  %v3603_v17 = vld [vmem:[#allocation3 + $0x130] sm:$0xff] }
 0x73b   :  { %v4938_v63 = vadd.f32 %v9151_v2, %v4766_v8  ;;  %v4939_v61 = vadd.f32 %v9152_v34, %v4767_v18  ;;  %v6025_v47 = vadd.f32 %v6024_v10, %v5983_v6  ;;  %v5984_v52 = vmul.f32 %v5890_v29, %v5890_v29  ;;  %v3604_v2 = vld [vmem:[#allocation3 + $0x138] sm:$0xff] }
 0x73c   :  { %v5985_v37 = vmul.f32 %v5891_v21, %v5891_v21  ;;  %v15601_v19 = vadd.f32 %v15391_v31, %v15240_v49  ;;  %v18547_v55 = vcvt.s32.f32 %v15459_v20  ;;  %v15606_v0 = vadd.s32 96, %v15294_v16 }
 0x73d   :  { %v4963_v39 = vpack.c.bf16 %v4939_v61, %v4938_v63  ;;  %v3776_v36 = vadd.f32 %v9157_v59, %v3604_v2  ;;  %v3775_v10 = vadd.f32 %v9156_v33, %v3603_v17  ;;  %v5635_v20 = vsub.f32 %v15524_v42, %v5592_v1  ;;  %v15618_v61 = vpop.f32.mrf.mxu1  ;;  %v15625_v1 = vpop.permute.xlu2 %9199 }
 0x73e   :  { %v9165_v25 = vpop.permute.xlu1 %9164  ;;  %18546 = vst [vmem:[#allocation83_spill] sm:$0xff] %v15601_v19  ;;  %v5420_v34 = vsub.f32 %v18547_v55, %v5377_v51  ;;  %v9160_v8 = vpop.permute.xlu0 %9159  ;;  %v5550_v18 = vfloor.f32 %v5507_v62  ;;  %v5293_v51 = vmul.f32 0.07692308, %v5250_v24  ;;  %v5251_v63 = vadd.f32 0.5, %v17140_v41 }
 0x73f   :  { %v9162_v49 = vunpack.i.h.bf16 %v9160_v8  ;;  %v9161_v6 = vunpack.i.l.bf16 %v9160_v8  ;;  %5133 = vmatmul.bf16.gmra.mxu1 %v4963_v39  ;;  %v9167_v9 = vunpack.i.h.bf16 %v9165_v25  ;;  %v9166_v38 = vunpack.i.l.bf16 %v9165_v25 }
 0x740   :  { %v5932_v5 = vadd.f32 %v5931_v27, %v5890_v29  ;;  %v6026_v48 = vadd.f32 %v6025_v47, %v5984_v52  ;;  %v5892_v59 = vsel %vm15611_vm12, %v15601_v19, 0.0  ;;  %v17139_v33 = vcvt.s32.f32 %v15606_v0 }
 0x741   :  { %v3948_v55 = vadd.f32 %v9162_v49, %v3776_v36  ;;  %v3947_v4 = vadd.f32 %v9161_v6, %v3775_v10  ;;  %vm5678_vm13 = vcmp.lt.f32.partialorder %v5420_v34, 10.5  ;;  %v5378_v42 = vmul.f32 13.0, %v15563_v3 }
 0x742   :  { %vm5721_vm14 = vcmp.lt.f32.partialorder %v5635_v20, 10.5  ;;  %v5593_v39 = vmul.f32 13.0, %v5550_v18  ;;  %v15627_v25 = vfloor.f32 %v5293_v51  ;;  %v5294_v17 = vmul.f32 0.07692308, %v5251_v63 }
 0x743   :  { %v4120_v62 = vadd.f32 %v9167_v9, %v3948_v55  ;;  %v4119_v24 = vadd.f32 %v9166_v38, %v3947_v4  ;;  %v5933_v29 = vadd.f32 %v5932_v5, %v5891_v21  ;;  %v6027_v27 = vadd.f32 %v6026_v48, %v5985_v37  ;;  %vm5764_vm15 = vmand %vm5678_vm13, %vm5721_vm14 }
 0x744   :  { %v9172_v47 = vunpack.i.h.bf16 %v15546_v60  ;;  %v9171_v52 = vunpack.i.l.bf16 %v15546_v60  ;;  %v5986_v8 = vmul.f32 %v5892_v59, %v5892_v59  ;;  %v15633_v53 = vadd.f32 %v15391_v31, %v15252_v46 }
 0x745   :  { %v5252_v4 = vadd.f32 0.5, %v17139_v33  ;;  %v15638_v36 = vadd.s32 104, %v15294_v16  ;;  %v18551_v60 = vcvt.s32.f32 %v15485_v58  ;;  %v5636_v6 = vsub.f32 %v15563_v3, %v5593_v39  ;;  %v3606_v33 = vld [vmem:[#allocation3 + $0x148] sm:$0xff] }
 0x746   :  { %v9180_v2 = vpop.permute.xlu1 %9179  ;;  %18550 = vst [vmem:[#allocation84_spill] sm:$0xff] %v15633_v53  ;;  %v9175_v10 = vpop.permute.xlu0 %9174  ;;  %v4291_v5 = vadd.f32 %v9171_v52, %v4119_v24  ;;  %v4292_v21 = vadd.f32 %v9172_v47, %v4120_v62  ;;  %v5465_v46 = vadd.f32 0.5, %v15627_v25  ;;  %v15645_v20 = vfloor.f32 %v5294_v17 }
 0x747   :  { %v9177_v37 = vunpack.i.h.bf16 %v9175_v10  ;;  %v9176_v48 = vunpack.i.l.bf16 %v9175_v10  ;;  %v5421_v49 = vsub.f32 %v18551_v60, %v5378_v42  ;;  %v9182_v18 = vunpack.i.h.bf16 %v9180_v2  ;;  %v15650_v42 = vpop.f32.mrf.mxu1 }
 0x748   :  { %v9181_v51 = vunpack.i.l.bf16 %v9180_v2  ;;  %v5893_v38 = vsel %vm5764_vm15, %v15633_v53, 0.0  ;;  %v5295_v55 = vmul.f32 0.07692308, %v5252_v4  ;;  %v17138_v62 = vcvt.s32.f32 %v15638_v36 }
 0x749   :  { %v4463_v63 = vadd.f32 %v9176_v48, %v4291_v5  ;;  %v4464_v9 = vadd.f32 %v9177_v37, %v4292_v21  ;;  %v5934_v24 = vadd.f32 %v5933_v29, %v5892_v59  ;;  %v6028_v58 = vadd.f32 %v6027_v27, %v5986_v8  ;;  %v15662_v29 = vpop.permute.xlu2 %9214 }
 0x74a   :  { %v5466_v17 = vadd.f32 0.5, %v15645_v20  ;;  %v15654_v47 = vadd.s32 112, %v15294_v16  ;;  %v9187_v52 = vunpack.i.h.bf16 %v15586_v44  ;;  %v9186_v2 = vunpack.i.l.bf16 %v15586_v44 }
 0x74b   :  { %v4596_v3 = vadd.f32 %v9181_v51, %v4463_v63  ;;  %v4597_v39 = vadd.f32 %v9182_v18, %v4464_v9  ;;  %v5987_v10 = vmul.f32 %v5893_v38, %v5893_v38  ;;  %vm5679_vm0 = vcmp.lt.f32.partialorder %v5421_v49, 10.5 }
 0x74c   :  { %vm15658_vm1 = vcmp.lt.f32.partialorder %v5636_v6, 10.5  ;;  %v5508_v59 = vmul.f32 0.07692308, %v5465_v46  ;;  %v15664_v8 = vfloor.f32 %v5295_v55  ;;  %v5253_v37 = vadd.f32 0.5, %v17138_v62  ;;  %v3605_v62 = vld [vmem:[#allocation3 + $0x140] sm:$0xff] }
 0x74d   :  { %v4768_v5 = vadd.f32 %v9186_v2, %v4596_v3  ;;  %v4769_v21 = vadd.f32 %v9187_v52, %v4597_v39  ;;  %v15670_v6 = vadd.f32 %v15391_v31, %v15264_v15  ;;  %v5509_v46 = vmul.f32 0.07692308, %v5466_v17  ;;  %vm15679_vm2 = vmand %vm5679_vm0, %vm15658_vm1 }
 0x74e   :  { %v9195_v27 = vpop.permute.xlu1 %9194  ;;  %v9190_v48 = vpop.permute.xlu0 %9189  ;;  %v15674_v9 = vadd.s32 120, %v15294_v16  ;;  %v5379_v3 = vmul.f32 13.0, %v15627_v25  ;;  %v5551_v39 = vfloor.f32 %v5508_v59  ;;  %v15685_v17 = vadd.f32 %v5934_v24, %v5893_v38 }
 0x74f   :  { %v9197_v60 = vunpack.i.h.bf16 %v9195_v27  ;;  %v9196_v44 = vunpack.i.l.bf16 %v9195_v27  ;;  %v9192_v18 = vunpack.i.h.bf16 %v9190_v48  ;;  %v9191_v51 = vunpack.i.l.bf16 %v9190_v48  ;;  %18554 = vst [vmem:[#allocation85_spill] sm:$0xff] %v15670_v6  ;;  %v15690_v49 = vpop.f32.mrf.mxu1 }
 0x750   :  { %v5467_v27 = vadd.f32 0.5, %v15664_v8  ;;  %v5296_v48 = vmul.f32 0.07692308, %v5253_v37  ;;  %v15688_v4 = vadd.f32 %v6028_v58, %v5987_v10  ;;  %v15695_v59 = vsel %vm15679_vm2, %v15670_v6, 0.0 }
 0x751   :  { %v4940_v52 = vadd.f32 %v9191_v51, %v4768_v5  ;;  %v4941_v2 = vadd.f32 %v9192_v18, %v4769_v21  ;;  %v3778_v34 = vadd.f32 %v9197_v60, %v3606_v33  ;;  %v3777_v41 = vadd.f32 %v9196_v44, %v3605_v62  ;;  %v15706_v60 = vpop.permute.xlu2 %9219 }
 0x752   :  { %v5552_v5 = vfloor.f32 %v5509_v46  ;;  %v18557_v38 = vcvt.s32.f32 %v15654_v47  ;;  %v17143_v37 = vcvt.s32.f32 %v15674_v9  ;;  %v18558_v21 = vcvt.s32.f32 %v15566_v11 }
 0x753   :  { %v4964_v63 = vpack.c.bf16 %v4941_v2, %v4940_v52  ;;  %v5594_v10 = vmul.f32 13.0, %v5551_v39  ;;  %v9202_v33 = vunpack.i.h.bf16 %v15625_v1  ;;  %v9201_v62 = vunpack.i.l.bf16 %v15625_v1 }
 0x754   :  { %v5254_v24 = vadd.f32 0.5, %v18557_v38  ;;  %v15702_v58 = vsub.f32 %v18558_v21, %v5379_v3  ;;  %v5380_v44 = vmul.f32 13.0, %v15645_v20  ;;  %v5510_v18 = vmul.f32 0.07692308, %v5467_v27 }
 0x755   :  { %5138 = vmatmul.bf16.gmra.mxu1 %v4964_v63  ;;  %v15709_v51 = vfloor.f32 %v5296_v48  ;;  %v15712_v46 = vadd.s32 128, %v15294_v16  ;;  %v3949_v3 = vadd.f32 %v9201_v62, %v3777_v41  ;;  %v3950_v52 = vadd.f32 %v9202_v33, %v3778_v34 }
 0x756   :  { %v9210_v55 = vpop.permute.xlu1 %9209  ;;  %v9205_v11 = vpop.permute.xlu0 %9204  ;;  %v5595_v38 = vmul.f32 13.0, %v5552_v5  ;;  %v5297_v21 = vmul.f32 0.07692308, %v5254_v24  ;;  %v5255_v1 = vadd.f32 0.5, %v17143_v37  ;;  %v15717_v63 = vadd.s32 136, %v15294_v16 }
 0x757   :  { %v9207_v39 = vunpack.i.h.bf16 %v9205_v11  ;;  %v9206_v2 = vunpack.i.l.bf16 %v9205_v11  ;;  %v9212_v27 = vunpack.i.h.bf16 %v9210_v55  ;;  %v9211_v48 = vunpack.i.l.bf16 %v9210_v55  ;;  %v15735_v37 = vpop.f32.mrf.mxu1 }
 0x758   :  { %v15721_v53 = vadd.f32 %v15391_v31, %v15276_v50  ;;  %vm5680_vm3 = vcmp.lt.f32.partialorder %v15702_v58, 10.5  ;;  %v5553_v41 = vfloor.f32 %v5510_v18  ;;  %v5468_v34 = vadd.f32 0.5, %v15709_v51 }
 0x759   :  { %v4122_v15 = vadd.f32 %v9207_v39, %v3950_v52  ;;  %v4121_v6 = vadd.f32 %v9206_v2, %v3949_v3  ;;  %v9217_v24 = vunpack.i.h.bf16 %v15662_v29  ;;  %v9216_v33 = vunpack.i.l.bf16 %v15662_v29 }
 0x75a   :  { %v5637_v55 = vsub.f32 %v15627_v25, %v5594_v10  ;;  %v15729_v3 = vfloor.f32 %v5297_v21  ;;  %v5298_v52 = vmul.f32 0.07692308, %v5255_v1  ;;  %v5214_v50 = vcvt.s32.f32 %v15717_v63 }
 0x75b   :  { %v4294_v62 = vadd.f32 %v9212_v27, %v4122_v15  ;;  %v4293_v11 = vadd.f32 %v9211_v48, %v4121_v6  ;;  %v18559_v39 = vcvt.s32.f32 %v15582_v23  ;;  %v5638_v2 = vsub.f32 %v15645_v20, %v5595_v38 }
 0x75c   :  { %v5381_v29 = vmul.f32 13.0, %v15664_v8  ;;  %v5596_v6 = vmul.f32 13.0, %v5553_v41  ;;  %v5511_v15 = vmul.f32 0.07692308, %v5468_v34  ;;  %v15739_v25 = vadd.s32 144, %v15294_v16 }
 0x75d   :  { %v5423_v18 = vsub.f32 %v18559_v39, %v5380_v44  ;;  %v4466_v5 = vadd.f32 %v9217_v24, %v4294_v62  ;;  %v4465_v19 = vadd.f32 %v9216_v33, %v4293_v11  ;;  %v18560_v1 = vcvt.s32.f32 %v15712_v46  ;;  %v4080_v62 = vpop.permute.xlu2 %4079 }
 0x75e   :  { %v3736_v10 = vpop.permute.xlu0 %3735  ;;  %v3908_v21 = vpop.permute.xlu1 %3907  ;;  %v18561_v44 = vunpack.i.l.bf16 %v14645_v57  ;;  %v18562_v38 = vunpack.i.h.bf16 %v14645_v57  ;;  %v5469_v24 = vadd.f32 0.5, %v15729_v3  ;;  %v15748_v33 = vfloor.f32 %v5298_v52 }
 0x75f   :  { %v5256_v23 = vadd.f32 0.5, %v18560_v1  ;;  %v3779_v48 = vadd.f32 %v3736_v10, %v3607_v43  ;;  %v5257_v41 = vadd.f32 0.5, %v5214_v50  ;;  %v9222_v34 = vunpack.i.h.bf16 %v15706_v60 }
 0x760   :  { %v4598_v20 = vadd.f32 %v18561_v44, %v4465_v19  ;;  %v4599_v27 = vadd.f32 %v18562_v38, %v4466_v5  ;;  %v9221_v11 = vunpack.i.l.bf16 %v15706_v60  ;;  %v18563_v39 = vunpack.i.l.bf16 %v14638_v12  ;;  %v7381_v44 = vld [vmem:[%s16796_s9 + $0x70] sm:$0xff] }
 0x761   :  { %v18564_v19 = vunpack.i.h.bf16 %v14638_v12  ;;  %v3951_v5 = vadd.f32 %v3908_v21, %v3779_v48  ;;  %vm15758_vm4 = vcmp.lt.f32.partialorder %v5637_v55, 10.5  ;;  %vm5681_vm5 = vcmp.lt.f32.partialorder %v5423_v18, 10.5  ;;  %v7373_v60 = vld [vmem:[%s16796_s9 + $0x30] sm:$0xff]  ;;  %6627 = vmatpush.bf16.msrb.mxu2 %v7381_v44 }
 0x762   :  { %v4770_v1 = vadd.f32 %v18563_v39, %v4598_v20  ;;  %v5554_v52 = vfloor.f32 %v5511_v15  ;;  %v5215_v10 = vcvt.s32.f32 %v15739_v25  ;;  %v5299_v20 = vmul.f32 0.07692308, %v5256_v23  ;;  %6688 = vmatpush.bf16.msrb.mxu3 %v7373_v60  ;;  %vm15783_vm7 = vmand %vm5680_vm3, %vm15758_vm4 }
 0x763   :  { %v4771_v57 = vadd.f32 %v18564_v19, %v4599_v27  ;;  %v15770_v12 = vadd.s32 152, %v15294_v16  ;;  %vm15772_vm6 = vcmp.lt.f32.partialorder %v5638_v2, 10.5  ;;  %v18569_v15 = vcvt.s32.f32 %v15606_v0 }
 0x764   :  { %v4942_v55 = vadd.f32 %v9221_v11, %v4770_v1  ;;  %v5639_v48 = vsub.f32 %v15664_v8, %v5596_v6  ;;  %v5512_v39 = vmul.f32 0.07692308, %v5469_v24  ;;  %v5470_v2 = vadd.f32 0.5, %v15748_v33  ;;  %v15788_v11 = vpop.f32.mrf.mxu1  ;;  %vm5767_vm8 = vmand %vm5681_vm5, %vm15772_vm6 }
 0x765   :  { %v4943_v21 = vadd.f32 %v9222_v34, %v4771_v57  ;;  %v5424_v27 = vsub.f32 %v18569_v15, %v5381_v29  ;;  %v5300_v34 = vmul.f32 0.07692308, %v5257_v41  ;;  %v4123_v0 = vadd.f32 %v4080_v62, %v3951_v5  ;;  %v4557_v15 = vpop.permute.xlu2 %4556 }
 0x766   :  { %v15792_v8 = vadd.f32 %v15391_v31, %v15289_v13  ;;  %v5382_v6 = vmul.f32 13.0, %v15709_v51  ;;  %v5597_v24 = vmul.f32 13.0, %v5554_v52  ;;  %v5258_v58 = vadd.f32 0.5, %v5215_v10  ;;  %v4252_v1 = vpop.permute.xlu0 %4251  ;;  %v4424_v19 = vpop.permute.xlu1 %4423 }
 0x767   :  { %v4965_v29 = vpack.c.bf16 %v4943_v21, %v4942_v55  ;;  %v5988_v57 = vmul.f32 %v15695_v59, %v15695_v59  ;;  %v15802_v41 = vfloor.f32 %v5299_v20  ;;  %v5216_v13 = vcvt.s32.f32 %v15770_v12 }
 0x768   :  { %v4295_v62 = vadd.f32 %v4252_v1, %v4123_v0  ;;  %v5936_v5 = vadd.f32 %v15685_v17, %v15695_v59  ;;  %v5895_v43 = vsel %vm15783_vm7, %v15721_v53, 0.0  ;;  %vm5682_vm9 = vcmp.lt.f32.partialorder %v5424_v27, 10.5 }
 0x769   :  { %5143 = vmatmul.bf16.gmra.mxu1 %v4965_v29  ;;  %v5555_v52 = vfloor.f32 %v5512_v39  ;;  %vm15810_vm10 = vcmp.lt.f32.partialorder %v5639_v48, 10.5  ;;  %v5513_v18 = vmul.f32 0.07692308, %v5470_v2  ;;  %v15814_v60 = vfloor.f32 %v5300_v34 }
 0x76a   :  { %v4467_v20 = vadd.f32 %v4424_v19, %v4295_v62  ;;  %v5896_v55 = vsel %vm5767_vm8, %v15792_v8, 0.0  ;;  %v18574_v21 = vcvt.s32.f32 %v15638_v36  ;;  %v5640_v17 = vsub.f32 %v15709_v51, %v5597_v24  ;;  %vm5768_vm11 = vmand %vm5682_vm9, %vm15810_vm10 }
 0x76b   :  { %v5301_v59 = vmul.f32 0.07692308, %v5258_v58  ;;  %v6030_v23 = vadd.f32 %v15688_v4, %v5988_v57  ;;  %v15823_v48 = vadd.f32 %v15391_v31, %v15307_v35  ;;  %v5471_v39 = vadd.f32 0.5, %v15802_v41 }
 0x76c   :  { %v5425_v38 = vsub.f32 %v18574_v21, %v5382_v6  ;;  %v5259_v2 = vadd.f32 0.5, %v5216_v13  ;;  %v5937_v34 = vadd.f32 %v5936_v5, %v5895_v43  ;;  %v5989_v0 = vmul.f32 %v5895_v43, %v5895_v43 }
 0x76d   :  { %v5383_v36 = vmul.f32 13.0, %v15729_v3  ;;  %v5598_v51 = vmul.f32 13.0, %v5555_v52  ;;  %v5990_v29 = vmul.f32 %v5896_v55, %v5896_v55  ;;  %v5556_v4 = vfloor.f32 %v5513_v18 }
 0x76e   :  { %v5472_v6 = vadd.f32 0.5, %v15814_v60  ;;  %v4600_v35 = vadd.f32 %v4557_v15, %v4467_v20  ;;  %vm5683_vm12 = vcmp.lt.f32.partialorder %v5425_v38, 10.5  ;;  %vm15833_vm13 = vcmp.lt.f32.partialorder %v5640_v17, 10.5  ;;  %v4729_v27 = vpop.permute.xlu0 %4728  ;;  %v4901_v19 = vpop.permute.xlu1 %4900 }
 0x76f   :  { %v15837_v58 = vfloor.f32 %v5301_v59  ;;  %v15840_v1 = vadd.s32 160, %v15294_v16  ;;  %v5897_v57 = vsel %vm5768_vm11, %v15823_v48, 0.0  ;;  %v5514_v62 = vmul.f32 0.07692308, %v5471_v39  ;;  %v15851_v17 = vpop.f32.mrf.mxu1  ;;  %vm5769_vm14 = vmand %vm5683_vm12, %vm15833_vm13 }
 0x770   :  { %v5302_v5 = vmul.f32 0.07692308, %v5259_v2  ;;  %v4772_v43 = vadd.f32 %v4729_v27, %v4600_v35  ;;  %v15845_v52 = vadd.f32 %v15391_v31, %v15324_v56  ;;  %v18577_v44 = vcvt.s32.f32 %v15654_v47 }
 0x771   :  { %v5641_v20 = vsub.f32 %v15729_v3, %v5598_v51  ;;  %v5384_v21 = vmul.f32 13.0, %v15748_v33  ;;  %v6031_v59 = vadd.f32 %v6030_v23, %v5989_v0  ;;  %v5599_v15 = vmul.f32 13.0, %v5556_v4 }
 0x772   :  { %v5426_v18 = vsub.f32 %v18577_v44, %v5383_v36  ;;  %v5515_v39 = vmul.f32 0.07692308, %v5472_v6  ;;  %v4944_v2 = vadd.f32 %v4901_v19, %v4772_v43  ;;  %v5938_v35 = vadd.f32 %v5937_v34, %v5896_v55 }
 0x773   :  { %v5473_v56 = vadd.f32 0.5, %v15837_v58  ;;  %v5217_v31 = vcvt.s32.f32 %v15840_v1  ;;  %v15859_v47 = vadd.s32 168, %v15294_v16  ;;  %v6032_v3 = vadd.f32 %v6031_v59, %v5990_v29  ;;  %v15885_v59 = vld [vmem:[%s16793_s6] ss:$0 sm:$0xff] }
 0x774   :  { %v5991_v36 = vmul.f32 %v5897_v57, %v5897_v57  ;;  %v5557_v51 = vfloor.f32 %v5514_v62  ;;  %v15861_v27 = vfloor.f32 %v5302_v5  ;;  %v5898_v23 = vsel %vm5769_vm14, %v15845_v52, 0.0 }
 0x775   :  { %vm5684_vm15 = vcmp.lt.f32.partialorder %v5426_v18, 10.5  ;;  %vm15864_vm0 = vcmp.lt.f32.partialorder %v5641_v20, 10.5  ;;  %v18580_v55 = vcvt.s32.f32 %v15674_v9  ;;  %v5642_v0 = vsub.f32 %v15748_v33, %v5599_v15 }
 0x776   :  { %v5385_v4 = vmul.f32 13.0, %v15802_v41  ;;  %v5558_v6 = vfloor.f32 %v5515_v39  ;;  %v4966_v29 = vpack.c.bf16 %v4944_v2, %v4944_v2  ;;  %v5516_v24 = vmul.f32 0.07692308, %v5473_v56  ;;  %vm5770_vm2 = vmand %vm5684_vm15, %vm15864_vm0 }
 0x777   :  { %v5427_v34 = vsub.f32 %v18580_v55, %v5384_v21  ;;  %v5260_v19 = vadd.f32 0.5, %v5217_v31  ;;  %v17151_v62 = vcvt.s32.f32 %v15859_v47  ;;  %v15876_v5 = vadd.s32 176, %v15294_v16 }
 0x778   :  { %v5939_v43 = vadd.f32 %v5938_v35, %v5897_v57  ;;  %v5600_v44 = vmul.f32 13.0, %v5557_v51  ;;  %v5474_v9 = vadd.f32 0.5, %v15861_v27  ;;  %v15880_v20 = vadd.s32 184, %v15294_v16  ;;  %v15891_v57 = vpop.f32.mrf.mxu1 }
 0x779   :  { %5148 = vmatmul.bf16.gmra.mxu1 %v4966_v29  ;;  %v6033_v33 = vadd.f32 %v6032_v3, %v5991_v36  ;;  %v5992_v21 = vmul.f32 %v5898_v23, %v5898_v23  ;;  %v15889_v15 = vadd.f32 %v15885_v59, %v15342_v30  ;;  %vm5685_vm1 = vcmp.lt.f32.partialorder %v5427_v34, 10.5 }
 0x77a   :  { %vm15896_vm3 = vcmp.lt.f32.partialorder %v5642_v0, 10.5  ;;  %v18583_v2 = vcvt.s32.f32 %v15712_v46  ;;  %v5386_v56 = vmul.f32 13.0, %v15814_v60  ;;  %v5601_v3 = vmul.f32 13.0, %v5558_v6 }
 0x77b   :  { %v5559_v36 = vfloor.f32 %v5516_v24  ;;  %v5303_v30 = vmul.f32 0.07692308, %v5260_v19  ;;  %v5261_v51 = vadd.f32 0.5, %v17151_v62  ;;  %v17149_v55 = vcvt.s32.f32 %v15876_v5  ;;  %vm5771_vm4 = vmand %vm5685_vm1, %vm15896_vm3 }
 0x77c   :  { %v5428_v35 = vsub.f32 %v18583_v2, %v5385_v4  ;;  %v5643_v18 = vsub.f32 %v15802_v41, %v5600_v44  ;;  %v5517_v38 = vmul.f32 0.07692308, %v5474_v9  ;;  %v17146_v0 = vcvt.s32.f32 %v15880_v20 }
 0x77d   :  { %v15909_v29 = vadd.s32 192, %v15294_v16  ;;  %v5940_v46 = vadd.f32 %v5939_v43, %v5898_v23  ;;  %v6034_v4 = vadd.f32 %v6033_v33, %v5992_v21  ;;  %v5899_v2 = vsel %vm5770_vm2, %v15889_v15, 0.0 }
 0x77e   :  { %v15914_v6 = vadd.f32 %v15885_v59, %v15364_v45  ;;  %vm5686_vm5 = vcmp.lt.f32.partialorder %v5428_v35, 10.5  ;;  %v5429_v41 = vsub.f32 %v5214_v50, %v5386_v56  ;;  %v5644_v24 = vsub.f32 %v15814_v60, %v5601_v3 }
 0x77f   :  { %v5387_v19 = vmul.f32 13.0, %v15837_v58  ;;  %v5602_v23 = vmul.f32 13.0, %v5559_v36  ;;  %v15923_v43 = vfloor.f32 %v5303_v30  ;;  %v5304_v44 = vmul.f32 0.07692308, %v5261_v51 }
 0x780   :  { %18584 = vst [vmem:[#allocation86_spill] sm:$0xff] %v15914_v6  ;;  %v5262_v45 = vadd.f32 0.5, %v17149_v55  ;;  %vm5729_vm6 = vcmp.lt.f32.partialorder %v5643_v18, 10.5  ;;  %v5560_v9 = vfloor.f32 %v5517_v38  ;;  %v5263_v34 = vadd.f32 0.5, %v17146_v0  ;;  %v15948_v18 = vpop.f32.mrf.mxu1 }
 0x781   :  { %v17148_v33 = vcvt.s32.f32 %v15909_v29  ;;  %v5993_v63 = vmul.f32 %v5899_v2, %v5899_v2  ;;  %v5900_v50 = vsel %vm5771_vm4, %v15914_v6, 0.0  ;;  %v5085_v60 = vadd.f32 %v15885_v59, %v15386_v22  ;;  %vm5772_vm9 = vmand %vm5686_vm5, %vm5729_vm6 }
 0x782   :  { %v15934_v21 = vadd.s32 200, %v15294_v16  ;;  %vm5687_vm7 = vcmp.lt.f32.partialorder %v5429_v41, 10.5  ;;  %vm15936_vm8 = vcmp.lt.f32.partialorder %v5644_v24, 10.5  ;;  %v5430_v56 = vsub.f32 %v5215_v10, %v5387_v19 }
 0x783   :  { %v5388_v3 = vmul.f32 13.0, %v15861_v27  ;;  %v5645_v36 = vsub.f32 %v15837_v58, %v5602_v23  ;;  %v5475_v30 = vadd.f32 0.5, %v15923_v43  ;;  %v15946_v22 = vfloor.f32 %v5304_v44  ;;  %vm5773_vm11 = vmand %vm5687_vm7, %vm15936_vm8 }
 0x784   :  { %v5305_v51 = vmul.f32 0.07692308, %v5262_v45  ;;  %v5603_v38 = vmul.f32 13.0, %v5560_v9  ;;  %v5306_v24 = vmul.f32 0.07692308, %v5263_v34  ;;  %v5264_v0 = vadd.f32 0.5, %v17148_v33 }
 0x785   :  { %v15953_v25 = vadd.s32 208, %v15294_v16  ;;  %v5941_v10 = vadd.f32 %v5940_v46, %v5899_v2  ;;  %v6035_v35 = vadd.f32 %v6034_v4, %v5993_v63  ;;  %v5994_v19 = vmul.f32 %v5900_v50, %v5900_v50 }
 0x786   :  { %v17147_v58 = vcvt.s32.f32 %v15934_v21  ;;  %v5901_v23 = vsel %vm5772_vm9, %v5085_v60, 0.0  ;;  %v5087_v44 = vadd.f32 %v15885_v59, %v15433_v28  ;;  %vm5688_vm10 = vcmp.lt.f32.partialorder %v5430_v56, 10.5 }
 0x787   :  { %v5431_v45 = vsub.f32 %v5216_v13, %v5388_v3  ;;  %vm15963_vm12 = vcmp.lt.f32.partialorder %v5645_v36, 10.5  ;;  %v5518_v46 = vmul.f32 0.07692308, %v5475_v30  ;;  %v5476_v4 = vadd.f32 0.5, %v15946_v22 }
 0x788   :  { %v15968_v2 = vfloor.f32 %v5305_v51  ;;  %v5646_v34 = vsub.f32 %v15861_v27, %v5603_v38  ;;  %v15971_v28 = vfloor.f32 %v5306_v24  ;;  %v5307_v63 = vmul.f32 0.07692308, %v5264_v0  ;;  %vm5774_vm13 = vmand %vm5688_vm10, %vm15963_vm12  ;;  %v15985_v38 = vpop.f32.mrf.mxu1 }
 0x789   :  { %v17150_v12 = vcvt.s32.f32 %v15953_v25  ;;  %v5995_v13 = vmul.f32 %v5901_v23, %v5901_v23  ;;  %v5265_v41 = vadd.f32 0.5, %v17147_v58  ;;  %v15977_v60 = vadd.s32 216, %v15294_v16 }
 0x78a   :  { %v5942_v39 = vadd.f32 %v5941_v10, %v5900_v50  ;;  %v6036_v3 = vadd.f32 %v6035_v35, %v5994_v19  ;;  %v5902_v36 = vsel %vm5773_vm11, %v5087_v44, 0.0  ;;  %v5090_v30 = vadd.f32 %v15885_v59, %v15461_v7 }
 0x78b   :  { %vm5689_vm14 = vcmp.lt.f32.partialorder %v5431_v45, 10.5  ;;  %v5561_v27 = vfloor.f32 %v5518_v46  ;;  %v5519_v0 = vmul.f32 0.07692308, %v5476_v4  ;;  %v5477_v51 = vadd.f32 0.5, %v15968_v2 }
 0x78c   :  { %vm5732_vm15 = vcmp.lt.f32.partialorder %v5646_v34, 10.5  ;;  %v5478_v24 = vadd.f32 0.5, %v15971_v28  ;;  %v15988_v50 = vfloor.f32 %v5307_v63  ;;  %v5266_v10 = vadd.f32 0.5, %v17150_v12 }
 0x78d   :  { %v5943_v7 = vadd.f32 %v5942_v39, %v5901_v23  ;;  %v6037_v35 = vadd.f32 %v6036_v3, %v5995_v13  ;;  %v5308_v19 = vmul.f32 0.07692308, %v5265_v41  ;;  %v5224_v56 = vcvt.s32.f32 %v15977_v60  ;;  %vm5775_vm0 = vmand %vm5689_vm14, %vm5732_vm15 }
 0x78e   :  { %v5996_v44 = vmul.f32 %v5902_v36, %v5902_v36  ;;  %v5903_v9 = vsel %vm5774_vm13, %v5090_v30, 0.0  ;;  %v5092_v46 = vadd.f32 %v15885_v59, %v15507_v26  ;;  %v5389_v4 = vmul.f32 13.0, %v15923_v43 }
 0x78f   :  { %v5944_v34 = vadd.f32 %v5943_v7, %v5902_v36  ;;  %v5604_v63 = vmul.f32 13.0, %v5561_v27  ;;  %v5562_v58 = vfloor.f32 %v5519_v0  ;;  %v5520_v33 = vmul.f32 0.07692308, %v5477_v51 }
 0x790   :  { %v5521_v55 = vmul.f32 0.07692308, %v5478_v24  ;;  %v5479_v23 = vadd.f32 0.5, %v15988_v50  ;;  %v5309_v13 = vmul.f32 0.07692308, %v5266_v10  ;;  %v15999_v41 = vadd.s32 224, %v15294_v16  ;;  %v16016_v1 = vpop.f32.mrf.mxu1 }
 0x791   :  { %v5997_v39 = vmul.f32 %v5903_v9, %v5903_v9  ;;  %v16001_v3 = vfloor.f32 %v5308_v19  ;;  %v5267_v26 = vadd.f32 0.5, %v5224_v56  ;;  %v6038_v30 = vadd.f32 %v6037_v35, %v5996_v44 }
 0x792   :  { %v5945_v36 = vadd.f32 %v5944_v34, %v5903_v9  ;;  %v5904_v45 = vsel %vm5775_vm0, %v5092_v46, 0.0  ;;  %v5432_v27 = vsub.f32 %v5217_v31, %v5389_v4  ;;  %v5647_v0 = vsub.f32 %v15923_v43, %v5604_v63  ;;  %v7380_v31 = vld [vmem:[%s16796_s9 + $0x68] sm:$0xff] }
 0x793   :  { %v5390_v51 = vmul.f32 13.0, %v15946_v22  ;;  %v5605_v24 = vmul.f32 13.0, %v5562_v58  ;;  %v5563_v10 = vfloor.f32 %v5520_v33  ;;  %v5564_v7 = vfloor.f32 %v5521_v55  ;;  %v7372_v55 = vld [vmem:[%s16796_s9 + $0x28] sm:$0xff]  ;;  %6628 = vmatpush.bf16.msrb.mxu2 %v7380_v31 }
 0x794   :  { %v5522_v12 = vmul.f32 0.07692308, %v5479_v23  ;;  %v16009_v62 = vfloor.f32 %v5309_v13  ;;  %v5225_v19 = vcvt.s32.f32 %v15999_v41  ;;  %v6039_v6 = vadd.f32 %v6038_v30, %v5997_v39  ;;  %6689 = vmatpush.bf16.msrb.mxu3 %v7372_v55 }
 0x795   :  { %v5480_v35 = vadd.f32 0.5, %v16001_v3  ;;  %v5310_v44 = vmul.f32 0.07692308, %v5267_v26  ;;  %v16014_v9 = vadd.s32 232, %v15294_v16  ;;  %v5946_v43 = vadd.f32 %v5945_v36, %v5904_v45 }
 0x796   :  { %v5998_v33 = vmul.f32 %v5904_v45, %v5904_v45  ;;  %vm5690_vm1 = vcmp.lt.f32.partialorder %v5432_v27, 10.5  ;;  %v5391_v58 = vmul.f32 13.0, %v15968_v2  ;;  %v18589_v46 = vcvt.s32.f32 %v15859_v47 }
 0x797   :  { %v5648_v34 = vsub.f32 %v15946_v22, %v5605_v24  ;;  %v5606_v63 = vmul.f32 13.0, %v5563_v10  ;;  %v5392_v23 = vmul.f32 13.0, %v15971_v28  ;;  %vm5733_vm2 = vcmp.lt.f32.partialorder %v5647_v0, 10.5 }
 0x798   :  { %v5433_v4 = vsub.f32 %v18589_v46, %v5390_v51  ;;  %v5607_v13 = vmul.f32 13.0, %v5564_v7  ;;  %v5481_v39 = vadd.f32 0.5, %v16009_v62  ;;  %v5268_v26 = vadd.f32 0.5, %v5225_v19  ;;  %vm5776_vm3 = vmand %vm5690_vm1, %vm5733_vm2  ;;  %v16055_v46 = vpop.f32.mrf.mxu1 }
 0x799   :  { %v5565_v30 = vfloor.f32 %v5522_v12  ;;  %v5523_v36 = vmul.f32 0.07692308, %v5480_v35  ;;  %v16032_v45 = vfloor.f32 %v5310_v44  ;;  %v17153_v47 = vcvt.s32.f32 %v16014_v9 }
 0x79a   :  { %v6040_v51 = vadd.f32 %v6039_v6, %v5998_v33  ;;  %v5095_v22 = vadd.f32 %v15885_v59, %v15544_v54  ;;  %v18590_v24 = vcvt.s32.f32 %v15876_v5  ;;  %v16040_v0 = vadd.s32 240, %v15294_v16 }
 0x79b   :  { %vm5691_vm4 = vcmp.lt.f32.partialorder %v5433_v4, 10.5  ;;  %vm16043_vm5 = vcmp.lt.f32.partialorder %v5648_v34, 10.5  ;;  %v5649_v7 = vsub.f32 %v15968_v2, %v5606_v63  ;;  %v18593_v6 = vcvt.s32.f32 %v15880_v20 }
 0x79c   :  { %v5434_v10 = vsub.f32 %v18590_v24, %v5391_v58  ;;  %v5650_v54 = vsub.f32 %v15971_v28, %v5607_v13  ;;  %v5393_v5 = vmul.f32 13.0, %v15988_v50  ;;  %v5524_v44 = vmul.f32 0.07692308, %v5481_v39  ;;  %vm5777_vm9 = vmand %vm5691_vm4, %vm16043_vm5 }
 0x79d   :  { %v5435_v35 = vsub.f32 %v18593_v6, %v5392_v23  ;;  %v5311_v31 = vmul.f32 0.07692308, %v5268_v26  ;;  %v5608_v55 = vmul.f32 13.0, %v5565_v30  ;;  %v5566_v33 = vfloor.f32 %v5523_v36 }
 0x79e   :  { %v5482_v27 = vadd.f32 0.5, %v16032_v45  ;;  %v5269_v58 = vadd.f32 0.5, %v17153_v47  ;;  %v5905_v34 = vsel %vm5776_vm3, %v5095_v22, 0.0  ;;  %v16059_v20 = vadd.f32 %v15885_v59, %v15584_v32 }
 0x79f   :  { %vm5692_vm6 = vcmp.lt.f32.partialorder %v5434_v10, 10.5  ;;  %v5227_v2 = vcvt.s32.f32 %v16040_v0  ;;  %vm16062_vm7 = vcmp.lt.f32.partialorder %v5649_v7, 10.5  ;;  %vm5693_vm8 = vcmp.lt.f32.partialorder %v5435_v35, 10.5 }
 0x7a0   :  { %v5394_v63 = vmul.f32 13.0, %v16001_v3  ;;  %v16068_v23 = vadd.s32 248, %v15294_v16  ;;  %vm16073_vm10 = vcmp.lt.f32.partialorder %v5650_v54, 10.5  ;;  %v18598_v13 = vcvt.s32.f32 %v15909_v29  ;;  %vm5778_vm11 = vmand %vm5692_vm6, %vm16062_vm7 }
 0x7a1   :  { %v5567_v26 = vfloor.f32 %v5524_v44  ;;  %v16079_v30 = vfloor.f32 %v5311_v31  ;;  %v5651_v36 = vsub.f32 %v15988_v50, %v5608_v55  ;;  %v5609_v22 = vmul.f32 13.0, %v5566_v33  ;;  %vm5779_vm12 = vmand %vm5693_vm8, %vm16073_vm10 }
 0x7a2   :  { %v5436_v39 = vsub.f32 %v18598_v13, %v5393_v5  ;;  %v5525_v24 = vmul.f32 0.07692308, %v5482_v27  ;;  %v5312_v7 = vmul.f32 0.07692308, %v5269_v58  ;;  %v5947_v6 = vadd.f32 %v5946_v43, %v5905_v34 }
 0x7a3   :  { %v5999_v47 = vmul.f32 %v5905_v34, %v5905_v34  ;;  %v16084_v4 = vadd.f32 %v15885_v59, %v15618_v61  ;;  %v5270_v12 = vadd.f32 0.5, %v5227_v2  ;;  %v5906_v29 = vsel %vm5777_vm9, %v16059_v20, 0.0 }
 0x7a4   :  { %v16094_v50 = vadd.f32 %v15885_v59, %v15650_v42  ;;  %v18599_v43 = vcvt.s32.f32 %v15934_v21  ;;  %v5228_v5 = vcvt.s32.f32 %v16068_v23  ;;  %vm5694_vm13 = vcmp.lt.f32.partialorder %v5436_v39, 10.5 }
 0x7a5   :  { %v5395_v61 = vmul.f32 13.0, %v16009_v62  ;;  %v5610_v44 = vmul.f32 13.0, %v5567_v26  ;;  %v5483_v10 = vadd.f32 0.5, %v16079_v30  ;;  %vm5737_vm14 = vcmp.lt.f32.partialorder %v5651_v36, 10.5 }
 0x7a6   :  { %v5437_v54 = vsub.f32 %v18599_v43, %v5394_v63  ;;  %v5652_v31 = vsub.f32 %v16001_v3, %v5609_v22  ;;  %v5568_v42 = vfloor.f32 %v5525_v24  ;;  %v16105_v55 = vfloor.f32 %v5312_v7  ;;  %v16115_v63 = vpop.f32.mrf.mxu1  ;;  %vm5780_vm0 = vmand %vm5694_vm13, %vm5737_vm14 }
 0x7a7   :  { %v6041_v21 = vadd.f32 %v6040_v51, %v5999_v47  ;;  %v6000_v33 = vmul.f32 %v5906_v29, %v5906_v29  ;;  %v5907_v27 = vsel %vm5778_vm11, %v16084_v4, 0.0  ;;  %v5313_v58 = vmul.f32 0.07692308, %v5270_v12 }
 0x7a8   :  { %v5908_v35 = vsel %vm5779_vm12, %v16094_v50, 0.0  ;;  %v16111_v34 = vadd.f32 %v15885_v59, %v15690_v49  ;;  %vm5695_vm15 = vcmp.lt.f32.partialorder %v5437_v54, 10.5  ;;  %v5271_v28 = vadd.f32 0.5, %v5228_v5 }
 0x7a9   :  { %v18600_v3 = vcvt.s32.f32 %v15953_v25  ;;  %v5653_v51 = vsub.f32 %v16009_v62, %v5610_v44  ;;  %v5526_v32 = vmul.f32 0.07692308, %v5483_v10  ;;  %v16122_v13 = vadd.s32 256, %v15294_v16 }
 0x7aa   :  { %vm5738_vm1 = vcmp.lt.f32.partialorder %v5652_v31, 10.5  ;;  %v5396_v49 = vmul.f32 13.0, %v16032_v45  ;;  %v5611_v26 = vmul.f32 13.0, %v5568_v42  ;;  %v5484_v36 = vadd.f32 0.5, %v16105_v55 }
 0x7ab   :  { %v5438_v47 = vsub.f32 %v18600_v3, %v5395_v61  ;;  %v5948_v22 = vadd.f32 %v5947_v6, %v5906_v29  ;;  %v6042_v24 = vadd.f32 %v6041_v21, %v6000_v33  ;;  %v6001_v7 = vmul.f32 %v5907_v27, %v5907_v27  ;;  %vm5781_vm2 = vmand %vm5695_vm15, %vm5738_vm1 }
 0x7ac   :  { %v16126_v39 = vfloor.f32 %v5313_v58  ;;  %v6002_v12 = vmul.f32 %v5908_v35, %v5908_v35  ;;  %v5909_v25 = vsel %vm5780_vm0, %v16111_v34, 0.0  ;;  %v16131_v62 = vadd.f32 %v15885_v59, %v15735_v37 }
 0x7ad   :  { %v5314_v43 = vmul.f32 0.07692308, %v5271_v28  ;;  %vm5696_vm3 = vcmp.lt.f32.partialorder %v5438_v47, 10.5  ;;  %vm16134_vm4 = vcmp.lt.f32.partialorder %v5653_v51, 10.5  ;;  %v5569_v6 = vfloor.f32 %v5526_v32 }
 0x7ae   :  { %v5229_v29 = vcvt.s32.f32 %v16122_v13  ;;  %v5439_v44 = vsub.f32 %v5224_v56, %v5396_v49  ;;  %v5654_v10 = vsub.f32 %v16032_v45, %v5611_v26  ;;  %v5527_v31 = vmul.f32 0.07692308, %v5484_v36  ;;  %v16154_v45 = vpop.f32.mrf.mxu1  ;;  %vm5782_vm5 = vmand %vm5696_vm3, %vm16134_vm4 }
 0x7af   :  { %v16143_v37 = vadd.s32 264, %v15294_v16  ;;  %v5949_v42 = vadd.f32 %v5948_v22, %v5907_v27  ;;  %v6043_v54 = vadd.f32 %v6042_v24, %v6001_v7  ;;  %v6003_v21 = vmul.f32 %v5909_v25, %v5909_v25 }
 0x7b0   :  { %v5485_v33 = vadd.f32 0.5, %v16126_v39  ;;  %v5910_v58 = vsel %vm5781_vm2, %v16131_v62, 0.0  ;;  %v16149_v28 = vadd.f32 %v15885_v59, %v15788_v11  ;;  %v5397_v60 = vmul.f32 13.0, %v16079_v30 }
 0x7b1   :  { %v16152_v56 = vfloor.f32 %v5314_v43  ;;  %v5950_v3 = vadd.f32 %v5949_v42, %v5908_v35  ;;  %v6044_v51 = vadd.f32 %v6043_v54, %v6002_v12  ;;  %v5612_v27 = vmul.f32 13.0, %v5569_v6 }
 0x7b2   :  { %v5272_v32 = vadd.f32 0.5, %v5229_v29  ;;  %vm5697_vm6 = vcmp.lt.f32.partialorder %v5439_v44, 10.5  ;;  %vm5740_vm7 = vcmp.lt.f32.partialorder %v5654_v10, 10.5  ;;  %v5570_v11 = vfloor.f32 %v5527_v31 }
 0x7b3   :  { %v17160_v49 = vcvt.s32.f32 %v16143_v37  ;;  %v5951_v26 = vadd.f32 %v5950_v3, %v5909_v25  ;;  %v6045_v36 = vadd.f32 %v6044_v51, %v6003_v21  ;;  %v6004_v22 = vmul.f32 %v5910_v58, %v5910_v58  ;;  %vm5783_vm8 = vmand %vm5697_vm6, %vm5740_vm7 }
 0x7b4   :  { %v5528_v24 = vmul.f32 0.07692308, %v5485_v33  ;;  %v5911_v35 = vsel %vm5782_vm5, %v16149_v28, 0.0  ;;  %v16165_v7 = vadd.f32 %v15885_v59, %v15851_v17  ;;  %v5440_v47 = vsub.f32 %v5225_v19, %v5397_v60 }
 0x7b5   :  { %v5486_v12 = vadd.f32 0.5, %v16152_v56  ;;  %v5655_v43 = vsub.f32 %v16079_v30, %v5612_v27  ;;  %v5398_v61 = vmul.f32 13.0, %v16105_v55  ;;  %v5315_v25 = vmul.f32 0.07692308, %v5272_v32 }
 0x7b6   :  { %v16173_v6 = vadd.s32 272, %v15294_v16  ;;  %v5613_v44 = vmul.f32 13.0, %v5570_v11  ;;  %v5273_v10 = vadd.f32 0.5, %v17160_v49  ;;  %v5952_v17 = vadd.f32 %v5951_v26, %v5910_v58  ;;  %v16188_v32 = vpop.f32.mrf.mxu1 }
 0x7b7   :  { %v6046_v31 = vadd.f32 %v6045_v36, %v6004_v22  ;;  %v6005_v42 = vmul.f32 %v5911_v35, %v5911_v35  ;;  %v5571_v41 = vfloor.f32 %v5528_v24  ;;  %v5912_v19 = vsel %vm5783_vm8, %v16165_v7, 0.0 }
 0x7b8   :  { %vm5698_vm9 = vcmp.lt.f32.partialorder %v5440_v47, 10.5  ;;  %v5529_v54 = vmul.f32 0.07692308, %v5486_v12  ;;  %v16179_v30 = vadd.s32 280, %v15294_v16  ;;  %vm5741_vm10 = vcmp.lt.f32.partialorder %v5655_v43, 10.5 }
 0x7b9   :  { %v18603_v21 = vcvt.s32.f32 %v16014_v9  ;;  %v16183_v60 = vfloor.f32 %v5315_v25  ;;  %v17156_v3 = vcvt.s32.f32 %v16173_v6  ;;  %v5656_v58 = vsub.f32 %v16105_v55, %v5613_v44  ;;  %vm5784_vm11 = vmand %vm5698_vm9, %vm5741_vm10 }
 0x7ba   :  { %v5399_v51 = vmul.f32 13.0, %v16126_v39  ;;  %v5316_v27 = vmul.f32 0.07692308, %v5273_v10  ;;  %v16191_v11 = vadd.s32 288, %v15294_v16  ;;  %v16195_v26 = vadd.f32 %v15885_v59, %v15891_v57 }
 0x7bb   :  { %v5441_v33 = vsub.f32 %v18603_v21, %v5398_v61  ;;  %v5614_v9 = vmul.f32 13.0, %v5571_v41  ;;  %v16198_v36 = vadd.s32 296, %v15294_v16  ;;  %v5953_v22 = vadd.f32 %v5952_v17, %v5911_v35 }
 0x7bc   :  { %18604 = vst [vmem:[#allocation87_spill] sm:$0xff] %v16195_v26  ;;  %v6047_v24 = vadd.f32 %v6046_v31, %v6005_v42  ;;  %v5572_v55 = vfloor.f32 %v5529_v54  ;;  %v17155_v12 = vcvt.s32.f32 %v16179_v30  ;;  %v6006_v43 = vmul.f32 %v5912_v19, %v5912_v19 }
 0x7bd   :  { %vm5699_vm12 = vcmp.lt.f32.partialorder %v5441_v33, 10.5  ;;  %v5487_v61 = vadd.f32 0.5, %v16183_v60  ;;  %v5274_v25 = vadd.f32 0.5, %v17156_v3  ;;  %vm5742_vm13 = vcmp.lt.f32.partialorder %v5656_v58, 10.5  ;;  %v7371_v33 = vld [vmem:[%s16796_s9 + $0x20] sm:$0xff] }
 0x7be   :  { %v5442_v57 = vsub.f32 %v5227_v2, %v5399_v51  ;;  %v16207_v44 = vfloor.f32 %v5316_v27  ;;  %v17154_v35 = vcvt.s32.f32 %v16191_v11  ;;  %v5913_v47 = vsel %vm5784_vm11, %v16195_v26, 0.0  ;;  %vm5785_vm14 = vmand %vm5699_vm12, %vm5742_vm13  ;;  %6690 = vmatpush.bf16.msrb.mxu3 %v7371_v33 }
 0x7bf   :  { %v5657_v10 = vsub.f32 %v16126_v39, %v5614_v9  ;;  %v5400_v17 = vmul.f32 13.0, %v16152_v56  ;;  %v17157_v31 = vcvt.s32.f32 %v16198_v36  ;;  %v16216_v42 = vadd.f32 %v15885_v59, %v15948_v18  ;;  %v16225_v9 = vpop.f32.mrf.mxu1 }
 0x7c0   :  { %v5615_v41 = vmul.f32 13.0, %v5572_v55  ;;  %v5275_v0 = vadd.f32 0.5, %v17155_v12  ;;  %v16221_v2 = vadd.s32 304, %v15294_v16  ;;  %v5954_v54 = vadd.f32 %v5953_v22, %v5912_v19  ;;  %v7379_v19 = vld [vmem:[%s16796_s9 + $0x60] sm:$0xff] }
 0x7c1   :  { %18605 = vst [vmem:[#allocation88_spill] sm:$0xff] %v16216_v42  ;;  %v6048_v21 = vadd.f32 %v6047_v24, %v6006_v43  ;;  %v5530_v39 = vmul.f32 0.07692308, %v5487_v61  ;;  %v5317_v58 = vmul.f32 0.07692308, %v5274_v25  ;;  %v6007_v51 = vmul.f32 %v5913_v47, %v5913_v47  ;;  %6629 = vmatpush.bf16.msrb.mxu2 %v7379_v19 }
 0x7c2   :  { %v5488_v27 = vadd.f32 0.5, %v16207_v44  ;;  %v5276_v18 = vadd.f32 0.5, %v17154_v35  ;;  %v16230_v55 = vadd.s32 312, %v15294_v16  ;;  %vm5700_vm15 = vcmp.lt.f32.partialorder %v5442_v57, 10.5 }
 0x7c3   :  { %vm5743_vm0 = vcmp.lt.f32.partialorder %v5657_v10, 10.5  ;;  %v5443_v22 = vsub.f32 %v5228_v5, %v5400_v17  ;;  %v5277_v24 = vadd.f32 0.5, %v17157_v31  ;;  %v5914_v43 = vsel %vm5785_vm14, %v16216_v42, 0.0 }
 0x7c4   :  { %v5658_v61 = vsub.f32 %v16152_v56, %v5615_v41  ;;  %v5318_v25 = vmul.f32 0.07692308, %v5275_v0  ;;  %v17158_v35 = vcvt.s32.f32 %v16221_v2  ;;  %v5955_v12 = vadd.f32 %v5954_v54, %v5913_v47  ;;  %vm5786_vm1 = vmand %vm5700_vm15, %vm5743_vm0 }
 0x7c5   :  { %v16247_v3 = vadd.f32 %v15885_v59, %v15985_v38  ;;  %v5573_v10 = vfloor.f32 %v5530_v39  ;;  %v16249_v23 = vfloor.f32 %v5317_v58  ;;  %v6049_v5 = vadd.f32 %v6048_v21, %v6007_v51 }
 0x7c6   :  { %v5531_v17 = vmul.f32 0.07692308, %v5488_v27  ;;  %v5319_v31 = vmul.f32 0.07692308, %v5276_v18  ;;  %v17159_v56 = vcvt.s32.f32 %v16230_v55  ;;  %v6008_v41 = vmul.f32 %v5914_v43, %v5914_v43 }
 0x7c7   :  { %18606 = vst [vmem:[#allocation89_spill] sm:$0xff] %v16247_v3  ;;  %vm5701_vm2 = vcmp.lt.f32.partialorder %v5443_v22, 10.5  ;;  %v5401_v0 = vmul.f32 13.0, %v16183_v60  ;;  %v5320_v19 = vmul.f32 0.07692308, %v5277_v24  ;;  %vm5744_vm3 = vcmp.lt.f32.partialorder %v5658_v61, 10.5 }
 0x7c8   :  { %v16254_v47 = vfloor.f32 %v5318_v25  ;;  %v5278_v38 = vadd.f32 0.5, %v17158_v35  ;;  %v16259_v54 = vadd.s32 320, %v15294_v16  ;;  %v5915_v57 = vsel %vm5786_vm1, %v16247_v3, 0.0  ;;  %vm5787_vm4 = vmand %vm5701_vm2, %vm5744_vm3 }
 0x7c9   :  { %v16264_v21 = vadd.f32 %v15885_v59, %v16016_v1  ;;  %v5616_v39 = vmul.f32 13.0, %v5573_v10  ;;  %v5489_v58 = vadd.f32 0.5, %v16249_v23  ;;  %v5574_v51 = vfloor.f32 %v5531_v17 }
 0x7ca   :  { %v16267_v27 = vfloor.f32 %v5319_v31  ;;  %v5279_v18 = vadd.f32 0.5, %v17159_v56  ;;  %v17163_v33 = vcvt.s32.f32 %v16259_v54  ;;  %v5956_v24 = vadd.f32 %v5955_v12, %v5914_v43  ;;  %v16279_v31 = vpop.f32.mrf.mxu1 }
 0x7cb   :  { %18607 = vst [vmem:[#allocation90_spill] sm:$0xff] %v16264_v21  ;;  %v5444_v61 = vsub.f32 %v5229_v29, %v5401_v0  ;;  %v5402_v1 = vmul.f32 13.0, %v16207_v44  ;;  %v16276_v25 = vfloor.f32 %v5320_v19  ;;  %v6050_v10 = vadd.f32 %v6049_v5, %v6008_v41 }
 0x7cc   :  { %v5490_v17 = vadd.f32 0.5, %v16254_v47  ;;  %v5321_v35 = vmul.f32 0.07692308, %v5278_v38  ;;  %v5280_v56 = vadd.f32 0.5, %v17163_v33  ;;  %v5957_v49 = vadd.f32 %v5956_v24, %v5915_v57 }
 0x7cd   :  { %v6009_v12 = vmul.f32 %v5915_v57, %v5915_v57  ;;  %v5659_v22 = vsub.f32 %v16183_v60, %v5616_v39  ;;  %v5532_v43 = vmul.f32 0.07692308, %v5489_v58  ;;  %v5916_v13 = vsel %vm5787_vm4, %v16264_v21, 0.0 }
 0x7ce   :  { %v5617_v29 = vmul.f32 13.0, %v5574_v51  ;;  %v5491_v0 = vadd.f32 0.5, %v16267_v27  ;;  %v5322_v19 = vmul.f32 0.07692308, %v5279_v18  ;;  %vm5702_vm5 = vcmp.lt.f32.partialorder %v5444_v61, 10.5 }
 0x7cf   :  { %v18608_v5 = vcvt.s32.f32 %v16143_v37  ;;  %v5492_v38 = vadd.f32 0.5, %v16276_v25  ;;  %v16290_v3 = vadd.s32 328, %v15294_v16  ;;  %v5403_v57 = vmul.f32 13.0, %v16249_v23 }
 0x7d0   :  { %v5533_v24 = vmul.f32 0.07692308, %v5490_v17  ;;  %v16293_v60 = vfloor.f32 %v5321_v35  ;;  %v5323_v39 = vmul.f32 0.07692308, %v5280_v56  ;;  %v6010_v58 = vmul.f32 %v5916_v13, %v5916_v13 }
 0x7d1   :  { %v5445_v41 = vsub.f32 %v18608_v5, %v5402_v1  ;;  %vm5745_vm6 = vcmp.lt.f32.partialorder %v5659_v22, 10.5  ;;  %v5575_v51 = vfloor.f32 %v5532_v43  ;;  %v17168_v18 = vcvt.s32.f32 %v16290_v3 }
 0x7d2   :  { %v6051_v33 = vadd.f32 %v6050_v10, %v6009_v12  ;;  %v5660_v37 = vsub.f32 %v16207_v44, %v5617_v29  ;;  %v5534_v1 = vmul.f32 0.07692308, %v5491_v0  ;;  %v16297_v5 = vfloor.f32 %v5322_v19  ;;  %vm5788_vm7 = vmand %vm5702_vm5, %vm5745_vm6  ;;  %v16308_v12 = vpop.f32.mrf.mxu1 }
 0x7d3   :  { %v5958_v21 = vadd.f32 %v5957_v49, %v5916_v13  ;;  %v16301_v42 = vadd.f32 %v15885_v59, %v16055_v46  ;;  %v5535_v17 = vmul.f32 0.07692308, %v5492_v38  ;;  %v5281_v35 = vadd.f32 0.5, %v17168_v18 }
 0x7d4   :  { %v18610_v56 = vcvt.s32.f32 %v16173_v6  ;;  %v5576_v10 = vfloor.f32 %v5533_v24  ;;  %v5493_v44 = vadd.f32 0.5, %v16293_v60  ;;  %v16311_v43 = vfloor.f32 %v5323_v39 }
 0x7d5   :  { %18609 = vst [vmem:[#allocation91_spill] sm:$0xff] %v16301_v42  ;;  %v16313_v49 = vadd.f32 %v6051_v33, %v6010_v58  ;;  %vm5703_vm8 = vcmp.lt.f32.partialorder %v5445_v41, 10.5  ;;  %v5618_v46 = vmul.f32 13.0, %v5575_v51  ;;  %v5324_v13 = vmul.f32 0.07692308, %v5281_v35 }
 0x7d6   :  { %v5446_v22 = vsub.f32 %v18610_v56, %v5403_v57  ;;  %vm16315_vm9 = vcmp.lt.f32.partialorder %v5660_v37, 10.5  ;;  %v5404_v61 = vmul.f32 13.0, %v16254_v47  ;;  %v5577_v6 = vfloor.f32 %v5534_v1 }
 0x7d7   :  { %v5494_v0 = vadd.f32 0.5, %v16297_v5  ;;  %v5917_v19 = vsel %vm5788_vm7, %v16301_v42, 0.0  ;;  %v5578_v38 = vfloor.f32 %v5535_v17  ;;  %v16322_v57 = vfloor.f32 %v5324_v13  ;;  %vm5789_vm11 = vmand %vm5703_vm8, %vm16315_vm9 }
 0x7d8   :  { %v16325_v33 = vadd.s32 336, %v15294_v16  ;;  %vm5704_vm10 = vcmp.lt.f32.partialorder %v5446_v22, 10.5  ;;  %v5619_v24 = vmul.f32 13.0, %v5576_v10  ;;  %v5536_v39 = vmul.f32 0.07692308, %v5493_v44 }
 0x7d9   :  { %v5495_v58 = vadd.f32 0.5, %v16311_v43  ;;  %v16330_v51 = vadd.f32 %v15885_v59, %v16115_v63  ;;  %v5661_v37 = vsub.f32 %v16249_v23, %v5618_v46  ;;  %v5405_v1 = vmul.f32 13.0, %v16267_v27 }
 0x7da   :  { %v5239_v17 = vcvt.s32.f32 %v16325_v33  ;;  %v18613_v16 = vcvt.s32.f32 %v16179_v30  ;;  %v5620_v56 = vmul.f32 13.0, %v5577_v6  ;;  %v5537_v10 = vmul.f32 0.07692308, %v5494_v0  ;;  %v5141_v0 = vpop.f32.mrf.mxu1 }
 0x7db   :  { %v5496_v44 = vadd.f32 0.5, %v16322_v57  ;;  %v5959_v13 = vadd.f32 %v5958_v21, %v5917_v19  ;;  %v5406_v63 = vmul.f32 13.0, %v16276_v25  ;;  %v5621_v18 = vmul.f32 13.0, %v5578_v38 }
 0x7dc   :  { %v5447_v35 = vsub.f32 %v18613_v16, %v5404_v61  ;;  %v5282_v23 = vadd.f32 0.5, %v5239_v17  ;;  %v6011_v46 = vmul.f32 %v5917_v19, %v5917_v19  ;;  %v5662_v42 = vsub.f32 %v16254_v47, %v5619_v24 }
 0x7dd   :  { %v5579_v29 = vfloor.f32 %v5536_v39  ;;  %v5538_v41 = vmul.f32 0.07692308, %v5495_v58  ;;  %v5918_v26 = vsel %vm5789_vm11, %v16330_v51, 0.0  ;;  %vm5747_vm12 = vcmp.lt.f32.partialorder %v5661_v37, 10.5 }
 0x7de   :  { %v18614_v30 = vcvt.s32.f32 %v16191_v11  ;;  %v5325_v6 = vmul.f32 0.07692308, %v5282_v23  ;;  %vm5705_vm13 = vcmp.lt.f32.partialorder %v5447_v35, 10.5  ;;  %v5663_v21 = vsub.f32 %v16267_v27, %v5620_v56  ;;  %vm5790_vm14 = vmand %vm5704_vm10, %vm5747_vm12 }
 0x7df   :  { %v5580_v38 = vfloor.f32 %v5537_v10  ;;  %v5539_v16 = vmul.f32 0.07692308, %v5496_v44  ;;  %v16351_v19 = vadd.f32 %v15885_v59, %v16154_v45  ;;  %v18615_v47 = vcvt.s32.f32 %v16198_v36 }
 0x7e0   :  { %v5448_v61 = vsub.f32 %v18614_v30, %v5405_v1  ;;  %v5664_v39 = vsub.f32 %v16276_v25, %v5621_v18  ;;  %v16356_v58 = vfloor.f32 %v5325_v6  ;;  %vm5748_vm15 = vcmp.lt.f32.partialorder %v5662_v42, 10.5 }
 0x7e1   :  { %v5449_v24 = vsub.f32 %v18615_v47, %v5406_v63  ;;  %v5407_v11 = vmul.f32 13.0, %v16293_v60  ;;  %v5622_v27 = vmul.f32 13.0, %v5579_v29  ;;  %v5581_v37 = vfloor.f32 %v5538_v41  ;;  %vm5791_vm2 = vmand %vm5705_vm13, %vm5748_vm15 }
 0x7e2   :  { %v6012_v1 = vmul.f32 %v5918_v26, %v5918_v26  ;;  %vm5706_vm0 = vcmp.lt.f32.partialorder %v5448_v61, 10.5  ;;  %v5408_v56 = vmul.f32 13.0, %v16297_v5  ;;  %v5497_v45 = vadd.f32 0.5, %v16356_v58 }
 0x7e3   :  { %v16364_v36 = vadd.f32 %v15885_v59, %v16188_v32  ;;  %vm5749_vm1 = vcmp.lt.f32.partialorder %v5663_v21, 10.5  ;;  %v5623_v25 = vmul.f32 13.0, %v5580_v38  ;;  %v5582_v18 = vfloor.f32 %v5539_v16 }
 0x7e4   :  { %v5919_v22 = vsel %vm5790_vm14, %v16351_v19, 0.0  ;;  %vm5707_vm3 = vcmp.lt.f32.partialorder %v5449_v24, 10.5  ;;  %vm5750_vm4 = vcmp.lt.f32.partialorder %v5664_v39, 10.5  ;;  %v5540_v42 = vmul.f32 0.07692308, %v5497_v45  ;;  %vm16378_vm5 = vmand %vm5706_vm0, %vm5749_vm1 }
 0x7e5   :  { %v18616_v10 = vcvt.s32.f32 %v16221_v2  ;;  %v5665_v63 = vsub.f32 %v16293_v60, %v5622_v27  ;;  %v5409_v23 = vmul.f32 13.0, %v16311_v43  ;;  %v5624_v29 = vmul.f32 13.0, %v5581_v37  ;;  %vm5793_vm6 = vmand %vm5707_vm3, %vm5750_vm4 }
 0x7e6   :  { %v6053_v32 = vadd.f32 %v16313_v49, %v6011_v46  ;;  %v16375_v41 = vadd.f32 %v15885_v59, %v16225_v9  ;;  %v5137_v2 = vadd.f32 %v15885_v59, %v16279_v31  ;;  %v18619_v30 = vcvt.s32.f32 %v16230_v55  ;;  %v5144_v46 = vpop.f32.mrf.mxu1 }
 0x7e7   :  { %v5450_v44 = vsub.f32 %v18616_v10, %v5407_v11  ;;  %v5920_v6 = vsel %vm5791_vm2, %v16364_v36, 0.0  ;;  %v5666_v49 = vsub.f32 %v16297_v5, %v5623_v25  ;;  %v5410_v9 = vmul.f32 13.0, %v16322_v57 }
 0x7e8   :  { %v5451_v60 = vsub.f32 %v18619_v30, %v5408_v56  ;;  %v5625_v21 = vmul.f32 13.0, %v5582_v18  ;;  %v5960_v61 = vadd.f32 %v5959_v13, %v5918_v26  ;;  %v6054_v38 = vadd.f32 %v6053_v32, %v6012_v1  ;;  %v9257_v32 = vld [vmem:[%s16793_s6] ss:$0 sm:$0xff] }
 0x7e9   :  { %v6013_v16 = vmul.f32 %v5919_v22, %v5919_v22  ;;  %v5583_v47 = vfloor.f32 %v5540_v42  ;;  %vm5708_vm7 = vcmp.lt.f32.partialorder %v5450_v44, 10.5  ;;  %vm5751_vm8 = vcmp.lt.f32.partialorder %v5665_v63, 10.5 }
 0x7ea   :  { %v18620_v31 = vcvt.s32.f32 %v16259_v54  ;;  %v5667_v55 = vsub.f32 %v16311_v43, %v5624_v29  ;;  %v6014_v39 = vmul.f32 %v5920_v6, %v5920_v6  ;;  %v5921_v5 = vsel %vm16378_vm5, %v16375_v41, 0.0  ;;  %vm5794_vm11 = vmand %vm5708_vm7, %vm5751_vm8 }
 0x7eb   :  { %v5922_v11 = vsel %vm5793_vm6, %v5137_v2, 0.0  ;;  %vm5709_vm9 = vcmp.lt.f32.partialorder %v5451_v60, 10.5  ;;  %v5140_v26 = vadd.f32 %v15885_v59, %v16308_v12  ;;  %vm16397_vm10 = vcmp.lt.f32.partialorder %v5666_v49, 10.5 }
 0x7ec   :  { %v5452_v24 = vsub.f32 %v18620_v31, %v5409_v23  ;;  %v18623_v27 = vcvt.s32.f32 %v16290_v3  ;;  %v5668_v37 = vsub.f32 %v16322_v57, %v5625_v21  ;;  %v5961_v43 = vadd.f32 %v5960_v61, %v5919_v22  ;;  %vm5795_vm14 = vmand %vm5709_vm9, %vm16397_vm10 }
 0x7ed   :  { %v6055_v1 = vadd.f32 %v6054_v38, %v6013_v16  ;;  %v5411_v56 = vmul.f32 13.0, %v16356_v58  ;;  %v5626_v45 = vmul.f32 13.0, %v5583_v47  ;;  %v6015_v25 = vmul.f32 %v5921_v5, %v5921_v5 }
 0x7ee   :  { %v5453_v54 = vsub.f32 %v18623_v27, %v5410_v9  ;;  %v5142_v18 = vadd.f32 %v15885_v59, %v5141_v0  ;;  %vm5710_vm12 = vcmp.lt.f32.partialorder %v5452_v24, 10.5  ;;  %vm5753_vm13 = vcmp.lt.f32.partialorder %v5667_v55, 10.5  ;;  %v5146_v22 = vpop.f32.mrf.mxu1 }
 0x7ef   :  { %v5962_v12 = vadd.f32 %v5961_v43, %v5920_v6  ;;  %v6056_v42 = vadd.f32 %v6055_v1, %v6014_v39  ;;  %v6016_v10 = vmul.f32 %v5922_v11, %v5922_v11  ;;  %v5923_v3 = vsel %vm5794_vm11, %v5140_v26, 0.0  ;;  %vm5796_vm1 = vmand %vm5710_vm12, %vm5753_vm13 }
 0x7f0   :  { %v5145_v57 = vadd.f32 %v15885_v59, %v5144_v46  ;;  %vm5711_vm15 = vcmp.lt.f32.partialorder %v5453_v54, 10.5  ;;  %vm5754_vm0 = vcmp.lt.f32.partialorder %v5668_v37, 10.5  ;;  %v5454_v0 = vsub.f32 %v5239_v17, %v5411_v56 }
 0x7f1   :  { %v5963_v44 = vadd.f32 %v5962_v12, %v5921_v5  ;;  %v5669_v63 = vsub.f32 %v16356_v58, %v5626_v45  ;;  %v6057_v23 = vadd.f32 %v6056_v42, %v6015_v25  ;;  %v5924_v29 = vsel %vm5795_vm14, %v5142_v18, 0.0  ;;  %vm5797_vm2 = vmand %vm5711_vm15, %vm5754_vm0 }
 0x7f2   :  { %v5147_v35 = vadd.f32 %v9257_v32, %v5146_v22  ;;  %v6017_v30 = vmul.f32 %v5923_v3, %v5923_v3  ;;  %v5925_v60 = vsel %vm5796_vm1, %v5145_v57, 0.0  ;;  %v6018_v49 = vmul.f32 %v5924_v29, %v5924_v29 }
 0x7f3   :  { %v5964_v2 = vadd.f32 %v5963_v44, %v5922_v11  ;;  %v6058_v59 = vadd.f32 %v6057_v23, %v6016_v10  ;;  %vm5712_vm3 = vcmp.lt.f32.partialorder %v5454_v0, 10.5  ;;  %vm5755_vm4 = vcmp.lt.f32.partialorder %v5669_v63, 10.5 }
 0x7f4   :  { %v5926_v33 = vsel %vm5797_vm2, %v5147_v35, 0.0  ;;  %v6019_v58 = vmul.f32 %v5925_v60, %v5925_v60  ;;  %vm5798_vm5 = vmand %vm5712_vm3, %vm5755_vm4  ;;  %vm5969_vm6 = vcmask 1041408  }
 0x7f5   :  { %v5965_v6 = vadd.f32 %v5964_v2, %v5923_v3  ;;  %v6059_v17 = vadd.f32 %v6058_v59, %v6017_v30  ;;  %v6020_v38 = vmul.f32 %v5926_v33, %v5926_v33  ;;  %v16423_v59 = vld [vmem:[%s16794_s7] ss:$0 sm:$0xff] }
 0x7f6   :  { %v5149_v9 = vpop.f32.mrf.mxu1 }
 0x7f7   :  { %v5966_v46 = vadd.f32 %v5965_v6, %v5924_v29  ;;  %v6060_v21 = vadd.f32 %v6059_v17, %v6018_v49  ;;  %v5150_v16 = vadd.f32 %v9257_v32, %v5149_v9  ;;  %v16430_v6 = vld [vmem:[%s16795_s8] ss:$0 sm:$0xff]  ;;  %v18624_v17 = vld [vmem:[#allocation78_spill] sm:$0xff] }
 0x7f9   :  { %v5967_v61 = vadd.f32 %v5966_v46, %v5925_v60  ;;  %v6061_v47 = vadd.f32 %v6060_v21, %v6019_v58  ;;  %v5927_v24 = vsel %vm5798_vm5, %v5150_v16, 0.0  ;;  %v18625_v58 = vld [vmem:[#allocation79_spill] sm:$0xff]  ;;  %v18626_v21 = vld [vmem:[#allocation80_spill] sm:$0xff] }
 0x7fa   :  { %v5970_v55 = vsel %vm5969_vm6, %v5927_v24, 0.0  ;;  %v6021_v39 = vmul.f32 %v5927_v24, %v5927_v24 }
 0x7fb   :  { %v5968_v31 = vadd.f32 %v5967_v61, %v5926_v33  ;;  %v6062_v5 = vadd.f32 %v6061_v47, %v6020_v38  ;;  %v18627_v38 = vld [vmem:[#allocation81_spill] sm:$0xff]  ;;  %v18628_v47 = vld [vmem:[#allocation82_spill] sm:$0xff] }
 0x7fc   :  { %v6063_v26 = vsel %vm5969_vm6, %v6021_v39, 0.0  ;;  %v18631_v39 = vld [vmem:[#allocation85_spill] sm:$0xff] }
 0x7fd   :  { %v5971_v11 = vadd.f32 %v5970_v55, %v5968_v31  ;;  %v6064_v27 = vadd.f32 %v6063_v26, %v6062_v5 }
 0x7fe   :  { %v5151_v54 = vpop.f32.mrf.mxu1 }
 0x7ff   :  { %v5972_v13 = vrot.slane %v5971_v11, 4  ;;  %v6065_v43 = vrot.slane %v6064_v27, 4 }
 0x801   :  { %v5973_v37 = vadd.f32 %v5972_v13, %v5971_v11  ;;  %v6066_v56 = vadd.f32 %v6065_v43, %v6064_v27 }
 0x803   :  { %v5974_v1 = vrot.slane %v5973_v37, 2  ;;  %v6067_v25 = vrot.slane %v6066_v56, 2 }
 0x805   :  { %v5975_v45 = vadd.f32 %v5974_v1, %v5973_v37  ;;  %v6068_v12 = vadd.f32 %v6067_v25, %v6066_v56  ;;  %v18632_v37 = vld [vmem:[#allocation86_spill] sm:$0xff] }
 0x807   :  { %v5976_v18 = vrot.slane %v5975_v45, 1  ;;  %v6069_v10 = vrot.slane %v6068_v12, 1 }
 0x809   :  { %v5977_v42 = vadd.f32 %v5976_v18, %v5975_v45  ;;  %v6070_v57 = vadd.f32 %v6069_v10, %v6068_v12  ;;  %v18633_v45 = vld [vmem:[#allocation87_spill] sm:$0xff]  ;;  %v18634_v18 = vld [vmem:[#allocation88_spill] sm:$0xff] }
 0x80b   :  { %v16416_v3 = vmul.f32 0.004132231, %v5977_v42  ;;  %v6071_v22 = vmul.f32 0.004132231, %v6070_v57  ;;  %v18635_v42 = vld [vmem:[#allocation89_spill] sm:$0xff] }
 0x80d   :  { %v6072_v44 = vmul.f32 %v16416_v3, %v16416_v3  ;;  %v6085_v49 = vsub.f32 %v15416_v14, %v16416_v3  ;;  %v6086_v33 = vsub.f32 %v15405_v40, %v16416_v3  ;;  %v6087_v46 = vsub.f32 %v18624_v17, %v16416_v3  ;;  %v18629_v14 = vld [vmem:[#allocation83_spill] sm:$0xff]  ;;  %v18630_v40 = vld [vmem:[#allocation84_spill] sm:$0xff] }
 0x80e   :  { %v6088_v9 = vsub.f32 %v18625_v58, %v16416_v3  ;;  %v6089_v61 = vsub.f32 %v18626_v21, %v16416_v3  ;;  %v6090_v16 = vsub.f32 %v18627_v38, %v16416_v3  ;;  %v6091_v31 = vsub.f32 %v18628_v47, %v16416_v3 }
 0x80f   :  { %v6073_v0 = vsub.f32 %v6071_v22, %v6072_v44  ;;  %v6092_v24 = vsub.f32 %v18629_v14, %v16416_v3  ;;  %v6093_v55 = vsub.f32 %v18630_v40, %v16416_v3  ;;  %v6094_v5 = vsub.f32 %v18631_v39, %v16416_v3 }
 0x810   :  { %v6095_v11 = vsub.f32 %v15721_v53, %v16416_v3  ;;  %v6096_v26 = vsub.f32 %v15792_v8, %v16416_v3  ;;  %v6097_v13 = vsub.f32 %v15823_v48, %v16416_v3  ;;  %v6098_v27 = vsub.f32 %v15845_v52, %v16416_v3 }
 0x811   :  { %v6074_v63 = vadd.f32 1e-05, %v6073_v0  ;;  %v6099_v54 = vsub.f32 %v15889_v15, %v16416_v3  ;;  %v6100_v43 = vsub.f32 %v18632_v37, %v16416_v3  ;;  %v6106_v1 = vsub.f32 %v16059_v20, %v16416_v3 }
 0x812   :  { %v6107_v53 = vsub.f32 %v16084_v4, %v16416_v3  ;;  %v6108_v8 = vsub.f32 %v16094_v50, %v16416_v3  ;;  %v6109_v48 = vsub.f32 %v16111_v34, %v16416_v3  ;;  %v6110_v52 = vsub.f32 %v16131_v62, %v16416_v3  ;;  %v7370_v62 = vld [vmem:[%s16796_s9 + $0x18] sm:$0xff] }
 0x813   :  { %9234 = vrsqrt.f32 %v6074_v63  ;;  %vm6081_vm8 = vweird.f32 %v6074_v63  ;;  %v6111_v15 = vsub.f32 %v16149_v28, %v16416_v3  ;;  %v6112_v56 = vsub.f32 %v16165_v7, %v16416_v3  ;;  %6691 = vmatpush.bf16.msrb.mxu3 %v7370_v62 }
 0x814   :  { %v6113_v25 = vsub.f32 %v18633_v45, %v16416_v3  ;;  %v6114_v12 = vsub.f32 %v18634_v18, %v16416_v3  ;;  %v6115_v10 = vsub.f32 %v18635_v42, %v16416_v3 }
 0x819   :  { %v9235_v23 = vpop.eup %9234 }
 0x81a   :  { %v6076_v29 = vmul.f32 %v9235_v23, %v6074_v63  ;;  %vm6082_vm7 = vweird.f32 %v9235_v23  ;;  %v18636_v63 = vld [vmem:[#allocation90_spill] sm:$0xff] }
 0x81b   :  { %vm6083_vm9 = vmor %vm6081_vm8, %vm6082_vm7 }
 0x81c   :  { %v6077_v32 = vmul.f32 %v9235_v23, %v6076_v29  ;;  %v18637_v29 = vld [vmem:[#allocation91_spill] sm:$0xff] }
 0x81e   :  { %v6078_v35 = vmul.f32 0.5, %v6077_v32  ;;  %v6117_v32 = vsub.f32 %v18637_v29, %v16416_v3 }
 0x820   :  { %v6079_v2 = vsub.f32 1.5, %v6078_v35 }
 0x822   :  { %v6080_v30 = vmul.f32 %v9235_v23, %v6079_v2 }
 0x824   :  { %v16425_v60 = vsel %vm6083_vm9, %v9235_v23, %v6080_v30  ;;  %v6116_v23 = vsub.f32 %v18636_v63, %v16416_v3  ;;  %v6118_v30 = vsub.f32 %v16330_v51, %v16416_v3 }
 0x825   :  { %v6128_v57 = vmul.f32 %v6085_v49, %v16425_v60  ;;  %v6129_v22 = vmul.f32 %v6086_v33, %v16425_v60  ;;  %v6130_v44 = vmul.f32 %v6087_v46, %v16425_v60  ;;  %v6131_v0 = vmul.f32 %v6088_v9, %v16425_v60 }
 0x826   :  { %v6132_v35 = vmul.f32 %v6089_v61, %v16425_v60  ;;  %v6133_v2 = vmul.f32 %v6090_v16, %v16425_v60  ;;  %v6119_v49 = vsub.f32 %v16351_v19, %v16416_v3  ;;  %v6120_v33 = vsub.f32 %v16364_v36, %v16416_v3 }
 0x827   :  { %v6134_v17 = vmul.f32 %v6091_v31, %v16425_v60  ;;  %v6135_v58 = vmul.f32 %v6092_v24, %v16425_v60  ;;  %v6175_v9 = vmul.f32 %v16423_v59, %v6128_v57  ;;  %v6176_v21 = vmul.f32 %v16423_v59, %v6129_v22 }
 0x828   :  { %v6136_v61 = vmul.f32 %v6093_v55, %v16425_v60  ;;  %v6137_v38 = vmul.f32 %v6094_v5, %v16425_v60  ;;  %v6177_v16 = vmul.f32 %v16423_v59, %v6130_v44  ;;  %v6178_v47 = vmul.f32 %v16423_v59, %v6131_v0 }
 0x829   :  { %v6138_v14 = vmul.f32 %v6095_v11, %v16425_v60  ;;  %v6139_v31 = vmul.f32 %v6096_v26, %v16425_v60  ;;  %v6179_v40 = vmul.f32 %v16423_v59, %v6132_v35  ;;  %v6180_v24 = vmul.f32 %v16423_v59, %v6133_v2 }
 0x82a   :  { %v6140_v39 = vmul.f32 %v6097_v13, %v16425_v60  ;;  %v6141_v37 = vmul.f32 %v6098_v27, %v16425_v60  ;;  %v6142_v55 = vmul.f32 %v6099_v54, %v16425_v60  ;;  %v6181_v5 = vmul.f32 %v16423_v59, %v6134_v17 }
 0x82b   :  { %v6143_v57 = vmul.f32 %v6100_v43, %v16425_v60  ;;  %v6222_v22 = vadd.f32 %v16430_v6, %v6175_v9  ;;  %v6223_v11 = vadd.f32 %v16430_v6, %v6176_v21  ;;  %v6182_v26 = vmul.f32 %v16423_v59, %v6135_v58 }
 0x82c   :  { %v6183_v44 = vmul.f32 %v16423_v59, %v6136_v61  ;;  %v6224_v0 = vadd.f32 %v16430_v6, %v6177_v16  ;;  %v6225_v13 = vadd.f32 %v16430_v6, %v6178_v47  ;;  %v6184_v27 = vmul.f32 %v16423_v59, %v6137_v38 }
 0x82d   :  { %v6185_v54 = vmul.f32 %v16423_v59, %v6138_v14  ;;  %v6226_v35 = vadd.f32 %v16430_v6, %v6179_v40  ;;  %v6227_v43 = vadd.f32 %v16430_v6, %v6180_v24  ;;  %v6228_v2 = vadd.f32 %v16430_v6, %v6181_v5 }
 0x82e   :  { %v6265_v17 = vmax.f32 %v6222_v22, 0.0  ;;  %v6266_v9 = vmax.f32 %v6223_v11, 0.0  ;;  %v6186_v58 = vmul.f32 %v16423_v59, %v6139_v31  ;;  %v6229_v21 = vadd.f32 %v16430_v6, %v6182_v26 }
 0x82f   :  { %v6267_v61 = vmax.f32 %v6224_v0, 0.0  ;;  %v6268_v16 = vmax.f32 %v6225_v13, 0.0  ;;  %v6187_v47 = vmul.f32 %v16423_v59, %v6140_v39  ;;  %v6230_v38 = vadd.f32 %v16430_v6, %v6183_v44 }
 0x830   :  { %v6269_v46 = vmax.f32 %v6226_v35, 0.0  ;;  %6308 = vst [vmem:[#allocation4] sm:$0xff] %v6265_v17  ;;  %v6188_v14 = vmul.f32 %v16423_v59, %v6141_v37  ;;  %v6231_v40 = vadd.f32 %v16430_v6, %v6184_v27  ;;  %v6270_v24 = vmax.f32 %v6227_v43, 0.0 }
 0x831   :  { %6309 = vst [vmem:[#allocation4 + $0x8] sm:$0xff] %v6266_v9  ;;  %v6189_v5 = vmul.f32 %v16423_v59, %v6142_v55  ;;  %v6232_v31 = vadd.f32 %v16430_v6, %v6185_v54  ;;  %v6271_v22 = vmax.f32 %v6228_v2, 0.0  ;;  %v6190_v11 = vmul.f32 %v16423_v59, %v6143_v57 }
 0x832   :  { %6310 = vst [vmem:[#allocation4 + $0x10] sm:$0xff] %v6267_v61  ;;  %v6233_v39 = vadd.f32 %v16430_v6, %v6186_v58  ;;  %v6272_v26 = vmax.f32 %v6229_v21, 0.0  ;;  %v6149_v37 = vmul.f32 %v6106_v1, %v16425_v60  ;;  %v6234_v44 = vadd.f32 %v16430_v6, %v6187_v47 }
 0x833   :  { %6311 = vst [vmem:[#allocation4 + $0x18] sm:$0xff] %v6268_v16  ;;  %v6273_v0 = vmax.f32 %v6230_v38, 0.0  ;;  %v6150_v55 = vmul.f32 %v6107_v53, %v16425_v60  ;;  %v6235_v57 = vadd.f32 %v16430_v6, %v6188_v14  ;;  %v6274_v13 = vmax.f32 %v6231_v40, 0.0 }
 0x834   :  { %6312 = vst [vmem:[#allocation4 + $0x20] sm:$0xff] %v6269_v46  ;;  %v6151_v27 = vmul.f32 %v6108_v8, %v16425_v60  ;;  %v6236_v20 = vadd.f32 %v16430_v6, %v6189_v5  ;;  %v6275_v1 = vmax.f32 %v6232_v31, 0.0  ;;  %v6152_v46 = vmul.f32 %v6109_v48, %v16425_v60  ;;  %v7378_v48 = vld [vmem:[%s16796_s9 + $0x58] sm:$0xff] }
 0x835   :  { %6313 = vst [vmem:[#allocation4 + $0x28] sm:$0xff] %v6270_v24  ;;  %v6237_v4 = vadd.f32 %v16430_v6, %v6190_v11  ;;  %v6276_v53 = vmax.f32 %v6233_v39, 0.0  ;;  %v6153_v54 = vmul.f32 %v6110_v52, %v16425_v60  ;;  %v6277_v50 = vmax.f32 %v6234_v44, 0.0  ;;  %6630 = vmatpush.bf16.msrb.mxu2 %v7378_v48 }
 0x836   :  { %6314 = vst [vmem:[#allocation4 + $0x30] sm:$0xff] %v6271_v22  ;;  %v6154_v8 = vmul.f32 %v6111_v15, %v16425_v60  ;;  %v6196_v35 = vmul.f32 %v16423_v59, %v6149_v37  ;;  %v6278_v34 = vmax.f32 %v6235_v57, 0.0  ;;  %v6155_v52 = vmul.f32 %v6112_v56, %v16425_v60 }
 0x837   :  { %6315 = vst [vmem:[#allocation4 + $0x38] sm:$0xff] %v6272_v26  ;;  %v6197_v28 = vmul.f32 %v16423_v59, %v6150_v55  ;;  %v6279_v15 = vmax.f32 %v6236_v20, 0.0  ;;  %v6198_v43 = vmul.f32 %v16423_v59, %v6151_v27  ;;  %v6280_v2 = vmax.f32 %v6237_v4, 0.0  ;;  %v7369_v55 = vld [vmem:[%s16796_s9 + $0x10] sm:$0xff] }
 0x838   :  { %6316 = vst [vmem:[#allocation4 + $0x40] sm:$0xff] %v6273_v0  ;;  %v6156_v17 = vmul.f32 %v6113_v25, %v16425_v60  ;;  %v6199_v9 = vmul.f32 %v16423_v59, %v6152_v46  ;;  %v6157_v7 = vmul.f32 %v6114_v12, %v16425_v60  ;;  %v6200_v56 = vmul.f32 %v16423_v59, %v6153_v54  ;;  %v7377_v0 = vld [vmem:[%s16796_s9 + $0x50] sm:$0xff] }
 0x839   :  { %6317 = vst [vmem:[#allocation4 + $0x48] sm:$0xff] %v6274_v13  ;;  %v6243_v58 = vadd.f32 %v16430_v6, %v6196_v35  ;;  %v6158_v21 = vmul.f32 %v6115_v10, %v16425_v60  ;;  %v6201_v45 = vmul.f32 %v16423_v59, %v6154_v8  ;;  %v6244_v25 = vadd.f32 %v16430_v6, %v6197_v28 }
 0x83a   :  { %6318 = vst [vmem:[#allocation4 + $0x50] sm:$0xff] %v6275_v1  ;;  %v6159_v18 = vmul.f32 %v6116_v23, %v16425_v60  ;;  %v6202_v12 = vmul.f32 %v16423_v59, %v6155_v52  ;;  %v6245_v61 = vadd.f32 %v16430_v6, %v6198_v43  ;;  %v6160_v42 = vmul.f32 %v6117_v32, %v16425_v60 }
 0x83b   :  { %6319 = vst [vmem:[#allocation4 + $0x58] sm:$0xff] %v6276_v53  ;;  %v6203_v10 = vmul.f32 %v16423_v59, %v6156_v17  ;;  %v6246_v16 = vadd.f32 %v16430_v6, %v6199_v9  ;;  %v6161_v63 = vmul.f32 %v6118_v30, %v16425_v60  ;;  %v6204_v23 = vmul.f32 %v16423_v59, %v6157_v7  ;;  %v6365_v43 = vld [vmem:[#allocation4 + $0x1b] ss:$2 sm:$0x1f] }
 0x83c   :  { %6320 = vst [vmem:[#allocation4 + $0x60] sm:$0xff] %v6277_v50  ;;  %v6247_v47 = vadd.f32 %v16430_v6, %v6200_v56  ;;  %v6286_v38 = vmax.f32 %v6243_v58, 0.0  ;;  %v6162_v29 = vmul.f32 %v6119_v49, %v16425_v60  ;;  %v6205_v32 = vmul.f32 %v16423_v59, %v6158_v21  ;;  %6631 = vmatpush.bf16.msrb.mxu2 %v7377_v0  ;;  %v6351_v7 = vld [vmem:[#allocation4] ss:$2 sm:$0x1f] }
 0x83d   :  { %6321 = vst [vmem:[#allocation4 + $0x68] sm:$0xff] %v6278_v34  ;;  %v6248_v14 = vadd.f32 %v16430_v6, %v6201_v45  ;;  %v6287_v40 = vmax.f32 %v6244_v25, 0.0  ;;  %v6163_v51 = vmul.f32 %v6120_v33, %v16425_v60  ;;  %v6206_v30 = vmul.f32 %v16423_v59, %v6159_v18  ;;  %6692 = vmatpush.bf16.msrb.mxu3 %v7369_v55  ;;  %v6370_v9 = vld [vmem:[#allocation4 + $0x28] ss:$2 sm:$0x1f] }
 0x83e   :  { %6322 = vst [vmem:[#allocation4 + $0x70] sm:$0xff] %v6279_v15  ;;  %v6249_v24 = vadd.f32 %v16430_v6, %v6202_v12  ;;  %v6288_v5 = vmax.f32 %v6245_v61, 0.0  ;;  %v18638_v19 = vsub.f32 %v16375_v41, %v16416_v3  ;;  %v6207_v31 = vmul.f32 %v16423_v59, %v6160_v42  ;;  %v6375_v35 = vld [vmem:[#allocation4 + $0x34] ss:$2 sm:$0x1f] }
 0x83f   :  { %6323 = vst [vmem:[#allocation4 + $0x78] sm:$0xff] %v6280_v2  ;;  %v6250_v22 = vadd.f32 %v16430_v6, %v6203_v10  ;;  %v6289_v11 = vmax.f32 %v6246_v16, 0.0  ;;  %v6208_v39 = vmul.f32 %v16423_v59, %v6161_v63  ;;  %v6251_v36 = vadd.f32 %v16430_v6, %v6204_v23  ;;  %v6377_v34 = vld [vmem:[#allocation4 + $0x35] ss:$2 sm:$0x1f] }
 0x840   :  { %v6164_v49 = vmul.f32 %v18638_v19, %v16425_v60  ;;  %v6290_v33 = vmax.f32 %v6247_v47, 0.0  ;;  %6329 = vst [vmem:[#allocation4 + $0xa8] sm:$0xff] %v6286_v38  ;;  %v6209_v26 = vmul.f32 %v16423_v59, %v6162_v29  ;;  %v6252_v37 = vadd.f32 %v16430_v6, %v6205_v32  ;;  %v6380_v48 = vld [vmem:[#allocation4 + $0x41] ss:$2 sm:$0x1f] }
 0x841   :  { %v6291_v44 = vmax.f32 %v6248_v14, 0.0  ;;  %6330 = vst [vmem:[#allocation4 + $0xb0] sm:$0xff] %v6287_v40  ;;  %v6210_v41 = vmul.f32 %v16423_v59, %v6163_v51  ;;  %v6253_v3 = vadd.f32 %v16430_v6, %v6206_v30  ;;  %v6292_v60 = vmax.f32 %v6249_v24, 0.0  ;;  %v6382_v52 = vld [vmem:[#allocation4 + $0x42] ss:$2 sm:$0x1f] }
 0x842   :  { %6331 = vst [vmem:[#allocation4 + $0xb8] sm:$0xff] %v6288_v5  ;;  %v6211_v57 = vmul.f32 %v16423_v59, %v6164_v49  ;;  %v6254_v13 = vadd.f32 %v16430_v6, %v6207_v31  ;;  %v6293_v27 = vmax.f32 %v6250_v22, 0.0  ;;  %v6255_v20 = vadd.f32 %v16430_v6, %v6208_v39  ;;  %v6363_v15 = vld [vmem:[#allocation4 + $0x1a] ss:$2 sm:$0x1f] }
 0x843   :  { %6332 = vst [vmem:[#allocation4 + $0xc0] sm:$0xff] %v6289_v11  ;;  %v6294_v1 = vmax.f32 %v6251_v36, 0.0  ;;  %v6256_v46 = vadd.f32 %v16430_v6, %v6209_v26  ;;  %v6295_v4 = vmax.f32 %v6252_v37, 0.0  ;;  %v6257_v53 = vadd.f32 %v16430_v6, %v6210_v41  ;;  %v6368_v2 = vld [vmem:[#allocation4 + $0x27] ss:$2 sm:$0x1f] }
 0x844   :  { %6333 = vst [vmem:[#allocation4 + $0xc8] sm:$0xff] %v6290_v33  ;;  %v6296_v54 = vmax.f32 %v6253_v3, 0.0  ;;  %v6258_v59 = vadd.f32 %v16430_v6, %v6211_v57  ;;  %v6297_v50 = vmax.f32 %v6254_v13, 0.0  ;;  %v6298_v8 = vmax.f32 %v6255_v20, 0.0 }
 0x845   :  { %6334 = vst [vmem:[#allocation4 + $0xd0] sm:$0xff] %v6291_v44  ;;  %v6299_v62 = vmax.f32 %v6256_v46, 0.0  ;;  %v6300_v28 = vmax.f32 %v6257_v53, 0.0  ;;  %v6353_v56 = vld [vmem:[#allocation4 + $0x1] ss:$2 sm:$0x1f]  ;;  %v6378_v45 = vmax.f32 %v6375_v35, %v6377_v34  ;;  %v6383_v25 = vmax.f32 %v6380_v48, %v6382_v52 }
 0x846   :  { %6335 = vst [vmem:[#allocation4 + $0xd8] sm:$0xff] %v6292_v60  ;;  %v6301_v17 = vmax.f32 %v6258_v59, 0.0  ;;  %v6356_v58 = vld [vmem:[#allocation4 + $0xd] ss:$2 sm:$0x1f]  ;;  %v6366_v63 = vmax.f32 %v6363_v15, %v6365_v43  ;;  %v6371_v23 = vmax.f32 %v6368_v2, %v6370_v9  ;;  %v6354_v51 = vmax.f32 %v6351_v7, %v6353_v56 }
 0x847   :  { %6336 = vst [vmem:[#allocation4 + $0xe0] sm:$0xff] %v6293_v27  ;;  %v6358_v21 = vld [vmem:[#allocation4 + $0xe] ss:$2 sm:$0x1f]  ;;  %v6384_v32 = vmax.f32 %v6378_v45, %v6383_v25 }
 0x848   :  { %6337 = vst [vmem:[#allocation4 + $0xe8] sm:$0xff] %v6294_v1  ;;  %v6411_v12 = vld [vmem:[#allocation4 + $0xa9] ss:$2 sm:$0x1f]  ;;  %v6359_v30 = vmax.f32 %v6356_v58, %v6358_v21  ;;  %v6372_v49 = vmax.f32 %v6366_v63, %v6371_v23 }
 0x849   :  { %6338 = vst [vmem:[#allocation4 + $0xf0] sm:$0xff] %v6295_v4  ;;  %v6413_v61 = vld [vmem:[#allocation4 + $0xaa] ss:$2 sm:$0x1f] }
 0x84a   :  { %6339 = vst [vmem:[#allocation4 + $0xf8] sm:$0xff] %v6296_v54  ;;  %v6416_v47 = vld [vmem:[#allocation4 + $0xb6] ss:$2 sm:$0x1f]  ;;  %v6414_v19 = vmax.f32 %v6411_v12, %v6413_v61  ;;  %v6360_v33 = vmax.f32 %v6354_v51, %v6359_v30  ;;  %v7368_v12 = vld [vmem:[%s16796_s9 + $0x8] sm:$0xff]  ;;  %v7375_v51 = vld [vmem:[%s16796_s9 + $0x40] sm:$0xff] }
 0x84b   :  { %6340 = vst [vmem:[#allocation4 + $0x100] sm:$0xff] %v6297_v50  ;;  %v6423_v6 = vld [vmem:[#allocation4 + $0xc3] ss:$2 sm:$0x1f]  ;;  %6693 = vmatpush.bf16.msrb.mxu3 %v7368_v12 }
 0x84c   :  { %6341 = vst [vmem:[#allocation4 + $0x108] sm:$0xff] %v6298_v8  ;;  %v6425_v18 = vld [vmem:[#allocation4 + $0xc4] ss:$2 sm:$0x1f] }
 0x84d   :  { %6342 = vst [vmem:[#allocation4 + $0x110] sm:$0xff] %v6299_v62  ;;  %v6428_v10 = vld [vmem:[#allocation4 + $0xd0] ss:$2 sm:$0x1f]  ;;  %v6426_v40 = vmax.f32 %v6423_v6, %v6425_v18  ;;  %v7367_v30 = vld [vmem:[%s16796_s9] sm:$0xff] }
 0x84e   :  { %6343 = vst [vmem:[#allocation4 + $0x118] sm:$0xff] %v6300_v28  ;;  %v6435_v42 = vld [vmem:[#allocation4 + $0xdd] ss:$2 sm:$0x1f]  ;;  %v7376_v18 = vld [vmem:[%s16796_s9 + $0x48] sm:$0xff] }
 0x84f   :  { %6344 = vst [vmem:[#allocation4 + $0x120] sm:$0xff] %v6301_v17  ;;  %v6437_v16 = vld [vmem:[#allocation4 + $0xde] ss:$2 sm:$0x1f]  ;;  %6632 = vmatpush.bf16.msrb.mxu2 %v7376_v18  ;;  %6694 = vmatpush.bf16.msrb.mxu3 %v7367_v30 }
 0x850   :  { %v6438_v38 = vmax.f32 %v6435_v42, %v6437_v16  ;;  %v6440_v29 = vld [vmem:[#allocation4 + $0xea] ss:$2 sm:$0x1f]  ;;  %v6442_v14 = vld [vmem:[#allocation4 + $0xeb] ss:$2 sm:$0x1f] }
 0x851   :  { %v6443_v24 = vmax.f32 %v6440_v29, %v6442_v14  ;;  %v6430_v5 = vld [vmem:[#allocation4 + $0xd1] ss:$2 sm:$0x1f]  ;;  %6385 = vst [vmem:[#allocation5 + $0xa] sm:$0x1f] %v6384_v32 }
 0x852   :  { %v6431_v31 = vmax.f32 %v6428_v10, %v6430_v5  ;;  %v6418_v22 = vld [vmem:[#allocation4 + $0xb7] ss:$2 sm:$0x1f]  ;;  %6373 = vst [vmem:[#allocation5 + $0x5] sm:$0x1f] %v6372_v49 }
 0x853   :  { %v6444_v11 = vmax.f32 %v6438_v38, %v6443_v24  ;;  %v6419_v39 = vmax.f32 %v6416_v47, %v6418_v22  ;;  %6361 = vst [vmem:[#allocation5] sm:$0x1f] %v6360_v33  ;;  %v6387_v37 = vld [vmem:[#allocation4 + $0x4e] ss:$2 sm:$0x1f]  ;;  %6633 = vmatpush.bf16.msrb.mxu2 %v7375_v51  ;;  %v7398_v24 = vld [vmem:[%s16796_s9 + $0xf8] sm:$0xff] }
 0x854   :  { %v6432_v36 = vmax.f32 %v6426_v40, %v6431_v31  ;;  %v6389_v44 = vld [vmem:[#allocation4 + $0x4f] ss:$2 sm:$0x1f]  ;;  %v6392_v41 = vld [vmem:[#allocation4 + $0x5b] ss:$2 sm:$0x1f]  ;;  %6885 = vmatpush.bf16.msra.mxu3 %v7398_v24 }
 0x855   :  { %6445 = vst [vmem:[#allocation5 + $0x23] sm:$0x1f] %v6444_v11  ;;  %v6420_v26 = vmax.f32 %v6414_v19, %v6419_v39  ;;  %v6390_v3 = vmax.f32 %v6387_v37, %v6389_v44  ;;  %v6394_v60 = vld [vmem:[#allocation4 + $0x5c] ss:$2 sm:$0x1f]  ;;  %v7397_v22 = vld [vmem:[%s16796_s9 + $0xf0] sm:$0xff] }
 0x856   :  { %6433 = vst [vmem:[#allocation5 + $0x1e] sm:$0x1f] %v6432_v36  ;;  %v6395_v55 = vmax.f32 %v6392_v41, %v6394_v60  ;;  %v6447_v20 = vld [vmem:[#allocation4 + $0xf7] ss:$2 sm:$0x1f]  ;;  %v7396_v39 = vld [vmem:[%s16796_s9 + $0xe8] sm:$0xff] }
 0x857   :  { %6421 = vst [vmem:[#allocation5 + $0x19] sm:$0x1f] %v6420_v26  ;;  %v6449_v46 = vld [vmem:[#allocation4 + $0xf8] ss:$2 sm:$0x1f]  ;;  %v7388_v36 = vld [vmem:[%s16796_s9 + $0xa8] sm:$0xff] }
 0x858   :  { %v6396_v13 = vmax.f32 %v6390_v3, %v6395_v55  ;;  %v6450_v4 = vmax.f32 %v6447_v20, %v6449_v46  ;;  %v6452_v53 = vld [vmem:[#allocation4 + $0x104] ss:$2 sm:$0x1f]  ;;  %v6454_v54 = vld [vmem:[#allocation4 + $0x105] ss:$2 sm:$0x1f]  ;;  %6886 = vmatpush.bf16.msra.mxu3 %v7397_v22 }
 0x859   :  { %v6455_v50 = vmax.f32 %v6452_v53, %v6454_v54  ;;  %v6399_v8 = vld [vmem:[#allocation4 + $0x68] ss:$2 sm:$0x1f]  ;;  %v6401_v35 = vld [vmem:[#allocation4 + $0x69] ss:$2 sm:$0x1f] }
 0x85a   :  { %6397 = vst [vmem:[#allocation5 + $0xf] sm:$0x1f] %v6396_v13  ;;  %v6404_v34 = vld [vmem:[#allocation4 + $0x75] ss:$2 sm:$0x1f]  ;;  %v6402_v52 = vmax.f32 %v6399_v8, %v6401_v35  ;;  %v7395_v26 = vld [vmem:[%s16796_s9 + $0xe0] sm:$0xff] }
 0x85b   :  { %v6456_v62 = vmax.f32 %v6450_v4, %v6455_v50  ;;  %v6406_v28 = vld [vmem:[#allocation4 + $0x76] ss:$2 sm:$0x1f]  ;;  %v6459_v15 = vld [vmem:[#allocation4 + $0x111] ss:$2 sm:$0x1f] }
 0x85c   :  { %v6531_v0 = vld [vmem:[#allocation5 + $0xa] ss:$25 sm:$0x3]  ;;  %v6536_v48 = vld [vmem:[#allocation5 + $0xb] ss:$25 sm:$0x3]  ;;  %v6407_v43 = vmax.f32 %v6404_v34, %v6406_v28  ;;  %6887 = vmatpush.bf16.msra.mxu3 %v7396_v39 }
 0x85d   :  { %6532 = vrot.lane.b32.xlu1 %v6531_v0, %s9289_s18  ;;  %v6526_v57 = vld [vmem:[#allocation5 + $0x9] ss:$25 sm:$0x3]  ;;  %v6464_v17 = vld [vmem:[#allocation4 + $0x11e] ss:$2 sm:$0x1f] }
 0x85e   :  { %6527 = vrot.lane.b32.xlu2 %v6526_v57, %s9290_s19  ;;  %v6472_v27 = vld [vmem:[#allocation5 + $0x1] ss:$25 sm:$0x3]  ;;  %v6482_v1 = vld [vmem:[#allocation5 + $0x3] ss:$25 sm:$0x3]  ;;  %v6408_v7 = vmax.f32 %v6402_v52, %v6407_v43 }
 0x85f   :  { %6473 = vrot.lane.b32.xlu0 %v6472_v27, %s9290_s19  ;;  %v6477_v59 = vld [vmem:[#allocation5 + $0x2] ss:$25 sm:$0x3]  ;;  %6457 = vst [vmem:[#allocation5 + $0x28] sm:$0x1f] %v6456_v62  ;;  %v7390_v5 = vld [vmem:[%s16796_s9 + $0xb8] sm:$0xff] }
 0x860   :  { %v6461_v2 = vld [vmem:[#allocation4 + $0x112] ss:$2 sm:$0x1f]  ;;  %v6466_v6 = vld [vmem:[#allocation4 + $0x11f] ss:$2 sm:$0x1f]  ;;  %6803 = vmatpush.bf16.msra.mxu2 %v7390_v5  ;;  %6888 = vmatpush.bf16.msra.mxu3 %v7395_v26 }
 0x861   :  { %v6462_v9 = vmax.f32 %v6459_v15, %v6461_v2  ;;  %v6467_v56 = vmax.f32 %v6464_v17, %v6466_v6  ;;  %6409 = vst [vmem:[#allocation5 + $0x14] sm:$0x1f] %v6408_v7  ;;  %v6546_v21 = vld [vmem:[#allocation5 + $0xd] ss:$25 sm:$0x3]  ;;  %v7389_v11 = vld [vmem:[%s16796_s9 + $0xb0] sm:$0xff] }
 0x862   :  { %v6541_v45 = vld [vmem:[#allocation5 + $0xc] ss:$25 sm:$0x3]  ;;  %v6487_v25 = vld [vmem:[#allocation5 + $0x4] ss:$25 sm:$0x3] }
 0x863   :  { %v6468_v58 = vmax.f32 %v6462_v9, %v6467_v56  ;;  %v6497_v61 = vld [vmem:[#allocation5 + $0x6] ss:$25 sm:$0x3]  ;;  %v6492_v42 = vld [vmem:[#allocation5 + $0x5] ss:$25 sm:$0x3] }
 0x864   :  { %v6551_v10 = vld [vmem:[#allocation5 + $0xe] ss:$25 sm:$0x3]  ;;  %6804 = vmatpush.bf16.msra.mxu2 %v7389_v11  ;;  %v7393_v55 = vld [vmem:[%s16796_s9 + $0xd0] sm:$0xff]  ;;  %v7392_v46 = vld [vmem:[%s16796_s9 + $0xc8] sm:$0xff] }
 0x865   :  { %6483 = vrot.lane.b32.xlu1 %v6482_v1, %s9286_s28  ;;  %6469 = vst [vmem:[#allocation5 + $0x2d] sm:$0x1f] %v6468_v58  ;;  %v6502_v23 = vld [vmem:[#allocation5 + $0x7] ss:$25 sm:$0x3]  ;;  %v7387_v37 = vld [vmem:[%s16796_s9 + $0xa0] sm:$0xff] }
 0x866   :  { %6478 = vrot.lane.b32.xlu2 %v6477_v59, %s9289_s18  ;;  %v6703_v16 = vld [vmem:[#allocation5 + $0x11] ss:$25 sm:$0x3]  ;;  %v6556_v63 = vld [vmem:[#allocation5 + $0xf] ss:$25 sm:$0x3] }
 0x867   :  { %6537 = vrot.lane.b32.xlu0 %v6536_v48, %s9286_s28  ;;  %v6708_v38 = vld [vmem:[#allocation5 + $0x12] ss:$25 sm:$0x3]  ;;  %v6713_v29 = vld [vmem:[#allocation5 + $0x13] ss:$25 sm:$0x3] }
 0x868   :  { %6805 = vmatpush.bf16.msra.mxu2 %v7388_v36  ;;  %v7394_v3 = vld [vmem:[%s16796_s9 + $0xd8] sm:$0xff]  ;;  %v7385_v57 = vld [vmem:[%s16796_s9 + $0x90] sm:$0xff]  ;;  %v7384_v4 = vld [vmem:[%s16796_s9 + $0x88] sm:$0xff] }
 0x869   :  { %v7386_v60 = vld [vmem:[%s16796_s9 + $0x98] sm:$0xff]  ;;  %6889 = vmatpush.bf16.msra.mxu3 %v7394_v3  ;;  %v6470_v54 = vld [vmem:[#allocation5] ss:$25 sm:$0x3]  ;;  %v7391_v62 = vld [vmem:[%s16796_s9 + $0xc0] sm:$0xff] }
 0x86a   :  { %v6524_v13 = vld [vmem:[#allocation5 + $0x8] ss:$25 sm:$0x3]  ;;  %v7383_v52 = vld [vmem:[%s16796_s9 + $0x80] sm:$0xff] }
 0x86b   :  { %v6701_v18 = vld [vmem:[#allocation5 + $0x10] ss:$25 sm:$0x3]  ;;  %v7401_v36 = vld [vmem:[%s16798_s11 + $0x10] sm:$0xff] }
 0x86c   :  { %v6718_v47 = vld [vmem:[#allocation5 + $0x14] ss:$25 sm:$0x3]  ;;  %v6733_v32 = vld [vmem:[#allocation5 + $0x17] ss:$25 sm:$0x3]  ;;  %6806 = vmatpush.bf16.msra.mxu2 %v7387_v37 }
 0x86d   :  { %6547 = vrot.lane.b32.xlu1 %v6546_v21, %s9293_s23  ;;  %v6723_v14 = vld [vmem:[#allocation5 + $0x15] ss:$25 sm:$0x3]  ;;  %v6728_v40 = vld [vmem:[#allocation5 + $0x16] ss:$25 sm:$0x3]  ;;  %6890 = vmatpush.bf16.msra.mxu3 %v7393_v55 }
 0x86e   :  { %6542 = vrot.lane.b32.xlu2 %v6541_v45, %s9292_s21  ;;  %v7403_v22 = vld [vmem:[%s16798_s11 + $0x20] sm:$0xff]  ;;  %v7402_v11 = vld [vmem:[%s16798_s11 + $0x18] sm:$0xff]  ;;  %v7413_v37 = vld [vmem:[%s16800_s13 + $0x30] sm:$0xff] }
 0x86f   :  { %6488 = vrot.lane.b32.xlu0 %v6487_v25, %s9292_s21  ;;  %v7414_v26 = vld [vmem:[%s16800_s13 + $0x38] sm:$0xff] }
 0x870   :  { %6807 = vmatpush.bf16.msra.mxu2 %v7386_v60  ;;  %v7412_v60 = vld [vmem:[%s16800_s13 + $0x28] sm:$0xff] }
 0x871   :  { %6891 = vmatpush.bf16.msra.mxu3 %v7392_v46 }
 0x874   :  { %6808 = vmatpush.bf16.msra.mxu2 %v7385_v57  ;;  %v7410_v57 = vld [vmem:[%s16800_s13 + $0x18] sm:$0xff] }
 0x875   :  { %6498 = vrot.lane.b32.xlu1 %v6497_v61, %s9294_s3  ;;  %6892 = vmatpush.bf16.msra.mxu3 %v7391_v62  ;;  %v9230_v62 = vld [vmem:[%s16799_s12] ss:$0 sm:$0xff] }
 0x876   :  { %6493 = vrot.lane.b32.xlu2 %v6492_v42, %s9293_s23 }
 0x877   :  { %6552 = vrot.lane.b32.xlu0 %v6551_v10, %s9294_s3 }
 0x878   :  { %6809 = vmatpush.bf16.msra.mxu2 %v7384_v4  ;;  %v9229_v4 = vld [vmem:[%s16797_s10] ss:$0 sm:$0xff] }
 0x87c   :  { %6810 = vmatpush.bf16.msra.mxu2 %v7383_v52 }
 0x87d   :  { %6704 = vrot.lane.b32.xlu1 %v6703_v16, %s9290_s19 }
 0x87e   :  { %6557 = vrot.lane.b32.xlu2 %v6556_v63, %s9295_s4 }
 0x87f   :  { %6503 = vrot.lane.b32.xlu0 %v6502_v23, %s9295_s4 }
 0x885   :  { %6719 = vrot.lane.b32.xlu1 %v6718_v47, %s9292_s21 }
 0x886   :  { %6709 = vrot.lane.b32.xlu2 %v6708_v38, %s9289_s18 }
 0x887   :  { %6714 = vrot.lane.b32.xlu0 %v6713_v29, %s9286_s28 }
 0x88d   :  { %6734 = vrot.lane.b32.xlu1 %v6733_v32, %s9295_s4 }
 0x88e   :  { %6724 = vrot.lane.b32.xlu2 %v6723_v14, %s9293_s23  ;;  %v6818_v14 = vld [vmem:[#allocation5 + $0x18] ss:$25 sm:$0x3] }
 0x88f   :  { %6729 = vrot.lane.b32.xlu0 %v6728_v40, %s9294_s3  ;;  %v6819_v24 = vpack.c.bf16 %v6818_v14, %v6818_v14  ;;  %s9296_s3 = smov [#allocation6]  }
 0x890   :  { %s7076_s4 = sshll.u32 %s9296_s3, 4  ;;  %s7077_s4 = int_to_ptr.vmem [resolvable:$true] %s7076_s4 }
 0x8b8   :  { %v6528_v19 = vpop.permute.xlu2 %6527 }
 0x8b9   :  { %v6529_v20 = vadd.f32 %v6528_v19, %v6524_v13  ;;  %v7406_v19 = vld [vmem:[%s16798_s11 + $0x38] sm:$0xff]  ;;  %v7409_v13 = vld [vmem:[%s16800_s13 + $0x10] sm:$0xff] }
 0x8c0   :  { %v6479_v49 = vpop.permute.xlu2 %6478 }
 0x8c8   :  { %v6543_v41 = vpop.permute.xlu2 %6542 }
 0x8cf   :  { %v6533_v31 = vpop.permute.xlu1 %6532 }
 0x8d0   :  { %v6534_v1 = vadd.f32 %v6533_v31, %v6529_v20  ;;  %v6494_v53 = vpop.permute.xlu2 %6493  ;;  %v7404_v31 = vld [vmem:[%s16798_s11 + $0x28] sm:$0xff] }
 0x8d1   :  { %v6474_v33 = vpop.permute.xlu0 %6473 }
 0x8d2   :  { %v6475_v50 = vadd.f32 %v6474_v33, %v6470_v54  ;;  %v7400_v33 = vld [vmem:[%s16798_s11 + $0x8] sm:$0xff] }
 0x8d4   :  { %v6480_v34 = vadd.f32 %v6479_v49, %v6475_v50  ;;  %v7405_v49 = vld [vmem:[%s16798_s11 + $0x30] sm:$0xff] }
 0x8d7   :  { %v6484_v44 = vpop.permute.xlu1 %6483 }
 0x8d8   :  { %v6485_v28 = vadd.f32 %v6484_v44, %v6480_v34  ;;  %v6558_v9 = vpop.permute.xlu2 %6557  ;;  %v7408_v34 = vld [vmem:[%s16800_s13 + $0x8] sm:$0xff] }
 0x8d9   :  { %v6538_v0 = vpop.permute.xlu0 %6537 }
 0x8da   :  { %v6539_v8 = vadd.f32 %v6538_v0, %v6534_v1  ;;  %v7411_v0 = vld [vmem:[%s16800_s13 + $0x20] sm:$0xff] }
 0x8dc   :  { %v6544_v48 = vadd.f32 %v6543_v41, %v6539_v8  ;;  %v7399_v41 = vld [vmem:[%s16798_s11] sm:$0xff] }
 0x8df   :  { %v6548_v27 = vpop.permute.xlu1 %6547 }
 0x8e0   :  { %v6549_v15 = vadd.f32 %v6548_v27, %v6544_v48  ;;  %v6710_v42 = vpop.permute.xlu2 %6709  ;;  %v7407_v48 = vld [vmem:[%s16800_s13] sm:$0xff]  ;;  %s7078_s13 = sshll.u32 %s16802_s15, 4  ;;  %s7079_s13 = int_to_ptr.hbm [resolvable:$true] %s7078_s13 }
 0x8e1   :  { %v6489_v59 = vpop.permute.xlu0 %6488 }
 0x8e2   :  { %v6490_v2 = vadd.f32 %v6489_v59, %v6485_v28 }
 0x8e4   :  { %v6495_v7 = vadd.f32 %v6494_v53, %v6490_v2 }
 0x8e7   :  { %v6499_v35 = vpop.permute.xlu1 %6498 }
 0x8e8   :  { %v6500_v21 = vadd.f32 %v6499_v35, %v6495_v7  ;;  %v6725_v38 = vpop.permute.xlu2 %6724 }
 0x8e9   :  { %v6553_v43 = vpop.permute.xlu0 %6552 }
 0x8ea   :  { %v6554_v17 = vadd.f32 %v6553_v43, %v6549_v15 }
 0x8ec   :  { %v6559_v6 = vadd.f32 %v6558_v9, %v6554_v17  ;;  %v9231_v17 = vld [vmem:[%s16801_s14] ss:$0 sm:$0xff] }
 0x8ee   :  { %v6560_v56 = vpack.c.bf16 %v6559_v6, %v6559_v6 }
 0x8ef   :  { %v6705_v58 = vpop.permute.xlu1 %6704 }
 0x8f0   :  { %6634 = vmatmul.bf16.vlgmr.msrb.gmra.mxu2 %v6560_v56  ;;  %v6706_v12 = vadd.f32 %v6705_v58, %v6701_v18 }
 0x8f1   :  { %v6504_v45 = vpop.permute.xlu0 %6503  ;;  %6974 = vmatpush.bf16.msrb.mxu2 %v7406_v19 }
 0x8f2   :  { %v6505_v25 = vadd.f32 %v6504_v45, %v6500_v21  ;;  %v6711_v10 = vadd.f32 %v6710_v42, %v6706_v12 }
 0x8f4   :  { %v6506_v61 = vpack.c.bf16 %v6505_v25, %v6505_v25 }
 0x8f5   :  { %6975 = vmatpush.bf16.msrb.mxu2 %v7405_v49 }
 0x8f6   :  { %6695 = vmatmul.bf16.vlgmr.msrb.gmra.mxu3 %v6506_v61 }
 0x8f7   :  { %v6720_v16 = vpop.permute.xlu1 %6719  ;;  %7057 = vmatpush.bf16.msrb.mxu3 %v7414_v26 }
 0x8f9   :  { %v6715_v63 = vpop.permute.xlu0 %6714  ;;  %6976 = vmatpush.bf16.msrb.mxu2 %v7404_v31 }
 0x8fa   :  { %v6716_v23 = vadd.f32 %v6715_v63, %v6711_v10 }
 0x8fb   :  { %7058 = vmatpush.bf16.msrb.mxu3 %v7413_v37 }
 0x8fc   :  { %v6721_v47 = vadd.f32 %v6720_v16, %v6716_v23 }
 0x8fd   :  { %6977 = vmatpush.bf16.msrb.mxu2 %v7403_v22 }
 0x8fe   :  { %v6726_v29 = vadd.f32 %v6725_v38, %v6721_v47 }
 0x8ff   :  { %v6735_v51 = vpop.permute.xlu1 %6734  ;;  %7059 = vmatpush.bf16.msrb.mxu3 %v7412_v60 }
 0x901   :  { %v6730_v32 = vpop.permute.xlu0 %6729  ;;  %6978 = vmatpush.bf16.msrb.mxu2 %v7402_v11 }
 0x902   :  { %v6731_v40 = vadd.f32 %v6730_v32, %v6726_v29 }
 0x903   :  { %7060 = vmatpush.bf16.msrb.mxu3 %v7411_v0 }
 0x904   :  { %v6736_v30 = vadd.f32 %v6735_v51, %v6731_v40 }
 0x905   :  { %6979 = vmatpush.bf16.msrb.mxu2 %v7401_v36 }
 0x906   :  { %v6737_v5 = vpack.c.bf16 %v6736_v30, %v6736_v30  ;;  %6893 = vmatmul.bf16.vlgmr.msra.gmra.mxu3 %v6819_v24 }
 0x907   :  { %7061 = vmatpush.bf16.msrb.mxu3 %v7410_v57 }
 0x908   :  { %6811 = vmatmul.bf16.vlgmr.msra.gmra.mxu2 %v6737_v5 }
 0x909   :  { %6980 = vmatpush.bf16.msrb.mxu2 %v7400_v33 }
 0x90b   :  { %7062 = vmatpush.bf16.msrb.mxu3 %v7409_v13 }
 0x90d   :  { %6981 = vmatpush.bf16.msrb.mxu2 %v7399_v41 }
 0x90f   :  { %7063 = vmatpush.bf16.msrb.mxu3 %v7408_v34 }
 0x913   :  { %7064 = vmatpush.bf16.msrb.mxu3 %v7407_v48 }
 0x973   :  { %v6635_v39 = vpop.f32.mrf.mxu2 }
 0x979   :  { %v6696_v44 = vpop.f32.mrf.mxu3 }
 0x97a   :  { %v6697_v20 = vadd.f32 %v6696_v44, %v6635_v39 }
 0x97b   :  { %v6637_v3 = vpop.f32.mrf.mxu2 }
 0x981   :  { %v6698_v55 = vpop.f32.mrf.mxu3 }
 0x989   :  { %v6894_v27 = vpop.f32.mrf.mxu3 }
 0x98b   :  { %v6812_v1 = vpop.f32.mrf.mxu2 }
 0x98c   :  { %v6816_v46 = vadd.f32 %v6812_v1, %v6697_v20 }
 0x98e   :  { %v6898_v53 = vadd.f32 %v6894_v27, %v6816_v46 }
 0x990   :  { %v6903_v54 = vadd.f32 %v9229_v4, %v6898_v53 }
 0x991   :  { %v6896_v59 = vpop.f32.mrf.mxu3 }
 0x992   :  { %v6904_v50 = vmax.f32 %v6903_v54, 0.0 }
 0x993   :  { %v6814_v8 = vpop.f32.mrf.mxu2 }
 0x994   :  { %v6905_v35 = vpack.c.bf16 %v6904_v50, %v6904_v50 }
 0x996   :  { %6982 = vmatmul.bf16.vlgmr.msrb.gmra.mxu2 %v6905_v35 }
 0xa19   :  { %v6983_v52 = vpop.f32.mrf.mxu2 }
 0xa1a   :  { %v6984_v28 = vadd.f32 %v9230_v62, %v6983_v52 }
 0xa1c   :  { %v6987_v15 = vmax.f32 %v6984_v28, 0.0 }
 0xa1e   :  { %v6988_v43 = vpack.c.bf16 %v6987_v15, %v6987_v15 }
 0xa20   :  { %7065 = vmatmul.bf16.vlgmr.msrb.gmra.mxu3 %v6988_v43 }
 0xa21   :  { %v6985_v2 = vpop.f32.mrf.mxu2 }
 0xaa3   :  { %v7066_v9 = vpop.f32.mrf.mxu3 }
 0xaa4   :  { %v7067_v6 = vadd.f32 %v9231_v17, %v7066_v9 }
 0xaa6   :  { %7070 = vst [vmem:[#allocation6] sm:$0x3] %v7067_v6 }
 0xaa7   :  { %7081 = dma.vmem_to_hbm [thread:$0]  %s7077_s4, 32, %s7079_s13, [#allocation7]  }
 0xaab   :  { %v7068_v7 = vpop.f32.mrf.mxu3 }
 0xaac   :  { %9282 = dma.done.wait [#allocation7], 32  }
 0xaad   :  { %9283 = vsyncadd [#allocation7], 4294967264 }
 0xaae   :  { %7086 = vsyncpa [#allocation7], 1 }

</bundles_post_ra>
